<compile_context>
chip_gen: v6e
topology: v6e:2x2x1
jax: 0.10.0
libtpu: 0.0.40
codegen_flags: <defaults>
</compile_context>

<pallas_src>
import functools

import jax
import jax.numpy as jnp
from jax.experimental import pallas as pl
from jax.experimental.pallas import tpu as pltpu


def _batch_parallel_params():
    """compiler_params marking the (batch) grid axis parallel (megacore sharding)."""
    cp_cls = getattr(pltpu, "CompilerParams", None)
    if cp_cls is None:  # very old naming fallback
        cp_cls = getattr(pltpu, "TPUCompilerParams")
    return cp_cls(dimension_semantics=("parallel",))


_BATCH_PARALLEL = _batch_parallel_params()


# ----------------------------------------------------------------------------- kernels
def _conv3x3_bn_kernel(xpad_ref, w_ref, scale_ref, shift_ref, o_ref):
    """3x3 conv (padding=1, no bias) + folded per-channel scale/shift, one batch elem."""
    _, _, _, cin = xpad_ref.shape
    _, h, w, cout = o_ref.shape
    xpad = xpad_ref[0]                                         # (H+2, W+2, Cin) f32
    acc = jnp.zeros((h * w, cout), jnp.float32)
    for dy in range(3):
        for dx in range(3):
            # TODO(synk): the offset-window reshape costs a relayout per tap; a
            # rank-3 dot_general contracting cin in place would avoid it once
            # the Mosaic lowering supports free spatial dims on the lhs.
            patch = xpad[dy:dy + h, dx:dx + w, :].reshape(h * w, cin)
            acc = acc + jnp.dot(patch.astype(jnp.bfloat16), w_ref[dy * 3 + dx],
                                preferred_element_type=jnp.float32)
    y = acc * scale_ref[...] + shift_ref[...]
    o_ref[0] = y.reshape(h, w, cout)


def _cls_head_kernel(xpad_ref, opad_ref, wx_ref, wo_ref, scale_ref, shift_ref,
                     wcls_ref, bcls_ref, out_ref):
    """cls_seg head (minus the upsample) for one batch element.

    Fuses: 3x3 conv over concat([x, out], channel) via split weights (no HBM
    concat), folded BN, and the 1x1 classifier (applied before the upsample --
    channel-mixing and spatial interpolation commute exactly).
    """
    _, _, _, cx = xpad_ref.shape
    _, _, _, co = opad_ref.shape
    _, h, w, nc = out_ref.shape
    cmid = wx_ref.shape[2]
    xpad = xpad_ref[0]
    opad = opad_ref[0]
    acc = jnp.zeros((h * w, cmid), jnp.float32)
    for dy in range(3):
        for dx in range(3):
            tap = dy * 3 + dx
            px = xpad[dy:dy + h, dx:dx + w, :].reshape(h * w, cx).astype(jnp.bfloat16)
            po = opad[dy:dy + h, dx:dx + w, :].reshape(h * w, co).astype(jnp.bfloat16)
            acc = acc + jnp.dot(px, wx_ref[tap], preferred_element_type=jnp.float32)
            acc = acc + jnp.dot(po, wo_ref[tap], preferred_element_type=jnp.float32)
    feat = acc * scale_ref[...] + shift_ref[...]               # BN (inference, folded)
    logits = jnp.dot(feat.astype(jnp.bfloat16), wcls_ref[...],
                     preferred_element_type=jnp.float32) + bcls_ref[...]
    out_ref[0] = logits.reshape(h, w, nc)


def _make_cca_kernel(transpose3):
    """Criss-cross attention kernel for one batch element.

    transpose3: callable performing an in-kernel (A,B,C)->(B,A,C) relayout
    (MXU column path), or None to fall back to a VPU broadcast-reduce column
    path (no relayout needed, but rank-4 temporaries -- demo sizes only).
    """
    use_mxu_h_path = transpose3 is not None

    def kernel(x_ref, wq_ref, bq_ref, wk_ref, bk_ref, wv_ref, bv_ref, gamma_ref,
               o_ref):
        _, h, w, c = x_ref.shape
        x = x_ref[0]                                           # (H, W, C) f32
        xb = x.reshape(h * w, c).astype(jnp.bfloat16)

        def proj(w_r, b_r):
            y = jnp.dot(xb, w_r[...], preferred_element_type=jnp.float32)
            return (y + b_r[...]).reshape(h, w, w_r.shape[1])

        q = proj(wq_ref, bq_ref)                               # (H, W, Cq) f32
        k = proj(wk_ref, bk_ref)                               # (H, W, Cq) f32
        v = proj(wv_ref, bv_ref)                               # (H, W, C)  f32
        qb = q.astype(jnp.bfloat16)
        kb = k.astype(jnp.bfloat16)
        vb = v.astype(jnp.bfloat16)

        # Row (W-direction) energies: eW[i,j,p] = sum_c q[i,j,c] k[i,p,c]   (MXU)
        eW = jnp.einsum('ijc,ipc->ijp', qb, kb,
                        preferred_element_type=jnp.float32)    # (H, W, W)
        mW = jnp.max(eW, axis=-1)                              # (H, W)

        if use_mxu_h_path:
            # Column (H-direction) path on the MXU, batched over columns j.
            qT = transpose3(q)                                 # (W, H, Cq)
            kT = transpose3(k)                                 # (W, H, Cq)
            vT = transpose3(v)                                 # (W, H, C)
            eH = jnp.einsum('jic,jpc->jip', qT.astype(jnp.bfloat16),
                            kT.astype(jnp.bfloat16),
                            preferred_element_type=jnp.float32)  # (W, H, H)
            ii = jax.lax.broadcasted_iota(jnp.int32, (w, h, h), 1)
            pp = jax.lax.broadcasted_iota(jnp.int32, (w, h, h), 2)
            eH = jnp.where(ii == pp, -jnp.inf, eH)             # the INF diagonal mask
            m = jnp.maximum(mW, jnp.max(eH, axis=-1).T)        # (H, W) joint max
            pW = jnp.exp(eW - m[:, :, None])                   # (H, W, W)
            pH = jnp.exp(eH - m.T[:, :, None])                 # (W, H, H)
            denom = jnp.sum(pW, axis=-1) + jnp.sum(pH, axis=-1).T
            oW = jnp.einsum('ijp,ipc->ijc', pW.astype(jnp.bfloat16), vb,
                            preferred_element_type=jnp.float32)   # (H, W, C)
            oHj = jnp.einsum('jip,jpc->jic', pH.astype(jnp.bfloat16),
                             vT.astype(jnp.bfloat16),
                             preferred_element_type=jnp.float32)  # (W, H, C)
            oH = transpose3(oHj)                               # (H, W, C)
        else:
            # Fallback: VPU broadcast-reduce column path in [i, p, j] ordering
            # (no relayout required).
            eH = jnp.sum(q[:, None, :, :] * k[None, :, :, :], axis=-1)  # (H, H, W)
            ii = jax.lax.broadcasted_iota(jnp.int32, (h, h, w), 0)
            pp = jax.lax.broadcasted_iota(jnp.int32, (h, h, w), 1)
            eH = jnp.where(ii == pp, -jnp.inf, eH)
            m = jnp.maximum(mW, jnp.max(eH, axis=1))           # (H, W)
            pW = jnp.exp(eW - m[:, :, None])
            pH = jnp.exp(eH - m[:, None, :])                   # (H, H, W)
            denom = jnp.sum(pW, axis=-1) + jnp.sum(pH, axis=1)
            oW = jnp.einsum('ijp,ipc->ijc', pW.astype(jnp.bfloat16), vb,
                            preferred_element_type=jnp.float32)
            oH = jnp.sum(pH[:, :, :, None] * v[None, :, :, :], axis=1)  # (H, W, C)

        inv = 1.0 / denom                                      # joint softmax denom
        o_ref[0] = x + gamma_ref[0] * (inv[:, :, None] * (oW + oH))

    return kernel


def _upsample_cls_kernel(x_ref, ah_ref, awt_ref, o_ref):
    """Bilinear (align_corners=True) upsample of an NCHW block.

    out[c] = ah @ x[c] @ awt per channel (two MXU matmuls).  The block is
    channel-major so the result is already NCHW and the (Ho, Wo) stores are
    lane-dense.
    """
    nch = x_ref.shape[1]
    ah = ah_ref[...].astype(jnp.bfloat16)                      # (Ho, H)
    awt = awt_ref[...].astype(jnp.bfloat16)                    # (W, Wo)
    for ci in range(nch):
        xc = x_ref[0, ci].astype(jnp.bfloat16)                 # (H, W)
        t = jnp.dot(ah, xc, preferred_element_type=jnp.float32)          # (Ho, W)
        o_ref[0, ci] = jnp.dot(t.astype(jnp.bfloat16), awt,
                               preferred_element_type=jnp.float32)       # (Ho, Wo)


# ----------------------------------------------------------------------------- probe
def probe_transpose3(shapes=((8, 8, 8), (8, 8, 1))):
    """Pick an in-kernel (A,B,C)->(B,A,C) relayout op that lowers on this backend."""
    candidates = []
    if hasattr(pltpu, "einshape"):
        candidates.append(lambda a: pltpu.einshape("abc->bac", a))
    candidates.append(lambda a: jnp.transpose(a, (1, 0, 2)))
    for fn in candidates:
        ok = True
        for (a, b, c) in shapes:
            x = jnp.arange(a * b * c, dtype=jnp.float32).reshape(a, b, c)

            def kern(x_ref, o_ref, _fn=fn):
                o_ref[...] = _fn(x_ref[...])

            try:
                y = pl.pallas_call(
                    kern,
                    out_shape=jax.ShapeDtypeStruct((b, a, c), jnp.float32))(x)
                ok = bool(jnp.allclose(y, jnp.transpose(x, (1, 0, 2))))
            except Exception:
                ok = False
            if not ok:
                break
        if ok:
            return fn
    return None  # fall back to the VPU broadcast-reduce column path


# ----------------------------------------------------------------------------- wrappers
def conv3x3_bn(xpad, w9, scale, shift):
    b, hp, wp, cin = xpad.shape
    h, w = hp - 2, wp - 2
    cout = w9.shape[-1]
    return pl.pallas_call(
        _conv3x3_bn_kernel,
        out_shape=jax.ShapeDtypeStruct((b, h, w, cout), jnp.float32),
        grid=(b,),
        in_specs=[
            pl.BlockSpec((1, hp, wp, cin), lambda i: (i, 0, 0, 0)),
            pl.BlockSpec((9, cin, cout), lambda i: (0, 0, 0)),
            pl.BlockSpec((1, cout), lambda i: (0, 0)),
            pl.BlockSpec((1, cout), lambda i: (0, 0)),
        ],
        out_specs=pl.BlockSpec((1, h, w, cout), lambda i: (i, 0, 0, 0)),
        compiler_params=_BATCH_PARALLEL,
    )(xpad, w9, scale, shift)


def criss_cross_attention(x, p, transpose3):
    b, h, w, c = x.shape
    cq = p['wq'].shape[1]
    return pl.pallas_call(
        _make_cca_kernel(transpose3),
        out_shape=jax.ShapeDtypeStruct((b, h, w, c), jnp.float32),
        grid=(b,),
        in_specs=[
            pl.BlockSpec((1, h, w, c), lambda i: (i, 0, 0, 0)),
            pl.BlockSpec((c, cq), lambda i: (0, 0)),
            pl.BlockSpec((1, cq), lambda i: (0, 0)),
            pl.BlockSpec((c, cq), lambda i: (0, 0)),
            pl.BlockSpec((1, cq), lambda i: (0, 0)),
            pl.BlockSpec((c, c), lambda i: (0, 0)),
            pl.BlockSpec((1, c), lambda i: (0, 0)),
            pl.BlockSpec(memory_space=pltpu.MemorySpace.SMEM),
        ],
        out_specs=pl.BlockSpec((1, h, w, c), lambda i: (i, 0, 0, 0)),
        compiler_params=_BATCH_PARALLEL,
    )(x, p['wq'], p['bq'], p['wk'], p['bk'], p['wv'], p['bv'], p['gamma'])


def cls_head(xpad, opad, p):
    b, hp, wp, cx = xpad.shape
    co = opad.shape[-1]
    h, w = hp - 2, wp - 2
    cmid = p['w_cls0_x'].shape[-1]
    nc = p['w_cls3'].shape[-1]
    return pl.pallas_call(
        _cls_head_kernel,
        out_shape=jax.ShapeDtypeStruct((b, h, w, nc), jnp.float32),
        grid=(b,),
        in_specs=[
            pl.BlockSpec((1, hp, wp, cx), lambda i: (i, 0, 0, 0)),
            pl.BlockSpec((1, hp, wp, co), lambda i: (i, 0, 0, 0)),
            pl.BlockSpec((9, cx, cmid), lambda i: (0, 0, 0)),
            pl.BlockSpec((9, co, cmid), lambda i: (0, 0, 0)),
            pl.BlockSpec((1, cmid), lambda i: (0, 0)),
            pl.BlockSpec((1, cmid), lambda i: (0, 0)),
            pl.BlockSpec((cmid, nc), lambda i: (0, 0)),
            pl.BlockSpec((1, nc), lambda i: (0, 0)),
        ],
        out_specs=pl.BlockSpec((1, h, w, nc), lambda i: (i, 0, 0, 0)),
        compiler_params=_BATCH_PARALLEL,
    )(xpad, opad, p['w_cls0_x'], p['w_cls0_o'], p['scale_cls'], p['shift_cls'],
      p['w_cls3'], p['b_cls3'])


def upsample_bilinear_nchw(x_cm, ah, awt):
    b, c, h, w = x_cm.shape
    ho, wo = ah.shape[0], awt.shape[1]
    return pl.pallas_call(
        _upsample_cls_kernel,
        out_shape=jax.ShapeDtypeStruct((b, c, ho, wo), jnp.float32),
        grid=(b,),
        in_specs=[
            pl.BlockSpec((1, c, h, w), lambda i: (i, 0, 0, 0)),
            pl.BlockSpec((ho, h), lambda i: (0, 0)),
            pl.BlockSpec((w, wo), lambda i: (0, 0)),
        ],
        out_specs=pl.BlockSpec((1, c, ho, wo), lambda i: (i, 0, 0, 0)),
        compiler_params=_BATCH_PARALLEL,
    )(x_cm, ah, awt)


# ----------------------------------------------------------------------------- glue
def _bilinear_matrix(n_in, n_out):
    """1-D linear interpolation matrix (align_corners=True)."""
    if n_in == 1:
        return jnp.ones((n_out, 1), jnp.float32)
    src = jnp.arange(n_out, dtype=jnp.float32) * (n_in - 1) / (n_out - 1)
    lo = jnp.clip(jnp.floor(src).astype(jnp.int32), 0, n_in - 2)
    frac = src - lo.astype(jnp.float32)
    rows = jnp.arange(n_out)
    a = jnp.zeros((n_out, n_in), jnp.float32)
    a = a.at[rows, lo].add(1.0 - frac)
    a = a.at[rows, lo + 1].add(frac)
    return a


def init_params(key, in_channels, num_classes, h, w, scale_factor=8):
    inter = in_channels // 4
    cq = inter // 8
    assert cq >= 1, "inter_channels must be >= 8 for the q/k projections"
    ks = jax.random.split(key, 20)
    eps = 1e-5
    bf16 = jnp.bfloat16

    def conv9(k_, cin, cout, std=0.05):
        return (std * jax.random.normal(k_, (9, cin, cout), jnp.float32)).astype(bf16)

    def mat(k_, cin, cout, std=0.1):
        return (std * jax.random.normal(k_, (cin, cout), jnp.float32)).astype(bf16)

    def bn(kg, kb, km, c):
        g = 1.0 + 0.1 * jax.random.normal(kg, (c,), jnp.float32)
        beta = 0.1 * jax.random.normal(kb, (c,), jnp.float32)
        mean = 0.1 * jax.random.normal(km, (c,), jnp.float32)
        var = jnp.ones((c,), jnp.float32)
        scale = g / jnp.sqrt(var + eps)
        shift = beta - mean * scale
        return scale.reshape(1, c), shift.reshape(1, c)

    scale_in, shift_in = bn(ks[1], ks[2], ks[3], inter)
    scale_cls, shift_cls = bn(ks[13], ks[14], ks[15], inter)

    params = {
        # conv_in: 3x3 (no bias) + BN (folded, inference mode)
        'w_in': conv9(ks[0], in_channels, inter),
        'scale_in': scale_in, 'shift_in': shift_in,
        # CrissCrossAttention (1x1 q/k/v convs, gamma residual)
        'cca': {
            'wq': mat(ks[4], inter, cq),
            'bq': 0.05 * jax.random.normal(ks[5], (1, cq), jnp.float32),
            'wk': mat(ks[6], inter, cq),
            'bk': 0.05 * jax.random.normal(ks[7], (1, cq), jnp.float32),
            'wv': mat(ks[8], inter, inter),
            'bv': 0.05 * jax.random.normal(ks[9], (1, inter), jnp.float32),
            'gamma': jnp.array([0.1], jnp.float32),   # PyTorch __init__ value is 0.0
        },
        # conv_out: 3x3 (no bias), no BN in the spec -> identity scale/shift
        'w_out': conv9(ks[10], inter, inter),
        'scale_id': jnp.ones((1, inter), jnp.float32),
        'shift_id': jnp.zeros((1, inter), jnp.float32),
        # cls_seg: 3x3 conv over concat([x, out]) (split weights) + BN + 1x1 cls
        'w_cls0_x': conv9(ks[11], in_channels, inter),
        'w_cls0_o': conv9(ks[12], inter, inter),
        'scale_cls': scale_cls, 'shift_cls': shift_cls,
        'w_cls3': mat(ks[16], inter, num_classes),
        'b_cls3': 0.05 * jax.random.normal(ks[17], (1, num_classes), jnp.float32),
        # bilinear interpolation matrices (align_corners=True)
        'ah': _bilinear_matrix(h, h * scale_factor),            # (Ho, H)
        'awt': _bilinear_matrix(w, w * scale_factor).T,         # (W, Wo)
    }
    return params


def rcca_forward(x_nchw, params, recurrence=2, transpose3=None):
    # NCHW -> NHWC
    x = jnp.transpose(x_nchw, (0, 2, 3, 1)).astype(jnp.float32)
    # TODO(synk): wrapper-side jnp.pad costs an extra HBM round trip per 3x3 conv;
    # a halo-aware index_map would avoid it at production sizes.
    xpad = jnp.pad(x, ((0, 0), (1, 1), (1, 1), (0, 0)))  # reused by conv_in + cls head
    # conv_in: 3x3 conv (no bias) + BN
    out = conv3x3_bn(xpad, params['w_in'], params['scale_in'], params['shift_in'])
    # recurrent criss-cross attention
    # TODO(synk): the recurrence could be folded into a single kernel holding the
    # feature map in VMEM scratch to save 2*recurrence HBM round trips.
    for _ in range(recurrence):
        out = criss_cross_attention(out, params['cca'], transpose3)
    # conv_out: 3x3 conv (no bias)
    out = conv3x3_bn(jnp.pad(out, ((0, 0), (1, 1), (1, 1), (0, 0))),
                     params['w_out'], params['scale_id'], params['shift_id'])
    # cls_seg: fused {3x3 conv over concat([x, out]) + BN + 1x1 classifier}, then
    # bilinear x8 upsample of the (small) num_classes-channel logits (NCHW out).
    logits = cls_head(xpad, jnp.pad(out, ((0, 0), (1, 1), (1, 1), (0, 0))), params)
    logits_cm = jnp.transpose(logits, (0, 3, 1, 2))      # tiny (B, nc, H, W) relayout
    return upsample_bilinear_nchw(logits_cm, params['ah'], params['awt'])


# ----------------------------------------------------------------------------- main
if __name__ == "__main__":
    B, IN_CH, H, W = 2, 32, 8, 8          # inter_channels = 8, q/k channels = 1
    NUM_CLASSES = 5                       # TODO(synk): undefined in the source module
    RECURRENCE = 2

    transpose3 = probe_transpose3()       # pick in-kernel relayout op (or VPU fallback)

    root = jax.random.PRNGKey(0)
    kx, kp = jax.random.split(root)
    x = jax.random.normal(kx, (B, IN_CH, H, W), jnp.float32)
    params = init_params(kp, IN_CH, NUM_CLASSES, H, W)

    fwd = jax.jit(functools.partial(rcca_forward, recurrence=RECURRENCE,
                                    transpose3=transpose3))
    y = fwd(x, params)
    jax.block_until_ready(y)
    assert y.shape == (B, NUM_CLASSES, H * 8, W * 8), y.shape
    assert bool(jnp.all(jnp.isfinite(y)))
    print("KERNEL_OK")
</pallas_src>

<mosaic_0001>
module attributes {stable_mosaic.version = 11 : i64} {
  func.func @kern(%arg0: memref<8x8x8xf32, #tpu.memory_space<vmem>>, %arg1: memref<8x8x8xf32, #tpu.memory_space<vmem>>) attributes {dimension_semantics = [], scalar_prefetch = 0 : i64, scratch_operands = 0 : i64, tpu.core_type = #tpu.core_type<tc>} {
    %c0 = arith.constant 0 : index
    %c0_0 = arith.constant 0 : index
    %c0_1 = arith.constant 0 : index
    %0 = vector.load %arg0[%c0, %c0_0, %c0_1] : memref<8x8x8xf32, #tpu.memory_space<vmem>>, vector<8x8x8xf32>
    %1 = tpu.transpose %0, [1, 0, 2] : vector<8x8x8xf32> -> vector<8x8x8xf32>
    %c0_2 = arith.constant 0 : index
    %c0_3 = arith.constant 0 : index
    %c0_4 = arith.constant 0 : index
    %2 = vector.load %arg1[%c0_2, %c0_3, %c0_4] : memref<8x8x8xf32, #tpu.memory_space<vmem>>, vector<8x8x8xf32>
    tpu.vector_store %arg1[%c0_2, %c0_3, %c0_4], %1 {strides = array<i32>} : memref<8x8x8xf32, #tpu.memory_space<vmem>>, vector<8x8x8xf32>,
    return
  }
}

module attributes {stable_mosaic.version = 11 : i64} {
  func.func @kern(%arg0: memref<8x8x8xf32, #tpu.memory_space<vmem>>, %arg1: memref<8x8x8xf32, #tpu.memory_space<vmem>>) attributes {dimension_semantics = [], scalar_prefetch = 0 : i64, scratch_operands = 0 : i64, tpu.core_type = #tpu.core_type<tc>} {
    %c0 = arith.constant 0 : index
    %c0_0 = arith.constant 0 : index
    %c0_1 = arith.constant 0 : index
    %0 = vector.load %arg0[%c0, %c0_0, %c0_1] : memref<8x8x8xf32, #tpu.memory_space<vmem>>, vector<8x8x8xf32>
    %1 = tpu.transpose %0, [1, 0, 2] : vector<8x8x8xf32> -> vector<8x8x8xf32>
    %c0_2 = arith.constant 0 : index
    %c0_3 = arith.constant 0 : index
    %c0_4 = arith.constant 0 : index
    %2 = vector.load %arg1[%c0_2, %c0_3, %c0_4] : memref<8x8x8xf32, #tpu.memory_space<vmem>>, vector<8x8x8xf32>
    tpu.vector_store %arg1[%c0_2, %c0_3, %c0_4], %1 {strides = array<i32>} : memref<8x8x8xf32, #tpu.memory_space<vmem>>, vector<8x8x8xf32>,
    return
  }
}

module attributes {stable_mosaic.version = 11 : i64} {
  func.func @kernel(%arg0: i32, %arg1: memref<1x8x8x8xf32, #tpu.memory_space<vmem>>, %arg2: memref<8x1xbf16, #tpu.memory_space<vmem>>, %arg3: memref<1x1xf32, #tpu.memory_space<vmem>>, %arg4: memref<8x1xbf16, #tpu.memory_space<vmem>>, %arg5: memref<1x1xf32, #tpu.memory_space<vmem>>, %arg6: memref<8x8xbf16, #tpu.memory_space<vmem>>, %arg7: memref<1x8xf32, #tpu.memory_space<vmem>>, %arg8: memref<1xf32, #tpu.memory_space<smem>>, %arg9: memref<1x8x8x8xf32, #tpu.memory_space<vmem>>) attributes {dimension_semantics = [#tpu.dimension_semantics<parallel>], iteration_bounds = array<i64: 2>, scalar_prefetch = 0 : i64, scratch_operands = 0 : i64, tpu.core_type = #tpu.core_type<tc>, window_params = [{transform_indices = @transform_0, window_bounds = array<i64: 1, 8, 8, 8>}, {pipeline_mode = #tpu.pipeline_mode<synchronous>, transform_indices = @transform_1, window_bounds = array<i64: 8, 1>}, {pipeline_mode = #tpu.pipeline_mode<synchronous>, transform_indices = @transform_2, window_bounds = array<i64: 1, 1>}, {pipeline_mode = #tpu.pipeline_mode<synchronous>, transform_indices = @transform_3, window_bounds = array<i64: 8, 1>}, {pipeline_mode = #tpu.pipeline_mode<synchronous>, transform_indices = @transform_4, window_bounds = array<i64: 1, 1>}, {pipeline_mode = #tpu.pipeline_mode<synchronous>, transform_indices = @transform_5, window_bounds = array<i64: 8, 8>}, {pipeline_mode = #tpu.pipeline_mode<synchronous>, transform_indices = @transform_6, window_bounds = array<i64: 1, 8>}, {transform_indices = @transform_7, window_bounds = array<i64: 1>}, {transform_indices = @transform_8, window_bounds = array<i64: 1, 8, 8, 8>}]} {
    %c0 = arith.constant 0 : index
    %c0_0 = arith.constant 0 : index
    %c0_1 = arith.constant 0 : index
    %c0_2 = arith.constant 0 : index
    %0 = vector.load %arg1[%c0, %c0_0, %c0_1, %c0_2] : memref<1x8x8x8xf32, #tpu.memory_space<vmem>>, vector<1x8x8x8xf32>
    %1 = vector.shape_cast %0 : vector<1x8x8x8xf32> to vector<8x8x8xf32>
    %2 = vector.shape_cast %1 : vector<8x8x8xf32> to vector<64x8xf32>
    %3 = arith.truncf %2 : vector<64x8xf32> to vector<64x8xbf16>
    %c0_3 = arith.constant 0 : index
    %c0_4 = arith.constant 0 : index
    %4 = vector.load %arg2[%c0_3, %c0_4] : memref<8x1xbf16, #tpu.memory_space<vmem>>, vector<8x1xbf16>
    %cst = arith.constant dense<0.000000e+00> : vector<64x1xf32>
    %5 = tpu.matmul %3, %4, %cst {dimension_numbers = #tpu.dot_dimension_numbers<[1], [0], [0], [1], [0, 0, 1, 1], [], []>} : vector<64x8xbf16>, vector<8x1xbf16>, vector<64x1xf32> -> vector<64x1xf32>
    %c0_5 = arith.constant 0 : index
    %c0_6 = arith.constant 0 : index
    %6 = vector.load %arg3[%c0_5, %c0_6] : memref<1x1xf32, #tpu.memory_space<vmem>>, vector<1x1xf32>
    %7 = vector.broadcast %6 : vector<1x1xf32> to vector<64x1xf32>
    %8 = arith.addf %5, %7 : vector<64x1xf32>
    %9 = vector.shape_cast %8 : vector<64x1xf32> to vector<8x8x1xf32>
    %c0_7 = arith.constant 0 : index
    %c0_8 = arith.constant 0 : index
    %10 = vector.load %arg4[%c0_7, %c0_8] : memref<8x1xbf16, #tpu.memory_space<vmem>>, vector<8x1xbf16>
    %cst_9 = arith.constant dense<0.000000e+00> : vector<64x1xf32>
    %11 = tpu.matmul %3, %10, %cst_9 {dimension_numbers = #tpu.dot_dimension_numbers<[1], [0], [0], [1], [0, 0, 1, 1], [], []>} : vector<64x8xbf16>, vector<8x1xbf16>, vector<64x1xf32> -> vector<64x1xf32>
    %c0_10 = arith.constant 0 : index
    %c0_11 = arith.constant 0 : index
    %12 = vector.load %arg5[%c0_10, %c0_11] : memref<1x1xf32, #tpu.memory_space<vmem>>, vector<1x1xf32>
    %13 = vector.broadcast %12 : vector<1x1xf32> to vector<64x1xf32>
    %14 = arith.addf %11, %13 : vector<64x1xf32>
    %15 = vector.shape_cast %14 : vector<64x1xf32> to vector<8x8x1xf32>
    %c0_12 = arith.constant 0 : index
    %c0_13 = arith.constant 0 : index
    %16 = vector.load %arg6[%c0_12, %c0_13] : memref<8x8xbf16, #tpu.memory_space<vmem>>, vector<8x8xbf16>
    %cst_14 = arith.constant dense<0.000000e+00> : vector<64x8xf32>
    %17 = tpu.matmul %3, %16, %cst_14 {dimension_numbers = #tpu.dot_dimension_numbers<[1], [0], [0], [1], [0, 0, 1, 1], [], []>} : vector<64x8xbf16>, vector<8x8xbf16>, vector<64x8xf32> -> vector<64x8xf32>
    %c0_15 = arith.constant 0 : index
    %c0_16 = arith.constant 0 : index
    %18 = vector.load %arg7[%c0_15, %c0_16] : memref<1x8xf32, #tpu.memory_space<vmem>>, vector<1x8xf32>
    %19 = vector.broadcast %18 : vector<1x8xf32> to vector<64x8xf32>
    %20 = arith.addf %17, %19 : vector<64x8xf32>
    %21 = vector.shape_cast %20 : vector<64x8xf32> to vector<8x8x8xf32>
    %22 = arith.truncf %9 : vector<8x8x1xf32> to vector<8x8x1xbf16>
    %23 = arith.truncf %15 : vector<8x8x1xf32> to vector<8x8x1xbf16>
    %24 = arith.truncf %21 : vector<8x8x8xf32> to vector<8x8x8xbf16>
    "tpu.trace_start"() <{level = 10 : i32, message = "ijc,ipc->ijp"}> : () -> ()
    %cst_17 = arith.constant dense<0.000000e+00> : vector<8x8x8xf32>
    %25 = tpu.matmul %22, %23, %cst_17 {dimension_numbers = #tpu.dot_dimension_numbers<[2], [2], [1], [1], [0, 0, 0, 1, 1, 1], [0], [0]>} : vector<8x8x1xbf16>, vector<8x8x1xbf16>, vector<8x8x8xf32> -> vector<8x8x8xf32>
    "tpu.trace_stop"() : () -> ()
    %cst_18 = arith.constant dense<0xFF800000> : vector<8x8xf32>
    %26 = vector.multi_reduction <maximumf>, %25, %cst_18 [2] : vector<8x8x8xf32> to vector<8x8xf32>
    %27 = vector.shape_cast %9 : vector<8x8x1xf32> to vector<8x1x8x1xf32>
    %28 = vector.shape_cast %15 : vector<8x8x1xf32> to vector<1x8x8x1xf32>
    %29 = vector.broadcast %27 : vector<8x1x8x1xf32> to vector<8x8x8x1xf32>
    %30 = vector.broadcast %28 : vector<1x8x8x1xf32> to vector<8x8x8x1xf32>
    %31 = arith.mulf %29, %30 : vector<8x8x8x1xf32>
    %cst_19 = arith.constant dense<0.000000e+00> : vector<8x8x8xf32>
    %32 = vector.multi_reduction <add>, %31, %cst_19 [3] : vector<8x8x8x1xf32> to vector<8x8x8xf32>
    %33 = tpu.iota {dimensions = array<i32: 0>} : vector<8x8x8xi32>
    %34 = tpu.iota {dimensions = array<i32: 1>} : vector<8x8x8xi32>
    %35 = arith.cmpi eq, %33, %34 : vector<8x8x8xi32>
    %cst_20 = arith.constant 0xFF800000 : f32
    %36 = vector.broadcast %cst_20 : f32 to vector<8x8x8xf32>
    %37 = arith.select %35, %36, %32 : vector<8x8x8xi1>, vector<8x8x8xf32>
    %cst_21 = arith.constant dense<0xFF800000> : vector<8x8xf32>
    %38 = vector.multi_reduction <maximumf>, %37, %cst_21 [1] : vector<8x8x8xf32> to vector<8x8xf32>
    %39 = arith.maximumf %26, %38 : vector<8x8xf32>
    %40 = vector.shape_cast %39 : vector<8x8xf32> to vector<8x8x1xf32>
    %41 = vector.broadcast %40 : vector<8x8x1xf32> to vector<8x8x8xf32>
    %42 = arith.subf %25, %41 : vector<8x8x8xf32>
    %43 = math.exp %42 : vector<8x8x8xf32>
    %44 = vector.shape_cast %39 : vector<8x8xf32> to vector<8x1x8xf32>
    %45 = vector.broadcast %44 : vector<8x1x8xf32> to vector<8x8x8xf32>
    %46 = arith.subf %37, %45 : vector<8x8x8xf32>
    %47 = math.exp %46 : vector<8x8x8xf32>
    %cst_22 = arith.constant dense<0.000000e+00> : vector<8x8xf32>
    %48 = vector.multi_reduction <add>, %43, %cst_22 [2] : vector<8x8x8xf32> to vector<8x8xf32>
    %cst_23 = arith.constant dense<0.000000e+00> : vector<8x8xf32>
    %49 = vector.multi_reduction <add>, %47, %cst_23 [1] : vector<8x8x8xf32> to vector<8x8xf32>
    %50 = arith.addf %48, %49 : vector<8x8xf32>
    %51 = arith.truncf %43 : vector<8x8x8xf32> to vector<8x8x8xbf16>
    "tpu.trace_start"() <{level = 10 : i32, message = "ijp,ipc->ijc"}> : () -> ()
    %cst_24 = arith.constant dense<0.000000e+00> : vector<8x8x8xf32>
    %52 = tpu.matmul %51, %24, %cst_24 {dimension_numbers = #tpu.dot_dimension_numbers<[2], [1], [1], [2], [0, 0, 0, 1, 1, 2], [0], [0]>} : vector<8x8x8xbf16>, vector<8x8x8xbf16>, vector<8x8x8xf32> -> vector<8x8x8xf32>
    "tpu.trace_stop"() : () -> ()
    %53 = vector.shape_cast %47 : vector<8x8x8xf32> to vector<8x8x8x1xf32>
    %54 = vector.shape_cast %21 : vector<8x8x8xf32> to vector<1x8x8x8xf32>
    %55 = vector.broadcast %53 : vector<8x8x8x1xf32> to vector<8x8x8x8xf32>
    %56 = vector.broadcast %54 : vector<1x8x8x8xf32> to vector<8x8x8x8xf32>
    %57 = arith.mulf %55, %56 : vector<8x8x8x8xf32>
    %cst_25 = arith.constant dense<0.000000e+00> : vector<8x8x8xf32>
    %58 = vector.multi_reduction <add>, %57, %cst_25 [1] : vector<8x8x8x8xf32> to vector<8x8x8xf32>
    %cst_26 = arith.constant 1.000000e+00 : f32
    %59 = vector.broadcast %cst_26 : f32 to vector<8x8xf32>
    %60 = arith.divf %59, %50 : vector<8x8xf32>
    %c0_27 = arith.constant 0 : index
    %61 = memref.load %arg8[%c0_27] : memref<1xf32, #tpu.memory_space<smem>>
    %62 = vector.shape_cast %60 : vector<8x8xf32> to vector<8x8x1xf32>
    %63 = arith.addf %52, %58 : vector<8x8x8xf32>
    %64 = vector.broadcast %62 : vector<8x8x1xf32> to vector<8x8x8xf32>
    %65 = arith.mulf %64, %63 : vector<8x8x8xf32>
    %66 = vector.broadcast %61 : f32 to vector<8x8x8xf32>
    %67 = arith.mulf %66, %65 : vector<8x8x8xf32>
    %68 = arith.addf %1, %67 : vector<8x8x8xf32>
    %c0_28 = arith.constant 0 : index
    %c0_29 = arith.constant 0 : index
    %c0_30 = arith.constant 0 : index
    %c0_31 = arith.constant 0 : index
    %69 = vector.load %arg9[%c0_28, %c0_29, %c0_30, %c0_31] : memref<1x8x8x8xf32, #tpu.memory_space<vmem>>, vector<1x8x8x8xf32>
    %70 = vector.shape_cast %69 : vector<1x8x8x8xf32> to vector<8x8x8xf32>
    %71 = vector.shape_cast %68 : vector<8x8x8xf32> to vector<1x8x8x8xf32>
    tpu.vector_store %arg9[%c0_28, %c0_29, %c0_30, %c0_31], %71 {strides = array<i32>} : memref<1x8x8x8xf32, #tpu.memory_space<vmem>>, vector<1x8x8x8xf32>,
    return
  }
  func.func @transform_0(%arg0: i32) -> (i32, i32, i32, i32) {
    %c0_i32 = arith.constant 0 : i32
    %c0_i32_0 = arith.constant 0 : i32
    %c0_i32_1 = arith.constant 0 : i32
    %c0_i32_2 = arith.constant 0 : i32
    return %arg0, %c0_i32, %c0_i32_0, %c0_i32_1 : i32, i32, i32, i32
  }
  func.func @transform_1(%arg0: i32) -> (i32, i32) {
    %c0_i32 = arith.constant 0 : i32
    %c0_i32_0 = arith.constant 0 : i32
    %c0_i32_1 = arith.constant 0 : i32
    return %c0_i32, %c0_i32_0 : i32, i32
  }
  func.func @transform_2(%arg0: i32) -> (i32, i32) {
    %c0_i32 = arith.constant 0 : i32
    %c0_i32_0 = arith.constant 0 : i32
    %c0_i32_1 = arith.constant 0 : i32
    return %c0_i32, %c0_i32_0 : i32, i32
  }
  func.func @transform_3(%arg0: i32) -> (i32, i32) {
    %c0_i32 = arith.constant 0 : i32
    %c0_i32_0 = arith.constant 0 : i32
    %c0_i32_1 = arith.constant 0 : i32
    return %c0_i32, %c0_i32_0 : i32, i32
  }
  func.func @transform_4(%arg0: i32) -> (i32, i32) {
    %c0_i32 = arith.constant 0 : i32
    %c0_i32_0 = arith.constant 0 : i32
    %c0_i32_1 = arith.constant 0 : i32
    return %c0_i32, %c0_i32_0 : i32, i32
  }
  func.func @transform_5(%arg0: i32) -> (i32, i32) {
    %c0_i32 = arith.constant 0 : i32
    %c0_i32_0 = arith.constant 0 : i32
    %c0_i32_1 = arith.constant 0 : i32
    return %c0_i32, %c0_i32_0 : i32, i32
  }
  func.func @transform_6(%arg0: i32) -> (i32, i32) {
    %c0_i32 = arith.constant 0 : i32
    %c0_i32_0 = arith.constant 0 : i32
    %c0_i32_1 = arith.constant 0 : i32
    return %c0_i32, %c0_i32_0 : i32, i32
  }
  func.func @transform_7(%arg0: i32) -> i32 {
    %c0_i32 = arith.constant 0 : i32
    %c0_i32_0 = arith.constant 0 : i32
    return %c0_i32 : i32
  }
  func.func @transform_8(%arg0: i32) -> (i32, i32, i32, i32) {
    %c0_i32 = arith.constant 0 : i32
    %c0_i32_0 = arith.constant 0 : i32
    %c0_i32_1 = arith.constant 0 : i32
    %c0_i32_2 = arith.constant 0 : i32
    return %arg0, %c0_i32, %c0_i32_0, %c0_i32_1 : i32, i32, i32, i32
  }
}

module attributes {stable_mosaic.version = 11 : i64} {
  func.func @_conv3x3_bn_kernel(%arg0: i32, %arg1: memref<1x10x10x32xf32, #tpu.memory_space<vmem>>, %arg2: memref<9x32x8xbf16, #tpu.memory_space<vmem>>, %arg3: memref<1x8xf32, #tpu.memory_space<vmem>>, %arg4: memref<1x8xf32, #tpu.memory_space<vmem>>, %arg5: memref<1x8x8x8xf32, #tpu.memory_space<vmem>>) attributes {dimension_semantics = [#tpu.dimension_semantics<parallel>], iteration_bounds = array<i64: 2>, scalar_prefetch = 0 : i64, scratch_operands = 0 : i64, tpu.core_type = #tpu.core_type<tc>, window_params = [{transform_indices = @transform_0, window_bounds = array<i64: 1, 10, 10, 32>}, {pipeline_mode = #tpu.pipeline_mode<synchronous>, transform_indices = @transform_1, window_bounds = array<i64: 9, 32, 8>}, {pipeline_mode = #tpu.pipeline_mode<synchronous>, transform_indices = @transform_2, window_bounds = array<i64: 1, 8>}, {pipeline_mode = #tpu.pipeline_mode<synchronous>, transform_indices = @transform_3, window_bounds = array<i64: 1, 8>}, {transform_indices = @transform_4, window_bounds = array<i64: 1, 8, 8, 8>}]} {
    %c0 = arith.constant 0 : index
    %c0_0 = arith.constant 0 : index
    %c0_1 = arith.constant 0 : index
    %c0_2 = arith.constant 0 : index
    %0 = vector.load %arg1[%c0, %c0_0, %c0_1, %c0_2] : memref<1x10x10x32xf32, #tpu.memory_space<vmem>>, vector<1x10x10x32xf32>
    %1 = vector.shape_cast %0 : vector<1x10x10x32xf32> to vector<10x10x32xf32>
    %cst = arith.constant 0.000000e+00 : f32
    %2 = vector.broadcast %cst : f32 to vector<64x8xf32>
    %3 = vector.extract_strided_slice %1 {offsets = [0, 0, 0], sizes = [8, 8, 32], strides = [1, 1, 1]} : vector<10x10x32xf32> to vector<8x8x32xf32>
    %4 = vector.shape_cast %3 : vector<8x8x32xf32> to vector<64x32xf32>
    %5 = arith.truncf %4 : vector<64x32xf32> to vector<64x32xbf16>
    %c0_3 = arith.constant 0 : index
    %c0_4 = arith.constant 0 : index
    %c0_5 = arith.constant 0 : index
    %6 = vector.load %arg2[%c0_3, %c0_4, %c0_5] : memref<9x32x8xbf16, #tpu.memory_space<vmem>>, vector<1x32x8xbf16>
    %7 = vector.shape_cast %6 : vector<1x32x8xbf16> to vector<32x8xbf16>
    %cst_6 = arith.constant dense<0.000000e+00> : vector<64x8xf32>
    %8 = tpu.matmul %5, %7, %cst_6 {dimension_numbers = #tpu.dot_dimension_numbers<[1], [0], [0], [1], [0, 0, 1, 1], [], []>} : vector<64x32xbf16>, vector<32x8xbf16>, vector<64x8xf32> -> vector<64x8xf32>
    %9 = arith.addf %2, %8 : vector<64x8xf32>
    %10 = vector.extract_strided_slice %1 {offsets = [0, 1, 0], sizes = [8, 8, 32], strides = [1, 1, 1]} : vector<10x10x32xf32> to vector<8x8x32xf32>
    %11 = vector.shape_cast %10 : vector<8x8x32xf32> to vector<64x32xf32>
    %12 = arith.truncf %11 : vector<64x32xf32> to vector<64x32xbf16>
    %c1 = arith.constant 1 : index
    %c0_7 = arith.constant 0 : index
    %c0_8 = arith.constant 0 : index
    %13 = vector.load %arg2[%c1, %c0_7, %c0_8] : memref<9x32x8xbf16, #tpu.memory_space<vmem>>, vector<1x32x8xbf16>
    %14 = vector.shape_cast %13 : vector<1x32x8xbf16> to vector<32x8xbf16>
    %cst_9 = arith.constant dense<0.000000e+00> : vector<64x8xf32>
    %15 = tpu.matmul %12, %14, %cst_9 {dimension_numbers = #tpu.dot_dimension_numbers<[1], [0], [0], [1], [0, 0, 1, 1], [], []>} : vector<64x32xbf16>, vector<32x8xbf16>, vector<64x8xf32> -> vector<64x8xf32>
    %16 = arith.addf %9, %15 : vector<64x8xf32>
    %17 = vector.extract_strided_slice %1 {offsets = [0, 2, 0], sizes = [8, 8, 32], strides = [1, 1, 1]} : vector<10x10x32xf32> to vector<8x8x32xf32>
    %18 = vector.shape_cast %17 : vector<8x8x32xf32> to vector<64x32xf32>
    %19 = arith.truncf %18 : vector<64x32xf32> to vector<64x32xbf16>
    %c2 = arith.constant 2 : index
    %c0_10 = arith.constant 0 : index
    %c0_11 = arith.constant 0 : index
    %20 = vector.load %arg2[%c2, %c0_10, %c0_11] : memref<9x32x8xbf16, #tpu.memory_space<vmem>>, vector<1x32x8xbf16>
    %21 = vector.shape_cast %20 : vector<1x32x8xbf16> to vector<32x8xbf16>
    %cst_12 = arith.constant dense<0.000000e+00> : vector<64x8xf32>
    %22 = tpu.matmul %19, %21, %cst_12 {dimension_numbers = #tpu.dot_dimension_numbers<[1], [0], [0], [1], [0, 0, 1, 1], [], []>} : vector<64x32xbf16>, vector<32x8xbf16>, vector<64x8xf32> -> vector<64x8xf32>
    %23 = arith.addf %16, %22 : vector<64x8xf32>
    %24 = vector.extract_strided_slice %1 {offsets = [1, 0, 0], sizes = [8, 8, 32], strides = [1, 1, 1]} : vector<10x10x32xf32> to vector<8x8x32xf32>
    %25 = vector.shape_cast %24 : vector<8x8x32xf32> to vector<64x32xf32>
    %26 = arith.truncf %25 : vector<64x32xf32> to vector<64x32xbf16>
    %c3 = arith.constant 3 : index
    %c0_13 = arith.constant 0 : index
    %c0_14 = arith.constant 0 : index
    %27 = vector.load %arg2[%c3, %c0_13, %c0_14] : memref<9x32x8xbf16, #tpu.memory_space<vmem>>, vector<1x32x8xbf16>
    %28 = vector.shape_cast %27 : vector<1x32x8xbf16> to vector<32x8xbf16>
    %cst_15 = arith.constant dense<0.000000e+00> : vector<64x8xf32>
    %29 = tpu.matmul %26, %28, %cst_15 {dimension_numbers = #tpu.dot_dimension_numbers<[1], [0], [0], [1], [0, 0, 1, 1], [], []>} : vector<64x32xbf16>, vector<32x8xbf16>, vector<64x8xf32> -> vector<64x8xf32>
    %30 = arith.addf %23, %29 : vector<64x8xf32>
    %31 = vector.extract_strided_slice %1 {offsets = [1, 1, 0], sizes = [8, 8, 32], strides = [1, 1, 1]} : vector<10x10x32xf32> to vector<8x8x32xf32>
    %32 = vector.shape_cast %31 : vector<8x8x32xf32> to vector<64x32xf32>
    %33 = arith.truncf %32 : vector<64x32xf32> to vector<64x32xbf16>
    %c4 = arith.constant 4 : index
    %c0_16 = arith.constant 0 : index
    %c0_17 = arith.constant 0 : index
    %34 = vector.load %arg2[%c4, %c0_16, %c0_17] : memref<9x32x8xbf16, #tpu.memory_space<vmem>>, vector<1x32x8xbf16>
    %35 = vector.shape_cast %34 : vector<1x32x8xbf16> to vector<32x8xbf16>
    %cst_18 = arith.constant dense<0.000000e+00> : vector<64x8xf32>
    %36 = tpu.matmul %33, %35, %cst_18 {dimension_numbers = #tpu.dot_dimension_numbers<[1], [0], [0], [1], [0, 0, 1, 1], [], []>} : vector<64x32xbf16>, vector<32x8xbf16>, vector<64x8xf32> -> vector<64x8xf32>
    %37 = arith.addf %30, %36 : vector<64x8xf32>
    %38 = vector.extract_strided_slice %1 {offsets = [1, 2, 0], sizes = [8, 8, 32], strides = [1, 1, 1]} : vector<10x10x32xf32> to vector<8x8x32xf32>
    %39 = vector.shape_cast %38 : vector<8x8x32xf32> to vector<64x32xf32>
    %40 = arith.truncf %39 : vector<64x32xf32> to vector<64x32xbf16>
    %c5 = arith.constant 5 : index
    %c0_19 = arith.constant 0 : index
    %c0_20 = arith.constant 0 : index
    %41 = vector.load %arg2[%c5, %c0_19, %c0_20] : memref<9x32x8xbf16, #tpu.memory_space<vmem>>, vector<1x32x8xbf16>
    %42 = vector.shape_cast %41 : vector<1x32x8xbf16> to vector<32x8xbf16>
    %cst_21 = arith.constant dense<0.000000e+00> : vector<64x8xf32>
    %43 = tpu.matmul %40, %42, %cst_21 {dimension_numbers = #tpu.dot_dimension_numbers<[1], [0], [0], [1], [0, 0, 1, 1], [], []>} : vector<64x32xbf16>, vector<32x8xbf16>, vector<64x8xf32> -> vector<64x8xf32>
    %44 = arith.addf %37, %43 : vector<64x8xf32>
    %45 = vector.extract_strided_slice %1 {offsets = [2, 0, 0], sizes = [8, 8, 32], strides = [1, 1, 1]} : vector<10x10x32xf32> to vector<8x8x32xf32>
    %46 = vector.shape_cast %45 : vector<8x8x32xf32> to vector<64x32xf32>
    %47 = arith.truncf %46 : vector<64x32xf32> to vector<64x32xbf16>
    %c6 = arith.constant 6 : index
    %c0_22 = arith.constant 0 : index
    %c0_23 = arith.constant 0 : index
    %48 = vector.load %arg2[%c6, %c0_22, %c0_23] : memref<9x32x8xbf16, #tpu.memory_space<vmem>>, vector<1x32x8xbf16>
    %49 = vector.shape_cast %48 : vector<1x32x8xbf16> to vector<32x8xbf16>
    %cst_24 = arith.constant dense<0.000000e+00> : vector<64x8xf32>
    %50 = tpu.matmul %47, %49, %cst_24 {dimension_numbers = #tpu.dot_dimension_numbers<[1], [0], [0], [1], [0, 0, 1, 1], [], []>} : vector<64x32xbf16>, vector<32x8xbf16>, vector<64x8xf32> -> vector<64x8xf32>
    %51 = arith.addf %44, %50 : vector<64x8xf32>
    %52 = vector.extract_strided_slice %1 {offsets = [2, 1, 0], sizes = [8, 8, 32], strides = [1, 1, 1]} : vector<10x10x32xf32> to vector<8x8x32xf32>
    %53 = vector.shape_cast %52 : vector<8x8x32xf32> to vector<64x32xf32>
    %54 = arith.truncf %53 : vector<64x32xf32> to vector<64x32xbf16>
    %c7 = arith.constant 7 : index
    %c0_25 = arith.constant 0 : index
    %c0_26 = arith.constant 0 : index
    %55 = vector.load %arg2[%c7, %c0_25, %c0_26] : memref<9x32x8xbf16, #tpu.memory_space<vmem>>, vector<1x32x8xbf16>
    %56 = vector.shape_cast %55 : vector<1x32x8xbf16> to vector<32x8xbf16>
    %cst_27 = arith.constant dense<0.000000e+00> : vector<64x8xf32>
    %57 = tpu.matmul %54, %56, %cst_27 {dimension_numbers = #tpu.dot_dimension_numbers<[1], [0], [0], [1], [0, 0, 1, 1], [], []>} : vector<64x32xbf16>, vector<32x8xbf16>, vector<64x8xf32> -> vector<64x8xf32>
    %58 = arith.addf %51, %57 : vector<64x8xf32>
    %59 = vector.extract_strided_slice %1 {offsets = [2, 2, 0], sizes = [8, 8, 32], strides = [1, 1, 1]} : vector<10x10x32xf32> to vector<8x8x32xf32>
    %60 = vector.shape_cast %59 : vector<8x8x32xf32> to vector<64x32xf32>
    %61 = arith.truncf %60 : vector<64x32xf32> to vector<64x32xbf16>
    %c8 = arith.constant 8 : index
    %c0_28 = arith.constant 0 : index
    %c0_29 = arith.constant 0 : index
    %62 = vector.load %arg2[%c8, %c0_28, %c0_29] : memref<9x32x8xbf16, #tpu.memory_space<vmem>>, vector<1x32x8xbf16>
    %63 = vector.shape_cast %62 : vector<1x32x8xbf16> to vector<32x8xbf16>
    %cst_30 = arith.constant dense<0.000000e+00> : vector<64x8xf32>
    %64 = tpu.matmul %61, %63, %cst_30 {dimension_numbers = #tpu.dot_dimension_numbers<[1], [0], [0], [1], [0, 0, 1, 1], [], []>} : vector<64x32xbf16>, vector<32x8xbf16>, vector<64x8xf32> -> vector<64x8xf32>
    %65 = arith.addf %58, %64 : vector<64x8xf32>
    %c0_31 = arith.constant 0 : index
    %c0_32 = arith.constant 0 : index
    %66 = vector.load %arg3[%c0_31, %c0_32] : memref<1x8xf32, #tpu.memory_space<vmem>>, vector<1x8xf32>
    %67 = vector.broadcast %66 : vector<1x8xf32> to vector<64x8xf32>
    %68 = arith.mulf %65, %67 : vector<64x8xf32>
    %c0_33 = arith.constant 0 : index
    %c0_34 = arith.constant 0 : index
    %69 = vector.load %arg4[%c0_33, %c0_34] : memref<1x8xf32, #tpu.memory_space<vmem>>, vector<1x8xf32>
    %70 = vector.broadcast %69 : vector<1x8xf32> to vector<64x8xf32>
    %71 = arith.addf %68, %70 : vector<64x8xf32>
    %72 = vector.shape_cast %71 : vector<64x8xf32> to vector<8x8x8xf32>
    %c0_35 = arith.constant 0 : index
    %c0_36 = arith.constant 0 : index
    %c0_37 = arith.constant 0 : index
    %c0_38 = arith.constant 0 : index
    %73 = vector.load %arg5[%c0_35, %c0_36, %c0_37, %c0_38] : memref<1x8x8x8xf32, #tpu.memory_space<vmem>>, vector<1x8x8x8xf32>
    %74 = vector.shape_cast %73 : vector<1x8x8x8xf32> to vector<8x8x8xf32>
    %75 = vector.shape_cast %72 : vector<8x8x8xf32> to vector<1x8x8x8xf32>
    tpu.vector_store %arg5[%c0_35, %c0_36, %c0_37, %c0_38], %75 {strides = array<i32>} : memref<1x8x8x8xf32, #tpu.memory_space<vmem>>, vector<1x8x8x8xf32>,
    return
  }
  func.func @transform_0(%arg0: i32) -> (i32, i32, i32, i32) {
    %c0_i32 = arith.constant 0 : i32
    %c0_i32_0 = arith.constant 0 : i32
    %c0_i32_1 = arith.constant 0 : i32
    %c0_i32_2 = arith.constant 0 : i32
    return %arg0, %c0_i32, %c0_i32_0, %c0_i32_1 : i32, i32, i32, i32
  }
  func.func @transform_1(%arg0: i32) -> (i32, i32, i32) {
    %c0_i32 = arith.constant 0 : i32
    %c0_i32_0 = arith.constant 0 : i32
    %c0_i32_1 = arith.constant 0 : i32
    %c0_i32_2 = arith.constant 0 : i32
    return %c0_i32, %c0_i32_0, %c0_i32_1 : i32, i32, i32
  }
  func.func @transform_2(%arg0: i32) -> (i32, i32) {
    %c0_i32 = arith.constant 0 : i32
    %c0_i32_0 = arith.constant 0 : i32
    %c0_i32_1 = arith.constant 0 : i32
    return %c0_i32, %c0_i32_0 : i32, i32
  }
  func.func @transform_3(%arg0: i32) -> (i32, i32) {
    %c0_i32 = arith.constant 0 : i32
    %c0_i32_0 = arith.constant 0 : i32
    %c0_i32_1 = arith.constant 0 : i32
    return %c0_i32, %c0_i32_0 : i32, i32
  }
  func.func @transform_4(%arg0: i32) -> (i32, i32, i32, i32) {
    %c0_i32 = arith.constant 0 : i32
    %c0_i32_0 = arith.constant 0 : i32
    %c0_i32_1 = arith.constant 0 : i32
    %c0_i32_2 = arith.constant 0 : i32
    return %arg0, %c0_i32, %c0_i32_0, %c0_i32_1 : i32, i32, i32, i32
  }
}

module attributes {stable_mosaic.version = 11 : i64} {
  func.func @_conv3x3_bn_kernel(%arg0: i32, %arg1: memref<1x10x10x8xf32, #tpu.memory_space<vmem>>, %arg2: memref<9x8x8xbf16, #tpu.memory_space<vmem>>, %arg3: memref<1x8xf32, #tpu.memory_space<vmem>>, %arg4: memref<1x8xf32, #tpu.memory_space<vmem>>, %arg5: memref<1x8x8x8xf32, #tpu.memory_space<vmem>>) attributes {dimension_semantics = [#tpu.dimension_semantics<parallel>], iteration_bounds = array<i64: 2>, scalar_prefetch = 0 : i64, scratch_operands = 0 : i64, tpu.core_type = #tpu.core_type<tc>, window_params = [{transform_indices = @transform_0, window_bounds = array<i64: 1, 10, 10, 8>}, {pipeline_mode = #tpu.pipeline_mode<synchronous>, transform_indices = @transform_1, window_bounds = array<i64: 9, 8, 8>}, {pipeline_mode = #tpu.pipeline_mode<synchronous>, transform_indices = @transform_2, window_bounds = array<i64: 1, 8>}, {pipeline_mode = #tpu.pipeline_mode<synchronous>, transform_indices = @transform_3, window_bounds = array<i64: 1, 8>}, {transform_indices = @transform_4, window_bounds = array<i64: 1, 8, 8, 8>}]} {
    %c0 = arith.constant 0 : index
    %c0_0 = arith.constant 0 : index
    %c0_1 = arith.constant 0 : index
    %c0_2 = arith.constant 0 : index
    %0 = vector.load %arg1[%c0, %c0_0, %c0_1, %c0_2] : memref<1x10x10x8xf32, #tpu.memory_space<vmem>>, vector<1x10x10x8xf32>
    %1 = vector.shape_cast %0 : vector<1x10x10x8xf32> to vector<10x10x8xf32>
    %cst = arith.constant 0.000000e+00 : f32
    %2 = vector.broadcast %cst : f32 to vector<64x8xf32>
    %3 = vector.extract_strided_slice %1 {offsets = [0, 0, 0], sizes = [8, 8, 8], strides = [1, 1, 1]} : vector<10x10x8xf32> to vector<8x8x8xf32>
    %4 = vector.shape_cast %3 : vector<8x8x8xf32> to vector<64x8xf32>
    %5 = arith.truncf %4 : vector<64x8xf32> to vector<64x8xbf16>
    %c0_3 = arith.constant 0 : index
    %c0_4 = arith.constant 0 : index
    %c0_5 = arith.constant 0 : index
    %6 = vector.load %arg2[%c0_3, %c0_4, %c0_5] : memref<9x8x8xbf16, #tpu.memory_space<vmem>>, vector<1x8x8xbf16>
    %7 = vector.shape_cast %6 : vector<1x8x8xbf16> to vector<8x8xbf16>
    %cst_6 = arith.constant dense<0.000000e+00> : vector<64x8xf32>
    %8 = tpu.matmul %5, %7, %cst_6 {dimension_numbers = #tpu.dot_dimension_numbers<[1], [0], [0], [1], [0, 0, 1, 1], [], []>} : vector<64x8xbf16>, vector<8x8xbf16>, vector<64x8xf32> -> vector<64x8xf32>
    %9 = arith.addf %2, %8 : vector<64x8xf32>
    %10 = vector.extract_strided_slice %1 {offsets = [0, 1, 0], sizes = [8, 8, 8], strides = [1, 1, 1]} : vector<10x10x8xf32> to vector<8x8x8xf32>
    %11 = vector.shape_cast %10 : vector<8x8x8xf32> to vector<64x8xf32>
    %12 = arith.truncf %11 : vector<64x8xf32> to vector<64x8xbf16>
    %c1 = arith.constant 1 : index
    %c0_7 = arith.constant 0 : index
    %c0_8 = arith.constant 0 : index
    %13 = vector.load %arg2[%c1, %c0_7, %c0_8] : memref<9x8x8xbf16, #tpu.memory_space<vmem>>, vector<1x8x8xbf16>
    %14 = vector.shape_cast %13 : vector<1x8x8xbf16> to vector<8x8xbf16>
    %cst_9 = arith.constant dense<0.000000e+00> : vector<64x8xf32>
    %15 = tpu.matmul %12, %14, %cst_9 {dimension_numbers = #tpu.dot_dimension_numbers<[1], [0], [0], [1], [0, 0, 1, 1], [], []>} : vector<64x8xbf16>, vector<8x8xbf16>, vector<64x8xf32> -> vector<64x8xf32>
    %16 = arith.addf %9, %15 : vector<64x8xf32>
    %17 = vector.extract_strided_slice %1 {offsets = [0, 2, 0], sizes = [8, 8, 8], strides = [1, 1, 1]} : vector<10x10x8xf32> to vector<8x8x8xf32>
    %18 = vector.shape_cast %17 : vector<8x8x8xf32> to vector<64x8xf32>
    %19 = arith.truncf %18 : vector<64x8xf32> to vector<64x8xbf16>
    %c2 = arith.constant 2 : index
    %c0_10 = arith.constant 0 : index
    %c0_11 = arith.constant 0 : index
    %20 = vector.load %arg2[%c2, %c0_10, %c0_11] : memref<9x8x8xbf16, #tpu.memory_space<vmem>>, vector<1x8x8xbf16>
    %21 = vector.shape_cast %20 : vector<1x8x8xbf16> to vector<8x8xbf16>
    %cst_12 = arith.constant dense<0.000000e+00> : vector<64x8xf32>
    %22 = tpu.matmul %19, %21, %cst_12 {dimension_numbers = #tpu.dot_dimension_numbers<[1], [0], [0], [1], [0, 0, 1, 1], [], []>} : vector<64x8xbf16>, vector<8x8xbf16>, vector<64x8xf32> -> vector<64x8xf32>
    %23 = arith.addf %16, %22 : vector<64x8xf32>
    %24 = vector.extract_strided_slice %1 {offsets = [1, 0, 0], sizes = [8, 8, 8], strides = [1, 1, 1]} : vector<10x10x8xf32> to vector<8x8x8xf32>
    %25 = vector.shape_cast %24 : vector<8x8x8xf32> to vector<64x8xf32>
    %26 = arith.truncf %25 : vector<64x8xf32> to vector<64x8xbf16>
    %c3 = arith.constant 3 : index
    %c0_13 = arith.constant 0 : index
    %c0_14 = arith.constant 0 : index
    %27 = vector.load %arg2[%c3, %c0_13, %c0_14] : memref<9x8x8xbf16, #tpu.memory_space<vmem>>, vector<1x8x8xbf16>
    %28 = vector.shape_cast %27 : vector<1x8x8xbf16> to vector<8x8xbf16>
    %cst_15 = arith.constant dense<0.000000e+00> : vector<64x8xf32>
    %29 = tpu.matmul %26, %28, %cst_15 {dimension_numbers = #tpu.dot_dimension_numbers<[1], [0], [0], [1], [0, 0, 1, 1], [], []>} : vector<64x8xbf16>, vector<8x8xbf16>, vector<64x8xf32> -> vector<64x8xf32>
    %30 = arith.addf %23, %29 : vector<64x8xf32>
    %31 = vector.extract_strided_slice %1 {offsets = [1, 1, 0], sizes = [8, 8, 8], strides = [1, 1, 1]} : vector<10x10x8xf32> to vector<8x8x8xf32>
    %32 = vector.shape_cast %31 : vector<8x8x8xf32> to vector<64x8xf32>
    %33 = arith.truncf %32 : vector<64x8xf32> to vector<64x8xbf16>
    %c4 = arith.constant 4 : index
    %c0_16 = arith.constant 0 : index
    %c0_17 = arith.constant 0 : index
    %34 = vector.load %arg2[%c4, %c0_16, %c0_17] : memref<9x8x8xbf16, #tpu.memory_space<vmem>>, vector<1x8x8xbf16>
    %35 = vector.shape_cast %34 : vector<1x8x8xbf16> to vector<8x8xbf16>
    %cst_18 = arith.constant dense<0.000000e+00> : vector<64x8xf32>
    %36 = tpu.matmul %33, %35, %cst_18 {dimension_numbers = #tpu.dot_dimension_numbers<[1], [0], [0], [1], [0, 0, 1, 1], [], []>} : vector<64x8xbf16>, vector<8x8xbf16>, vector<64x8xf32> -> vector<64x8xf32>
    %37 = arith.addf %30, %36 : vector<64x8xf32>
    %38 = vector.extract_strided_slice %1 {offsets = [1, 2, 0], sizes = [8, 8, 8], strides = [1, 1, 1]} : vector<10x10x8xf32> to vector<8x8x8xf32>
    %39 = vector.shape_cast %38 : vector<8x8x8xf32> to vector<64x8xf32>
    %40 = arith.truncf %39 : vector<64x8xf32> to vector<64x8xbf16>
    %c5 = arith.constant 5 : index
    %c0_19 = arith.constant 0 : index
    %c0_20 = arith.constant 0 : index
    %41 = vector.load %arg2[%c5, %c0_19, %c0_20] : memref<9x8x8xbf16, #tpu.memory_space<vmem>>, vector<1x8x8xbf16>
    %42 = vector.shape_cast %41 : vector<1x8x8xbf16> to vector<8x8xbf16>
    %cst_21 = arith.constant dense<0.000000e+00> : vector<64x8xf32>
    %43 = tpu.matmul %40, %42, %cst_21 {dimension_numbers = #tpu.dot_dimension_numbers<[1], [0], [0], [1], [0, 0, 1, 1], [], []>} : vector<64x8xbf16>, vector<8x8xbf16>, vector<64x8xf32> -> vector<64x8xf32>
    %44 = arith.addf %37, %43 : vector<64x8xf32>
    %45 = vector.extract_strided_slice %1 {offsets = [2, 0, 0], sizes = [8, 8, 8], strides = [1, 1, 1]} : vector<10x10x8xf32> to vector<8x8x8xf32>
    %46 = vector.shape_cast %45 : vector<8x8x8xf32> to vector<64x8xf32>
    %47 = arith.truncf %46 : vector<64x8xf32> to vector<64x8xbf16>
    %c6 = arith.constant 6 : index
    %c0_22 = arith.constant 0 : index
    %c0_23 = arith.constant 0 : index
    %48 = vector.load %arg2[%c6, %c0_22, %c0_23] : memref<9x8x8xbf16, #tpu.memory_space<vmem>>, vector<1x8x8xbf16>
    %49 = vector.shape_cast %48 : vector<1x8x8xbf16> to vector<8x8xbf16>
    %cst_24 = arith.constant dense<0.000000e+00> : vector<64x8xf32>
    %50 = tpu.matmul %47, %49, %cst_24 {dimension_numbers = #tpu.dot_dimension_numbers<[1], [0], [0], [1], [0, 0, 1, 1], [], []>} : vector<64x8xbf16>, vector<8x8xbf16>, vector<64x8xf32> -> vector<64x8xf32>
    %51 = arith.addf %44, %50 : vector<64x8xf32>
    %52 = vector.extract_strided_slice %1 {offsets = [2, 1, 0], sizes = [8, 8, 8], strides = [1, 1, 1]} : vector<10x10x8xf32> to vector<8x8x8xf32>
    %53 = vector.shape_cast %52 : vector<8x8x8xf32> to vector<64x8xf32>
    %54 = arith.truncf %53 : vector<64x8xf32> to vector<64x8xbf16>
    %c7 = arith.constant 7 : index
    %c0_25 = arith.constant 0 : index
    %c0_26 = arith.constant 0 : index
    %55 = vector.load %arg2[%c7, %c0_25, %c0_26] : memref<9x8x8xbf16, #tpu.memory_space<vmem>>, vector<1x8x8xbf16>
    %56 = vector.shape_cast %55 : vector<1x8x8xbf16> to vector<8x8xbf16>
    %cst_27 = arith.constant dense<0.000000e+00> : vector<64x8xf32>
    %57 = tpu.matmul %54, %56, %cst_27 {dimension_numbers = #tpu.dot_dimension_numbers<[1], [0], [0], [1], [0, 0, 1, 1], [], []>} : vector<64x8xbf16>, vector<8x8xbf16>, vector<64x8xf32> -> vector<64x8xf32>
    %58 = arith.addf %51, %57 : vector<64x8xf32>
    %59 = vector.extract_strided_slice %1 {offsets = [2, 2, 0], sizes = [8, 8, 8], strides = [1, 1, 1]} : vector<10x10x8xf32> to vector<8x8x8xf32>
    %60 = vector.shape_cast %59 : vector<8x8x8xf32> to vector<64x8xf32>
    %61 = arith.truncf %60 : vector<64x8xf32> to vector<64x8xbf16>
    %c8 = arith.constant 8 : index
    %c0_28 = arith.constant 0 : index
    %c0_29 = arith.constant 0 : index
    %62 = vector.load %arg2[%c8, %c0_28, %c0_29] : memref<9x8x8xbf16, #tpu.memory_space<vmem>>, vector<1x8x8xbf16>
    %63 = vector.shape_cast %62 : vector<1x8x8xbf16> to vector<8x8xbf16>
    %cst_30 = arith.constant dense<0.000000e+00> : vector<64x8xf32>
    %64 = tpu.matmul %61, %63, %cst_30 {dimension_numbers = #tpu.dot_dimension_numbers<[1], [0], [0], [1], [0, 0, 1, 1], [], []>} : vector<64x8xbf16>, vector<8x8xbf16>, vector<64x8xf32> -> vector<64x8xf32>
    %65 = arith.addf %58, %64 : vector<64x8xf32>
    %c0_31 = arith.constant 0 : index
    %c0_32 = arith.constant 0 : index
    %66 = vector.load %arg3[%c0_31, %c0_32] : memref<1x8xf32, #tpu.memory_space<vmem>>, vector<1x8xf32>
    %67 = vector.broadcast %66 : vector<1x8xf32> to vector<64x8xf32>
    %68 = arith.mulf %65, %67 : vector<64x8xf32>
    %c0_33 = arith.constant 0 : index
    %c0_34 = arith.constant 0 : index
    %69 = vector.load %arg4[%c0_33, %c0_34] : memref<1x8xf32, #tpu.memory_space<vmem>>, vector<1x8xf32>
    %70 = vector.broadcast %69 : vector<1x8xf32> to vector<64x8xf32>
    %71 = arith.addf %68, %70 : vector<64x8xf32>
    %72 = vector.shape_cast %71 : vector<64x8xf32> to vector<8x8x8xf32>
    %c0_35 = arith.constant 0 : index
    %c0_36 = arith.constant 0 : index
    %c0_37 = arith.constant 0 : index
    %c0_38 = arith.constant 0 : index
    %73 = vector.load %arg5[%c0_35, %c0_36, %c0_37, %c0_38] : memref<1x8x8x8xf32, #tpu.memory_space<vmem>>, vector<1x8x8x8xf32>
    %74 = vector.shape_cast %73 : vector<1x8x8x8xf32> to vector<8x8x8xf32>
    %75 = vector.shape_cast %72 : vector<8x8x8xf32> to vector<1x8x8x8xf32>
    tpu.vector_store %arg5[%c0_35, %c0_36, %c0_37, %c0_38], %75 {strides = array<i32>} : memref<1x8x8x8xf32, #tpu.memory_space<vmem>>, vector<1x8x8x8xf32>,
    return
  }
  func.func @transform_0(%arg0: i32) -> (i32, i32, i32, i32) {
    %c0_i32 = arith.constant 0 : i32
    %c0_i32_0 = arith.constant 0 : i32
    %c0_i32_1 = arith.constant 0 : i32
    %c0_i32_2 = arith.constant 0 : i32
    return %arg0, %c0_i32, %c0_i32_0, %c0_i32_1 : i32, i32, i32, i32
  }
  func.func @transform_1(%arg0: i32) -> (i32, i32, i32) {
    %c0_i32 = arith.constant 0 : i32
    %c0_i32_0 = arith.constant 0 : i32
    %c0_i32_1 = arith.constant 0 : i32
    %c0_i32_2 = arith.constant 0 : i32
    return %c0_i32, %c0_i32_0, %c0_i32_1 : i32, i32, i32
  }
  func.func @transform_2(%arg0: i32) -> (i32, i32) {
    %c0_i32 = arith.constant 0 : i32
    %c0_i32_0 = arith.constant 0 : i32
    %c0_i32_1 = arith.constant 0 : i32
    return %c0_i32, %c0_i32_0 : i32, i32
  }
  func.func @transform_3(%arg0: i32) -> (i32, i32) {
    %c0_i32 = arith.constant 0 : i32
    %c0_i32_0 = arith.constant 0 : i32
    %c0_i32_1 = arith.constant 0 : i32
    return %c0_i32, %c0_i32_0 : i32, i32
  }
  func.func @transform_4(%arg0: i32) -> (i32, i32, i32, i32) {
    %c0_i32 = arith.constant 0 : i32
    %c0_i32_0 = arith.constant 0 : i32
    %c0_i32_1 = arith.constant 0 : i32
    %c0_i32_2 = arith.constant 0 : i32
    return %arg0, %c0_i32, %c0_i32_0, %c0_i32_1 : i32, i32, i32, i32
  }
}

module attributes {stable_mosaic.version = 11 : i64} {
  func.func @_cls_head_kernel(%arg0: i32, %arg1: memref<1x10x10x32xf32, #tpu.memory_space<vmem>>, %arg2: memref<1x10x10x8xf32, #tpu.memory_space<vmem>>, %arg3: memref<9x32x8xbf16, #tpu.memory_space<vmem>>, %arg4: memref<9x8x8xbf16, #tpu.memory_space<vmem>>, %arg5: memref<1x8xf32, #tpu.memory_space<vmem>>, %arg6: memref<1x8xf32, #tpu.memory_space<vmem>>, %arg7: memref<8x5xbf16, #tpu.memory_space<vmem>>, %arg8: memref<1x5xf32, #tpu.memory_space<vmem>>, %arg9: memref<1x8x8x5xf32, #tpu.memory_space<vmem>>) attributes {dimension_semantics = [#tpu.dimension_semantics<parallel>], iteration_bounds = array<i64: 2>, scalar_prefetch = 0 : i64, scratch_operands = 0 : i64, tpu.core_type = #tpu.core_type<tc>, window_params = [{transform_indices = @transform_0, window_bounds = array<i64: 1, 10, 10, 32>}, {transform_indices = @transform_1, window_bounds = array<i64: 1, 10, 10, 8>}, {pipeline_mode = #tpu.pipeline_mode<synchronous>, transform_indices = @transform_2, window_bounds = array<i64: 9, 32, 8>}, {pipeline_mode = #tpu.pipeline_mode<synchronous>, transform_indices = @transform_3, window_bounds = array<i64: 9, 8, 8>}, {pipeline_mode = #tpu.pipeline_mode<synchronous>, transform_indices = @transform_4, window_bounds = array<i64: 1, 8>}, {pipeline_mode = #tpu.pipeline_mode<synchronous>, transform_indices = @transform_5, window_bounds = array<i64: 1, 8>}, {pipeline_mode = #tpu.pipeline_mode<synchronous>, transform_indices = @transform_6, window_bounds = array<i64: 8, 5>}, {pipeline_mode = #tpu.pipeline_mode<synchronous>, transform_indices = @transform_7, window_bounds = array<i64: 1, 5>}, {transform_indices = @transform_8, window_bounds = array<i64: 1, 8, 8, 5>}]} {
    %c0 = arith.constant 0 : index
    %c0_0 = arith.constant 0 : index
    %c0_1 = arith.constant 0 : index
    %c0_2 = arith.constant 0 : index
    %0 = vector.load %arg1[%c0, %c0_0, %c0_1, %c0_2] : memref<1x10x10x32xf32, #tpu.memory_space<vmem>>, vector<1x10x10x32xf32>
    %1 = vector.shape_cast %0 : vector<1x10x10x32xf32> to vector<10x10x32xf32>
    %c0_3 = arith.constant 0 : index
    %c0_4 = arith.constant 0 : index
    %c0_5 = arith.constant 0 : index
    %c0_6 = arith.constant 0 : index
    %2 = vector.load %arg2[%c0_3, %c0_4, %c0_5, %c0_6] : memref<1x10x10x8xf32, #tpu.memory_space<vmem>>, vector<1x10x10x8xf32>
    %3 = vector.shape_cast %2 : vector<1x10x10x8xf32> to vector<10x10x8xf32>
    %cst = arith.constant 0.000000e+00 : f32
    %4 = vector.broadcast %cst : f32 to vector<64x8xf32>
    %5 = vector.extract_strided_slice %1 {offsets = [0, 0, 0], sizes = [8, 8, 32], strides = [1, 1, 1]} : vector<10x10x32xf32> to vector<8x8x32xf32>
    %6 = vector.shape_cast %5 : vector<8x8x32xf32> to vector<64x32xf32>
    %7 = arith.truncf %6 : vector<64x32xf32> to vector<64x32xbf16>
    %8 = vector.extract_strided_slice %3 {offsets = [0, 0, 0], sizes = [8, 8, 8], strides = [1, 1, 1]} : vector<10x10x8xf32> to vector<8x8x8xf32>
    %9 = vector.shape_cast %8 : vector<8x8x8xf32> to vector<64x8xf32>
    %10 = arith.truncf %9 : vector<64x8xf32> to vector<64x8xbf16>
    %c0_7 = arith.constant 0 : index
    %c0_8 = arith.constant 0 : index
    %c0_9 = arith.constant 0 : index
    %11 = vector.load %arg3[%c0_7, %c0_8, %c0_9] : memref<9x32x8xbf16, #tpu.memory_space<vmem>>, vector<1x32x8xbf16>
    %12 = vector.shape_cast %11 : vector<1x32x8xbf16> to vector<32x8xbf16>
    %cst_10 = arith.constant dense<0.000000e+00> : vector<64x8xf32>
    %13 = tpu.matmul %7, %12, %cst_10 {dimension_numbers = #tpu.dot_dimension_numbers<[1], [0], [0], [1], [0, 0, 1, 1], [], []>} : vector<64x32xbf16>, vector<32x8xbf16>, vector<64x8xf32> -> vector<64x8xf32>
    %14 = arith.addf %4, %13 : vector<64x8xf32>
    %c0_11 = arith.constant 0 : index
    %c0_12 = arith.constant 0 : index
    %c0_13 = arith.constant 0 : index
    %15 = vector.load %arg4[%c0_11, %c0_12, %c0_13] : memref<9x8x8xbf16, #tpu.memory_space<vmem>>, vector<1x8x8xbf16>
    %16 = vector.shape_cast %15 : vector<1x8x8xbf16> to vector<8x8xbf16>
    %cst_14 = arith.constant dense<0.000000e+00> : vector<64x8xf32>
    %17 = tpu.matmul %10, %16, %cst_14 {dimension_numbers = #tpu.dot_dimension_numbers<[1], [0], [0], [1], [0, 0, 1, 1], [], []>} : vector<64x8xbf16>, vector<8x8xbf16>, vector<64x8xf32> -> vector<64x8xf32>
    %18 = arith.addf %14, %17 : vector<64x8xf32>
    %19 = vector.extract_strided_slice %1 {offsets = [0, 1, 0], sizes = [8, 8, 32], strides = [1, 1, 1]} : vector<10x10x32xf32> to vector<8x8x32xf32>
    %20 = vector.shape_cast %19 : vector<8x8x32xf32> to vector<64x32xf32>
    %21 = arith.truncf %20 : vector<64x32xf32> to vector<64x32xbf16>
    %22 = vector.extract_strided_slice %3 {offsets = [0, 1, 0], sizes = [8, 8, 8], strides = [1, 1, 1]} : vector<10x10x8xf32> to vector<8x8x8xf32>
    %23 = vector.shape_cast %22 : vector<8x8x8xf32> to vector<64x8xf32>
    %24 = arith.truncf %23 : vector<64x8xf32> to vector<64x8xbf16>
    %c1 = arith.constant 1 : index
    %c0_15 = arith.constant 0 : index
    %c0_16 = arith.constant 0 : index
    %25 = vector.load %arg3[%c1, %c0_15, %c0_16] : memref<9x32x8xbf16, #tpu.memory_space<vmem>>, vector<1x32x8xbf16>
    %26 = vector.shape_cast %25 : vector<1x32x8xbf16> to vector<32x8xbf16>
    %cst_17 = arith.constant dense<0.000000e+00> : vector<64x8xf32>
    %27 = tpu.matmul %21, %26, %cst_17 {dimension_numbers = #tpu.dot_dimension_numbers<[1], [0], [0], [1], [0, 0, 1, 1], [], []>} : vector<64x32xbf16>, vector<32x8xbf16>, vector<64x8xf32> -> vector<64x8xf32>
    %28 = arith.addf %18, %27 : vector<64x8xf32>
    %c1_18 = arith.constant 1 : index
    %c0_19 = arith.constant 0 : index
    %c0_20 = arith.constant 0 : index
    %29 = vector.load %arg4[%c1_18, %c0_19, %c0_20] : memref<9x8x8xbf16, #tpu.memory_space<vmem>>, vector<1x8x8xbf16>
    %30 = vector.shape_cast %29 : vector<1x8x8xbf16> to vector<8x8xbf16>
    %cst_21 = arith.constant dense<0.000000e+00> : vector<64x8xf32>
    %31 = tpu.matmul %24, %30, %cst_21 {dimension_numbers = #tpu.dot_dimension_numbers<[1], [0], [0], [1], [0, 0, 1, 1], [], []>} : vector<64x8xbf16>, vector<8x8xbf16>, vector<64x8xf32> -> vector<64x8xf32>
    %32 = arith.addf %28, %31 : vector<64x8xf32>
    %33 = vector.extract_strided_slice %1 {offsets = [0, 2, 0], sizes = [8, 8, 32], strides = [1, 1, 1]} : vector<10x10x32xf32> to vector<8x8x32xf32>
    %34 = vector.shape_cast %33 : vector<8x8x32xf32> to vector<64x32xf32>
    %35 = arith.truncf %34 : vector<64x32xf32> to vector<64x32xbf16>
    %36 = vector.extract_strided_slice %3 {offsets = [0, 2, 0], sizes = [8, 8, 8], strides = [1, 1, 1]} : vector<10x10x8xf32> to vector<8x8x8xf32>
    %37 = vector.shape_cast %36 : vector<8x8x8xf32> to vector<64x8xf32>
    %38 = arith.truncf %37 : vector<64x8xf32> to vector<64x8xbf16>
    %c2 = arith.constant 2 : index
    %c0_22 = arith.constant 0 : index
    %c0_23 = arith.constant 0 : index
    %39 = vector.load %arg3[%c2, %c0_22, %c0_23] : memref<9x32x8xbf16, #tpu.memory_space<vmem>>, vector<1x32x8xbf16>
    %40 = vector.shape_cast %39 : vector<1x32x8xbf16> to vector<32x8xbf16>
    %cst_24 = arith.constant dense<0.000000e+00> : vector<64x8xf32>
    %41 = tpu.matmul %35, %40, %cst_24 {dimension_numbers = #tpu.dot_dimension_numbers<[1], [0], [0], [1], [0, 0, 1, 1], [], []>} : vector<64x32xbf16>, vector<32x8xbf16>, vector<64x8xf32> -> vector<64x8xf32>
    %42 = arith.addf %32, %41 : vector<64x8xf32>
    %c2_25 = arith.constant 2 : index
    %c0_26 = arith.constant 0 : index
    %c0_27 = arith.constant 0 : index
    %43 = vector.load %arg4[%c2_25, %c0_26, %c0_27] : memref<9x8x8xbf16, #tpu.memory_space<vmem>>, vector<1x8x8xbf16>
    %44 = vector.shape_cast %43 : vector<1x8x8xbf16> to vector<8x8xbf16>
    %cst_28 = arith.constant dense<0.000000e+00> : vector<64x8xf32>
    %45 = tpu.matmul %38, %44, %cst_28 {dimension_numbers = #tpu.dot_dimension_numbers<[1], [0], [0], [1], [0, 0, 1, 1], [], []>} : vector<64x8xbf16>, vector<8x8xbf16>, vector<64x8xf32> -> vector<64x8xf32>
    %46 = arith.addf %42, %45 : vector<64x8xf32>
    %47 = vector.extract_strided_slice %1 {offsets = [1, 0, 0], sizes = [8, 8, 32], strides = [1, 1, 1]} : vector<10x10x32xf32> to vector<8x8x32xf32>
    %48 = vector.shape_cast %47 : vector<8x8x32xf32> to vector<64x32xf32>
    %49 = arith.truncf %48 : vector<64x32xf32> to vector<64x32xbf16>
    %50 = vector.extract_strided_slice %3 {offsets = [1, 0, 0], sizes = [8, 8, 8], strides = [1, 1, 1]} : vector<10x10x8xf32> to vector<8x8x8xf32>
    %51 = vector.shape_cast %50 : vector<8x8x8xf32> to vector<64x8xf32>
    %52 = arith.truncf %51 : vector<64x8xf32> to vector<64x8xbf16>
    %c3 = arith.constant 3 : index
    %c0_29 = arith.constant 0 : index
    %c0_30 = arith.constant 0 : index
    %53 = vector.load %arg3[%c3, %c0_29, %c0_30] : memref<9x32x8xbf16, #tpu.memory_space<vmem>>, vector<1x32x8xbf16>
    %54 = vector.shape_cast %53 : vector<1x32x8xbf16> to vector<32x8xbf16>
    %cst_31 = arith.constant dense<0.000000e+00> : vector<64x8xf32>
    %55 = tpu.matmul %49, %54, %cst_31 {dimension_numbers = #tpu.dot_dimension_numbers<[1], [0], [0], [1], [0, 0, 1, 1], [], []>} : vector<64x32xbf16>, vector<32x8xbf16>, vector<64x8xf32> -> vector<64x8xf32>
    %56 = arith.addf %46, %55 : vector<64x8xf32>
    %c3_32 = arith.constant 3 : index
    %c0_33 = arith.constant 0 : index
    %c0_34 = arith.constant 0 : index
    %57 = vector.load %arg4[%c3_32, %c0_33, %c0_34] : memref<9x8x8xbf16, #tpu.memory_space<vmem>>, vector<1x8x8xbf16>
    %58 = vector.shape_cast %57 : vector<1x8x8xbf16> to vector<8x8xbf16>
    %cst_35 = arith.constant dense<0.000000e+00> : vector<64x8xf32>
    %59 = tpu.matmul %52, %58, %cst_35 {dimension_numbers = #tpu.dot_dimension_numbers<[1], [0], [0], [1], [0, 0, 1, 1], [], []>} : vector<64x8xbf16>, vector<8x8xbf16>, vector<64x8xf32> -> vector<64x8xf32>
    %60 = arith.addf %56, %59 : vector<64x8xf32>
    %61 = vector.extract_strided_slice %1 {offsets = [1, 1, 0], sizes = [8, 8, 32], strides = [1, 1, 1]} : vector<10x10x32xf32> to vector<8x8x32xf32>
    %62 = vector.shape_cast %61 : vector<8x8x32xf32> to vector<64x32xf32>
    %63 = arith.truncf %62 : vector<64x32xf32> to vector<64x32xbf16>
    %64 = vector.extract_strided_slice %3 {offsets = [1, 1, 0], sizes = [8, 8, 8], strides = [1, 1, 1]} : vector<10x10x8xf32> to vector<8x8x8xf32>
    %65 = vector.shape_cast %64 : vector<8x8x8xf32> to vector<64x8xf32>
    %66 = arith.truncf %65 : vector<64x8xf32> to vector<64x8xbf16>
    %c4 = arith.constant 4 : index
    %c0_36 = arith.constant 0 : index
    %c0_37 = arith.constant 0 : index
    %67 = vector.load %arg3[%c4, %c0_36, %c0_37] : memref<9x32x8xbf16, #tpu.memory_space<vmem>>, vector<1x32x8xbf16>
    %68 = vector.shape_cast %67 : vector<1x32x8xbf16> to vector<32x8xbf16>
    %cst_38 = arith.constant dense<0.000000e+00> : vector<64x8xf32>
    %69 = tpu.matmul %63, %68, %cst_38 {dimension_numbers = #tpu.dot_dimension_numbers<[1], [0], [0], [1], [0, 0, 1, 1], [], []>} : vector<64x32xbf16>, vector<32x8xbf16>, vector<64x8xf32> -> vector<64x8xf32>
    %70 = arith.addf %60, %69 : vector<64x8xf32>
    %c4_39 = arith.constant 4 : index
    %c0_40 = arith.constant 0 : index
    %c0_41 = arith.constant 0 : index
    %71 = vector.load %arg4[%c4_39, %c0_40, %c0_41] : memref<9x8x8xbf16, #tpu.memory_space<vmem>>, vector<1x8x8xbf16>
    %72 = vector.shape_cast %71 : vector<1x8x8xbf16> to vector<8x8xbf16>
    %cst_42 = arith.constant dense<0.000000e+00> : vector<64x8xf32>
    %73 = tpu.matmul %66, %72, %cst_42 {dimension_numbers = #tpu.dot_dimension_numbers<[1], [0], [0], [1], [0, 0, 1, 1], [], []>} : vector<64x8xbf16>, vector<8x8xbf16>, vector<64x8xf32> -> vector<64x8xf32>
    %74 = arith.addf %70, %73 : vector<64x8xf32>
    %75 = vector.extract_strided_slice %1 {offsets = [1, 2, 0], sizes = [8, 8, 32], strides = [1, 1, 1]} : vector<10x10x32xf32> to vector<8x8x32xf32>
    %76 = vector.shape_cast %75 : vector<8x8x32xf32> to vector<64x32xf32>
    %77 = arith.truncf %76 : vector<64x32xf32> to vector<64x32xbf16>
    %78 = vector.extract_strided_slice %3 {offsets = [1, 2, 0], sizes = [8, 8, 8], strides = [1, 1, 1]} : vector<10x10x8xf32> to vector<8x8x8xf32>
    %79 = vector.shape_cast %78 : vector<8x8x8xf32> to vector<64x8xf32>
    %80 = arith.truncf %79 : vector<64x8xf32> to vector<64x8xbf16>
    %c5 = arith.constant 5 : index
    %c0_43 = arith.constant 0 : index
    %c0_44 = arith.constant 0 : index
    %81 = vector.load %arg3[%c5, %c0_43, %c0_44] : memref<9x32x8xbf16, #tpu.memory_space<vmem>>, vector<1x32x8xbf16>
    %82 = vector.shape_cast %81 : vector<1x32x8xbf16> to vector<32x8xbf16>
    %cst_45 = arith.constant dense<0.000000e+00> : vector<64x8xf32>
    %83 = tpu.matmul %77, %82, %cst_45 {dimension_numbers = #tpu.dot_dimension_numbers<[1], [0], [0], [1], [0, 0, 1, 1], [], []>} : vector<64x32xbf16>, vector<32x8xbf16>, vector<64x8xf32> -> vector<64x8xf32>
    %84 = arith.addf %74, %83 : vector<64x8xf32>
    %c5_46 = arith.constant 5 : index
    %c0_47 = arith.constant 0 : index
    %c0_48 = arith.constant 0 : index
    %85 = vector.load %arg4[%c5_46, %c0_47, %c0_48] : memref<9x8x8xbf16, #tpu.memory_space<vmem>>, vector<1x8x8xbf16>
    %86 = vector.shape_cast %85 : vector<1x8x8xbf16> to vector<8x8xbf16>
    %cst_49 = arith.constant dense<0.000000e+00> : vector<64x8xf32>
    %87 = tpu.matmul %80, %86, %cst_49 {dimension_numbers = #tpu.dot_dimension_numbers<[1], [0], [0], [1], [0, 0, 1, 1], [], []>} : vector<64x8xbf16>, vector<8x8xbf16>, vector<64x8xf32> -> vector<64x8xf32>
    %88 = arith.addf %84, %87 : vector<64x8xf32>
    %89 = vector.extract_strided_slice %1 {offsets = [2, 0, 0], sizes = [8, 8, 32], strides = [1, 1, 1]} : vector<10x10x32xf32> to vector<8x8x32xf32>
    %90 = vector.shape_cast %89 : vector<8x8x32xf32> to vector<64x32xf32>
    %91 = arith.truncf %90 : vector<64x32xf32> to vector<64x32xbf16>
    %92 = vector.extract_strided_slice %3 {offsets = [2, 0, 0], sizes = [8, 8, 8], strides = [1, 1, 1]} : vector<10x10x8xf32> to vector<8x8x8xf32>
    %93 = vector.shape_cast %92 : vector<8x8x8xf32> to vector<64x8xf32>
    %94 = arith.truncf %93 : vector<64x8xf32> to vector<64x8xbf16>
    %c6 = arith.constant 6 : index
    %c0_50 = arith.constant 0 : index
    %c0_51 = arith.constant 0 : index
    %95 = vector.load %arg3[%c6, %c0_50, %c0_51] : memref<9x32x8xbf16, #tpu.memory_space<vmem>>, vector<1x32x8xbf16>
    %96 = vector.shape_cast %95 : vector<1x32x8xbf16> to vector<32x8xbf16>
    %cst_52 = arith.constant dense<0.000000e+00> : vector<64x8xf32>
    %97 = tpu.matmul %91, %96, %cst_52 {dimension_numbers = #tpu.dot_dimension_numbers<[1], [0], [0], [1], [0, 0, 1, 1], [], []>} : vector<64x32xbf16>, vector<32x8xbf16>, vector<64x8xf32> -> vector<64x8xf32>
    %98 = arith.addf %88, %97 : vector<64x8xf32>
    %c6_53 = arith.constant 6 : index
    %c0_54 = arith.constant 0 : index
    %c0_55 = arith.constant 0 : index
    %99 = vector.load %arg4[%c6_53, %c0_54, %c0_55] : memref<9x8x8xbf16, #tpu.memory_space<vmem>>, vector<1x8x8xbf16>
    %100 = vector.shape_cast %99 : vector<1x8x8xbf16> to vector<8x8xbf16>
    %cst_56 = arith.constant dense<0.000000e+00> : vector<64x8xf32>
    %101 = tpu.matmul %94, %100, %cst_56 {dimension_numbers = #tpu.dot_dimension_numbers<[1], [0], [0], [1], [0, 0, 1, 1], [], []>} : vector<64x8xbf16>, vector<8x8xbf16>, vector<64x8xf32> -> vector<64x8xf32>
    %102 = arith.addf %98, %101 : vector<64x8xf32>
    %103 = vector.extract_strided_slice %1 {offsets = [2, 1, 0], sizes = [8, 8, 32], strides = [1, 1, 1]} : vector<10x10x32xf32> to vector<8x8x32xf32>
    %104 = vector.shape_cast %103 : vector<8x8x32xf32> to vector<64x32xf32>
    %105 = arith.truncf %104 : vector<64x32xf32> to vector<64x32xbf16>
    %106 = vector.extract_strided_slice %3 {offsets = [2, 1, 0], sizes = [8, 8, 8], strides = [1, 1, 1]} : vector<10x10x8xf32> to vector<8x8x8xf32>
    %107 = vector.shape_cast %106 : vector<8x8x8xf32> to vector<64x8xf32>
    %108 = arith.truncf %107 : vector<64x8xf32> to vector<64x8xbf16>
    %c7 = arith.constant 7 : index
    %c0_57 = arith.constant 0 : index
    %c0_58 = arith.constant 0 : index
    %109 = vector.load %arg3[%c7, %c0_57, %c0_58] : memref<9x32x8xbf16, #tpu.memory_space<vmem>>, vector<1x32x8xbf16>
    %110 = vector.shape_cast %109 : vector<1x32x8xbf16> to vector<32x8xbf16>
    %cst_59 = arith.constant dense<0.000000e+00> : vector<64x8xf32>
    %111 = tpu.matmul %105, %110, %cst_59 {dimension_numbers = #tpu.dot_dimension_numbers<[1], [0], [0], [1], [0, 0, 1, 1], [], []>} : vector<64x32xbf16>, vector<32x8xbf16>, vector<64x8xf32> -> vector<64x8xf32>
    %112 = arith.addf %102, %111 : vector<64x8xf32>
    %c7_60 = arith.constant 7 : index
    %c0_61 = arith.constant 0 : index
    %c0_62 = arith.constant 0 : index
    %113 = vector.load %arg4[%c7_60, %c0_61, %c0_62] : memref<9x8x8xbf16, #tpu.memory_space<vmem>>, vector<1x8x8xbf16>
    %114 = vector.shape_cast %113 : vector<1x8x8xbf16> to vector<8x8xbf16>
    %cst_63 = arith.constant dense<0.000000e+00> : vector<64x8xf32>
    %115 = tpu.matmul %108, %114, %cst_63 {dimension_numbers = #tpu.dot_dimension_numbers<[1], [0], [0], [1], [0, 0, 1, 1], [], []>} : vector<64x8xbf16>, vector<8x8xbf16>, vector<64x8xf32> -> vector<64x8xf32>
    %116 = arith.addf %112, %115 : vector<64x8xf32>
    %117 = vector.extract_strided_slice %1 {offsets = [2, 2, 0], sizes = [8, 8, 32], strides = [1, 1, 1]} : vector<10x10x32xf32> to vector<8x8x32xf32>
    %118 = vector.shape_cast %117 : vector<8x8x32xf32> to vector<64x32xf32>
    %119 = arith.truncf %118 : vector<64x32xf32> to vector<64x32xbf16>
    %120 = vector.extract_strided_slice %3 {offsets = [2, 2, 0], sizes = [8, 8, 8], strides = [1, 1, 1]} : vector<10x10x8xf32> to vector<8x8x8xf32>
    %121 = vector.shape_cast %120 : vector<8x8x8xf32> to vector<64x8xf32>
    %122 = arith.truncf %121 : vector<64x8xf32> to vector<64x8xbf16>
    %c8 = arith.constant 8 : index
    %c0_64 = arith.constant 0 : index
    %c0_65 = arith.constant 0 : index
    %123 = vector.load %arg3[%c8, %c0_64, %c0_65] : memref<9x32x8xbf16, #tpu.memory_space<vmem>>, vector<1x32x8xbf16>
    %124 = vector.shape_cast %123 : vector<1x32x8xbf16> to vector<32x8xbf16>
    %cst_66 = arith.constant dense<0.000000e+00> : vector<64x8xf32>
    %125 = tpu.matmul %119, %124, %cst_66 {dimension_numbers = #tpu.dot_dimension_numbers<[1], [0], [0], [1], [0, 0, 1, 1], [], []>} : vector<64x32xbf16>, vector<32x8xbf16>, vector<64x8xf32> -> vector<64x8xf32>
    %126 = arith.addf %116, %125 : vector<64x8xf32>
    %c8_67 = arith.constant 8 : index
    %c0_68 = arith.constant 0 : index
    %c0_69 = arith.constant 0 : index
    %127 = vector.load %arg4[%c8_67, %c0_68, %c0_69] : memref<9x8x8xbf16, #tpu.memory_space<vmem>>, vector<1x8x8xbf16>
    %128 = vector.shape_cast %127 : vector<1x8x8xbf16> to vector<8x8xbf16>
    %cst_70 = arith.constant dense<0.000000e+00> : vector<64x8xf32>
    %129 = tpu.matmul %122, %128, %cst_70 {dimension_numbers = #tpu.dot_dimension_numbers<[1], [0], [0], [1], [0, 0, 1, 1], [], []>} : vector<64x8xbf16>, vector<8x8xbf16>, vector<64x8xf32> -> vector<64x8xf32>
    %130 = arith.addf %126, %129 : vector<64x8xf32>
    %c0_71 = arith.constant 0 : index
    %c0_72 = arith.constant 0 : index
    %131 = vector.load %arg5[%c0_71, %c0_72] : memref<1x8xf32, #tpu.memory_space<vmem>>, vector<1x8xf32>
    %132 = vector.broadcast %131 : vector<1x8xf32> to vector<64x8xf32>
    %133 = arith.mulf %130, %132 : vector<64x8xf32>
    %c0_73 = arith.constant 0 : index
    %c0_74 = arith.constant 0 : index
    %134 = vector.load %arg6[%c0_73, %c0_74] : memref<1x8xf32, #tpu.memory_space<vmem>>, vector<1x8xf32>
    %135 = vector.broadcast %134 : vector<1x8xf32> to vector<64x8xf32>
    %136 = arith.addf %133, %135 : vector<64x8xf32>
    %137 = arith.truncf %136 : vector<64x8xf32> to vector<64x8xbf16>
    %c0_75 = arith.constant 0 : index
    %c0_76 = arith.constant 0 : index
    %138 = vector.load %arg7[%c0_75, %c0_76] : memref<8x5xbf16, #tpu.memory_space<vmem>>, vector<8x5xbf16>
    %cst_77 = arith.constant dense<0.000000e+00> : vector<64x5xf32>
    %139 = tpu.matmul %137, %138, %cst_77 {dimension_numbers = #tpu.dot_dimension_numbers<[1], [0], [0], [1], [0, 0, 1, 1], [], []>} : vector<64x8xbf16>, vector<8x5xbf16>, vector<64x5xf32> -> vector<64x5xf32>
    %c0_78 = arith.constant 0 : index
    %c0_79 = arith.constant 0 : index
    %140 = vector.load %arg8[%c0_78, %c0_79] : memref<1x5xf32, #tpu.memory_space<vmem>>, vector<1x5xf32>
    %141 = vector.broadcast %140 : vector<1x5xf32> to vector<64x5xf32>
    %142 = arith.addf %139, %141 : vector<64x5xf32>
    %143 = vector.shape_cast %142 : vector<64x5xf32> to vector<8x8x5xf32>
    %c0_80 = arith.constant 0 : index
    %c0_81 = arith.constant 0 : index
    %c0_82 = arith.constant 0 : index
    %c0_83 = arith.constant 0 : index
    %144 = vector.load %arg9[%c0_80, %c0_81, %c0_82, %c0_83] : memref<1x8x8x5xf32, #tpu.memory_space<vmem>>, vector<1x8x8x5xf32>
    %145 = vector.shape_cast %144 : vector<1x8x8x5xf32> to vector<8x8x5xf32>
    %146 = vector.shape_cast %143 : vector<8x8x5xf32> to vector<1x8x8x5xf32>
    tpu.vector_store %arg9[%c0_80, %c0_81, %c0_82, %c0_83], %146 {strides = array<i32>} : memref<1x8x8x5xf32, #tpu.memory_space<vmem>>, vector<1x8x8x5xf32>,
    return
  }
  func.func @transform_0(%arg0: i32) -> (i32, i32, i32, i32) {
    %c0_i32 = arith.constant 0 : i32
    %c0_i32_0 = arith.constant 0 : i32
    %c0_i32_1 = arith.constant 0 : i32
    %c0_i32_2 = arith.constant 0 : i32
    return %arg0, %c0_i32, %c0_i32_0, %c0_i32_1 : i32, i32, i32, i32
  }
  func.func @transform_1(%arg0: i32) -> (i32, i32, i32, i32) {
    %c0_i32 = arith.constant 0 : i32
    %c0_i32_0 = arith.constant 0 : i32
    %c0_i32_1 = arith.constant 0 : i32
    %c0_i32_2 = arith.constant 0 : i32
    return %arg0, %c0_i32, %c0_i32_0, %c0_i32_1 : i32, i32, i32, i32
  }
  func.func @transform_2(%arg0: i32) -> (i32, i32, i32) {
    %c0_i32 = arith.constant 0 : i32
    %c0_i32_0 = arith.constant 0 : i32
    %c0_i32_1 = arith.constant 0 : i32
    %c0_i32_2 = arith.constant 0 : i32
    return %c0_i32, %c0_i32_0, %c0_i32_1 : i32, i32, i32
  }
  func.func @transform_3(%arg0: i32) -> (i32, i32, i32) {
    %c0_i32 = arith.constant 0 : i32
    %c0_i32_0 = arith.constant 0 : i32
    %c0_i32_1 = arith.constant 0 : i32
    %c0_i32_2 = arith.constant 0 : i32
    return %c0_i32, %c0_i32_0, %c0_i32_1 : i32, i32, i32
  }
  func.func @transform_4(%arg0: i32) -> (i32, i32) {
    %c0_i32 = arith.constant 0 : i32
    %c0_i32_0 = arith.constant 0 : i32
    %c0_i32_1 = arith.constant 0 : i32
    return %c0_i32, %c0_i32_0 : i32, i32
  }
  func.func @transform_5(%arg0: i32) -> (i32, i32) {
    %c0_i32 = arith.constant 0 : i32
    %c0_i32_0 = arith.constant 0 : i32
    %c0_i32_1 = arith.constant 0 : i32
    return %c0_i32, %c0_i32_0 : i32, i32
  }
  func.func @transform_6(%arg0: i32) -> (i32, i32) {
    %c0_i32 = arith.constant 0 : i32
    %c0_i32_0 = arith.constant 0 : i32
    %c0_i32_1 = arith.constant 0 : i32
    return %c0_i32, %c0_i32_0 : i32, i32
  }
  func.func @transform_7(%arg0: i32) -> (i32, i32) {
    %c0_i32 = arith.constant 0 : i32
    %c0_i32_0 = arith.constant 0 : i32
    %c0_i32_1 = arith.constant 0 : i32
    return %c0_i32, %c0_i32_0 : i32, i32
  }
  func.func @transform_8(%arg0: i32) -> (i32, i32, i32, i32) {
    %c0_i32 = arith.constant 0 : i32
    %c0_i32_0 = arith.constant 0 : i32
    %c0_i32_1 = arith.constant 0 : i32
    %c0_i32_2 = arith.constant 0 : i32
    return %arg0, %c0_i32, %c0_i32_0, %c0_i32_1 : i32, i32, i32, i32
  }
}

module attributes {stable_mosaic.version = 11 : i64} {
  func.func @_upsample_cls_kernel(%arg0: i32, %arg1: memref<1x5x8x8xf32, #tpu.memory_space<vmem>>, %arg2: memref<64x8xf32, #tpu.memory_space<vmem>>, %arg3: memref<8x64xf32, #tpu.memory_space<vmem>>, %arg4: memref<1x5x64x64xf32, #tpu.memory_space<vmem>>) attributes {dimension_semantics = [#tpu.dimension_semantics<parallel>], iteration_bounds = array<i64: 2>, scalar_prefetch = 0 : i64, scratch_operands = 0 : i64, tpu.core_type = #tpu.core_type<tc>, window_params = [{transform_indices = @transform_0, window_bounds = array<i64: 1, 5, 8, 8>}, {pipeline_mode = #tpu.pipeline_mode<synchronous>, transform_indices = @transform_1, window_bounds = array<i64: 64, 8>}, {pipeline_mode = #tpu.pipeline_mode<synchronous>, transform_indices = @transform_2, window_bounds = array<i64: 8, 64>}, {transform_indices = @transform_3, window_bounds = array<i64: 1, 5, 64, 64>}]} {
    %c0 = arith.constant 0 : index
    %c0_0 = arith.constant 0 : index
    %0 = vector.load %arg2[%c0, %c0_0] : memref<64x8xf32, #tpu.memory_space<vmem>>, vector<64x8xf32>
    %1 = arith.truncf %0 : vector<64x8xf32> to vector<64x8xbf16>
    %c0_1 = arith.constant 0 : index
    %c0_2 = arith.constant 0 : index
    %2 = vector.load %arg3[%c0_1, %c0_2] : memref<8x64xf32, #tpu.memory_space<vmem>>, vector<8x64xf32>
    %3 = arith.truncf %2 : vector<8x64xf32> to vector<8x64xbf16>
    %c0_3 = arith.constant 0 : index
    %c0_4 = arith.constant 0 : index
    %c0_5 = arith.constant 0 : index
    %c0_6 = arith.constant 0 : index
    %4 = vector.load %arg1[%c0_3, %c0_4, %c0_5, %c0_6] : memref<1x5x8x8xf32, #tpu.memory_space<vmem>>, vector<1x1x8x8xf32>
    %5 = vector.shape_cast %4 : vector<1x1x8x8xf32> to vector<8x8xf32>
    %6 = arith.truncf %5 : vector<8x8xf32> to vector<8x8xbf16>
    %cst = arith.constant dense<0.000000e+00> : vector<64x8xf32>
    %7 = tpu.matmul %1, %6, %cst {dimension_numbers = #tpu.dot_dimension_numbers<[1], [0], [0], [1], [0, 0, 1, 1], [], []>} : vector<64x8xbf16>, vector<8x8xbf16>, vector<64x8xf32> -> vector<64x8xf32>
    %8 = arith.truncf %7 : vector<64x8xf32> to vector<64x8xbf16>
    %cst_7 = arith.constant dense<0.000000e+00> : vector<64x64xf32>
    %9 = tpu.matmul %8, %3, %cst_7 {dimension_numbers = #tpu.dot_dimension_numbers<[1], [0], [0], [1], [0, 0, 1, 1], [], []>} : vector<64x8xbf16>, vector<8x64xbf16>, vector<64x64xf32> -> vector<64x64xf32>
    %c0_8 = arith.constant 0 : index
    %c0_9 = arith.constant 0 : index
    %c0_10 = arith.constant 0 : index
    %c0_11 = arith.constant 0 : index
    %10 = vector.load %arg4[%c0_8, %c0_9, %c0_10, %c0_11] : memref<1x5x64x64xf32, #tpu.memory_space<vmem>>, vector<1x1x64x64xf32>
    %11 = vector.shape_cast %10 : vector<1x1x64x64xf32> to vector<64x64xf32>
    %12 = vector.shape_cast %9 : vector<64x64xf32> to vector<1x1x64x64xf32>
    tpu.vector_store %arg4[%c0_8, %c0_9, %c0_10, %c0_11], %12 {strides = array<i32>} : memref<1x5x64x64xf32, #tpu.memory_space<vmem>>, vector<1x1x64x64xf32>,
    %c0_12 = arith.constant 0 : index
    %c1 = arith.constant 1 : index
    %c0_13 = arith.constant 0 : index
    %c0_14 = arith.constant 0 : index
    %13 = vector.load %arg1[%c0_12, %c1, %c0_13, %c0_14] : memref<1x5x8x8xf32, #tpu.memory_space<vmem>>, vector<1x1x8x8xf32>
    %14 = vector.shape_cast %13 : vector<1x1x8x8xf32> to vector<8x8xf32>
    %15 = arith.truncf %14 : vector<8x8xf32> to vector<8x8xbf16>
    %cst_15 = arith.constant dense<0.000000e+00> : vector<64x8xf32>
    %16 = tpu.matmul %1, %15, %cst_15 {dimension_numbers = #tpu.dot_dimension_numbers<[1], [0], [0], [1], [0, 0, 1, 1], [], []>} : vector<64x8xbf16>, vector<8x8xbf16>, vector<64x8xf32> -> vector<64x8xf32>
    %17 = arith.truncf %16 : vector<64x8xf32> to vector<64x8xbf16>
    %cst_16 = arith.constant dense<0.000000e+00> : vector<64x64xf32>
    %18 = tpu.matmul %17, %3, %cst_16 {dimension_numbers = #tpu.dot_dimension_numbers<[1], [0], [0], [1], [0, 0, 1, 1], [], []>} : vector<64x8xbf16>, vector<8x64xbf16>, vector<64x64xf32> -> vector<64x64xf32>
    %c0_17 = arith.constant 0 : index
    %c1_18 = arith.constant 1 : index
    %c0_19 = arith.constant 0 : index
    %c0_20 = arith.constant 0 : index
    %19 = vector.load %arg4[%c0_17, %c1_18, %c0_19, %c0_20] : memref<1x5x64x64xf32, #tpu.memory_space<vmem>>, vector<1x1x64x64xf32>
    %20 = vector.shape_cast %19 : vector<1x1x64x64xf32> to vector<64x64xf32>
    %21 = vector.shape_cast %18 : vector<64x64xf32> to vector<1x1x64x64xf32>
    tpu.vector_store %arg4[%c0_17, %c1_18, %c0_19, %c0_20], %21 {strides = array<i32>} : memref<1x5x64x64xf32, #tpu.memory_space<vmem>>, vector<1x1x64x64xf32>,
    %c0_21 = arith.constant 0 : index
    %c2 = arith.constant 2 : index
    %c0_22 = arith.constant 0 : index
    %c0_23 = arith.constant 0 : index
    %22 = vector.load %arg1[%c0_21, %c2, %c0_22, %c0_23] : memref<1x5x8x8xf32, #tpu.memory_space<vmem>>, vector<1x1x8x8xf32>
    %23 = vector.shape_cast %22 : vector<1x1x8x8xf32> to vector<8x8xf32>
    %24 = arith.truncf %23 : vector<8x8xf32> to vector<8x8xbf16>
    %cst_24 = arith.constant dense<0.000000e+00> : vector<64x8xf32>
    %25 = tpu.matmul %1, %24, %cst_24 {dimension_numbers = #tpu.dot_dimension_numbers<[1], [0], [0], [1], [0, 0, 1, 1], [], []>} : vector<64x8xbf16>, vector<8x8xbf16>, vector<64x8xf32> -> vector<64x8xf32>
    %26 = arith.truncf %25 : vector<64x8xf32> to vector<64x8xbf16>
    %cst_25 = arith.constant dense<0.000000e+00> : vector<64x64xf32>
    %27 = tpu.matmul %26, %3, %cst_25 {dimension_numbers = #tpu.dot_dimension_numbers<[1], [0], [0], [1], [0, 0, 1, 1], [], []>} : vector<64x8xbf16>, vector<8x64xbf16>, vector<64x64xf32> -> vector<64x64xf32>
    %c0_26 = arith.constant 0 : index
    %c2_27 = arith.constant 2 : index
    %c0_28 = arith.constant 0 : index
    %c0_29 = arith.constant 0 : index
    %28 = vector.load %arg4[%c0_26, %c2_27, %c0_28, %c0_29] : memref<1x5x64x64xf32, #tpu.memory_space<vmem>>, vector<1x1x64x64xf32>
    %29 = vector.shape_cast %28 : vector<1x1x64x64xf32> to vector<64x64xf32>
    %30 = vector.shape_cast %27 : vector<64x64xf32> to vector<1x1x64x64xf32>
    tpu.vector_store %arg4[%c0_26, %c2_27, %c0_28, %c0_29], %30 {strides = array<i32>} : memref<1x5x64x64xf32, #tpu.memory_space<vmem>>, vector<1x1x64x64xf32>,
    %c0_30 = arith.constant 0 : index
    %c3 = arith.constant 3 : index
    %c0_31 = arith.constant 0 : index
    %c0_32 = arith.constant 0 : index
    %31 = vector.load %arg1[%c0_30, %c3, %c0_31, %c0_32] : memref<1x5x8x8xf32, #tpu.memory_space<vmem>>, vector<1x1x8x8xf32>
    %32 = vector.shape_cast %31 : vector<1x1x8x8xf32> to vector<8x8xf32>
    %33 = arith.truncf %32 : vector<8x8xf32> to vector<8x8xbf16>
    %cst_33 = arith.constant dense<0.000000e+00> : vector<64x8xf32>
    %34 = tpu.matmul %1, %33, %cst_33 {dimension_numbers = #tpu.dot_dimension_numbers<[1], [0], [0], [1], [0, 0, 1, 1], [], []>} : vector<64x8xbf16>, vector<8x8xbf16>, vector<64x8xf32> -> vector<64x8xf32>
    %35 = arith.truncf %34 : vector<64x8xf32> to vector<64x8xbf16>
    %cst_34 = arith.constant dense<0.000000e+00> : vector<64x64xf32>
    %36 = tpu.matmul %35, %3, %cst_34 {dimension_numbers = #tpu.dot_dimension_numbers<[1], [0], [0], [1], [0, 0, 1, 1], [], []>} : vector<64x8xbf16>, vector<8x64xbf16>, vector<64x64xf32> -> vector<64x64xf32>
    %c0_35 = arith.constant 0 : index
    %c3_36 = arith.constant 3 : index
    %c0_37 = arith.constant 0 : index
    %c0_38 = arith.constant 0 : index
    %37 = vector.load %arg4[%c0_35, %c3_36, %c0_37, %c0_38] : memref<1x5x64x64xf32, #tpu.memory_space<vmem>>, vector<1x1x64x64xf32>
    %38 = vector.shape_cast %37 : vector<1x1x64x64xf32> to vector<64x64xf32>
    %39 = vector.shape_cast %36 : vector<64x64xf32> to vector<1x1x64x64xf32>
    tpu.vector_store %arg4[%c0_35, %c3_36, %c0_37, %c0_38], %39 {strides = array<i32>} : memref<1x5x64x64xf32, #tpu.memory_space<vmem>>, vector<1x1x64x64xf32>,
    %c0_39 = arith.constant 0 : index
    %c4 = arith.constant 4 : index
    %c0_40 = arith.constant 0 : index
    %c0_41 = arith.constant 0 : index
    %40 = vector.load %arg1[%c0_39, %c4, %c0_40, %c0_41] : memref<1x5x8x8xf32, #tpu.memory_space<vmem>>, vector<1x1x8x8xf32>
    %41 = vector.shape_cast %40 : vector<1x1x8x8xf32> to vector<8x8xf32>
    %42 = arith.truncf %41 : vector<8x8xf32> to vector<8x8xbf16>
    %cst_42 = arith.constant dense<0.000000e+00> : vector<64x8xf32>
    %43 = tpu.matmul %1, %42, %cst_42 {dimension_numbers = #tpu.dot_dimension_numbers<[1], [0], [0], [1], [0, 0, 1, 1], [], []>} : vector<64x8xbf16>, vector<8x8xbf16>, vector<64x8xf32> -> vector<64x8xf32>
    %44 = arith.truncf %43 : vector<64x8xf32> to vector<64x8xbf16>
    %cst_43 = arith.constant dense<0.000000e+00> : vector<64x64xf32>
    %45 = tpu.matmul %44, %3, %cst_43 {dimension_numbers = #tpu.dot_dimension_numbers<[1], [0], [0], [1], [0, 0, 1, 1], [], []>} : vector<64x8xbf16>, vector<8x64xbf16>, vector<64x64xf32> -> vector<64x64xf32>
    %c0_44 = arith.constant 0 : index
    %c4_45 = arith.constant 4 : index
    %c0_46 = arith.constant 0 : index
    %c0_47 = arith.constant 0 : index
    %46 = vector.load %arg4[%c0_44, %c4_45, %c0_46, %c0_47] : memref<1x5x64x64xf32, #tpu.memory_space<vmem>>, vector<1x1x64x64xf32>
    %47 = vector.shape_cast %46 : vector<1x1x64x64xf32> to vector<64x64xf32>
    %48 = vector.shape_cast %45 : vector<64x64xf32> to vector<1x1x64x64xf32>
    tpu.vector_store %arg4[%c0_44, %c4_45, %c0_46, %c0_47], %48 {strides = array<i32>} : memref<1x5x64x64xf32, #tpu.memory_space<vmem>>, vector<1x1x64x64xf32>,
    return
  }
  func.func @transform_0(%arg0: i32) -> (i32, i32, i32, i32) {
    %c0_i32 = arith.constant 0 : i32
    %c0_i32_0 = arith.constant 0 : i32
    %c0_i32_1 = arith.constant 0 : i32
    %c0_i32_2 = arith.constant 0 : i32
    return %arg0, %c0_i32, %c0_i32_0, %c0_i32_1 : i32, i32, i32, i32
  }
  func.func @transform_1(%arg0: i32) -> (i32, i32) {
    %c0_i32 = arith.constant 0 : i32
    %c0_i32_0 = arith.constant 0 : i32
    %c0_i32_1 = arith.constant 0 : i32
    return %c0_i32, %c0_i32_0 : i32, i32
  }
  func.func @transform_2(%arg0: i32) -> (i32, i32) {
    %c0_i32 = arith.constant 0 : i32
    %c0_i32_0 = arith.constant 0 : i32
    %c0_i32_1 = arith.constant 0 : i32
    return %c0_i32, %c0_i32_0 : i32, i32
  }
  func.func @transform_3(%arg0: i32) -> (i32, i32, i32, i32) {
    %c0_i32 = arith.constant 0 : i32
    %c0_i32_0 = arith.constant 0 : i32
    %c0_i32_1 = arith.constant 0 : i32
    %c0_i32_2 = arith.constant 0 : i32
    return %arg0, %c0_i32, %c0_i32_0, %c0_i32_1 : i32, i32, i32, i32
  }
}

</mosaic_0001>

<bundles_post_ra>
// kernel: tpu_custom_call.1
= control target key start
LH: loop header
LB: loop body
LE: loop exit
PB: predicated region body
PF: predicated region fallthrough
CT: control target
= control target key end

     0   :  { %6 = vsyncpa [#allocation3], 0  ;;  %s287_s0 = inlined_call_operand.hbm [shape: f32[8,8,8], index: 0, kind: input, shape index: {}]   ;;  %s288_s1 = inlined_call_operand.hbm [shape: f32[8,8,8], index: 1, kind: output, shape index: {}]  }
   0x1   :  { %7 = vsyncpa [#allocation4], 0  ;;  %s251_s6 = smov [#allocation2]  }
   0x2   :  { %s13_s7 = sshll.u32 %s251_s6, 4  ;;  %s14_s7 = int_to_ptr.vmem [resolvable:$true] %s13_s7 }
   0x3   :  { %s215_s8 = scalar_lea.vmem %s14_s7, 1024  ;;  %p220_p1 = scmp.lt.s32.totalorder %s14_s7, %s14_s7 }
   0x4   :  { %p216_p0 = scmp.ne.s32.totalorder %s14_s7, %s215_s8  ;;  %p221_p2 = scmp.lt.s32.totalorder %s215_s8, %s215_s8 }
   0x6   :  { %p222_p3 = por %p221_p2, %p220_p1 }
   0x8   :  { %p223_p4 = pnand %p222_p3, %p216_p0 }
   0xa   :  { %226 = shalt.err (!%p223_p4)
}
   0xb   :  { %s252_s9 = smov 128   ;;  %s253_s10 = smov 8  }
   0xc   :  { %19 = dma.hbm_to_vmem [thread:$0]  %s287_s0, 1024, %s14_s7, [#allocation3], %s252_s9, %s252_s9, %s253_s10  }
   0xd   :  { %247 = dma.done.wait [#allocation3], 1024  }
   0xe   :  { %248 = vsyncadd [#allocation3], 4294966272  ;;  %v36_v0 = vlaneseq  ;;  %v254_v1 = vmov 1983009808   ;;  %v255_v5 = vmov 1934713408  }
   0xf   :  { %v34_v2 = vunpack.c.l.s4 %v254_v1  ;;  %v98_v6 = vunpack.c.l.s4 %v255_v5  ;;  %v23_v8 = vld [vmem:[#allocation2] sm:$0xff]  ;;  %v24_v9 = vld [vmem:[#allocation2 + $0x8] sm:$0xff]  ;;  %v25_v10 = vld [vmem:[#allocation2 + $0x10] sm:$0xff]  ;;  %s256_s0 = smov [#allocation5]   ;;  %vm167_vm0 = vcmask 64512  }
  0x10   :  { %v37_v3 = vshrl.u32 %v36_v0, 7  ;;  %v26_v12 = vld [vmem:[#allocation2 + $0x18] sm:$0xff]  ;;  %v27_v13 = vld [vmem:[#allocation2 + $0x20] sm:$0xff]  ;;  %v28_v14 = vld [vmem:[#allocation2 + $0x28] sm:$0xff]  ;;  %v32_v15 = vcombine.high %v23_v8, %v25_v10  ;;  %s181_s13 = sshll.u32 %s256_s0, 4  ;;  %s182_s13 = int_to_ptr.vmem [resolvable:$true] %s181_s13 }
  0x11   :  { %v35_v4 = vunpack.c.0.s8 %v34_v2  ;;  %v99_v11 = vunpack.c.0.s8 %v98_v6  ;;  %v29_v16 = vld [vmem:[#allocation2 + $0x30] sm:$0xff]  ;;  %v30_v17 = vld [vmem:[#allocation2 + $0x38] sm:$0xff]  ;;  %v48_v19 = vcombine.high %v24_v9, %v26_v12  ;;  %s227_s14 = scalar_lea.vmem %s182_s13, 1024  ;;  %p232_p6 = scmp.lt.s32.totalorder %s182_s13, %s182_s13 }
  0x12   :  { %v199_v18 = vld [vmem:[#allocation2] ss:$16 sps:$4 sm:$0xff]   ;;  %v201_v20 = vld [vmem:[#allocation2 + $0x8] ss:$16 sps:$4 sm:$0xff]   ;;  %v64_v24 = vcombine.high %v27_v13, %v29_v16  ;;  %v80_v25 = vcombine.high %v28_v14, %v30_v17  ;;  %p228_p5 = scmp.ne.s32.totalorder %s182_s13, %s227_s14  ;;  %p233_p7 = scmp.lt.s32.totalorder %s227_s14, %s227_s14 }
  0x13   :  { %v38_v7 = vsub.s32 %v35_v4, %v37_v3  ;;  %v203_v21 = vld [vmem:[#allocation2 + $0x20] ss:$16 sps:$4 sm:$0xff]   ;;  %v205_v22 = vld [vmem:[#allocation2 + $0x28] ss:$16 sps:$4 sm:$0xff]   ;;  %v102_v27 = vsub.s32 %v99_v11, %v37_v3 }
  0x14   :  { %p234_p8 = por %p233_p7, %p232_p6 }
  0x15   :  { %v46_v23 = vrot.slane %v32_v15, %v38_v7  ;;  %v39_v26 = vrot.slane %v199_v18, %v38_v7  ;;  %v62_v28 = vrot.slane %v48_v19, %v38_v7  ;;  %v55_v29 = vrot.slane %v201_v20, %v38_v7 }
  0x16   :  { %v71_v30 = vrot.slane %v203_v21, %v38_v7  ;;  %v87_v31 = vrot.slane %v205_v22, %v38_v7  ;;  %v78_v32 = vrot.slane %v64_v24, %v38_v7  ;;  %v94_v33 = vrot.slane %v80_v25, %v38_v7  ;;  %p235_p9 = pnand %p234_p8, %p228_p5 }
  0x17   :  { %v111_v34 = vcombine.low %v46_v23, %v62_v28  ;;  %v112_v35 = vcombine.high %v46_v23, %v62_v28  ;;  %v95_v36 = vcombine.low %v39_v26, %v55_v29  ;;  %v96_v38 = vcombine.high %v39_v26, %v55_v29 }
  0x18   :  { %v127_v37 = vcombine.low %v71_v30, %v87_v31  ;;  %v128_v39 = vcombine.high %v71_v30, %v87_v31  ;;  %v143_v41 = vcombine.low %v78_v32, %v94_v33  ;;  %v144_v43 = vcombine.high %v78_v32, %v94_v33 }
  0x19   :  { %v119_v40 = vrot.slane %v111_v34, %v102_v27  ;;  %v126_v42 = vrot.slane %v112_v35, %v102_v27  ;;  %v103_v44 = vrot.slane %v95_v36, %v102_v27  ;;  %v110_v46 = vrot.slane %v96_v38, %v102_v27 }
  0x1a   :  { %v135_v45 = vrot.slane %v127_v37, %v102_v27  ;;  %v142_v47 = vrot.slane %v128_v39, %v102_v27  ;;  %v151_v48 = vrot.slane %v143_v41, %v102_v27  ;;  %v158_v49 = vrot.slane %v144_v43, %v102_v27 }
  0x1c   :  { %v159_v50 = vcombine.low %v103_v44, %v135_v45  ;;  %v160_v51 = vcombine.high %v103_v44, %v135_v45  ;;  %v161_v52 = vcombine.low %v110_v46, %v142_v47  ;;  %v162_v53 = vcombine.high %v110_v46, %v142_v47 }
  0x1d   :  { %v163_v54 = vcombine.low %v119_v40, %v151_v48  ;;  %v164_v55 = vcombine.high %v119_v40, %v151_v48  ;;  %v165_v56 = vcombine.low %v126_v42, %v158_v49  ;;  %v166_v57 = vcombine.high %v126_v42, %v158_v49 }
  0x1e   :  { %168 = vst.msk [vmem:[#allocation5] sm:$0xff] %vm167_vm0, %v159_v50  ;;  %169 = vst.msk [vmem:[#allocation5 + $0x8] sm:$0xff] %vm167_vm0, %v160_v51 }
  0x1f   :  { %170 = vst.msk [vmem:[#allocation5 + $0x10] sm:$0xff] %vm167_vm0, %v161_v52  ;;  %171 = vst.msk [vmem:[#allocation5 + $0x18] sm:$0xff] %vm167_vm0, %v162_v53 }
  0x20   :  { %172 = vst.msk [vmem:[#allocation5 + $0x20] sm:$0xff] %vm167_vm0, %v163_v54  ;;  %173 = vst.msk [vmem:[#allocation5 + $0x28] sm:$0xff] %vm167_vm0, %v164_v55 }
  0x21   :  { %174 = vst.msk [vmem:[#allocation5 + $0x30] sm:$0xff] %vm167_vm0, %v165_v56  ;;  %175 = vst.msk [vmem:[#allocation5 + $0x38] sm:$0xff] %vm167_vm0, %v166_v57 }
  0x22   :  { %238 = shalt.err (!%p235_p9)
}
  0x23   :  { %187 = dma.vmem_to_hbm [thread:$0]  %s182_s13, 1024, %s288_s1, [#allocation4], %s252_s9, %s252_s9, %s253_s10  }
  0x24   :  { %249 = dma.done.wait [#allocation4], 1024  }
  0x25   :  { %250 = vsyncadd [#allocation4], 4294966272 }
  0x26   :  { %191 = vsyncpa [#allocation3], 1 }
  0x27   :  { %192 = vsyncpa [#allocation4], 1 }

// kernel: tpu_custom_call.1
= control target key start
LH: loop header
LB: loop body
LE: loop exit
PB: predicated region body
PF: predicated region fallthrough
CT: control target
= control target key end

     0   :  { %6 = vsyncpa [#allocation3], 0  ;;  %s287_s0 = inlined_call_operand.hbm [shape: f32[8,8,8], index: 0, kind: input, shape index: {}]   ;;  %s288_s1 = inlined_call_operand.hbm [shape: f32[8,8,8], index: 1, kind: output, shape index: {}]  }
   0x1   :  { %7 = vsyncpa [#allocation4], 0  ;;  %s251_s6 = smov [#allocation2]  }
   0x2   :  { %s13_s7 = sshll.u32 %s251_s6, 4  ;;  %s14_s7 = int_to_ptr.vmem [resolvable:$true] %s13_s7 }
   0x3   :  { %s215_s8 = scalar_lea.vmem %s14_s7, 1024  ;;  %p220_p1 = scmp.lt.s32.totalorder %s14_s7, %s14_s7 }
   0x4   :  { %p216_p0 = scmp.ne.s32.totalorder %s14_s7, %s215_s8  ;;  %p221_p2 = scmp.lt.s32.totalorder %s215_s8, %s215_s8 }
   0x6   :  { %p222_p3 = por %p221_p2, %p220_p1 }
   0x8   :  { %p223_p4 = pnand %p222_p3, %p216_p0 }
   0xa   :  { %226 = shalt.err (!%p223_p4)
}
   0xb   :  { %s252_s9 = smov 128   ;;  %s253_s10 = smov 8  }
   0xc   :  { %19 = dma.hbm_to_vmem [thread:$0]  %s287_s0, 1024, %s14_s7, [#allocation3], %s252_s9, %s252_s9, %s253_s10  }
   0xd   :  { %247 = dma.done.wait [#allocation3], 1024  }
   0xe   :  { %248 = vsyncadd [#allocation3], 4294966272  ;;  %v36_v0 = vlaneseq  ;;  %v254_v1 = vmov 1983009808   ;;  %v255_v5 = vmov 1934713408  }
   0xf   :  { %v34_v2 = vunpack.c.l.s4 %v254_v1  ;;  %v98_v6 = vunpack.c.l.s4 %v255_v5  ;;  %v23_v8 = vld [vmem:[#allocation2] sm:$0xff]  ;;  %v24_v9 = vld [vmem:[#allocation2 + $0x8] sm:$0xff]  ;;  %v25_v10 = vld [vmem:[#allocation2 + $0x10] sm:$0xff]  ;;  %s256_s0 = smov [#allocation5]   ;;  %vm167_vm0 = vcmask 64512  }
  0x10   :  { %v37_v3 = vshrl.u32 %v36_v0, 7  ;;  %v26_v12 = vld [vmem:[#allocation2 + $0x18] sm:$0xff]  ;;  %v27_v13 = vld [vmem:[#allocation2 + $0x20] sm:$0xff]  ;;  %v28_v14 = vld [vmem:[#allocation2 + $0x28] sm:$0xff]  ;;  %v32_v15 = vcombine.high %v23_v8, %v25_v10  ;;  %s181_s13 = sshll.u32 %s256_s0, 4  ;;  %s182_s13 = int_to_ptr.vmem [resolvable:$true] %s181_s13 }
  0x11   :  { %v35_v4 = vunpack.c.0.s8 %v34_v2  ;;  %v99_v11 = vunpack.c.0.s8 %v98_v6  ;;  %v29_v16 = vld [vmem:[#allocation2 + $0x30] sm:$0xff]  ;;  %v30_v17 = vld [vmem:[#allocation2 + $0x38] sm:$0xff]  ;;  %v48_v19 = vcombine.high %v24_v9, %v26_v12  ;;  %s227_s14 = scalar_lea.vmem %s182_s13, 1024  ;;  %p232_p6 = scmp.lt.s32.totalorder %s182_s13, %s182_s13 }
  0x12   :  { %v199_v18 = vld [vmem:[#allocation2] ss:$16 sps:$4 sm:$0xff]   ;;  %v201_v20 = vld [vmem:[#allocation2 + $0x8] ss:$16 sps:$4 sm:$0xff]   ;;  %v64_v24 = vcombine.high %v27_v13, %v29_v16  ;;  %v80_v25 = vcombine.high %v28_v14, %v30_v17  ;;  %p228_p5 = scmp.ne.s32.totalorder %s182_s13, %s227_s14  ;;  %p233_p7 = scmp.lt.s32.totalorder %s227_s14, %s227_s14 }
  0x13   :  { %v38_v7 = vsub.s32 %v35_v4, %v37_v3  ;;  %v203_v21 = vld [vmem:[#allocation2 + $0x20] ss:$16 sps:$4 sm:$0xff]   ;;  %v205_v22 = vld [vmem:[#allocation2 + $0x28] ss:$16 sps:$4 sm:$0xff]   ;;  %v102_v27 = vsub.s32 %v99_v11, %v37_v3 }
  0x14   :  { %p234_p8 = por %p233_p7, %p232_p6 }
  0x15   :  { %v46_v23 = vrot.slane %v32_v15, %v38_v7  ;;  %v39_v26 = vrot.slane %v199_v18, %v38_v7  ;;  %v62_v28 = vrot.slane %v48_v19, %v38_v7  ;;  %v55_v29 = vrot.slane %v201_v20, %v38_v7 }
  0x16   :  { %v71_v30 = vrot.slane %v203_v21, %v38_v7  ;;  %v87_v31 = vrot.slane %v205_v22, %v38_v7  ;;  %v78_v32 = vrot.slane %v64_v24, %v38_v7  ;;  %v94_v33 = vrot.slane %v80_v25, %v38_v7  ;;  %p235_p9 = pnand %p234_p8, %p228_p5 }
  0x17   :  { %v111_v34 = vcombine.low %v46_v23, %v62_v28  ;;  %v112_v35 = vcombine.high %v46_v23, %v62_v28  ;;  %v95_v36 = vcombine.low %v39_v26, %v55_v29  ;;  %v96_v38 = vcombine.high %v39_v26, %v55_v29 }
  0x18   :  { %v127_v37 = vcombine.low %v71_v30, %v87_v31  ;;  %v128_v39 = vcombine.high %v71_v30, %v87_v31  ;;  %v143_v41 = vcombine.low %v78_v32, %v94_v33  ;;  %v144_v43 = vcombine.high %v78_v32, %v94_v33 }
  0x19   :  { %v119_v40 = vrot.slane %v111_v34, %v102_v27  ;;  %v126_v42 = vrot.slane %v112_v35, %v102_v27  ;;  %v103_v44 = vrot.slane %v95_v36, %v102_v27  ;;  %v110_v46 = vrot.slane %v96_v38, %v102_v27 }
  0x1a   :  { %v135_v45 = vrot.slane %v127_v37, %v102_v27  ;;  %v142_v47 = vrot.slane %v128_v39, %v102_v27  ;;  %v151_v48 = vrot.slane %v143_v41, %v102_v27  ;;  %v158_v49 = vrot.slane %v144_v43, %v102_v27 }
  0x1c   :  { %v159_v50 = vcombine.low %v103_v44, %v135_v45  ;;  %v160_v51 = vcombine.high %v103_v44, %v135_v45  ;;  %v161_v52 = vcombine.low %v110_v46, %v142_v47  ;;  %v162_v53 = vcombine.high %v110_v46, %v142_v47 }
  0x1d   :  { %v163_v54 = vcombine.low %v119_v40, %v151_v48  ;;  %v164_v55 = vcombine.high %v119_v40, %v151_v48  ;;  %v165_v56 = vcombine.low %v126_v42, %v158_v49  ;;  %v166_v57 = vcombine.high %v126_v42, %v158_v49 }
  0x1e   :  { %168 = vst.msk [vmem:[#allocation5] sm:$0xff] %vm167_vm0, %v159_v50  ;;  %169 = vst.msk [vmem:[#allocation5 + $0x8] sm:$0xff] %vm167_vm0, %v160_v51 }
  0x1f   :  { %170 = vst.msk [vmem:[#allocation5 + $0x10] sm:$0xff] %vm167_vm0, %v161_v52  ;;  %171 = vst.msk [vmem:[#allocation5 + $0x18] sm:$0xff] %vm167_vm0, %v162_v53 }
  0x20   :  { %172 = vst.msk [vmem:[#allocation5 + $0x20] sm:$0xff] %vm167_vm0, %v163_v54  ;;  %173 = vst.msk [vmem:[#allocation5 + $0x28] sm:$0xff] %vm167_vm0, %v164_v55 }
  0x21   :  { %174 = vst.msk [vmem:[#allocation5 + $0x30] sm:$0xff] %vm167_vm0, %v165_v56  ;;  %175 = vst.msk [vmem:[#allocation5 + $0x38] sm:$0xff] %vm167_vm0, %v166_v57 }
  0x22   :  { %238 = shalt.err (!%p235_p9)
}
  0x23   :  { %187 = dma.vmem_to_hbm [thread:$0]  %s182_s13, 1024, %s288_s1, [#allocation4], %s252_s9, %s252_s9, %s253_s10  }
  0x24   :  { %249 = dma.done.wait [#allocation4], 1024  }
  0x25   :  { %250 = vsyncadd [#allocation4], 4294966272 }
  0x26   :  { %191 = vsyncpa [#allocation3], 1 }
  0x27   :  { %192 = vsyncpa [#allocation4], 1 }

// kernel: rcca_forward.6
= control target key start
LH: loop header
LB: loop body
LE: loop exit
PB: predicated region body
PF: predicated region fallthrough
CT: control target
= control target key end

     0   :  { %s1642_s15 = smov 0   ;;  %s2025_s0 = inlined_call_operand.vmem [shape: f32[2,10,10,32], index: 0, kind: input, shape index: {}]   ;;  %s2026_s1 = inlined_call_operand.vmem [shape: bf16[9,32,8], index: 1, kind: input, shape index: {}]   ;;  %s2027_s2 = inlined_call_operand.vmem [shape: f32[1,8], index: 2, kind: input, shape index: {}]   ;;  %s2028_s3 = inlined_call_operand.vmem [shape: f32[1,8], index: 3, kind: input, shape index: {}]   ;;  %s2029_s4 = inlined_call_operand.vmem [shape: f32[2,8,8,8], index: 4, kind: output, shape index: {}]  }
   0x1 LB: > { %s1317_s16 = sadd.s32 4294967295, %s1615_s15   ;;  %p1321_p0 = scmp.ge.s32.totalorder %s1615_s15, 1  ;;  %s1615_s15 = sphi %s1642_s15, %s14_s15  }
   0x2   : > { %p162_p1 = scmp.lt.s32.totalorder %s1615_s15, 3 }
   0x4   : > { %p163_p2 = pnand %p1321_p0, %p162_p1 }
   0x5   : > { %p188_p3 = scmp.lt.s32.totalorder (!%p163_p2), %s1317_s16, 1 }
   0x6   : > { %166 = sbr.rel (%p163_p2) target bundleno = 300 (0x12c), region = 36 }
   0xb   : > { %v1591_v0 = vld [vmem:[%s2026_s1 + $0x18] sm:$0xff]   ;;  %v1592_v1 = vld [vmem:[%s2026_s1 + $0x10] sm:$0xff]   ;;  %s2031_s16 = smov (!%p188_p3, %s1317_s16), 1  ;;  %v1661_v2 = vld [vmem:[%s2026_s1 + $0x8] sm:$0xff]   ;;  %vm243_vm0 = vcmask 1046528   ;;  %vm297_vm1 = vcmask 261120  }
   0xc   : > { %1578 = vmatprep.subr.bf16.mxu1 %v1591_v0  ;;  %1470 = vmatprep.subr.bf16.mxu0 %v1591_v0  ;;  %s1582_s23 = smul.u32 160, %s2031_s16  ;;  %v1667_v3 = vld [vmem:[%s2026_s1 + $0x28] sm:$0xff]   ;;  %vm464_vm2 = vcmask 1045504   ;;  %v1596_v51 = vld [vmem:[%s2026_s1 + $0x20] sm:$0xff]   ;;  %s1415_s9 = sshll.u32 %s2031_s16, 6  ;;  %vm1253_vm3 = vcmask 64512  }
   0xd   : > { %1580 = vmatpush3.bf16.msra.mxu1 %v1591_v0  ;;  %1471 = vmatpush3.bf16.msra.mxu0 %v1591_v0  ;;  %v1595_v58 = vld [vmem:[%s2026_s1] sm:$0xff]   ;;  %v1598_v0 = vld [vmem:[%s2026_s1 + $0x48] sm:$0xff]   ;;  %s1994_s13 = scalar_lea.vmem %s2029_s4, %s1415_s9 }
   0xe   : > { %1579 = vmatprep.subr.bf16.mxu1 %v1592_v1  ;;  %1472 = vmatprep.subr.bf16.mxu0 %v1592_v1  ;;  %s1672_s28 = scalar_lea.vmem %s2025_s0, %s1582_s23 }
   0xf   : > { %v1675_v4 = vld [vmem:[%s1672_s28] sm:$0xff]  ;;  %v1678_v5 = vld [vmem:[%s1672_s28 + $0x8] sm:$0x3]  ;;  %v1681_v6 = vld [vmem:[%s1672_s28 + $0x10] sm:$0xff] }
  0x10   : > { %v1684_v7 = vld [vmem:[%s1672_s28 + $0x18] sm:$0x3]  ;;  %v1687_v8 = vld [vmem:[%s1672_s28 + $0x20] sm:$0xff]  ;;  %v1690_v9 = vld [vmem:[%s1672_s28 + $0x28] sm:$0x3]  ;;  %v244_v10 = vrot.slane %v1675_v4, 1  ;;  %v219_v33 = vpack.c.bf16 %v1681_v6, %v1675_v4 }
  0x11   : > { %1581 = vmatpush3.bf16.msra.mxu1 %v1592_v1  ;;  %1473 = vmatpush3.bf16.msra.mxu0 %v1592_v1  ;;  %v245_v11 = vrot.slane %v1678_v5, 1  ;;  %v247_v12 = vrot.slane %v1681_v6, 1  ;;  %v248_v13 = vrot.slane %v1684_v7, 1  ;;  %v250_v14 = vrot.slane %v1687_v8, 1  ;;  %v1700_v15 = vld [vmem:[%s1672_s28 + $0x30] sm:$0xff]  ;;  %v1707_v20 = vld [vmem:[%s1672_s28 + $0x40] sm:$0xff] }
  0x12   : > { %1482 = vmatprep.subr.bf16.mxu1 %v1661_v2  ;;  %1494 = vmatprep.subr.bf16.mxu0 %v1667_v3  ;;  %v251_v16 = vrot.slane %v1690_v9, 1  ;;  %v465_v17 = vrot.slane %v1675_v4, 2  ;;  %v466_v18 = vrot.slane %v1678_v5, 2  ;;  %v206_v19 = vld [vmem:[%s1672_s28 + $0x38] sm:$0x3]  ;;  %v471_v23 = vrot.slane %v1687_v8, 2 }
  0x13   : > { %v246_v21 = vsel %vm243_vm0, %v244_v10, %v245_v11  ;;  %v1711_v22 = vsel %vm243_vm0, %v247_v12, %v248_v13  ;;  %v472_v24 = vrot.slane %v1690_v9, 2  ;;  %v208_v25 = vld [vmem:[%s1672_s28 + $0x48] sm:$0x3]  ;;  %v1717_v26 = vld [vmem:[%s1672_s28 + $0x50] sm:$0xff]  ;;  %v1720_v27 = vld [vmem:[%s1672_s28 + $0x60] sm:$0xff]  ;;  %v253_v32 = vrot.slane %v1700_v15, 1 }
  0x14   : > { %v276_v28 = vpack.c.bf16 %v1711_v22, %v246_v21  ;;  %v210_v29 = vld [vmem:[%s1672_s28 + $0x58] sm:$0x3]  ;;  %v1725_v30 = vld [vmem:[%s1672_s28 + $0x68] sm:$0x3]  ;;  %v1728_v31 = vld [vmem:[%s1672_s28 + $0x70] sm:$0xff]  ;;  %v1734_v34 = vsel %vm243_vm0, %v250_v14, %v251_v16  ;;  %v254_v36 = vrot.slane %v206_v19, 1  ;;  %v467_v60 = vsel %vm464_vm2, %v465_v17, %v466_v18 }
  0x15   : > { %v1737_v35 = vld [vmem:[%s1672_s28 + $0x78] sm:$0x3]  ;;  %v256_v37 = vrot.slane %v1707_v20, 1  ;;  %v257_v38 = vrot.slane %v208_v25, 1  ;;  %v259_v39 = vrot.slane %v1717_v26, 1  ;;  %v260_v40 = vrot.slane %v210_v29, 1 }
  0x16   : > { %1474 = vmatprep.mubr.msk.bf16.mxu0 %vm297_vm1, %v276_v28  ;;  %v262_v41 = vrot.slane %v1720_v27, 1  ;;  %v263_v42 = vrot.slane %v1725_v30, 1  ;;  %v1745_v43 = vsel %vm243_vm0, %v253_v32, %v254_v36  ;;  %v265_v45 = vrot.slane %v1728_v31, 1  ;;  %v1597_v9 = vld [vmem:[%s2026_s1 + $0x38] sm:$0xff]   ;;  %v1600_v18 = vld [vmem:[%s2026_s1 + $0x40] sm:$0xff]   ;;  %v1599_v21 = vld [vmem:[%s2026_s1 + $0x30] sm:$0xff]  }
  0x17   : > { %v1748_v44 = vsel %vm243_vm0, %v256_v37, %v257_v38  ;;  %v266_v46 = vrot.slane %v1737_v35, 1  ;;  %v1753_v47 = vsel %vm243_vm0, %v259_v39, %v260_v40  ;;  %v1760_v49 = vpack.c.bf16 %v1745_v43, %v1734_v34 }
  0x18   : > { %v1756_v48 = vsel %vm243_vm0, %v262_v41, %v263_v42  ;;  %v474_v50 = vrot.slane %v1700_v15, 2  ;;  %v469_v52 = vrot.slane %v1684_v7, 2  ;;  %v1772_v54 = vpack.c.bf16 %v1753_v47, %v1748_v44 }
  0x19   : > { %v1768_v53 = vsel %vm243_vm0, %v265_v45, %v266_v46  ;;  %v475_v55 = vrot.slane %v206_v19, 2  ;;  %v478_v57 = vrot.slane %v208_v25, 2  ;;  %1475 = vmatmul.mubr.msk.bf16.vlgmr.msra.gmra.mxu0 %vm297_vm1, %v1760_v49  ;;  %v481_v59 = vrot.slane %v210_v29, 2  ;;  %v1602_v29 = vld [vmem:[%s2026_s1 + $0x68] sm:$0xff]   ;;  %v1604_v45 = vld [vmem:[%s2026_s1 + $0x60] sm:$0xff]  }
  0x1a   : > { %v1776_v56 = vpack.c.bf16 %v1768_v53, %v1756_v48  ;;  %1478 = vmatprep.mubr.msk.bf16.mxu1 %vm297_vm1, %v1772_v54  ;;  %1495 = vmatpush3.bf16.msra.mxu0 %v1667_v3  ;;  %v468_v61 = vrot.slane %v1681_v6, 2  ;;  %v1791_v62 = vsel %vm464_vm2, %v471_v23, %v472_v24  ;;  %v477_v1 = vrot.slane %v1707_v20, 2  ;;  %v1846_v23 = vld [vmem:[%s1672_s28 + $0x90] sm:$0xff] }
  0x1b   : > { %1496 = vmatprep.subr.bf16.mxu0 %v1596_v51  ;;  %v1794_v63 = vsel %vm464_vm2, %v474_v50, %v475_v55  ;;  %v484_v3 = vrot.slane %v1725_v30, 2  ;;  %v480_v5 = vrot.slane %v1717_v26, 2  ;;  %v483_v11 = vrot.slane %v1720_v27, 2  ;;  %v1863_v30 = vld [vmem:[%s1672_s28 + $0x98] sm:$0x3] }
  0x1c   : > { %1479 = vmatmul.mubr.msk.bf16.vlgmr.msra.gmra.mxu1 %vm297_vm1, %v1776_v56  ;;  %v1804_v4 = vsel %vm464_vm2, %v468_v61, %v469_v52  ;;  %v1813_v10 = vpack.c.bf16 %v1794_v63, %v1791_v62  ;;  %v486_v13 = vrot.slane %v1728_v31, 2  ;;  %v487_v14 = vrot.slane %v1737_v35, 2  ;;  %v1601_v35 = vld [vmem:[%s2026_s1 + $0x58] sm:$0xff]  }
  0x1d   : > { %1483 = vmatpush3.bf16.msra.mxu1 %v1661_v2  ;;  %1486 = vmatprep.mubr.msk.bf16.mxu1 %vm297_vm1, %v219_v33  ;;  %v497_v7 = vpack.c.bf16 %v1804_v4, %v467_v60  ;;  %v1816_v2 = vsel %vm464_vm2, %v477_v1, %v478_v57  ;;  %v1820_v12 = vsel %vm464_vm2, %v480_v5, %v481_v59  ;;  %v1027_v28 = vrot.slane %v1846_v23, 1 }
  0x1e   : > { %1484 = vmatprep.subr.bf16.mxu1 %v1595_v58  ;;  %1497 = vmatpush3.bf16.msra.mxu0 %v1596_v51  ;;  %v1827_v16 = vpack.c.bf16 %v1700_v15, %v1687_v8  ;;  %v1831_v17 = vpack.c.bf16 %v1820_v12, %v1816_v2  ;;  %v1838_v19 = vpack.c.bf16 %v1717_v26, %v1707_v20  ;;  %v1028_v32 = vrot.slane %v1863_v30, 1 }
  0x1f   : > { %1498 = vmatprep.mubr.msk.bf16.mxu0 %vm297_vm1, %v497_v7  ;;  %1518 = vmatprep.subr.bf16.mxu0 %v1598_v0  ;;  %v1851_v24 = vsel %vm464_vm2, %v483_v11, %v484_v3  ;;  %v1854_v25 = vsel %vm464_vm2, %v486_v13, %v487_v14  ;;  %v715_v36 = vpack.c.bf16 %v1734_v34, %v1711_v22  ;;  %v215_v22 = vld [vmem:[%s1672_s28 + $0x80] sm:$0xff]  ;;  %v216_v34 = vld [vmem:[%s1672_s28 + $0x88] sm:$0x3]  ;;  %v1125_v59 = vrot.slane %v1846_v23, 2 }
  0x20   : > { %v1870_v33 = vpack.c.bf16 %v1854_v25, %v1851_v24  ;;  %v1878_v37 = vsel %vm243_vm0, %v1027_v28, %v1028_v32  ;;  %v222_v38 = vpack.c.bf16 %v1728_v31, %v1720_v27  ;;  %v603_v39 = vpack.c.bf16 %v1687_v8, %v1681_v6 }
  0x21   : > { %1485 = vmatpush3.bf16.msra.mxu1 %v1595_v58  ;;  %1499 = vmatmul.mubr.msk.bf16.vlgmr.msra.gmra.mxu0 %vm297_vm1, %v1813_v10  ;;  %v716_v40 = vpack.c.bf16 %v1748_v44, %v1745_v43  ;;  %v717_v41 = vpack.c.bf16 %v1756_v48, %v1753_v47  ;;  %v711_v42 = vrot.slane %v215_v22, 1  ;;  %v712_v6 = vrot.slane %v216_v34, 1  ;;  %v1603_v43 = vld [vmem:[%s2026_s1 + $0x50] sm:$0xff]  }
  0x22   : > { %1506 = vmatprep.subr.bf16.mxu1 %v1597_v9  ;;  %1519 = vmatpush3.bf16.msra.mxu0 %v1598_v0  ;;  %v604_v8 = vpack.c.bf16 %v1707_v20, %v1700_v15  ;;  %v605_v46 = vpack.c.bf16 %v1720_v27, %v1717_v26  ;;  %v1606_v15 = vld [vmem:[%s2026_s1 + $0x88] sm:$0xff]   ;;  %v1605_v26 = vld [vmem:[%s2026_s1 + $0x78] sm:$0xff]   ;;  %v606_v27 = vpack.c.bf16 %v215_v22, %v1728_v31  ;;  %v1608_v31 = vld [vmem:[%s2026_s1 + $0x80] sm:$0xff]   ;;  %v821_v51 = vrot.slane %v215_v22, 2 }
  0x23   : > { %1502 = vmatprep.mubr.msk.bf16.mxu0 %vm297_vm1, %v1831_v17  ;;  %1520 = vmatprep.subr.bf16.mxu0 %v1600_v18  ;;  %v713_v44 = vsel %vm243_vm0, %v711_v42, %v712_v6  ;;  %v825_v47 = vpack.c.bf16 %v1791_v62, %v1804_v4  ;;  %v826_v48 = vpack.c.bf16 %v1816_v2, %v1794_v63  ;;  %v822_v52 = vrot.slane %v216_v34, 2 }
  0x24   : > { %1487 = vmatmul.mubr.msk.bf16.vlgmr.msra.gmra.mxu1 %vm297_vm1, %v1827_v16  ;;  %v718_v20 = vpack.c.bf16 %v713_v44, %v1768_v53  ;;  %v827_v50 = vpack.c.bf16 %v1851_v24, %v1820_v12  ;;  %v1607_v53 = vld [vmem:[%s2026_s1 + $0x70] sm:$0xff]   ;;  %v931_v57 = vpack.c.bf16 %v1846_v23, %v215_v22  ;;  %v1126_v60 = vrot.slane %v1863_v30, 2 }
  0x25   : > { %1507 = vmatpush3.bf16.msra.mxu1 %v1597_v9  ;;  %1490 = vmatprep.mubr.msk.bf16.mxu1 %vm297_vm1, %v1838_v19  ;;  %v823_v55 = vsel %vm464_vm2, %v821_v51, %v822_v52 }
  0x26   : > { %1508 = vmatprep.subr.bf16.mxu1 %v1599_v21  ;;  %1521 = vmatpush3.bf16.msra.mxu0 %v1600_v18  ;;  %v828_v58 = vpack.c.bf16 %v823_v55, %v1854_v25  ;;  %v1127_v61 = vsel %vm464_vm2, %v1125_v59, %v1126_v60 }
  0x27   : > { %1542 = vmatprep.subr.bf16.mxu0 %v1602_v29  ;;  %v1129_v62 = vpack.c.bf16 %v1127_v61, %v823_v55 }
  0x29   : > { %1509 = vmatpush3.bf16.msra.mxu1 %v1599_v21  ;;  %1503 = vmatmul.mubr.msk.bf16.gmra.mxu0 %vm297_vm1, %v1870_v33 }
  0x2a   : > { %1530 = vmatprep.subr.bf16.mxu1 %v1601_v35  ;;  %1522 = vmatprep.mubr.msk.bf16.mxu0 %vm297_vm1, %v715_v36 }
  0x2c   : > { %1491 = vmatmul.mubr.msk.bf16.gmra.mxu1 %vm297_vm1, %v222_v38 }
  0x2d   : > { %1510 = vmatprep.mubr.msk.bf16.mxu1 %vm297_vm1, %v603_v39 }
  0x31   : > { %1523 = vmatmul.mubr.msk.bf16.vlgmr.msra.gmra.mxu0 %vm297_vm1, %v716_v40 }
  0x32   : > { %1543 = vmatpush3.bf16.msra.mxu0 %v1602_v29  ;;  %1526 = vmatprep.mubr.msk.bf16.mxu0 %vm297_vm1, %v717_v41 }
  0x33   : > { %1544 = vmatprep.subr.bf16.mxu0 %v1604_v45 }
  0x34   : > { %1511 = vmatmul.mubr.msk.bf16.vlgmr.msra.gmra.mxu1 %vm297_vm1, %v604_v8 }
  0x35   : > { %1531 = vmatpush3.bf16.msra.mxu1 %v1601_v35  ;;  %1514 = vmatprep.mubr.msk.bf16.mxu1 %vm297_vm1, %v605_v46 }
  0x36   : > { %1532 = vmatprep.subr.bf16.mxu1 %v1603_v43  ;;  %1545 = vmatpush3.bf16.msra.mxu0 %v1604_v45 }
  0x37   : > { %1566 = vmatprep.subr.bf16.mxu0 %v1606_v15 }
  0x39   : > { %1533 = vmatpush3.bf16.msra.mxu1 %v1603_v43  ;;  %1527 = vmatmul.mubr.msk.bf16.gmra.mxu0 %vm297_vm1, %v718_v20 }
  0x3a   : > { %1554 = vmatprep.subr.bf16.mxu1 %v1605_v26  ;;  %1546 = vmatprep.mubr.msk.bf16.mxu0 %vm297_vm1, %v1827_v16 }
  0x3c   : > { %1515 = vmatmul.mubr.msk.bf16.gmra.mxu1 %vm297_vm1, %v606_v27 }
  0x3d   : > { %1534 = vmatprep.mubr.msk.bf16.mxu1 %vm297_vm1, %v825_v47 }
  0x41   : > { %1547 = vmatmul.mubr.msk.bf16.vlgmr.msra.gmra.mxu0 %vm297_vm1, %v1838_v19 }
  0x42   : > { %1567 = vmatpush3.bf16.msra.mxu0 %v1606_v15  ;;  %1550 = vmatprep.mubr.msk.bf16.mxu0 %vm297_vm1, %v222_v38 }
  0x43   : > { %1568 = vmatprep.subr.bf16.mxu0 %v1608_v31 }
  0x44   : > { %1535 = vmatmul.mubr.msk.bf16.vlgmr.msra.gmra.mxu1 %vm297_vm1, %v826_v48 }
  0x45   : > { %1555 = vmatpush3.bf16.msra.mxu1 %v1605_v26  ;;  %1538 = vmatprep.mubr.msk.bf16.mxu1 %vm297_vm1, %v827_v50 }
  0x46   : > { %1556 = vmatprep.subr.bf16.mxu1 %v1607_v53  ;;  %1569 = vmatpush3.bf16.msra.mxu0 %v1608_v31 }
  0x49   : > { %1557 = vmatpush3.bf16.msra.mxu1 %v1607_v53  ;;  %1551 = vmatmul.mubr.msk.bf16.gmra.mxu0 %vm297_vm1, %v931_v57 }
  0x4a   : > { %1570 = vmatprep.mubr.msk.bf16.mxu0 %vm297_vm1, %v1813_v10 }
  0x4c   : > { %1539 = vmatmul.mubr.msk.bf16.gmra.mxu1 %vm297_vm1, %v828_v58 }
  0x4d   : > { %1558 = vmatprep.mubr.msk.bf16.mxu1 %vm297_vm1, %v1760_v49  ;;  %v1031_v49 = vpack.c.bf16 %v1878_v37, %v713_v44 }
  0x51   : > { %1571 = vmatmul.mubr.msk.bf16.vlgmr.msra.gmra.mxu0 %vm297_vm1, %v1831_v17 }
  0x52   : > { %1574 = vmatprep.mubr.msk.bf16.mxu0 %vm297_vm1, %v1870_v33 }
  0x54   : > { %1559 = vmatmul.mubr.msk.bf16.vlgmr.msra.gmra.mxu1 %vm297_vm1, %v1772_v54 }
  0x55   : > { %1562 = vmatprep.mubr.msk.bf16.mxu1 %vm297_vm1, %v1776_v56 }
  0x59   : > { %1575 = vmatmul.mubr.msk.bf16.gmra.mxu0 %vm297_vm1, %v1129_v62 }
  0x5c   : > { %1563 = vmatmul.mubr.msk.bf16.gmra.mxu1 %vm297_vm1, %v1031_v49 }
  0xd9   : > { %v1476_v63 = vpop.f32.mrf.mxu0 }
  0xdb   : > { %v344_v1 = vpop.f32.mrf.mxu0 }
  0xdc   : > { %v1480_v0 = vpop.f32.mrf.mxu1 }
  0xdd   : > { %v1477_v4 = vpop.f32.mrf.mxu0 }
  0xde   : > { %v360_v3 = vpop.f32.mrf.mxu1 }
  0xdf   : > { %v347_v7 = vpop.f32.mrf.mxu0 }
  0xe0   : > { %v1481_v5 = vpop.f32.mrf.mxu1 }
  0xe1   : > { %v1500_v54 = vpop.f32.mrf.mxu0 }
  0xe2   : > { %v1963_v9 = vpop.f32.mrf.mxu1 }
  0xe3   : > { %v564_v2 = vpop.f32.mrf.mxu0 }
  0xe4   : > { %v1488_v10 = vpop.f32.mrf.mxu1 }
  0xe5   : > { %v1501_v11 = vpop.f32.mrf.mxu0  ;;  %v442_v45 = vadd.f32 %v1488_v10, %v1476_v63 }
  0xe6   : > { %v433_v56 = vpop.f32.mrf.mxu1 }
  0xe7   : > { %v567_v13 = vpop.f32.mrf.mxu0  ;;  %v434_v44 = vadd.f32 %v433_v56, %v344_v1  ;;  %v597_v26 = vadd.f32 %v1500_v54, %v442_v45 }
  0xe8   : > { %v1489_v12 = vpop.f32.mrf.mxu1 }
  0xe9   : > { %v1504_v16 = vpop.f32.mrf.mxu0  ;;  %v445_v27 = vadd.f32 %v1489_v12, %v1477_v4  ;;  %v595_v31 = vadd.f32 %v564_v2, %v434_v44 }
  0xea   : > { %v436_v14 = vpop.f32.mrf.mxu1 }
  0xeb   : > { %v580_v18 = vpop.f32.mrf.mxu0  ;;  %v437_v50 = vadd.f32 %v436_v14, %v347_v7  ;;  %v598_v57 = vadd.f32 %v1501_v11, %v445_v27 }
  0xec   : > { %v1492_v17 = vpop.f32.mrf.mxu1 }
  0xed   : > { %v1505_v21 = vpop.f32.mrf.mxu0  ;;  %v458_v52 = vadd.f32 %v1492_v17, %v1480_v0  ;;  %v596_v62 = vadd.f32 %v567_v13, %v437_v50 }
  0xee   : > { %v449_v19 = vpop.f32.mrf.mxu1 }
  0xef   : > { %v1965_v24 = vpop.f32.mrf.mxu0  ;;  %v450_v59 = vadd.f32 %v449_v19, %v360_v3  ;;  %v601_v1 = vadd.f32 %v1504_v16, %v458_v52 }
  0xf0   : > { %v1493_v23 = vpop.f32.mrf.mxu1 }
  0xf1   : > { %v1524_v28 = vpop.f32.mrf.mxu0  ;;  %v461_v54 = vadd.f32 %v1493_v23, %v1481_v5  ;;  %v599_v0 = vadd.f32 %v580_v18, %v450_v59 }
  0xf2   : > { %v452_v25 = vpop.f32.mrf.mxu1 }
  0xf3   : > { %v782_v30 = vpop.f32.mrf.mxu0  ;;  %v453_v12 = vadd.f32 %v452_v25, %v1963_v9  ;;  %v602_v13 = vadd.f32 %v1505_v21, %v461_v54  ;;  %v1982_v21 = vld [vmem:[%s2027_s2] ss:$0 sm:$0xff] }
  0xf4   : > { %v1512_v29 = vpop.f32.mrf.mxu1 }
  0xf5   : > { %v1525_v33 = vpop.f32.mrf.mxu0  ;;  %v703_v51 = vadd.f32 %v1512_v29, %v597_v26 }
  0xf6   : > { %v670_v32 = vpop.f32.mrf.mxu1 }
  0xf7   : > { %v785_v36 = vpop.f32.mrf.mxu0  ;;  %v701_v58 = vadd.f32 %v670_v32, %v595_v31  ;;  %v815_v49 = vadd.f32 %v1524_v28, %v703_v51 }
  0xf8   : > { %v1513_v35 = vpop.f32.mrf.mxu1 }
  0xf9   : > { %v1528_v38 = vpop.f32.mrf.mxu0  ;;  %v704_v63 = vadd.f32 %v1513_v35, %v598_v57  ;;  %v813_v2 = vadd.f32 %v782_v30, %v701_v58  ;;  %v600_v30 = vadd.f32 %v1965_v24, %v453_v12 }
  0xfa   : > { %v673_v37 = vpop.f32.mrf.mxu1 }
  0xfb   : > { %v798_v22 = vpop.f32.mrf.mxu0  ;;  %v702_v7 = vadd.f32 %v673_v37, %v596_v62  ;;  %v816_v17 = vadd.f32 %v1525_v33, %v704_v63 }
  0xfc   : > { %v1516_v39 = vpop.f32.mrf.mxu1 }
  0xfd   : > { %v1967_v40 = vpop.f32.mrf.mxu0  ;;  %v707_v11 = vadd.f32 %v1516_v39, %v601_v1  ;;  %v814_v5 = vadd.f32 %v785_v36, %v702_v7 }
  0xfe   : > { %v686_v34 = vpop.f32.mrf.mxu1 }
  0xff   : > { %v1969_v42 = vpop.f32.mrf.mxu0  ;;  %v705_v28 = vadd.f32 %v686_v34, %v599_v0  ;;  %v819_v35 = vadd.f32 %v1528_v38, %v707_v11 }
 0x100   : > { %v1517_v41 = vpop.f32.mrf.mxu1 }
 0x101   : > { %v1548_v8 = vpop.f32.mrf.mxu0  ;;  %v708_v18 = vadd.f32 %v1517_v41, %v602_v13 }
 0x102   : > { %v689_v6 = vpop.f32.mrf.mxu1 }
 0x103   : > { %v986_v43 = vpop.f32.mrf.mxu0  ;;  %v706_v33 = vadd.f32 %v689_v6, %v600_v30  ;;  %v820_v41 = vadd.f32 %v1967_v40, %v708_v18 }
 0x104   : > { %v1536_v46 = vpop.f32.mrf.mxu1 }
 0x105   : > { %v1549_v20 = vpop.f32.mrf.mxu0  ;;  %v925_v56 = vadd.f32 %v1536_v46, %v815_v49  ;;  %v817_v46 = vadd.f32 %v798_v22, %v705_v28  ;;  %v1412_v22 = vld [vmem:[%s2028_s3] ss:$0 sm:$0xff]  ;;  %v818_v50 = vadd.f32 %v1969_v42, %v706_v33 }
 0x106   : > { %v892_v15 = vpop.f32.mrf.mxu1 }
 0x107   : > { %v989_v48 = vpop.f32.mrf.mxu0  ;;  %v923_v19 = vadd.f32 %v892_v15, %v813_v2  ;;  %v1019_v23 = vadd.f32 %v1548_v8, %v925_v56 }
 0x108   : > { %v1537_v47 = vpop.f32.mrf.mxu1 }
 0x109   : > { %v1552_v55 = vpop.f32.mrf.mxu0  ;;  %v926_v32 = vadd.f32 %v1537_v47, %v816_v17  ;;  %v1017_v25 = vadd.f32 %v986_v43, %v923_v19 }
 0x10a   : > { %v895_v53 = vpop.f32.mrf.mxu1 }
 0x10b   : > { %v1971_v61 = vpop.f32.mrf.mxu0  ;;  %v924_v39 = vadd.f32 %v895_v53, %v814_v5  ;;  %v1020_v8 = vadd.f32 %v1549_v20, %v926_v32 }
 0x10c   : > { %v1540_v60 = vpop.f32.mrf.mxu1 }
 0x10d   : > { %v1973_v10 = vpop.f32.mrf.mxu0  ;;  %v929_v44 = vadd.f32 %v1540_v60, %v819_v35  ;;  %v1018_v26 = vadd.f32 %v989_v48, %v924_v39 }
 0x10e   : > { %v908_v4 = vpop.f32.mrf.mxu1 }
 0x10f   : > { %v1976_v3 = vpop.f32.mrf.mxu0  ;;  %v927_v15 = vadd.f32 %v908_v4, %v817_v46  ;;  %v1023_v20 = vadd.f32 %v1552_v55, %v929_v44 }
 0x110   : > { %v1541_v14 = vpop.f32.mrf.mxu1 }
 0x111   : > { %v1572_v16 = vpop.f32.mrf.mxu0  ;;  %v930_v51 = vadd.f32 %v1541_v14, %v820_v41  ;;  %v1021_v59 = vadd.f32 %v1971_v61, %v927_v15 }
 0x112   : > { %v911_v29 = vpop.f32.mrf.mxu1 }
 0x113   : > { %v1184_v9 = vpop.f32.mrf.mxu0  ;;  %v928_v42 = vadd.f32 %v911_v29, %v818_v50  ;;  %v1024_v54 = vadd.f32 %v1973_v10, %v930_v51 }
 0x114   : > { %v1560_v37 = vpop.f32.mrf.mxu1 }
 0x115   : > { %v1119_v45 = vadd.f32 %v1560_v37, %v1019_v23  ;;  %v1573_v34 = vpop.f32.mrf.mxu0  ;;  %v1022_v0 = vadd.f32 %v1976_v3, %v928_v42 }
 0x116   : > { %v1086_v36 = vpop.f32.mrf.mxu1 }
 0x117   : > { %v1217_v24 = vadd.f32 %v1572_v16, %v1119_v45  ;;  %v1117_v38 = vadd.f32 %v1086_v36, %v1017_v25  ;;  %v1187_v43 = vpop.f32.mrf.mxu0 }
 0x118   : > { %v1561_v6 = vpop.f32.mrf.mxu1 }
 0x119   : > { %v1232_v27 = vmul.f32 %v1982_v21, %v1217_v24  ;;  %v1215_v47 = vadd.f32 %v1184_v9, %v1117_v38  ;;  %v1120_v31 = vadd.f32 %v1561_v6, %v1020_v8  ;;  %v1576_v52 = vpop.f32.mrf.mxu0 }
 0x11a   : > { %v1089_v40 = vpop.f32.mrf.mxu1 }
 0x11b   : > { %v1247_v53 = vadd.f32 %v1412_v22, %v1232_v27  ;;  %v1230_v48 = vmul.f32 %v1982_v21, %v1215_v47  ;;  %v1218_v57 = vadd.f32 %v1573_v34, %v1120_v31  ;;  %v1118_v58 = vadd.f32 %v1089_v40, %v1018_v26  ;;  %v1200_v60 = vpop.f32.mrf.mxu0 }
 0x11c   : > { %v1564_v55 = vpop.f32.mrf.mxu1 }
 0x11d   : > { %1256 = vst.msk [vmem:[%s1994_s13 + $0x10] sm:$0xff] %vm1253_vm3, %v1247_v53  ;;  %v1245_v62 = vadd.f32 %v1412_v22, %v1230_v48  ;;  %v1233_v49 = vmul.f32 %v1982_v21, %v1218_v57  ;;  %v1216_v63 = vadd.f32 %v1187_v43, %v1118_v58  ;;  %v1123_v1 = vadd.f32 %v1564_v55, %v1023_v20  ;;  %v1577_v11 = vpop.f32.mrf.mxu0 }
 0x11e   : > { %v1102_v4 = vpop.f32.mrf.mxu1 }
 0x11f   : > { %1254 = vst.msk [vmem:[%s1994_s13] sm:$0xff] %vm1253_vm3, %v1245_v62  ;;  %v1248_v2 = vadd.f32 %v1412_v22, %v1233_v49  ;;  %v1231_v61 = vmul.f32 %v1982_v21, %v1216_v63  ;;  %v1221_v7 = vadd.f32 %v1576_v52, %v1123_v1  ;;  %v1121_v56 = vadd.f32 %v1102_v4, %v1021_v59  ;;  %v1203_v5 = vpop.f32.mrf.mxu0 }
 0x120   : > { %v1565_v12 = vpop.f32.mrf.mxu1 }
 0x121   : > { %1257 = vst.msk [vmem:[%s1994_s13 + $0x18] sm:$0xff] %vm1253_vm3, %v1248_v2  ;;  %v1246_v14 = vadd.f32 %v1412_v22, %v1231_v61  ;;  %v1236_v10 = vmul.f32 %v1982_v21, %v1221_v7  ;;  %v1219_v17 = vadd.f32 %v1200_v60, %v1121_v56  ;;  %v1124_v19 = vadd.f32 %v1565_v12, %v1024_v54 }
 0x122   : > { %v1105_v13 = vpop.f32.mrf.mxu1 }
 0x123   : > { %1255 = vst.msk [vmem:[%s1994_s13 + $0x8] sm:$0xff] %vm1253_vm3, %v1246_v14  ;;  %v1251_v28 = vadd.f32 %v1412_v22, %v1236_v10  ;;  %v1234_v29 = vmul.f32 %v1982_v21, %v1219_v17  ;;  %v1222_v16 = vadd.f32 %v1577_v11, %v1124_v19  ;;  %v1122_v3 = vadd.f32 %v1105_v13, %v1022_v0 }
 0x125   : > { %1260 = vst.msk [vmem:[%s1994_s13 + $0x30] sm:$0xff] %vm1253_vm3, %v1251_v28  ;;  %v1249_v23 = vadd.f32 %v1412_v22, %v1234_v29  ;;  %v1237_v32 = vmul.f32 %v1982_v21, %v1222_v16  ;;  %v1220_v30 = vadd.f32 %v1203_v5, %v1122_v3 }
 0x127   : > { %1258 = vst.msk [vmem:[%s1994_s13 + $0x20] sm:$0xff] %vm1253_vm3, %v1249_v23  ;;  %v1252_v35 = vadd.f32 %v1412_v22, %v1237_v32  ;;  %v1235_v18 = vmul.f32 %v1982_v21, %v1220_v30 }
 0x129   : > { %1261 = vst.msk [vmem:[%s1994_s13 + $0x38] sm:$0xff] %vm1253_vm3, %v1252_v35  ;;  %v1250_v37 = vadd.f32 %v1412_v22, %v1235_v18 }
 0x12b   : > { %1259 = vst.msk [vmem:[%s1994_s13 + $0x28] sm:$0xff] %vm1253_vm3, %v1250_v37 }
 0x12c PF: > { %s14_s15 = sadd.s32 1, %s1615_s15  }
 0x12d   : > { %p11_p4 = scmp.ge.s32.totalorder %s14_s15, 4  }
 0x12f   :  { %13 = sbr.rel (!%p11_p4) target bundleno = 1 (0x1), region = 74 }

// kernel: rcca_forward.9
= control target key start
LH: loop header
LB: loop body
LE: loop exit
PB: predicated region body
PF: predicated region fallthrough
CT: control target
= control target key end

     0   :  { %s1455_s15 = smov 0   ;;  %s1803_s0 = inlined_call_operand.vmem [shape: f32[2,10,10,8], index: 0, kind: input, shape index: {}]   ;;  %s1804_s1 = inlined_call_operand.vmem [shape: bf16[9,8,8], index: 1, kind: input, shape index: {}]   ;;  %s1805_s2 = inlined_call_operand.vmem [shape: f32[1,8], index: 2, kind: input, shape index: {}]   ;;  %s1806_s3 = inlined_call_operand.vmem [shape: f32[1,8], index: 3, kind: input, shape index: {}]   ;;  %s1807_s4 = inlined_call_operand.vmem [shape: f32[2,8,8,8], index: 4, kind: output, shape index: {}]  }
   0x1 LB: > { %s1209_s16 = sadd.s32 4294967295, %s1428_s15   ;;  %p1213_p0 = scmp.ge.s32.totalorder %s1428_s15, 1  ;;  %s1428_s15 = sphi %s1455_s15, %s14_s15  }
   0x2   : > { %p162_p1 = scmp.lt.s32.totalorder %s1428_s15, 3 }
   0x4   : > { %p163_p2 = pnand %p1213_p0, %p162_p1 }
   0x5   : > { %p188_p3 = scmp.lt.s32.totalorder (!%p163_p2), %s1209_s16, 1 }
   0x6   : > { %166 = sbr.rel (%p163_p2) target bundleno = 300 (0x12c), region = 36 }
   0xb   : > { %v1217_v0 = vld [vmem:[%s1804_s1 + $0x4] sm:$0xf]  ;;  %vm292_vm0 = vcmask 1043456   ;;  %v1472_v2 = vld [vmem:[%s1804_s1] sm:$0xf]  ;;  %s1809_s16 = smov (!%p188_p3, %s1209_s16), 1 }
   0xc   : > { %1404 = vmatprep.subr.msk.bf16.mxu1 %vm292_vm0, %v1217_v0  ;;  %1403 = vmatprep.subr.msk.bf16.mxu0 %vm292_vm0, %v1217_v0  ;;  %v294_v1 = vsel %vm292_vm0, %v1217_v0, 0  ;;  %v1226_v3 = vld [vmem:[%s1804_s1 + $0x8] sm:$0xf]  ;;  %s1413_s23 = smul.u32 160, %s1809_s16  ;;  %vm240_vm1 = vcmask 1046528   ;;  %vm279_vm2 = vcmask 64512  }
   0xd   : > { %1402 = vmatpush3.bf16.msra.mxu1 %v294_v1  ;;  %1312 = vmatpush3.bf16.msra.mxu0 %v294_v1  ;;  %v493_v7 = vsel %vm292_vm0, %v1226_v3, 0  ;;  %vm441_vm3 = vcmask 1045504   ;;  %v1236_v56 = vld [vmem:[%s1804_s1 + $0x10] sm:$0xf]  ;;  %v374_v59 = vsel %vm292_vm0, %v1472_v2, 0  ;;  %s1265_s17 = sshll.u32 %s1809_s16, 6 }
   0xe   : > { %1405 = vmatprep.subr.msk.bf16.mxu1 %vm292_vm0, %v1472_v2  ;;  %1406 = vmatprep.subr.msk.bf16.mxu0 %vm292_vm0, %v1226_v3  ;;  %s1486_s26 = scalar_lea.vmem %s1803_s0, %s1413_s23  ;;  %v1231_v63 = vld [vmem:[%s1804_s1 + $0xc] sm:$0xf]  ;;  %s1773_s21 = scalar_lea.vmem %s1807_s4, %s1265_s17 }
   0xf   : > { %v1489_v4 = vld [vmem:[%s1486_s26] sm:$0xff]  ;;  %v1492_v5 = vld [vmem:[%s1486_s26 + $0x8] sm:$0x3]  ;;  %v1495_v6 = vld [vmem:[%s1486_s26 + $0x10] sm:$0xff] }
  0x10   : > { %v1499_v8 = vld [vmem:[%s1486_s26 + $0x18] sm:$0x3]  ;;  %v1502_v9 = vld [vmem:[%s1486_s26 + $0x20] sm:$0xff]  ;;  %v204_v10 = vld [vmem:[%s1486_s26 + $0x28] sm:$0x3]  ;;  %v241_v11 = vrot.slane %v1489_v4, 1  ;;  %v219_v34 = vpack.c.bf16 %v1495_v6, %v1489_v4 }
  0x11   : > { %v242_v12 = vrot.slane %v1492_v5, 1  ;;  %v244_v13 = vrot.slane %v1495_v6, 1  ;;  %v245_v14 = vrot.slane %v1499_v8, 1  ;;  %v247_v15 = vrot.slane %v1502_v9, 1  ;;  %v1511_v16 = vld [vmem:[%s1486_s26 + $0x30] sm:$0xff]  ;;  %v1517_v21 = vld [vmem:[%s1486_s26 + $0x40] sm:$0xff] }
  0x12   : > { %v248_v17 = vrot.slane %v204_v10, 1  ;;  %v442_v18 = vrot.slane %v1489_v4, 2  ;;  %v443_v19 = vrot.slane %v1492_v5, 2  ;;  %v206_v20 = vld [vmem:[%s1486_s26 + $0x38] sm:$0x3]  ;;  %v448_v24 = vrot.slane %v1502_v9, 2 }
  0x13   : > { %v243_v22 = vsel %vm240_vm1, %v241_v11, %v242_v12  ;;  %v1521_v23 = vsel %vm240_vm1, %v244_v13, %v245_v14  ;;  %v449_v25 = vrot.slane %v204_v10, 2  ;;  %v208_v26 = vld [vmem:[%s1486_s26 + $0x48] sm:$0x3]  ;;  %v1526_v27 = vld [vmem:[%s1486_s26 + $0x50] sm:$0xff]  ;;  %v1529_v28 = vld [vmem:[%s1486_s26 + $0x60] sm:$0xff]  ;;  %v250_v33 = vrot.slane %v1511_v16, 1 }
  0x14   : > { %v273_v29 = vpack.c.bf16 %v1521_v23, %v243_v22  ;;  %v210_v30 = vld [vmem:[%s1486_s26 + $0x58] sm:$0x3]  ;;  %v1534_v31 = vld [vmem:[%s1486_s26 + $0x68] sm:$0x3]  ;;  %v1537_v32 = vld [vmem:[%s1486_s26 + $0x70] sm:$0xff]  ;;  %v1543_v35 = vsel %vm240_vm1, %v247_v15, %v248_v17  ;;  %v251_v37 = vrot.slane %v206_v20, 1  ;;  %v444_v61 = vsel %vm441_vm3, %v442_v18, %v443_v19 }
  0x15   : > { %v1546_v36 = vld [vmem:[%s1486_s26 + $0x78] sm:$0x3]  ;;  %v253_v38 = vrot.slane %v1517_v21, 1  ;;  %v254_v39 = vrot.slane %v208_v26, 1  ;;  %v256_v40 = vrot.slane %v1526_v27, 1  ;;  %v257_v41 = vrot.slane %v210_v30, 1 }
  0x16   : > { %1313 = vmatprep.mubr.msk.bf16.mxu0 %vm279_vm2, %v273_v29  ;;  %v259_v42 = vrot.slane %v1529_v28, 1  ;;  %v260_v43 = vrot.slane %v1534_v31, 1  ;;  %v1554_v44 = vsel %vm240_vm1, %v250_v33, %v251_v37  ;;  %v262_v46 = vrot.slane %v1537_v32, 1  ;;  %v1643_v22 = vld [vmem:[%s1486_s26 + $0x98] sm:$0x3] }
  0x17   : > { %v1557_v45 = vsel %vm240_vm1, %v253_v38, %v254_v39  ;;  %v263_v47 = vrot.slane %v1546_v36, 1  ;;  %v1562_v48 = vsel %vm240_vm1, %v256_v40, %v257_v41  ;;  %v1569_v50 = vpack.c.bf16 %v1554_v44, %v1543_v35  ;;  %v215_v40 = vld [vmem:[%s1486_s26 + $0x80] sm:$0xff]  ;;  %v216_v41 = vld [vmem:[%s1486_s26 + $0x88] sm:$0x3] }
  0x18   : > { %v1565_v49 = vsel %vm240_vm1, %v259_v42, %v260_v43  ;;  %v451_v51 = vrot.slane %v1511_v16, 2  ;;  %v446_v52 = vrot.slane %v1499_v8, 2  ;;  %v1578_v54 = vpack.c.bf16 %v1562_v48, %v1557_v45 }
  0x19   : > { %v1574_v53 = vsel %vm240_vm1, %v262_v46, %v263_v47  ;;  %v452_v55 = vrot.slane %v206_v20, 2  ;;  %v455_v58 = vrot.slane %v208_v26, 2  ;;  %1314 = vmatmul.mubr.msk.bf16.vlgmr.msra.gmra.mxu0 %vm279_vm2, %v1569_v50  ;;  %v458_v60 = vrot.slane %v210_v30, 2  ;;  %v1246_v20 = vld [vmem:[%s1804_s1 + $0x18] sm:$0xf] }
  0x1a   : > { %v1585_v57 = vpack.c.bf16 %v1574_v53, %v1565_v49  ;;  %1317 = vmatprep.mubr.msk.bf16.mxu1 %vm279_vm2, %v1578_v54  ;;  %1332 = vmatpush3.bf16.msra.mxu0 %v493_v7  ;;  %v445_v62 = vrot.slane %v1495_v6, 2  ;;  %v1601_v0 = vsel %vm441_vm3, %v448_v24, %v449_v25  ;;  %v454_v2 = vrot.slane %v1517_v21, 2  ;;  %v1649_v25 = vld [vmem:[%s1486_s26 + $0x90] sm:$0xff]  ;;  %v1256_v47 = vld [vmem:[%s1804_s1 + $0x20] sm:$0xf] }
  0x1b   : > { %v1604_v1 = vsel %vm441_vm3, %v451_v51, %v452_v55  ;;  %1408 = vmatprep.subr.msk.bf16.mxu0 %vm292_vm0, %v1236_v56  ;;  %v457_v4 = vrot.slane %v1526_v27, 2  ;;  %v461_v5 = vrot.slane %v1534_v31, 2  ;;  %v460_v12 = vrot.slane %v1529_v28, 2  ;;  %v1241_v30 = vld [vmem:[%s1804_s1 + $0x14] sm:$0xf] }
  0x1c   : > { %1318 = vmatmul.mubr.msk.bf16.vlgmr.msra.gmra.mxu1 %vm279_vm2, %v1585_v57  ;;  %v1610_v3 = vsel %vm441_vm3, %v445_v62, %v446_v52  ;;  %v1618_v8 = vpack.c.bf16 %v1604_v1, %v1601_v0  ;;  %v1621_v10 = vsel %vm441_vm3, %v454_v2, %v455_v58  ;;  %v463_v13 = vrot.slane %v1537_v32, 2 }
  0x1d   : > { %1322 = vmatpush3.bf16.msra.mxu1 %v374_v59  ;;  %1323 = vmatprep.mubr.msk.bf16.mxu1 %vm279_vm2, %v219_v34  ;;  %v474_v7 = vpack.c.bf16 %v1610_v3, %v444_v61  ;;  %v1624_v11 = vsel %vm441_vm3, %v457_v4, %v458_v60  ;;  %v464_v14 = vrot.slane %v1546_v36, 2  ;;  %v220_v15 = vpack.c.bf16 %v1511_v16, %v1502_v9 }
  0x1e   : > { %1407 = vmatprep.subr.msk.bf16.mxu1 %vm292_vm0, %v1231_v63  ;;  %v687_v17 = vsel %vm292_vm0, %v1236_v56, 0  ;;  %v1635_v18 = vpack.c.bf16 %v1624_v11, %v1621_v10  ;;  %v221_v19 = vpack.c.bf16 %v1526_v27, %v1517_v21  ;;  %v587_v24 = vsel %vm292_vm0, %v1231_v63, 0 }
  0x1f   : > { %1333 = vmatprep.mubr.msk.bf16.mxu0 %vm279_vm2, %v474_v7  ;;  %v462_v26 = vsel %vm441_vm3, %v460_v12, %v461_v5  ;;  %v1655_v29 = vsel %vm441_vm3, %v463_v13, %v464_v14  ;;  %v944_v31 = vrot.slane %v1649_v25, 1  ;;  %v945_v33 = vrot.slane %v1643_v22, 1 }
  0x20   : > { %v477_v34 = vpack.c.bf16 %v1655_v29, %v462_v26  ;;  %v668_v37 = vpack.c.bf16 %v1543_v35, %v1521_v23  ;;  %v222_v38 = vpack.c.bf16 %v1537_v32, %v1529_v28  ;;  %v568_v39 = vpack.c.bf16 %v1502_v9, %v1495_v6 }
  0x21   : > { %1334 = vmatmul.mubr.msk.bf16.vlgmr.msra.gmra.mxu0 %vm279_vm2, %v1618_v8  ;;  %v1668_v36 = vsel %vm240_vm1, %v944_v31, %v945_v33  ;;  %v669_v42 = vpack.c.bf16 %v1557_v45, %v1554_v44  ;;  %v670_v23 = vpack.c.bf16 %v1565_v49, %v1562_v48  ;;  %v664_v35 = vrot.slane %v215_v40, 1 }
  0x22   : > { %1352 = vmatpush3.bf16.msra.mxu0 %v687_v17  ;;  %1337 = vmatprep.mubr.msk.bf16.mxu0 %vm279_vm2, %v1635_v18  ;;  %v665_v43 = vrot.slane %v216_v41, 1  ;;  %v569_v6 = vpack.c.bf16 %v1517_v21, %v1511_v16  ;;  %v867_v9 = vsel %vm292_vm0, %v1246_v20, 0  ;;  %v570_v46 = vpack.c.bf16 %v1529_v28, %v1526_v27  ;;  %v1251_v16 = vld [vmem:[%s1804_s1 + $0x1c] sm:$0xf] }
  0x23   : > { %1410 = vmatprep.subr.msk.bf16.mxu0 %vm292_vm0, %v1246_v20  ;;  %v785_v44 = vsel %vm292_vm0, %v1241_v30, 0  ;;  %v571_v27 = vpack.c.bf16 %v215_v40, %v1537_v32  ;;  %v766_v28 = vpack.c.bf16 %v1601_v0, %v1610_v3  ;;  %v767_v48 = vpack.c.bf16 %v1621_v10, %v1604_v1 }
  0x24   : > { %1324 = vmatmul.mubr.msk.bf16.vlgmr.msra.gmra.mxu1 %vm279_vm2, %v220_v15  ;;  %v666_v45 = vsel %vm240_vm1, %v664_v35, %v665_v43  ;;  %v1041_v49 = vsel %vm292_vm0, %v1256_v47, 0  ;;  %v768_v51 = vpack.c.bf16 %v462_v26, %v1624_v11  ;;  %v762_v52 = vrot.slane %v215_v40, 2 }
  0x25   : > { %1342 = vmatpush3.bf16.msra.mxu1 %v587_v24  ;;  %1327 = vmatprep.mubr.msk.bf16.mxu1 %vm279_vm2, %v221_v19  ;;  %v671_v21 = vpack.c.bf16 %v666_v45, %v1574_v53  ;;  %v763_v32 = vrot.slane %v216_v41, 2  ;;  %v955_v53 = vsel %vm292_vm0, %v1251_v16, 0  ;;  %v860_v56 = vpack.c.bf16 %v1649_v25, %v215_v40 }
  0x26   : > { %1409 = vmatprep.subr.msk.bf16.mxu1 %vm292_vm0, %v1241_v30  ;;  %v1030_v59 = vrot.slane %v1649_v25, 2  ;;  %v1031_v60 = vrot.slane %v1643_v22, 2 }
  0x27   : > { %v764_v55 = vsel %vm441_vm3, %v762_v52, %v763_v32 }
  0x28   : > { %v769_v58 = vpack.c.bf16 %v764_v55, %v1655_v29  ;;  %v1032_v61 = vsel %vm441_vm3, %v1030_v59, %v1031_v60 }
  0x29   : > { %1338 = vmatmul.mubr.msk.bf16.gmra.mxu0 %vm279_vm2, %v477_v34  ;;  %v1034_v62 = vpack.c.bf16 %v1032_v61, %v764_v55 }
  0x2a   : > { %1353 = vmatprep.mubr.msk.bf16.mxu0 %vm279_vm2, %v668_v37 }
  0x2c   : > { %1328 = vmatmul.mubr.msk.bf16.gmra.mxu1 %vm279_vm2, %v222_v38 }
  0x2d   : > { %1343 = vmatprep.mubr.msk.bf16.mxu1 %vm279_vm2, %v568_v39 }
  0x31   : > { %1354 = vmatmul.mubr.msk.bf16.vlgmr.msra.gmra.mxu0 %vm279_vm2, %v669_v42 }
  0x32   : > { %1372 = vmatpush3.bf16.msra.mxu0 %v867_v9  ;;  %1357 = vmatprep.mubr.msk.bf16.mxu0 %vm279_vm2, %v670_v23 }
  0x33   : > { %1412 = vmatprep.subr.msk.bf16.mxu0 %vm292_vm0, %v1256_v47 }
  0x34   : > { %1344 = vmatmul.mubr.msk.bf16.vlgmr.msra.gmra.mxu1 %vm279_vm2, %v569_v6 }
  0x35   : > { %1362 = vmatpush3.bf16.msra.mxu1 %v785_v44  ;;  %1347 = vmatprep.mubr.msk.bf16.mxu1 %vm279_vm2, %v570_v46 }
  0x36   : > { %1411 = vmatprep.subr.msk.bf16.mxu1 %vm292_vm0, %v1251_v16 }
  0x39   : > { %1358 = vmatmul.mubr.msk.bf16.gmra.mxu0 %vm279_vm2, %v671_v21 }
  0x3a   : > { %1373 = vmatprep.mubr.msk.bf16.mxu0 %vm279_vm2, %v220_v15 }
  0x3c   : > { %1348 = vmatmul.mubr.msk.bf16.gmra.mxu1 %vm279_vm2, %v571_v27 }
  0x3d   : > { %1363 = vmatprep.mubr.msk.bf16.mxu1 %vm279_vm2, %v766_v28 }
  0x41   : > { %1374 = vmatmul.mubr.msk.bf16.vlgmr.msra.gmra.mxu0 %vm279_vm2, %v221_v19 }
  0x42   : > { %1392 = vmatpush3.bf16.msra.mxu0 %v1041_v49  ;;  %1377 = vmatprep.mubr.msk.bf16.mxu0 %vm279_vm2, %v222_v38 }
  0x44   : > { %1364 = vmatmul.mubr.msk.bf16.vlgmr.msra.gmra.mxu1 %vm279_vm2, %v767_v48 }
  0x45   : > { %1382 = vmatpush3.bf16.msra.mxu1 %v955_v53  ;;  %1367 = vmatprep.mubr.msk.bf16.mxu1 %vm279_vm2, %v768_v51 }
  0x49   : > { %1378 = vmatmul.mubr.msk.bf16.gmra.mxu0 %vm279_vm2, %v860_v56 }
  0x4a   : > { %1393 = vmatprep.mubr.msk.bf16.mxu0 %vm279_vm2, %v1618_v8 }
  0x4c   : > { %1368 = vmatmul.mubr.msk.bf16.gmra.mxu1 %vm279_vm2, %v769_v58 }
  0x4d   : > { %1383 = vmatprep.mubr.msk.bf16.mxu1 %vm279_vm2, %v1569_v50  ;;  %v948_v50 = vpack.c.bf16 %v1668_v36, %v666_v45 }
  0x51   : > { %1394 = vmatmul.mubr.msk.bf16.vlgmr.msra.gmra.mxu0 %vm279_vm2, %v1635_v18 }
  0x52   : > { %1397 = vmatprep.mubr.msk.bf16.mxu0 %vm279_vm2, %v477_v34 }
  0x54   : > { %1384 = vmatmul.mubr.msk.bf16.vlgmr.msra.gmra.mxu1 %vm279_vm2, %v1578_v54 }
  0x55   : > { %1387 = vmatprep.mubr.msk.bf16.mxu1 %vm279_vm2, %v1585_v57 }
  0x59   : > { %1398 = vmatmul.mubr.msk.bf16.gmra.mxu0 %vm279_vm2, %v1034_v62 }
  0x5c   : > { %1388 = vmatmul.mubr.msk.bf16.gmra.mxu1 %vm279_vm2, %v948_v50 }
  0xd9   : > { %v1315_v63 = vpop.f32.mrf.mxu0 }
  0xdb   : > { %v330_v1 = vpop.f32.mrf.mxu0 }
  0xdc   : > { %v1319_v0 = vpop.f32.mrf.mxu1 }
  0xdd   : > { %v1316_v3 = vpop.f32.mrf.mxu0 }
  0xde   : > { %v346_v2 = vpop.f32.mrf.mxu1 }
  0xdf   : > { %v333_v5 = vpop.f32.mrf.mxu0 }
  0xe0   : > { %v1320_v4 = vpop.f32.mrf.mxu1 }
  0xe1   : > { %v1335_v54 = vpop.f32.mrf.mxu0 }
  0xe2   : > { %v1744_v7 = vpop.f32.mrf.mxu1 }
  0xe3   : > { %v529_v10 = vpop.f32.mrf.mxu0 }
  0xe4   : > { %v1325_v8 = vpop.f32.mrf.mxu1 }
  0xe5   : > { %v1336_v11 = vpop.f32.mrf.mxu0  ;;  %v419_v9 = vadd.f32 %v1325_v8, %v1315_v63 }
  0xe6   : > { %v410_v57 = vpop.f32.mrf.mxu1 }
  0xe7   : > { %v532_v13 = vpop.f32.mrf.mxu0  ;;  %v411_v44 = vadd.f32 %v410_v57, %v330_v1  ;;  %v562_v21 = vadd.f32 %v1335_v54, %v419_v9 }
  0xe8   : > { %v1326_v12 = vpop.f32.mrf.mxu1 }
  0xe9   : > { %v1339_v15 = vpop.f32.mrf.mxu0  ;;  %v422_v27 = vadd.f32 %v1326_v12, %v1316_v3  ;;  %v560_v49 = vadd.f32 %v529_v10, %v411_v44 }
  0xea   : > { %v413_v14 = vpop.f32.mrf.mxu1 }
  0xeb   : > { %v545_v18 = vpop.f32.mrf.mxu0  ;;  %v414_v51 = vadd.f32 %v413_v14, %v333_v5  ;;  %v563_v56 = vadd.f32 %v1336_v11, %v422_v27 }
  0xec   : > { %v1329_v17 = vpop.f32.mrf.mxu1 }
  0xed   : > { %v1340_v20 = vpop.f32.mrf.mxu0  ;;  %v435_v32 = vadd.f32 %v1329_v17, %v1319_v0  ;;  %v561_v62 = vadd.f32 %v532_v13, %v414_v51 }
  0xee   : > { %v426_v19 = vpop.f32.mrf.mxu1 }
  0xef   : > { %v1746_v24 = vpop.f32.mrf.mxu0  ;;  %v427_v59 = vadd.f32 %v426_v19, %v346_v2  ;;  %v566_v1 = vadd.f32 %v1339_v15, %v435_v32 }
  0xf0   : > { %v1330_v22 = vpop.f32.mrf.mxu1 }
  0xf1   : > { %v1355_v26 = vpop.f32.mrf.mxu0  ;;  %v438_v8 = vadd.f32 %v1330_v22, %v1320_v4  ;;  %v564_v12 = vadd.f32 %v545_v18, %v427_v59 }
  0xf2   : > { %v429_v25 = vpop.f32.mrf.mxu1 }
  0xf3   : > { %v723_v30 = vpop.f32.mrf.mxu0  ;;  %v430_v0 = vadd.f32 %v429_v25, %v1744_v7  ;;  %v567_v13 = vadd.f32 %v1340_v20, %v438_v8  ;;  %v1761_v20 = vld [vmem:[%s1805_s2] ss:$0 sm:$0xff] }
  0xf4   : > { %v1345_v29 = vpop.f32.mrf.mxu1 }
  0xf5   : > { %v1356_v33 = vpop.f32.mrf.mxu0  ;;  %v656_v52 = vadd.f32 %v1345_v29, %v562_v21 }
  0xf6   : > { %v623_v31 = vpop.f32.mrf.mxu1 }
  0xf7   : > { %v726_v36 = vpop.f32.mrf.mxu0  ;;  %v654_v58 = vadd.f32 %v623_v31, %v560_v49  ;;  %v756_v50 = vadd.f32 %v1355_v26, %v656_v52 }
  0xf8   : > { %v1346_v34 = vpop.f32.mrf.mxu1 }
  0xf9   : > { %v1359_v38 = vpop.f32.mrf.mxu0  ;;  %v657_v63 = vadd.f32 %v1346_v34, %v563_v56  ;;  %v754_v57 = vadd.f32 %v723_v30, %v654_v58  ;;  %v565_v30 = vadd.f32 %v1746_v24, %v430_v0 }
  0xfa   : > { %v626_v37 = vpop.f32.mrf.mxu1 }
  0xfb   : > { %v739_v40 = vpop.f32.mrf.mxu0  ;;  %v655_v10 = vadd.f32 %v626_v37, %v561_v62  ;;  %v757_v2 = vadd.f32 %v1356_v33, %v657_v63 }
  0xfc   : > { %v1349_v39 = vpop.f32.mrf.mxu1 }
  0xfd   : > { %v1748_v42 = vpop.f32.mrf.mxu0  ;;  %v660_v14 = vadd.f32 %v1349_v39, %v566_v1  ;;  %v755_v4 = vadd.f32 %v726_v36, %v655_v10 }
  0xfe   : > { %v639_v41 = vpop.f32.mrf.mxu1 }
  0xff   : > { %v1750_v35 = vpop.f32.mrf.mxu0  ;;  %v658_v26 = vadd.f32 %v639_v41, %v564_v12  ;;  %v760_v34 = vadd.f32 %v1359_v38, %v660_v14 }
 0x100   : > { %v1350_v23 = vpop.f32.mrf.mxu1 }
 0x101   : > { %v1375_v6 = vpop.f32.mrf.mxu0  ;;  %v661_v18 = vadd.f32 %v1350_v23, %v567_v13 }
 0x102   : > { %v642_v43 = vpop.f32.mrf.mxu1 }
 0x103   : > { %v903_v47 = vpop.f32.mrf.mxu0  ;;  %v659_v33 = vadd.f32 %v642_v43, %v565_v30  ;;  %v761_v23 = vadd.f32 %v1748_v42, %v661_v18 }
 0x104   : > { %v1365_v46 = vpop.f32.mrf.mxu1 }
 0x105   : > { %v1376_v16 = vpop.f32.mrf.mxu0  ;;  %v854_v5 = vadd.f32 %v1365_v46, %v756_v50  ;;  %v758_v46 = vadd.f32 %v739_v40, %v658_v26  ;;  %v1262_v40 = vld [vmem:[%s1806_s3] ss:$0 sm:$0xff]  ;;  %v759_v51 = vadd.f32 %v1750_v35, %v659_v33 }
 0x106   : > { %v821_v45 = vpop.f32.mrf.mxu1 }
 0x107   : > { %v906_v48 = vpop.f32.mrf.mxu0  ;;  %v852_v19 = vadd.f32 %v821_v45, %v754_v57  ;;  %v936_v22 = vadd.f32 %v1375_v6, %v854_v5 }
 0x108   : > { %v1366_v28 = vpop.f32.mrf.mxu1 }
 0x109   : > { %v1379_v55 = vpop.f32.mrf.mxu0  ;;  %v855_v31 = vadd.f32 %v1366_v28, %v757_v2  ;;  %v934_v25 = vadd.f32 %v903_v47, %v852_v19 }
 0x10a   : > { %v824_v53 = vpop.f32.mrf.mxu1 }
 0x10b   : > { %v919_v61 = vpop.f32.mrf.mxu0  ;;  %v853_v39 = vadd.f32 %v824_v53, %v755_v4  ;;  %v937_v6 = vadd.f32 %v1376_v16, %v855_v31 }
 0x10c   : > { %v1369_v60 = vpop.f32.mrf.mxu1 }
 0x10d   : > { %v1752_v3 = vpop.f32.mrf.mxu0  ;;  %v858_v44 = vadd.f32 %v1369_v60, %v760_v34  ;;  %v935_v21 = vadd.f32 %v906_v48, %v853_v39 }
 0x10e   : > { %v837_v54 = vpop.f32.mrf.mxu1 }
 0x10f   : > { %v1755_v17 = vpop.f32.mrf.mxu0  ;;  %v856_v45 = vadd.f32 %v837_v54, %v758_v46  ;;  %v940_v16 = vadd.f32 %v1379_v55, %v858_v44 }
 0x110   : > { %v1370_v11 = vpop.f32.mrf.mxu1 }
 0x111   : > { %v1395_v15 = vpop.f32.mrf.mxu0  ;;  %v859_v52 = vadd.f32 %v1370_v11, %v761_v23  ;;  %v938_v59 = vadd.f32 %v919_v61, %v856_v45 }
 0x112   : > { %v840_v29 = vpop.f32.mrf.mxu1 }
 0x113   : > { %v1077_v7 = vpop.f32.mrf.mxu0  ;;  %v857_v60 = vadd.f32 %v840_v29, %v759_v51  ;;  %v941_v8 = vadd.f32 %v1752_v3, %v859_v52 }
 0x114   : > { %v1385_v37 = vpop.f32.mrf.mxu1 }
 0x115   : > { %v1024_v9 = vadd.f32 %v1385_v37, %v936_v22  ;;  %v1396_v41 = vpop.f32.mrf.mxu0  ;;  %v939_v12 = vadd.f32 %v1755_v17, %v857_v60 }
 0x116   : > { %v991_v36 = vpop.f32.mrf.mxu1 }
 0x117   : > { %v1110_v24 = vadd.f32 %v1395_v15, %v1024_v9  ;;  %v1022_v38 = vadd.f32 %v991_v36, %v934_v25  ;;  %v1080_v47 = vpop.f32.mrf.mxu0 }
 0x118   : > { %v1386_v43 = vpop.f32.mrf.mxu1 }
 0x119   : > { %v1125_v27 = vmul.f32 %v1761_v20, %v1110_v24  ;;  %v1108_v28 = vadd.f32 %v1077_v7, %v1022_v38  ;;  %v1025_v49 = vadd.f32 %v1386_v43, %v937_v6  ;;  %v1399_v32 = vpop.f32.mrf.mxu0 }
 0x11a   : > { %v994_v42 = vpop.f32.mrf.mxu1 }
 0x11b   : > { %v1140_v53 = vadd.f32 %v1262_v40, %v1125_v27  ;;  %v1123_v48 = vmul.f32 %v1761_v20, %v1108_v28  ;;  %v1111_v56 = vadd.f32 %v1396_v41, %v1025_v49  ;;  %v1023_v58 = vadd.f32 %v994_v42, %v935_v21  ;;  %v1093_v35 = vpop.f32.mrf.mxu0 }
 0x11c   : > { %v1389_v62 = vpop.f32.mrf.mxu1 }
 0x11d   : > { %1148 = vst.msk [vmem:[%s1773_s21 + $0x10] sm:$0xff] %vm279_vm2, %v1140_v53  ;;  %v1138_v55 = vadd.f32 %v1262_v40, %v1123_v48  ;;  %v1126_v50 = vmul.f32 %v1761_v20, %v1111_v56  ;;  %v1109_v63 = vadd.f32 %v1080_v47, %v1023_v58  ;;  %v1028_v1 = vadd.f32 %v1389_v62, %v940_v16  ;;  %v1400_v14 = vpop.f32.mrf.mxu0 }
 0x11e   : > { %v1007_v54 = vpop.f32.mrf.mxu1 }
 0x11f   : > { %1146 = vst.msk [vmem:[%s1773_s21] sm:$0xff] %vm279_vm2, %v1138_v55  ;;  %v1141_v57 = vadd.f32 %v1262_v40, %v1126_v50  ;;  %v1124_v61 = vmul.f32 %v1761_v20, %v1109_v63  ;;  %v1114_v10 = vadd.f32 %v1399_v32, %v1028_v1  ;;  %v1026_v5 = vadd.f32 %v1007_v54, %v938_v59  ;;  %v1096_v4 = vpop.f32.mrf.mxu0 }
 0x120   : > { %v1390_v0 = vpop.f32.mrf.mxu1 }
 0x121   : > { %1149 = vst.msk [vmem:[%s1773_s21 + $0x18] sm:$0xff] %vm279_vm2, %v1141_v57  ;;  %v1139_v11 = vadd.f32 %v1262_v40, %v1124_v61  ;;  %v1129_v3 = vmul.f32 %v1761_v20, %v1114_v10  ;;  %v1112_v2 = vadd.f32 %v1093_v35, %v1026_v5  ;;  %v1029_v19 = vadd.f32 %v1390_v0, %v941_v8 }
 0x122   : > { %v1010_v13 = vpop.f32.mrf.mxu1 }
 0x123   : > { %1147 = vst.msk [vmem:[%s1773_s21 + $0x8] sm:$0xff] %vm279_vm2, %v1139_v11  ;;  %v1144_v26 = vadd.f32 %v1262_v40, %v1129_v3  ;;  %v1127_v29 = vmul.f32 %v1761_v20, %v1112_v2  ;;  %v1115_v15 = vadd.f32 %v1400_v14, %v1029_v19  ;;  %v1027_v17 = vadd.f32 %v1010_v13, %v939_v12 }
 0x125   : > { %1152 = vst.msk [vmem:[%s1773_s21 + $0x30] sm:$0xff] %vm279_vm2, %v1144_v26  ;;  %v1142_v22 = vadd.f32 %v1262_v40, %v1127_v29  ;;  %v1130_v31 = vmul.f32 %v1761_v20, %v1115_v15  ;;  %v1113_v30 = vadd.f32 %v1096_v4, %v1027_v17 }
 0x127   : > { %1150 = vst.msk [vmem:[%s1773_s21 + $0x20] sm:$0xff] %vm279_vm2, %v1142_v22  ;;  %v1145_v34 = vadd.f32 %v1262_v40, %v1130_v31  ;;  %v1128_v18 = vmul.f32 %v1761_v20, %v1113_v30 }
 0x129   : > { %1153 = vst.msk [vmem:[%s1773_s21 + $0x38] sm:$0xff] %vm279_vm2, %v1145_v34  ;;  %v1143_v37 = vadd.f32 %v1262_v40, %v1128_v18 }
 0x12b   : > { %1151 = vst.msk [vmem:[%s1773_s21 + $0x28] sm:$0xff] %vm279_vm2, %v1143_v37 }
 0x12c PF: > { %s14_s15 = sadd.s32 1, %s1428_s15  }
 0x12d   : > { %p11_p4 = scmp.ge.s32.totalorder %s14_s15, 4  }
 0x12f   :  { %13 = sbr.rel (!%p11_p4) target bundleno = 1 (0x1), region = 74 }

// kernel: rcca_forward.7
= control target key start
LH: loop header
LB: loop body
LE: loop exit
PB: predicated region body
PF: predicated region fallthrough
CT: control target
= control target key end

     0   :  { %s3629_s11 = smov 0   ;;  %s5043_s0 = inlined_call_operand.vmem [shape: f32[2,8,8,8], index: 0, kind: input, shape index: {}]   ;;  %s5044_s1 = inlined_call_operand.vmem [shape: bf16[8,1], index: 1, kind: input, shape index: {}]   ;;  %s5045_s2 = inlined_call_operand.<no memory space> [shape: f32[1,1], index: 2, kind: input, shape index: {}]   ;;  %s5046_s3 = inlined_call_operand.vmem [shape: bf16[8,1], index: 3, kind: input, shape index: {}]   ;;  %s5047_s5 = inlined_call_operand.vmem [shape: bf16[8,8], index: 5, kind: input, shape index: {}]   ;;  %s5048_s6 = inlined_call_operand.vmem [shape: f32[1,8], index: 6, kind: input, shape index: {}]   ;;  %s5049_s7 = inlined_call_operand.<no memory space> [shape: f32[1], index: 7, kind: input, shape index: {}]   ;;  %s5050_s8 = inlined_call_operand.vmem [shape: f32[2,8,8,8], index: 8, kind: output, shape index: {}]   ;;  %s5051_s4 = inlined_call_operand.<no memory space> [shape: f32[1,1], index: 4, kind: input, shape index: {}]  }
   0x1   :  { %v13_v0 = vstv %s5045_s2  ;;  %v15_v1 = vstv %s5051_s4  ;;  %17 = sst [smem:[#allocation4]] %s5049_s7 }
   0x2   :  { %14 = vst [vmem:[#allocation2] sm:$0x1] %v13_v0  ;;  %16 = vst [vmem:[#allocation3] sm:$0x1] %v15_v1 }
   0x3 LB: > { %s3275_s2 = sadd.s32 4294967295, %s3570_s11   ;;  %p3279_p0 = scmp.ge.s32.totalorder %s3570_s11, 1  ;;  %s3570_s11 = sphi %s3629_s11, %s23_s11  }
   0x4   : > { %p267_p1 = scmp.lt.s32.totalorder %s3570_s11, 3 }
   0x6   : > { %p268_p2 = pnand %p3279_p0, %p267_p1 }
   0x8   : > { %271 = sbr.rel (%p268_p2) target bundleno = 1342 (0x53e), region = 52 }
   0xd   : > { %v324_v2 = vld [vmem:[%s5044_s1] sm:$0xf]  ;;  %vm345_vm0 = vcmask 1043456   ;;  %p301_p3 = scmp.lt.s32.totalorder %s3275_s2, 1  ;;  %vm332_vm1 = vcmask 64512   ;;  %v3572_v20 = vmov 0  }
   0xe   : > { %v414_v3 = vld [vmem:[%s5046_s3] sm:$0xf]  ;;  %3492 = vmatprep.subr.msk.bf16.mxu0 %vm345_vm0, %v324_v2  ;;  %v347_v4 = vsel %vm345_vm0, %v324_v2, 0  ;;  %3506 = vset.pattern.permute.xlu1 %v3572_v20  ;;  %v5052_v21 = vmov 0.0   ;;  %vm3574_vm2 = vmmov 0   ;;  %vm590_vm3 = vcmask 7168  }
   0xf   : > { %3493 = vmatprep.subr.msk.bf16.mxu1 %vm345_vm0, %v414_v3  ;;  %v423_v5 = vsel %vm345_vm0, %v414_v3, 0  ;;  %v490_v6 = vld [vmem:[%s5047_s5] sm:$0xf]  ;;  %3367 = vmatpush3.bf16.msra.mxu0 %v347_v4  ;;  %s5088_s2 = smov (!%p301_p3, %s3275_s2), 1  ;;  %vm1635_vm4 = vcmask 1041409   ;;  %vm1637_vm5 = vcmask 1042434  }
  0x10   : > { %3377 = vmatpush3.bf16.msra.mxu1 %v423_v5  ;;  %3494 = vmatprep.subr.msk.bf16.mxu0 %vm345_vm0, %v490_v6  ;;  %s3317_s16 = sshll.u32 %s5088_s2, 6  ;;  %v499_v16 = vsel %vm345_vm0, %v490_v6, 0  ;;  %v3688_v22 = vld [vmem:[#allocation2] ss:$0 sm:$0xff]  ;;  %v3690_v23 = vld [vmem:[#allocation3] ss:$0 sm:$0xff] }
  0x11   : > { %s3659_s19 = scalar_lea.vmem %s5043_s0, %s3317_s16  ;;  %3507 = vset.pattern.permute.xlu0 %v3572_v20  ;;  %3396 = vmatprep.subr.bf16.mxu1 %v5052_v21  ;;  %vm1639_vm6 = vcmask 1043459   ;;  %vm1641_vm7 = vcmask 1044484   ;;  %vm1643_vm8 = vcmask 1045509   ;;  %vm1645_vm9 = vcmask 1046534   ;;  %s2778_s22 = sld [smem:[#allocation4]] }
  0x12   : > { %v312_v7 = vld [vmem:[%s3659_s19] sm:$0xff]  ;;  %v313_v8 = vld [vmem:[%s3659_s19 + $0x8] sm:$0xff]  ;;  %v314_v9 = vld [vmem:[%s3659_s19 + $0x10] sm:$0xff]  ;;  %vm1647_vm10 = vcmask 1047559   ;;  %s4970_s25 = scalar_lea.vmem %s5050_s8, %s3317_s16 }
  0x13   : > { %v320_v10 = vpack.c.bf16 %v313_v8, %v312_v7  ;;  %v315_v11 = vld [vmem:[%s3659_s19 + $0x18] sm:$0xff]  ;;  %v316_v12 = vld [vmem:[%s3659_s19 + $0x20] sm:$0xff]  ;;  %v317_v13 = vld [vmem:[%s3659_s19 + $0x28] sm:$0xff] }
  0x14   : > { %v321_v14 = vpack.c.bf16 %v315_v11, %v314_v9  ;;  %v322_v15 = vpack.c.bf16 %v317_v13, %v316_v12  ;;  %v318_v17 = vld [vmem:[%s3659_s19 + $0x30] sm:$0xff]  ;;  %v319_v18 = vld [vmem:[%s3659_s19 + $0x38] sm:$0xff] }
  0x15   : > { %3368 = vmatprep.mubr.msk.bf16.mxu0 %vm332_vm1, %v320_v10  ;;  %3378 = vmatprep.mubr.msk.bf16.mxu1 %vm332_vm1, %v320_v10  ;;  %v323_v19 = vpack.c.bf16 %v319_v18, %v318_v17 }
  0x16   : > { %3369 = vmatmul.mubr.msk.bf16.vlgmr.msra.gmra.mxu0 %vm332_vm1, %v321_v14  ;;  %3379 = vmatmul.mubr.msk.bf16.vlgmr.msra.gmra.mxu1 %vm332_vm1, %v321_v14 }
  0x17   : > { %3372 = vmatprep.mubr.msk.bf16.mxu0 %vm332_vm1, %v322_v15  ;;  %3382 = vmatprep.mubr.msk.bf16.mxu1 %vm332_vm1, %v322_v15 }
  0x18   : > { %3387 = vmatpush3.bf16.msra.mxu0 %v499_v16 }
  0x19   : > { %3408 = vmatprep.subr.bf16.mxu0 %v5052_v21 }
  0x1e   : > { %3373 = vmatmul.mubr.msk.bf16.gmra.mxu0 %vm332_vm1, %v323_v19  ;;  %3383 = vmatmul.mubr.msk.bf16.gmra.mxu1 %vm332_vm1, %v323_v19 }
  0x1f   : > { %3388 = vmatprep.mubr.msk.bf16.mxu0 %vm332_vm1, %v320_v10  ;;  %3398 = vmatprep.mubr.msk.bf16.mxu1 %vm3574_vm2, %v5052_v21 }
  0x26   : > { %3389 = vmatmul.mubr.msk.bf16.vlgmr.msra.gmra.mxu0 %vm332_vm1, %v321_v14 }
  0x27   : > { %3392 = vmatprep.mubr.msk.bf16.mxu0 %vm332_vm1, %v322_v15 }
  0x2e   : > { %3393 = vmatmul.mubr.msk.bf16.gmra.mxu0 %vm332_vm1, %v323_v19 }
  0x2f   : > { %3410 = vmatprep.mubr.msk.bf16.mxu0 %vm3574_vm2, %v5052_v21 }
  0xd6   : > { %v3370_v24 = vpop.f32.mrf.mxu0  ;;  %v3380_v25 = vpop.f32.mrf.mxu1 }
  0xd7   : > { %v3693_v26 = vadd.f32 %v3370_v24, %v3688_v22  ;;  %v3696_v27 = vadd.f32 %v3380_v25, %v3690_v23 }
  0xd8   : > { %v383_v28 = vpop.f32.mrf.mxu0  ;;  %v459_v29 = vpop.f32.mrf.mxu1 }
  0xd9   : > { %v3699_v30 = vadd.f32 %v3688_v22, %v383_v28  ;;  %v3702_v31 = vadd.f32 %v3690_v23, %v459_v29  ;;  %v1001_v32 = vmul.f32 %v3696_v27, %v3693_v26  ;;  %v576_v33 = vpack.c.bf16 %v3696_v27, %v3696_v27 }
  0xda   : > { %v3371_v34 = vpop.f32.mrf.mxu0  ;;  %v3381_v35 = vpop.f32.mrf.mxu1  ;;  %v568_v51 = vpack.c.bf16 %v3693_v26, %v3693_v26 }
  0xdb   : > { %v3709_v36 = vadd.f32 %v3371_v34, %v3688_v22  ;;  %1240 = vperm.xlu1 %3506, %v1001_v32   ;;  %v687_v37 = vsel %vm590_vm3, %v576_v33, 0  ;;  %v983_v38 = vmul.f32 %v3702_v31, %v3699_v30  ;;  %v574_v41 = vpack.c.bf16 %v3702_v31, %v3702_v31 }
  0xdc   : > { %v386_v39 = vpop.f32.mrf.mxu0  ;;  %v462_v40 = vpop.f32.mrf.mxu1  ;;  %3409 = vmatpush3.bf16.xpose.msra.mxu0 %v687_v37  ;;  %v985_v42 = vmul.f32 %v3696_v27, %v3699_v30  ;;  %v3727_v49 = vadd.f32 %v3381_v35, %v3690_v23  ;;  %v999_v52 = vmul.f32 %v3702_v31, %v3693_v26  ;;  %v566_v58 = vpack.c.bf16 %v3699_v30, %v3699_v30 }
  0xdd   : > { %1186 = vperm.xlu0 %3507, %v983_v38   ;;  %v3719_v43 = vadd.f32 %v3690_v23, %v462_v40  ;;  %v595_v45 = vsel %vm590_vm3, %v574_v41, 0  ;;  %3420 = vmatprep.subr.bf16.mxu0 %v5052_v21  ;;  %v1007_v46 = vmul.f32 %v3702_v31, %v3709_v36  ;;  %v1009_v54 = vmul.f32 %v3696_v27, %v3709_v36 }
  0xde   : > { %v3384_v44 = vpop.f32.mrf.mxu1  ;;  %3397 = vmatpush3.bf16.xpose.msra.mxu1 %v595_v45  ;;  %v3374_v47 = vpop.f32.mrf.mxu0  ;;  %v986_v60 = vmul.f32 %v3727_v49, %v3699_v30  ;;  %v3754_v62 = vadd.f32 %v3688_v22, %v386_v39  ;;  %v1010_v1 = vmul.f32 %v3727_v49, %v3709_v36  ;;  %v1002_v5 = vmul.f32 %v3727_v49, %v3693_v26 }
  0xdf   : > { %1192 = vperm.xlu1 %3506, %v985_v42   ;;  %3402 = vmatprep.subr.bf16.mxu1 %v5052_v21  ;;  %v575_v53 = vpack.c.bf16 %v3719_v43, %v3719_v43  ;;  %v3748_v59 = vadd.f32 %v3384_v44, %v3690_v23  ;;  %v577_v7 = vpack.c.bf16 %v3727_v49, %v3727_v49 }
  0xe0   : > { %v475_v48 = vpop.f32.mrf.mxu1  ;;  %v399_v56 = vpop.f32.mrf.mxu0  ;;  %v992_v9 = vmul.f32 %v3719_v43, %v3754_v62  ;;  %v3782_v11 = vadd.f32 %v3374_v47, %v3688_v22  ;;  %v567_v13 = vpack.c.bf16 %v3754_v62, %v3754_v62  ;;  %v984_v14 = vmul.f32 %v3719_v43, %v3699_v30 }
  0xe1   : > { %v3730_v50 = vadd.f32 %v3690_v23, %v475_v48  ;;  %1258 = vperm.xlu0 %3507, %v1007_v46   ;;  %v641_v63 = vsel %vm590_vm3, %v575_v53, 0  ;;  %v3759_v0 = vadd.f32 %v3688_v22, %v399_v56  ;;  %v580_v2 = vpack.c.bf16 %v3748_v59, %v3748_v59 }
  0xe2   : > { %v3385_v57 = vpop.f32.mrf.mxu1  ;;  %v3375_v3 = vpop.f32.mrf.mxu0  ;;  %v994_v15 = vmul.f32 %v3727_v49, %v3754_v62  ;;  %v733_v18 = vsel %vm590_vm3, %v577_v7, 0  ;;  %v991_v19 = vmul.f32 %v3702_v31, %v3754_v62  ;;  %v1000_v20 = vmul.f32 %v3719_v43, %v3693_v26 }
  0xe3   : > { %3411 = vmatmul.mubr.msk.bf16.vlgmr.msra.gmra.mxu0 %vm590_vm3, %v568_v51  ;;  %1234 = vperm.xlu1 %3506, %v999_v52   ;;  %v578_v55 = vpack.c.bf16 %v3730_v50, %v3730_v50  ;;  %v570_v6 = vpack.c.bf16 %v3759_v0, %v3759_v0  ;;  %v871_v10 = vsel %vm590_vm3, %v580_v2, 0  ;;  %v3794_v17 = vadd.f32 %v3385_v57, %v3690_v23 }
  0xe4   : > { %3422 = vmatprep.mubr.msk.bf16.mxu0 %vm3574_vm2, %v5052_v21  ;;  %v478_v4 = vpop.f32.mrf.mxu1  ;;  %v402_v12 = vpop.f32.mrf.mxu0  ;;  %v3803_v24 = vadd.f32 %v3375_v3, %v3688_v22  ;;  %v569_v28 = vpack.c.bf16 %v3709_v36, %v3709_v36  ;;  %v3819_v29 = vmul.f32 %v3730_v50, %v3759_v0  ;;  %v572_v33 = vpack.c.bf16 %v3782_v11, %v3782_v11 }
  0xe5   : > { %1264 = vperm.xlu0 %3507, %v1009_v54   ;;  %v779_v61 = vsel %vm590_vm3, %v578_v55, 0  ;;  %3399 = vmatmul.mubr.msk.bf16.vlgmr.msra.gmra.mxu1 %vm590_vm3, %v566_v58  ;;  %v3776_v8 = vadd.f32 %v3690_v23, %v478_v4  ;;  %v3806_v25 = vadd.f32 %v3688_v22, %v402_v12  ;;  %v3810_v23 = vmul.f32 %v3727_v49, %v3759_v0 }
  0xe6   : > { %3421 = vmatpush3.bf16.xpose.msra.mxu0 %v779_v61  ;;  %3403 = vmatpush3.bf16.xpose.msra.mxu1 %v641_v63  ;;  %v3823_v22 = vmul.f32 %v3748_v59, %v3759_v0  ;;  %v3832_v34 = vmul.f32 %v3730_v50, %v3782_v11  ;;  %v3840_v37 = vmul.f32 %v3794_v17, %v3699_v30 }
  0xe7   : > { %1195 = vperm.xlu1 %3506, %v986_v60   ;;  %3404 = vmatprep.mubr.msk.bf16.mxu1 %vm3574_vm2, %v5052_v21  ;;  %v579_v16 = vpack.c.bf16 %v3776_v8, %v3776_v8  ;;  %v3836_v35 = vmul.f32 %v3730_v50, %v3806_v25  ;;  %v3844_v38 = vmul.f32 %v3776_v8, %v3806_v25 }
  0xe8   : > { %3414 = vmatprep.subr.bf16.mxu1 %v5052_v21  ;;  %3432 = vmatprep.subr.bf16.mxu0 %v5052_v21  ;;  %v3848_v39 = vmul.f32 %v3794_v17, %v3693_v26  ;;  %v3852_v40 = vmul.f32 %v3748_v59, %v3806_v25  ;;  %v3857_v41 = vmul.f32 %v3794_v17, %v3759_v0 }
  0xe9   : > { %1267 = vperm.xlu0 %3507, %v1010_v1   ;;  %v825_v32 = vsel %vm590_vm3, %v579_v16, 0  ;;  %v3861_v42 = vmul.f32 %v3794_v17, %v3806_v25  ;;  %v3865_v44 = vmul.f32 %v3702_v31, %v3803_v24  ;;  %v3869_v45 = vmul.f32 %v3776_v8, %v3803_v24  ;;  %v3951_v16 = vld [vmem:[%s5048_s6] ss:$0 sm:$0xff] }
  0xea   : > { %v3873_v46 = vmul.f32 %v3794_v17, %v3782_v11  ;;  %v3877_v47 = vmul.f32 %v3776_v8, %v3699_v30  ;;  %v3881_v48 = vmul.f32 %v3776_v8, %v3693_v26  ;;  %v3885_v51 = vmul.f32 %v3702_v31, %v3806_v25 }
  0xeb   : > { %1243 = vperm.xlu1 %3506, %v1002_v5   ;;  %v993_v52 = vmul.f32 %v3696_v27, %v3754_v62  ;;  %v3892_v53 = vmul.f32 %v3776_v8, %v3759_v0  ;;  %v3896_v54 = vmul.f32 %v3776_v8, %v3782_v11  ;;  %v1013_v55 = vmul.f32 %v3748_v59, %v3709_v36 }
  0xec   : > { %v581_v56 = vpack.c.bf16 %v3794_v17, %v3794_v17  ;;  %v1008_v57 = vmul.f32 %v3719_v43, %v3709_v36  ;;  %v571_v58 = vpack.c.bf16 %v3806_v25, %v3806_v25  ;;  %v1032_v60 = vmul.f32 %v3719_v43, %v3782_v11 }
  0xed   : > { %1213 = vperm.xlu0 %3507, %v992_v9   ;;  %3423 = vmatmul.mubr.msk.bf16.vlgmr.msra.gmra.mxu0 %vm590_vm3, %v570_v6  ;;  %v989_v63 = vmul.f32 %v3748_v59, %v3699_v30  ;;  %v1011_v1 = vmul.f32 %v3730_v50, %v3709_v36  ;;  %v997_v2 = vmul.f32 %v3748_v59, %v3754_v62 }
  0xee   : > { %3405 = vmatmul.mubr.msk.bf16.vlgmr.msra.gmra.mxu1 %vm590_vm3, %v567_v13  ;;  %3433 = vmatpush3.bf16.xpose.msra.mxu0 %v871_v10  ;;  %v917_v61 = vsel %vm590_vm3, %v581_v56, 0  ;;  %v573_v3 = vpack.c.bf16 %v3803_v24, %v3803_v24  ;;  %v1016_v4 = vmul.f32 %v3719_v43, %v3759_v0  ;;  %v1005_v5 = vmul.f32 %v3748_v59, %v3693_v26 }
  0xef   : > { %3415 = vmatpush3.bf16.xpose.msra.mxu1 %v733_v18  ;;  %1189 = vperm.xlu1 %3506, %v984_v14   ;;  %v998_v6 = vmul.f32 %v3794_v17, %v3754_v62  ;;  %v1031_v7 = vmul.f32 %v3702_v31, %v3782_v11  ;;  %v1014_v9 = vmul.f32 %v3794_v17, %v3709_v36 }
  0xf0   : > { %3416 = vmatprep.mubr.msk.bf16.mxu1 %vm3574_vm2, %v5052_v21  ;;  %3426 = vmatprep.subr.bf16.mxu1 %v5052_v21  ;;  %v1033_v10 = vmul.f32 %v3696_v27, %v3782_v11  ;;  %v1040_v12 = vmul.f32 %v3719_v43, %v3803_v24  ;;  %v1034_v13 = vmul.f32 %v3727_v49, %v3782_v11 }
  0xf1   : > { %1219 = vperm.xlu0 %3507, %v994_v15   ;;  %3434 = vmatprep.mubr.msk.bf16.mxu0 %vm3574_vm2, %v5052_v21  ;;  %v1041_v14 = vmul.f32 %v3696_v27, %v3803_v24  ;;  %v3390_v15 = vpop.f32.mrf.mxu0 }
  0xf2   : > { %3444 = vmatprep.subr.bf16.mxu0 %v5052_v21  ;;  %v3954_v18 = vadd.f32 %v3390_v15, %v3951_v16 }
  0xf3   : > { %1210 = vperm.xlu1 %3506, %v991_v19   ;;  %v1037_v19 = vmul.f32 %v3748_v59, %v3782_v11  ;;  %v995_v11 = vmul.f32 %v3730_v50, %v3754_v62 }
  0xf4   : > { %5062 = vst [vmem:[#allocation5_spill] sm:$0xff] %v3954_v18 }
  0xf5   : > { %1237 = vperm.xlu0 %3507, %v1000_v20   ;;  %3435 = vmatmul.mubr.msk.bf16.vlgmr.msra.gmra.mxu0 %vm590_vm3, %v572_v33  ;;  %v3958_v20 = vpop.f32.mrf.mxu0 }
  0xf6   : > { %3417 = vmatmul.mubr.msk.bf16.vlgmr.msra.gmra.mxu1 %vm590_vm3, %v569_v28  ;;  %3446 = vmatprep.mubr.msk.bf16.mxu0 %vm3574_vm2, %v5052_v21  ;;  %v1042_v28 = vmul.f32 %v3727_v49, %v3803_v24 }
  0xf7   : > { %3427 = vmatpush3.bf16.xpose.msra.mxu1 %v825_v32  ;;  %1216 = vperm.xlu1 %3506, %v993_v52   ;;  %v987_v32 = vmul.f32 %v3730_v50, %v3699_v30  ;;  %v3391_v33 = vpop.f32.mrf.mxu0  ;;  %v1045_v30 = vmul.f32 %v3748_v59, %v3803_v24  ;;  %v1015_v59 = vmul.f32 %v3702_v31, %v3759_v0 }
  0xf8   : > { %3428 = vmatprep.mubr.msk.bf16.mxu1 %vm3574_vm2, %v5052_v21  ;;  %3438 = vmatprep.subr.bf16.mxu1 %v5052_v21  ;;  %v3965_v52 = vadd.f32 %v3391_v33, %v3951_v16  ;;  %v1025_v31 = vmul.f32 %v3696_v27, %v3806_v25 }
  0xf9   : > { %1276 = vperm.xlu0 %3507, %v1013_v55   ;;  %v1043_v55 = vmul.f32 %v3730_v50, %v3803_v24  ;;  %v3969_v56 = vpop.f32.mrf.mxu0 }
  0xfb   : > { %1261 = vperm.xlu1 %3506, %v1008_v57   ;;  %v3394_v57 = vpop.f32.mrf.mxu0 }
  0xfd   : > { %1333 = vperm.xlu0 %3507, %v1032_v60   ;;  %v551_v60 = vpop.f32.mrf.mxu0 }
  0xfe   : > { %3429 = vmatmul.mubr.msk.bf16.vlgmr.msra.gmra.mxu1 %vm590_vm3, %v571_v58  ;;  %v3974_v58 = vadd.f32 %v3394_v57, %v3951_v16 }
  0xff   : > { %3439 = vmatpush3.bf16.xpose.msra.mxu1 %v917_v61  ;;  %1204 = vperm.xlu1 %3506, %v989_v63   ;;  %v3979_v61 = vadd.f32 %v3951_v16, %v551_v60  ;;  %v1003_v63 = vmul.f32 %v3730_v50, %v3693_v26  ;;  %v1017_v26 = vmul.f32 %v3696_v27, %v3759_v0 }
 0x100   : > { %3440 = vmatprep.mubr.msk.bf16.mxu1 %vm3574_vm2, %v5052_v21  ;;  %3450 = vmatprep.subr.bf16.mxu1 %v5052_v21  ;;  %5063 = vst [vmem:[#allocation6_spill] sm:$0xff] %v3974_v58  ;;  %v1012_v50 = vmul.f32 %v3776_v8, %v3709_v36 }
 0x101   : > { %1270 = vperm.xlu0 %3507, %v1011_v1   ;;  %5064 = vst [vmem:[#allocation7_spill] sm:$0xff] %v3979_v61  ;;  %v3395_v1 = vpop.f32.mrf.mxu0 }
 0x103   : > { %1228 = vperm.xlu1 %3506, %v997_v2   ;;  %v3984_v2 = vadd.f32 %v3395_v1, %v3951_v16 }
 0x105   : > { %1285 = vperm.xlu0 %3507, %v1016_v4   ;;  %5065 = vst [vmem:[#allocation8_spill] sm:$0xff] %v3984_v2  ;;  %v996_v4 = vmul.f32 %v3776_v8, %v3754_v62  ;;  %v1026_v62 = vmul.f32 %v3727_v49, %v3806_v25 }
 0x106   : > { %3441 = vmatmul.mubr.msk.bf16.vlgmr.msra.gmra.mxu1 %vm590_vm3, %v573_v3  ;;  %v1046_v3 = vmul.f32 %v3794_v17, %v3803_v24  ;;  %v1024_v17 = vmul.f32 %v3719_v43, %v3806_v25 }
 0x107   : > { %1252 = vperm.xlu1 %3506, %v1005_v5   ;;  %3452 = vmatprep.mubr.msk.bf16.mxu1 %vm3574_vm2, %v5052_v21 }
 0x109   : > { %1231 = vperm.xlu0 %3507, %v998_v6  }
 0x10b   : > { %1330 = vperm.xlu1 %3506, %v1031_v7  }
 0x10d   : > { %1279 = vperm.xlu0 %3507, %v1014_v9  }
 0x10f   : > { %1336 = vperm.xlu1 %3506, %v1033_v10  }
 0x111   : > { %1357 = vperm.xlu0 %3507, %v1040_v12  }
 0x113   : > { %1339 = vperm.xlu1 %3506, %v1034_v13  }
 0x115   : > { %1360 = vperm.xlu0 %3507, %v1041_v14  }
 0x117   : > { %1348 = vperm.xlu1 %3506, %v1037_v19  }
 0x119   : > { %1363 = vperm.xlu0 %3507, %v1042_v28  }
 0x11b   : > { %1198 = vperm.xlu1 %3506, %v987_v32  }
 0x11d   : > { %1366 = vperm.xlu0 %3507, %v1043_v55  }
 0x11f   : > { %1222 = vperm.xlu1 %3506, %v995_v11  }
 0x121   : > { %1372 = vperm.xlu0 %3507, %v1045_v30  }
 0x123   : > { %1246 = vperm.xlu1 %3506, %v1003_v63  }
 0x125   : > { %1375 = vperm.xlu0 %3507, %v1046_v3  }
 0x127   : > { %1282 = vperm.xlu1 %3506, %v1015_v59  }
 0x129   : > { %1225 = vperm.xlu0 %3507, %v996_v4   ;;  %v4108_v4 = vpop.f32.mrf.mxu0 }
 0x12b   : > { %1288 = vperm.xlu1 %3506, %v1017_v26  }
 0x12d   : > { %1273 = vperm.xlu0 %3507, %v1012_v50  }
 0x12f   : > { %1291 = vperm.xlu1 %3506, %v3810_v23  }
 0x131   : > { %1309 = vperm.xlu0 %3507, %v1024_v17  }
 0x133   : > { %1294 = vperm.xlu1 %3506, %v3819_v29  }
 0x135   : > { %1312 = vperm.xlu0 %3507, %v1025_v31  }
 0x137   : > { %1300 = vperm.xlu1 %3506, %v3823_v22  }
 0x139   : > { %1315 = vperm.xlu0 %3507, %v1026_v62  }
 0x13b   : > { %1342 = vperm.xlu1 %3506, %v3832_v34  }
 0x13d   : > { %1318 = vperm.xlu0 %3507, %v3836_v35  }
 0x13f   : > { %1207 = vperm.xlu1 %3506, %v3840_v37   ;;  %v4045_v37 = vadd.f32 %v3951_v16, %v3958_v20  ;;  %v1111_v20 = vlaneseq }
 0x141   : > { %1321 = vperm.xlu0 %3507, %v3844_v38   ;;  %5066 = vst [vmem:[#allocation9_spill] sm:$0xff] %v4045_v37  ;;  %v4049_v38 = vadd.f32 %v3951_v16, %v3969_v56  ;;  %v4093_v33 = vshrl.u32 %v1111_v20, 7  ;;  %v1378_v55 = vand.u32 127, %v1111_v20 }
 0x143   : > { %1255 = vperm.xlu1 %3506, %v3848_v39   ;;  %5067 = vst [vmem:[#allocation10_spill] sm:$0xff] %v4049_v38  ;;  %v4098_v57 = vsub.s32 %v1378_v55, %v4093_v33  ;;  %vm1114_vm11 = vcmp.eq.s32.totalorder %v4093_v33, 1  ;;  %vm1116_vm12 = vcmp.eq.s32.totalorder %v4093_v33, 3  ;;  %vm1120_vm13 = vcmp.eq.s32.totalorder %v4093_v33, 7 }
 0x144   : > { %vm1113_vm14 = vcmp.eq.s32.totalorder %v4093_v33, 0  ;;  %vm1115_vm15 = vcmp.eq.s32.totalorder %v4093_v33, 2  ;;  %vm1117_vm3 = vcmp.eq.s32.totalorder %v4093_v33, 4 }
 0x145   : > { %1324 = vperm.xlu0 %3507, %v3852_v40  }
 0x147   : > { %1303 = vperm.xlu1 %3506, %v3857_v41   ;;  %v582_v41 = vpack.c.bf16 %v4045_v37, %v4045_v37 }
 0x149   : > { %1327 = vperm.xlu0 %3507, %v3861_v42   ;;  %v583_v42 = vpack.c.bf16 %v4049_v38, %v4049_v38 }
 0x14b   : > { %1354 = vperm.xlu1 %3506, %v3865_v44  }
 0x14d   : > { %1369 = vperm.xlu0 %3507, %v3869_v45   ;;  %v2783_v45 = vsel %vm345_vm0, %v582_v41, 0 }
 0x14e   : > { %3445 = vmatpush3.bf16.msra.mxu0 %v2783_v45 }
 0x14f   : > { %1351 = vperm.xlu1 %3506, %v3873_v46   ;;  %v2829_v46 = vsel %vm345_vm0, %v583_v42, 0  ;;  %3456 = vmatprep.subr.bf16.mxu0 %v5052_v21 }
 0x150   : > { %3451 = vmatpush3.bf16.msra.mxu1 %v2829_v46 }
 0x151   : > { %3462 = vmatprep.subr.bf16.mxu1 %v5052_v21 }
 0x153   : > { %1201 = vperm.xlu1 %3506, %v3877_v47  }
 0x156   : > { %v4017_v27 = vpop.permute.xlu1 %1240 }
 0x157   : > { %1249 = vperm.xlu1 %3506, %v3881_v48  }
 0x158   : > { %v4020_v36 = vpop.permute.xlu0 %1186 }
 0x15a   : > { %v4022_v43 = vpop.permute.xlu1 %1192 }
 0x15b   : > { %1306 = vperm.xlu1 %3506, %v3885_v51  }
 0x15c   : > { %v4025_v49 = vpop.permute.xlu0 %1258 }
 0x15d   : > { %v1478_v50 = vrot.slane %v4025_v49, %v4098_v57 }
 0x15e   : > { %v4027_v0 = vpop.permute.xlu1 %1234 }
 0x15f   : > { %1297 = vperm.xlu1 %3506, %v3892_v53  }
 0x160   : > { %v4030_v8 = vpop.permute.xlu0 %1264 }
 0x161   : > { %v1486_v42 = vrot.slane %v4030_v8, %v4098_v57 }
 0x162   : > { %v4032_v24 = vpop.permute.xlu1 %1195 }
 0x163   : > { %1345 = vperm.xlu1 %3506, %v3896_v54  }
 0x164   : > { %v4035_v25 = vpop.permute.xlu0 %1267 }
 0x166   : > { %v4037_v23 = vpop.permute.xlu1 %1243 }
 0x168   : > { %v1214_v29 = vpop.permute.xlu0 %1213 }
 0x169   : > { %v1418_v3 = vrot.slane %v1214_v29, %v4098_v57 }
 0x16a   : > { %v4039_v22 = vpop.permute.xlu1 %1189 }
 0x16c   : > { %v4041_v34 = vpop.permute.xlu0 %1219 }
 0x16d   : > { %v1426_v29 = vrot.slane %v4041_v34, %v4098_v57 }
 0x16e   : > { %v1211_v35 = vpop.permute.xlu1 %1210 }
 0x16f   : > { %v1414_v60 = vrot.slane %v1211_v35, %v4098_v57 }
 0x170   : > { %v4051_v39 = vpop.permute.xlu0 %1237 }
 0x171   : > { %v1649_v17 = vsel %vm1635_vm4, %v1418_v3, %v1414_v60 }
 0x172   : > { %v1217_v40 = vpop.permute.xlu1 %1216 }
 0x173   : > { %v1422_v63 = vrot.slane %v1217_v40, %v4098_v57 }
 0x174   : > { %v4057_v44 = vpop.permute.xlu0 %1276 }
 0x175   : > { %v1650_v31 = vsel %vm1637_vm5, %v1422_v63, %v1649_v17  ;;  %v1490_v63 = vrot.slane %v4035_v25, %v4098_v57  ;;  %v1502_v25 = vrot.slane %v4057_v44, %v4098_v57 }
 0x176   : > { %v1262_v47 = vpop.permute.xlu1 %1261  ;;  %v1651_v45 = vsel %vm1639_vm6, %v1426_v29, %v1650_v31 }
 0x177   : > { %v1482_v59 = vrot.slane %v1262_v47, %v4098_v57 }
 0x178   : > { %v4063_v48 = vpop.permute.xlu0 %1333 }
 0x179   : > { %v1663_v40 = vsel %vm1635_vm4, %v1482_v59, %v1478_v50 }
 0x17a   : > { %v4065_v51 = vpop.permute.xlu1 %1204  ;;  %v1664_v34 = vsel %vm1637_vm5, %v1486_v42, %v1663_v40 }
 0x17b   : > { %v1665_v31 = vsel %vm1639_vm6, %v1490_v63, %v1664_v34 }
 0x17c   : > { %v4067_v53 = vpop.permute.xlu0 %1270 }
 0x17d   : > { %v1494_v20 = vrot.slane %v4067_v53, %v4098_v57 }
 0x17e   : > { %v1229_v54 = vpop.permute.xlu1 %1228 }
 0x17f   : > { %v1438_v55 = vrot.slane %v1229_v54, %v4098_v57 }
 0x180   : > { %v4069_v5 = vpop.permute.xlu0 %1285 }
 0x182   : > { %v4071_v6 = vpop.permute.xlu1 %1252 }
 0x184   : > { %v4073_v7 = vpop.permute.xlu0 %1231 }
 0x185   : > { %v1442_v3 = vrot.slane %v4073_v7, %v4098_v57  ;;  %v1666_v7 = vsel %vm1641_vm7, %v1494_v20, %v1665_v31 }
 0x186   : > { %v4075_v9 = vpop.permute.xlu1 %1330 }
 0x188   : > { %v4077_v10 = vpop.permute.xlu0 %1279 }
 0x18a   : > { %v4079_v12 = vpop.permute.xlu1 %1336 }
 0x18c   : > { %v4081_v13 = vpop.permute.xlu0 %1357 }
 0x18e   : > { %v4083_v14 = vpop.permute.xlu1 %1339 }
 0x190   : > { %v4085_v15 = vpop.permute.xlu0 %1360 }
 0x192   : > { %v4087_v19 = vpop.permute.xlu1 %1348 }
 0x194   : > { %v4089_v28 = vpop.permute.xlu0 %1363 }
 0x196   : > { %v4091_v32 = vpop.permute.xlu1 %1198 }
 0x198   : > { %v4095_v56 = vpop.permute.xlu0 %1366 }
 0x19a   : > { %v1223_v11 = vpop.permute.xlu1 %1222 }
 0x19b   : > { %v1430_v62 = vrot.slane %v1223_v11, %v4098_v57 }
 0x19c   : > { %v4100_v30 = vpop.permute.xlu0 %1372 }
 0x19d   : > { %v1652_v8 = vsel %vm1641_vm7, %v1430_v62, %v1651_v45 }
 0x19e   : > { %v4104_v1 = vpop.permute.xlu1 %1246 }
 0x1a0   : > { %v4110_v26 = vpop.permute.xlu0 %1375 }
 0x1a2   : > { %v4117_v35 = vpop.permute.xlu1 %1282 }
 0x1a3   : > { %v4122_v41 = vpop.f32.mrf.mxu0 }
 0x1a4   : > { %v1226_v49 = vpop.permute.xlu0 %1225 }
 0x1a5   : > { %v1434_v46 = vrot.slane %v1226_v49, %v4098_v57  ;;  %v3412_v47 = vpop.f32.mrf.mxu0  ;;  %v4133_v11 = vpop.f32.mrf.mxu1 }
 0x1a6   : > { %v4135_v60 = vpop.permute.xlu1 %1288 }
 0x1a7   : > { %v1653_v59 = vsel %vm1643_vm8, %v1434_v46, %v1652_v8  ;;  %v726_v50 = vpop.f32.mrf.mxu0  ;;  %v3400_v54 = vpop.f32.mrf.mxu1  ;;  %v1506_v46 = vrot.slane %v4077_v10, %v4098_v57 }
 0x1a8   : > { %v1654_v53 = vsel %vm1645_vm9, %v1438_v55, %v1653_v59  ;;  %v1274_v17 = vpop.permute.xlu0 %1273 }
 0x1a9   : > { %v1498_v62 = vrot.slane %v1274_v17, %v4098_v57  ;;  %v3413_v29 = vpop.f32.mrf.mxu0  ;;  %v1655_v40 = vsel %vm1647_vm10, %v1442_v3, %v1654_v53  ;;  %v634_v42 = vpop.f32.mrf.mxu1 }
 0x1aa   : > { %v4150_v49 = vpop.permute.xlu1 %1291  ;;  %v4152_v45 = vsel %vm1114_vm11, -inf, %v1655_v40  ;;  %vm1118_vm11 = vcmp.eq.s32.totalorder %v4093_v33, 5 }
 0x1ab   : > { %v1667_v47 = vsel %vm1643_vm8, %v1498_v62, %v1666_v7  ;;  %v1721_v34 = vsel %vm332_vm1, %v4152_v45, -inf  ;;  %v3401_v44 = vpop.f32.mrf.mxu1 }
 0x1ac   : > { %v1668_v55 = vsel %vm1645_vm9, %v1502_v25, %v1667_v47  ;;  %v4161_v8 = vpop.permute.xlu0 %1309  ;;  %v1722_v20 = vrot.slane %v1721_v34, 4 }
 0x1ad   : > { %v1669_v63 = vsel %vm1647_vm10, %v1506_v46, %v1668_v55  ;;  %v4164_v3 = vpop.f32.mrf.mxu0 }
 0x1ae   : > { %v4166_v59 = vpop.f32.mrf.mxu1  ;;  %v4168_v10 = vpop.permute.xlu1 %1294  ;;  %v1723_v50 = vmax.f32 %v1721_v34, %v1722_v20  ;;  %v4170_v53 = vsel %vm1116_vm12, -inf, %v1669_v63  ;;  %vm1119_vm12 = vcmp.eq.s32.totalorder %v4093_v33, 6 }
 0x1af   : > { %v1735_v54 = vsel %vm332_vm1, %v4170_v53, -inf  ;;  %v3424_v17 = vpop.f32.mrf.mxu0 }
 0x1b0   : > { %v3406_v31 = vpop.f32.mrf.mxu1  ;;  %v4174_v62 = vpop.permute.xlu0 %1312  ;;  %v1724_v29 = vrot.slane %v1723_v50, 2  ;;  %v1736_v40 = vrot.slane %v1735_v54, 4 }
 0x1b1   : > { %v818_v25 = vpop.f32.mrf.mxu0 }
 0x1b2   : > { %v680_v7 = vpop.f32.mrf.mxu1  ;;  %v4176_v42 = vpop.permute.xlu1 %1300  ;;  %v1725_v46 = vmax.f32 %v1723_v50, %v1724_v29  ;;  %v1737_v47 = vmax.f32 %v1735_v54, %v1736_v40 }
 0x1b3   : > { %v3425_v55 = vpop.f32.mrf.mxu0 }
 0x1b4   : > { %v3407_v44 = vpop.f32.mrf.mxu1  ;;  %v4178_v34 = vpop.permute.xlu0 %1315  ;;  %v1726_v20 = vrot.slane %v1725_v46, 1  ;;  %v1738_v63 = vrot.slane %v1737_v47, 2 }
 0x1b5   : > { %v4180_v21 = vpop.f32.mrf.mxu0 }
 0x1b6   : > { %v4182_v17 = vpop.f32.mrf.mxu1  ;;  %v4184_v31 = vpop.permute.xlu1 %1342  ;;  %v1727_v37 = vmax.f32 %v1725_v46, %v1726_v20  ;;  %v1739_v38 = vmax.f32 %v1737_v47, %v1738_v63  ;;  %v1450_v47 = vrot.slane %v4051_v39, %v4098_v57 }
 0x1b7   : > { %v3436_v25 = vpop.f32.mrf.mxu0 }
 0x1b8   : > { %v3418_v7 = vpop.f32.mrf.mxu1  ;;  %1782 = vbcast.lane.b32.xlu0 %v1727_v37, 256  ;;  %v4186_v58 = vpop.permute.xlu0 %1318  ;;  %v1740_v50 = vrot.slane %v1739_v38, 1  ;;  %v1386_v37 = vrot.slane %v4039_v22, %v4098_v57  ;;  %v1390_v22 = vrot.slane %v4022_v43, %v4098_v57  ;;  %v1610_v43 = vrot.slane %v4081_v13, %v4098_v57 }
 0x1b9   : > { %v910_v54 = vpop.f32.mrf.mxu0  ;;  %v1574_v13 = vrot.slane %v4075_v9, %v4098_v57 }
 0x1ba   : > { %v772_v29 = vpop.f32.mrf.mxu1  ;;  %v4188_v40 = vpop.permute.xlu1 %1207  ;;  %v1741_v55 = vmax.f32 %v1739_v38, %v1740_v50  ;;  %v1382_v38 = vrot.slane %v4020_v36, %v4098_v57 }
 0x1bb   : > { %v3437_v44 = vpop.f32.mrf.mxu0 }
 0x1bc   : > { %v3419_v61 = vpop.f32.mrf.mxu1  ;;  %1788 = vbcast.lane.b32.xlu0 %v1741_v55, 256  ;;  %v4190_v2 = vpop.permute.xlu0 %1321  ;;  %v1636_v50 = vsel %vm1635_vm4, %v1386_v37, %v1382_v38  ;;  %v1454_v55 = vrot.slane %v4017_v27, %v4098_v57  ;;  %v1458_v38 = vrot.slane %v4037_v23, %v4098_v57  ;;  %v1614_v27 = vrot.slane %v4085_v15, %v4098_v57 }
 0x1bd   : > { %v1446_v61 = vrot.slane %v4027_v0, %v4098_v57  ;;  %v1638_v36 = vsel %vm1637_vm5, %v1390_v22, %v1636_v50  ;;  %v1622_v23 = vrot.slane %v4095_v56, %v4098_v57  ;;  %v1406_v56 = vrot.slane %v4065_v51, %v4098_v57 }
 0x1be   : > { %v4192_v18 = vpop.f32.mrf.mxu1  ;;  %v4194_v46 = vpop.permute.xlu1 %1255 }
 0x1bf   : > { %v1656_v54 = vsel %vm1635_vm4, %v1450_v47, %v1446_v61 }
 0x1c0   : > { %v3430_v20 = vpop.f32.mrf.mxu1  ;;  %v4200_v63 = vpop.permute.xlu0 %1324  ;;  %v1657_v37 = vsel %vm1637_vm5, %v1454_v55, %v1656_v54 }
 0x1c1   : > { %v1394_v20 = vrot.slane %v4032_v24, %v4098_v57  ;;  %v1618_v24 = vrot.slane %v4089_v28, %v4098_v57  ;;  %v1658_v15 = vsel %vm1639_vm6, %v1458_v38, %v1657_v37  ;;  %v1578_v28 = vrot.slane %v4063_v48, %v4098_v57 }
 0x1c2   : > { %v864_v25 = vpop.f32.mrf.mxu1  ;;  %v4206_v7 = vpop.permute.xlu1 %1303  ;;  %v1630_v37 = vrot.slane %v4100_v30, %v4098_v57  ;;  %v1514_v48 = vrot.slane %v4069_v5, %v4098_v57  ;;  %v1634_v38 = vrot.slane %v4110_v26, %v4098_v57  ;;  %v1518_v26 = vrot.slane %v4135_v60, %v4098_v57 }
 0x1c3   : > { %v1640_v50 = vsel %vm1639_vm6, %v1394_v20, %v1638_v36  ;;  %v1582_v36 = vrot.slane %v4079_v12, %v4098_v57  ;;  %v1398_v20 = vrot.slane %v4091_v32, %v4098_v57  ;;  %v1586_v12 = vrot.slane %v4083_v14, %v4098_v57 }
 0x1c4   : > { %v3431_v39 = vpop.f32.mrf.mxu1  ;;  %v4212_v29 = vpop.permute.xlu0 %1327  ;;  %v1470_v32 = vrot.slane %v4071_v6, %v4098_v57  ;;  %v1684_v30 = vsel %vm1635_vm4, %v1578_v28, %v1574_v13  ;;  %v1462_v6 = vrot.slane %v4104_v1, %v4098_v57  ;;  %v1410_v60 = vrot.slane %v4188_v40, %v4098_v57 }
 0x1c5   : > { %v1685_v14 = vsel %vm1637_vm5, %v1582_v36, %v1684_v30 }
 0x1c6   : > { %v4217_v44 = vpop.f32.mrf.mxu1  ;;  %v1355_v0 = vpop.permute.xlu1 %1354 }
 0x1c7   : > { %v1606_v47 = vrot.slane %v1355_v0, %v4098_v57 }
 0x1c8   : > { %v3442_v61 = vpop.f32.mrf.mxu1  ;;  %v1370_v25 = vpop.permute.xlu0 %1369 }
 0x1c9   : > { %v1691_v22 = vsel %vm1635_vm4, %v1610_v43, %v1606_v47  ;;  %v1626_v9 = vrot.slane %v1370_v25, %v4098_v57 }
 0x1ca   : > { %v1692_v54 = vsel %vm1637_vm5, %v1614_v27, %v1691_v22  ;;  %v956_v39 = vpop.f32.mrf.mxu1  ;;  %v4241_v55 = vpop.permute.xlu1 %1351  ;;  %v1510_v27 = vrot.slane %v4117_v35, %v4098_v57  ;;  %v1642_v22 = vsel %vm1641_vm7, %v1398_v20, %v1640_v50  ;;  %v1522_v35 = vrot.slane %v4150_v49, %v4098_v57 }
 0x1cb   : > { %v1693_v0 = vsel %vm1639_vm6, %v1618_v24, %v1692_v54  ;;  %v1526_v49 = vrot.slane %v4168_v10, %v4098_v57 }
 0x1cc   : > { %v1694_v43 = vsel %vm1641_vm7, %v1622_v23, %v1693_v0  ;;  %v3443_v47 = vpop.f32.mrf.mxu1  ;;  %v4285_v23 = vsel %vm1639_vm6, %v1586_v12, %v1685_v14  ;;  %v1670_v1 = vsel %vm1635_vm4, %v1514_v48, %v1510_v27  ;;  %v1598_v0 = vrot.slane %v4087_v19, %v4098_v57 }
 0x1cd   : > { %v1695_v51 = vsel %vm1643_vm8, %v1626_v9, %v1694_v43  ;;  %v1671_v9 = vsel %vm1637_vm5, %v1518_v26, %v1670_v1  ;;  %v1474_v48 = vrot.slane %v4194_v46, %v4098_v57  ;;  %v1534_v46 = vrot.slane %v4176_v42, %v4098_v57 }
 0x1ce   : > { %v1696_v5 = vsel %vm1645_vm9, %v1630_v37, %v1695_v51  ;;  %v1202_v61 = vpop.permute.xlu1 %1201  ;;  %v1659_v37 = vsel %vm1641_vm7, %v1462_v6, %v1658_v15  ;;  %v1672_v43 = vsel %vm1639_vm6, %v1522_v35, %v1671_v9  ;;  %v1554_v26 = vrot.slane %v4178_v34, %v4098_v57 }
 0x1cf   : > { %v1402_v25 = vrot.slane %v1202_v61, %v4098_v57  ;;  %v1697_v24 = vsel %vm1647_vm10, %v1634_v38, %v1696_v5  ;;  %v1673_v15 = vsel %vm1641_vm7, %v1526_v49, %v1672_v43  ;;  %v1562_v1 = vrot.slane %v4190_v2, %v4098_v57 }
 0x1d0   : > { %v4282_v13 = vsel %vm1120_vm13, -inf, %v1697_v24 }
 0x1d1   : > { %v1644_v54 = vsel %vm1643_vm8, %v1402_v25, %v1642_v22  ;;  %v1763_v50 = vsel %vm332_vm1, %v4282_v13, -inf  ;;  %v1590_v22 = vrot.slane %v4184_v31, %v4098_v57  ;;  %v1566_v31 = vrot.slane %v4200_v63, %v4098_v57 }
 0x1d2   : > { %v1646_v39 = vsel %vm1645_vm9, %v1406_v56, %v1644_v54  ;;  %v1250_v28 = vpop.permute.xlu1 %1249  ;;  %v1764_v36 = vrot.slane %v1763_v50, 4  ;;  %v1546_v56 = vrot.slane %v4161_v8, %v4098_v57  ;;  %v1550_v8 = vrot.slane %v4174_v62, %v4098_v57 }
 0x1d3   : > { %v1466_v40 = vrot.slane %v1250_v28, %v4098_v57  ;;  %v1648_v20 = vsel %vm1647_vm10, %v1410_v60, %v1646_v39  ;;  %v1558_v62 = vrot.slane %v4186_v58, %v4098_v57 }
 0x1d4   : > { %v1765_v47 = vmax.f32 %v1763_v50, %v1764_v36  ;;  %v4305_v10 = vsel %vm1113_vm14, -inf, %v1648_v20  ;;  %v1570_v20 = vrot.slane %v4212_v29, %v4098_v57 }
 0x1d5   : > { %v1660_v12 = vsel %vm1643_vm8, %v1466_v40, %v1659_v37  ;;  %v1714_v38 = vsel %vm332_vm1, %v4305_v10, -inf  ;;  %v1538_v40 = vrot.slane %v4206_v7, %v4098_v57 }
 0x1d6   : > { %v1661_v51 = vsel %vm1645_vm9, %v1470_v32, %v1660_v12  ;;  %v1307_v30 = vpop.permute.xlu1 %1306  ;;  %v1766_v27 = vrot.slane %v1765_v47, 2  ;;  %v1715_v5 = vrot.slane %v1714_v38, 4  ;;  %v1687_v12 = vsel %vm1641_vm7, %v1590_v22, %v4285_v23 }
 0x1d7   : > { %v1542_v61 = vrot.slane %v1307_v30, %v4098_v57  ;;  %v1662_v14 = vsel %vm1647_vm10, %v1474_v48, %v1661_v51 }
 0x1d8   : > { %v1767_v25 = vmax.f32 %v1765_v47, %v1766_v27  ;;  %v1716_v24 = vmax.f32 %v1714_v38, %v1715_v5  ;;  %v4328_v32 = vsel %vm1115_vm15, -inf, %v1662_v14  ;;  %v1602_v5 = vrot.slane %v4241_v55, %v4098_v57 }
 0x1d9   : > { %v1677_v42 = vsel %vm1635_vm4, %v1546_v56, %v1542_v61  ;;  %v1728_v6 = vsel %vm332_vm1, %v4328_v32, -inf }
 0x1da   : > { %v1678_v34 = vsel %vm1637_vm5, %v1550_v8, %v1677_v42  ;;  %v1298_v35 = vpop.permute.xlu1 %1297  ;;  %v1768_v60 = vrot.slane %v1767_v25, 1  ;;  %v1717_v54 = vrot.slane %v1716_v24, 2  ;;  %v1729_v50 = vrot.slane %v1728_v6, 4 }
 0x1db   : > { %v1679_v58 = vsel %vm1639_vm6, %v1554_v26, %v1678_v34  ;;  %v1530_v49 = vrot.slane %v1298_v35, %v4098_v57 }
 0x1dc   : > { %v1680_v39 = vsel %vm1641_vm7, %v1558_v62, %v1679_v58  ;;  %v1769_v28 = vmax.f32 %v1767_v25, %v1768_v60  ;;  %v1718_v36 = vmax.f32 %v1716_v24, %v1717_v54  ;;  %v1730_v9 = vmax.f32 %v1728_v6, %v1729_v50 }
 0x1dd   : > { %v1674_v2 = vsel %vm1643_vm8, %v1530_v49, %v1673_v15  ;;  %v1681_v37 = vsel %vm1643_vm8, %v1562_v1, %v1680_v39 }
 0x1de   : > { %v1675_v63 = vsel %vm1645_vm9, %v1534_v46, %v1674_v2  ;;  %v1346_v43 = vpop.permute.xlu1 %1345  ;;  %1800 = vbcast.lane.b32.xlu0 %v1769_v28, 256  ;;  %v1719_v47 = vrot.slane %v1718_v36, 1  ;;  %v1731_v56 = vrot.slane %v1730_v9, 2  ;;  %v1682_v48 = vsel %vm1645_vm9, %v1566_v31, %v1681_v37 }
 0x1df   : > { %v1594_v7 = vrot.slane %v1346_v43, %v4098_v57  ;;  %v1676_v38 = vsel %vm1647_vm10, %v1538_v40, %v1675_v63  ;;  %v1683_v29 = vsel %vm1647_vm10, %v1570_v20, %v1682_v48  ;;  %v962_v40 = vsel %vm332_vm1, %v4166_v59, -inf }
 0x1e0   : > { %v1720_v15 = vmax.f32 %v1718_v36, %v1719_v47  ;;  %v1732_v51 = vmax.f32 %v1730_v9, %v1731_v56  ;;  %v4361_v30 = vsel %vm1117_vm3, -inf, %v1676_v38  ;;  %v4365_v27 = vsel %vm1118_vm11, -inf, %v1683_v29 }
 0x1e1   : > { %v1688_v23 = vsel %vm1643_vm8, %v1594_v7, %v1687_v12  ;;  %v1742_v8 = vsel %vm332_vm1, %v4361_v30, -inf  ;;  %v1749_v46 = vsel %vm332_vm1, %v4365_v27, -inf  ;;  %v959_v9 = vsel %vm332_vm1, %v4133_v11, -inf }
 0x1e2   : > { %v1689_v61 = vsel %vm1645_vm9, %v1598_v0, %v1688_v23  ;;  %1779 = vbcast.lane.b32.xlu1 %v1720_v15, 256  ;;  %v1733_v14 = vrot.slane %v1732_v51, 1  ;;  %v1743_v26 = vrot.slane %v1742_v8, 4  ;;  %v1750_v25 = vrot.slane %v1749_v46, 4 }
 0x1e3   : > { %v1690_v24 = vsel %vm1647_vm10, %v1602_v5, %v1689_v61  ;;  %v971_v20 = vsel %vm332_vm1, %v4164_v3, -inf  ;;  %v965_v2 = vsel %vm332_vm1, %v4122_v41, -inf  ;;  %v977_v37 = vsel %vm332_vm1, %v4180_v21, -inf }
 0x1e4   : > { %v1734_v55 = vmax.f32 %v1732_v51, %v1733_v14  ;;  %v1744_v22 = vmax.f32 %v1742_v8, %v1743_v26  ;;  %v1751_v62 = vmax.f32 %v1749_v46, %v1750_v25  ;;  %v4381_v42 = vsel %vm1119_vm12, -inf, %v1690_v24 }
 0x1e5   : > { %v1756_v6 = vsel %vm332_vm1, %v4381_v42, -inf  ;;  %v968_v63 = vsel %vm332_vm1, %v4182_v17, -inf  ;;  %v974_v43 = vsel %vm332_vm1, %v4192_v18, -inf  ;;  %v980_v47 = vsel %vm332_vm1, %v4217_v44, -inf }
 0x1e6   : > { %1785 = vbcast.lane.b32.xlu1 %v1734_v55, 256  ;;  %v1745_v19 = vrot.slane %v1744_v22, 2  ;;  %v1752_v34 = vrot.slane %v1751_v62, 2  ;;  %v1757_v0 = vrot.slane %v1756_v6, 4 }
 0x1e8   : > { %v1746_v35 = vmax.f32 %v1744_v22, %v1745_v19  ;;  %v1753_v60 = vmax.f32 %v1751_v62, %v1752_v34  ;;  %v1758_v54 = vmax.f32 %v1756_v6, %v1757_v0 }
 0x1ea   : > { %v1747_v50 = vrot.slane %v1746_v35, 1  ;;  %v1754_v1 = vrot.slane %v1753_v60, 1  ;;  %v1759_v31 = vrot.slane %v1758_v54, 2 }
 0x1ec   : > { %v1748_v58 = vmax.f32 %v1746_v35, %v1747_v50  ;;  %v1755_v49 = vmax.f32 %v1753_v60, %v1754_v1  ;;  %v1760_v39 = vmax.f32 %v1758_v54, %v1759_v31 }
 0x1ee   : > { %1791 = vbcast.lane.b32.xlu1 %v1748_v58, 256  ;;  %1794 = vbcast.lane.b32.xlu0 %v1755_v49, 256  ;;  %v1761_v28 = vrot.slane %v1760_v39, 1 }
 0x1f0   : > { %v1762_v36 = vmax.f32 %v1760_v39, %v1761_v28 }
 0x1f2   : > { %1797 = vbcast.lane.b32.xlu1 %v1762_v36, 256 }
 0x20d   : > { %960 = vmax.xlane.f32.xlu0 %v959_v9 }
 0x211   : > { %963 = vmax.xlane.f32.xlu0 %v962_v40 }
 0x215   : > { %972 = vmax.xlane.f32.xlu0 %v971_v20 }
 0x216   : > { %966 = vmax.xlane.f32.xlu1 %v965_v2 }
 0x219   : > { %978 = vmax.xlane.f32.xlu0 %v977_v37 }
 0x21a   : > { %969 = vmax.xlane.f32.xlu1 %v968_v63 }
 0x21e   : > { %975 = vmax.xlane.f32.xlu1 %v974_v43 }
 0x222   : > { %981 = vmax.xlane.f32.xlu1 %v980_v47 }
 0x22a   : > { %v1783_v56 = vpop.permute.xlu0 %1782 }
 0x22e   : > { %v1789_v48 = vpop.permute.xlu0 %1788 }
 0x250   : > { %v1801_v7 = vpop.permute.xlu0 %1800 }
 0x254   : > { %v1780_v12 = vpop.permute.xlu1 %1779 }
 0x258   : > { %v1786_v38 = vpop.permute.xlu1 %1785 }
 0x260   : > { %v1795_v29 = vpop.permute.xlu0 %1794  ;;  %v1792_v15 = vpop.permute.xlu1 %1791 }
 0x264   : > { %v1798_v23 = vpop.permute.xlu1 %1797 }
 0x296   : > { %v961_v51 = vpop.xlane.xlu0 %960 }
 0x297   : > { %v1810_v25 = vmax.f32 %v961_v51, %v1780_v12  ;;  %v4428_v51 = vsub.s32 1, %v4093_v33 }
 0x29a   : > { %v964_v5 = vpop.xlane.xlu0 %963 }
 0x29b   : > { %v1811_v8 = vmax.f32 %v964_v5, %v1783_v56 }
 0x29d   : > { %1825 = vperm.xlu0 %3507, %v1811_v8  }
 0x29e   : > { %v973_v14 = vpop.xlane.xlu0 %972 }
 0x29f   : > { %v967_v46 = vpop.xlane.xlu1 %966  ;;  %v1814_v22 = vmax.f32 %v973_v14, %v1792_v15 }
 0x2a0   : > { %v1812_v61 = vmax.f32 %v967_v46, %v1786_v38  ;;  %v585_v38 = vpack.c.bf16 %v3965_v52, %v3965_v52 }
 0x2a2   : > { %1830 = vperm.xlu1 %3506, %v1812_v61   ;;  %v979_v6 = vpop.xlane.xlu0 %978  ;;  %v2921_v61 = vsel %vm345_vm0, %v585_v38, 0 }
 0x2a3   : > { %v970_v26 = vpop.xlane.xlu1 %969  ;;  %v1816_v34 = vmax.f32 %v979_v6, %v1798_v23  ;;  %v4434_v23 = vsub.s32 3, %v4093_v33 }
 0x2a4   : > { %v1813_v24 = vmax.f32 %v970_v26, %v1789_v48 }
 0x2a6   : > { %1835 = vperm.xlu0 %3507, %v1813_v24   ;;  %1820 = vperm.xlu1 %3506, %v1810_v25  }
 0x2a7   : > { %v976_v55 = vpop.xlane.xlu1 %975 }
 0x2a8   : > { %v1815_v62 = vmax.f32 %v976_v55, %v1795_v29 }
 0x2aa   : > { %1845 = vperm.xlu0 %3507, %v1815_v62   ;;  %1840 = vperm.xlu1 %3506, %v1814_v22  }
 0x2ab   : > { %v982_v19 = vpop.xlane.xlu1 %981 }
 0x2ac   : > { %v1817_v0 = vmax.f32 %v982_v19, %v1801_v7 }
 0x2ae   : > { %1850 = vperm.xlu1 %3506, %v1816_v34   ;;  %1855 = vperm.xlu0 %3507, %v1817_v0  }
 0x318   : > { %v1826_v35 = vpop.permute.xlu0 %1825 }
 0x319   : > { %v1859_v60 = vsub.f32 %v4166_v59, %v1826_v35  ;;  %v1889_v54 = vrot.slane %v1826_v35, %v4098_v57 }
 0x31b   : > { %v1868_v50 = vmul.f32 1.442695, %v1859_v60  ;;  %v1971_v1 = vsub.f32 %v4152_v45, %v1889_v54  ;;  %v5069_v60 = vld [vmem:[#allocation5_spill] sm:$0xff] }
 0x31c   : > { %v584_v54 = vpack.c.bf16 %v5069_v60, %v5069_v60 }
 0x31d   : > { %3508 = vpow2.f32 %v1868_v50  ;;  %v1980_v31 = vmul.f32 1.442695, %v1971_v1  ;;  %v1831_v58 = vpop.permute.xlu1 %1830 }
 0x31e   : > { %v1860_v49 = vsub.f32 %v4122_v41, %v1831_v58  ;;  %v1893_v41 = vrot.slane %v1831_v58, %v4098_v57  ;;  %v4474_v58 = vsub.s32 0, %v4093_v33 }
 0x31f   : > { %3510 = vpow2.f32 %v1980_v31 }
 0x320   : > { %v1870_v39 = vmul.f32 1.442695, %v1860_v49  ;;  %v1972_v7 = vsub.f32 %v4328_v32, %v1893_v41 }
 0x321   : > { %v1836_v28 = vpop.permute.xlu0 %1835  ;;  %v4405_v36 = vpop.permute.xlu1 %1820 }
 0x322   : > { %3512 = vpow2.f32 %v1870_v39  ;;  %v1861_v9 = vsub.f32 %v4182_v17, %v1836_v28  ;;  %v1897_v59 = vrot.slane %v1836_v28, %v4098_v57  ;;  %v1858_v40 = vsub.f32 %v4133_v11, %v4405_v36 }
 0x323   : > { %v1982_v46 = vmul.f32 1.442695, %v1972_v7  ;;  %v4482_v28 = vsub.s32 4, %v4093_v33  ;;  %v1885_v41 = vrot.slane %v4405_v36, %v4098_v57 }
 0x324   : > { %v1872_v20 = vmul.f32 1.442695, %v1861_v9  ;;  %v1973_v45 = vsub.f32 %v4170_v53, %v1897_v59  ;;  %v1866_v2 = vmul.f32 1.442695, %v1858_v40 }
 0x325   : > { %v1846_v37 = vpop.permute.xlu0 %1845  ;;  %v1841_v63 = vpop.permute.xlu1 %1840  ;;  %v1970_v7 = vsub.f32 %v4305_v10, %v1885_v41 }
 0x326   : > { %3514 = vpow2.f32 %v1872_v20  ;;  %v1984_v43 = vmul.f32 1.442695, %v1973_v45  ;;  %v1863_v47 = vsub.f32 %v4192_v18, %v1846_v37  ;;  %v1901_v17 = vrot.slane %v1841_v63, %v4098_v57 }
 0x327   : > { %3516 = vpow2.f32 %v1866_v2  ;;  %v1905_v48 = vrot.slane %v1846_v37, %v4098_v57  ;;  %v4424_v18 = vadd.f32 %v3951_v16, %v4108_v4  ;;  %v1862_v29 = vsub.f32 %v4164_v3, %v1841_v63 }
 0x328   : > { %3518 = vpow2.f32 %v1984_v43  ;;  %v1876_v56 = vmul.f32 1.442695, %v1863_v47  ;;  %v1974_v11 = vsub.f32 %v4361_v30, %v1901_v17  ;;  %v4440_v4 = vsub.s32 5, %v4093_v33 }
 0x329   : > { %v1856_v12 = vpop.permute.xlu0 %1855  ;;  %v1851_v5 = vpop.permute.xlu1 %1850  ;;  %v1975_v16 = vsub.f32 %v4365_v27, %v1905_v48  ;;  %v4443_v3 = vsub.s32 7, %v4093_v33  ;;  %v1874_v26 = vmul.f32 1.442695, %v1862_v29  ;;  %v5068_v27 = vmov 0.0   ;;  %v5071_v48 = vld [vmem:[#allocation7_spill] sm:$0xff] }
 0x32a   : > { %v4417_v53 = vpop.eup %3508  ;;  %v1986_v15 = vmul.f32 1.442695, %v1974_v11  ;;  %3520 = vpow2.f32 %v1876_v56  ;;  %v1865_v30 = vsub.f32 %v4217_v44, %v1856_v12  ;;  %v1913_v44 = vrot.slane %v1856_v12, %v4098_v57 }
 0x32b   : > { %v2123_v32 = vpack.c.bf16 %v4417_v53, %v4417_v53  ;;  %v1909_v25 = vrot.slane %v1851_v5, %v4098_v57  ;;  %v587_v24 = vpack.c.bf16 %v4424_v18, %v4424_v18  ;;  %v1988_v6 = vmul.f32 1.442695, %v1975_v16  ;;  %v5070_v57 = vld [vmem:[#allocation8_spill] sm:$0xff] }
 0x32c   : > { %v4436_v8 = vpop.eup %3510  ;;  %3522 = vpow2.f32 %v1986_v15  ;;  %v1880_v55 = vmul.f32 1.442695, %v1865_v30  ;;  %v1977_v35 = vsub.f32 %v4282_v13, %v1913_v44  ;;  %v4479_v13 = vsub.s32 2, %v4093_v33 }
 0x32d   : > { %3453 = vmatmul.mubr.msk.bf16.vlgmr.msra.gmra.mxu1 %vm332_vm1, %v2123_v32  ;;  %v2196_v62 = vrot.slane %v4436_v8, %v4428_v51  ;;  %v2210_v19 = vrot.slane %v4436_v8, %v4434_v23  ;;  %v2224_v34 = vrot.slane %v4436_v8, %v4440_v4  ;;  %v2238_v0 = vrot.slane %v4436_v8, %v4443_v3 }
 0x32e   : > { %3463 = vmatpush3.bf16.msra.mxu1 %v2921_v61  ;;  %3464 = vmatprep.mubr.msk.bf16.mxu1 %vm3574_vm2, %v5068_v27  ;;  %3524 = vpow2.f32 %v1982_v46  ;;  %v1976_v1 = vsub.f32 %v4381_v42, %v1909_v25  ;;  %v3013_v31 = vsel %vm345_vm0, %v587_v24, 0  ;;  %v1864_v42 = vsub.f32 %v4180_v21, %v1851_v5  ;;  %v5072_v25 = vld [vmem:[#allocation6_spill] sm:$0xff] }
 0x32f   : > { %v4448_v14 = vpop.eup %3512  ;;  %3474 = vmatprep.subr.bf16.mxu1 %v5068_v27  ;;  %3526 = vpow2.f32 %v1874_v26  ;;  %v1992_v20 = vmul.f32 1.442695, %v1977_v35  ;;  %v2875_v21 = vsel %vm345_vm0, %v584_v54, 0  ;;  %v4502_v43 = vsub.s32 6, %v4093_v33 }
 0x330   : > { %v2000_v22 = vsel %vm332_vm1, %v4448_v14, 0.0  ;;  %3528 = vpow2.f32 %v1880_v55  ;;  %v1990_v63 = vmul.f32 1.442695, %v1976_v1  ;;  %v1878_v17 = vmul.f32 1.442695, %v1864_v42 }
 0x331   : > { %2001 = vadd.xlane.f32.xlu0 %v2000_v22  ;;  %3530 = vpow2.f32 %v1988_v6  ;;  %v589_v36 = vpack.c.bf16 %v5070_v57, %v5070_v57  ;;  %v586_v11 = vpack.c.bf16 %v5071_v48, %v5071_v48  ;;  %v2124_v29 = vpack.c.bf16 %v4448_v14, %v4448_v14 }
 0x332   : > { %3532 = vpow2.f32 %v1992_v20  ;;  %v1978_v44 = vmul.f32 1.442695, %v1970_v7  ;;  %v588_v24 = vpack.c.bf16 %v5072_v25, %v5072_v25 }
 0x333   : > { %v4469_v50 = vpop.eup %3514  ;;  %3534 = vpow2.f32 %v1990_v63  ;;  %v3105_v15 = vsel %vm345_vm0, %v589_v36, 0  ;;  %v2967_v10 = vsel %vm345_vm0, %v586_v11, 0 }
 0x334   : > { %v3517_v49 = vpop.eup %3516  ;;  %v2125_v39 = vpack.c.bf16 %v4469_v50, %v4469_v50  ;;  %3536 = vpow2.f32 %v1878_v17 }
 0x335   : > { %v4484_v9 = vpop.eup %3518  ;;  %v1994_v59 = vsel %vm332_vm1, %v3517_v49, 0.0  ;;  %v2122_v40 = vpack.c.bf16 %v3517_v49, %v3517_v49  ;;  %3538 = vpow2.f32 %v1978_v44 }
 0x336   : > { %1995 = vadd.xlane.f32.xlu1 %v1994_v59  ;;  %3465 = vmatmul.mubr.msk.bf16.vlgmr.msra.gmra.mxu1 %vm332_vm1, %v2125_v39  ;;  %v2301_v45 = vrot.slane %v4484_v9, %v4474_v58  ;;  %v2315_v2 = vrot.slane %v4484_v9, %v4479_v13  ;;  %v2329_v37 = vrot.slane %v4484_v9, %v4482_v28  ;;  %v3059_v39 = vsel %vm345_vm0, %v588_v24, 0 }
 0x337   : > { %3447 = vmatmul.mubr.msk.bf16.vlgmr.msra.gmra.mxu0 %vm332_vm1, %v2122_v40  ;;  %3475 = vmatpush3.bf16.msra.mxu1 %v3013_v31  ;;  %v4504_v47 = vpop.eup %3520  ;;  %v2343_v33 = vrot.slane %v4484_v9, %v4502_v43  ;;  %v2308_v30 = vrot.slane %v4484_v9, %v4428_v51  ;;  %v2322_v5 = vrot.slane %v4484_v9, %v4434_v23 }
 0x338   : > { %3457 = vmatpush3.bf16.msra.mxu0 %v2875_v21  ;;  %3458 = vmatprep.mubr.msk.bf16.mxu0 %vm3574_vm2, %v5068_v27  ;;  %v2127_v38 = vpack.c.bf16 %v4504_v47, %v4504_v47  ;;  %v2336_v16 = vrot.slane %v4484_v9, %v4440_v4  ;;  %v2350_v61 = vrot.slane %v4484_v9, %v4443_v3 }
 0x339   : > { %3468 = vmatprep.subr.bf16.mxu0 %v5068_v27  ;;  %3476 = vmatprep.mubr.msk.bf16.mxu1 %vm3574_vm2, %v5068_v27  ;;  %v4509_v56 = vpop.eup %3522 }
 0x33a   : > { %3486 = vmatprep.subr.bf16.mxu1 %v5068_v27  ;;  %v2364_v12 = vrot.slane %v4509_v56, %v4428_v51  ;;  %v2378_v22 = vrot.slane %v4509_v56, %v4434_v23  ;;  %v2392_v54 = vrot.slane %v4509_v56, %v4440_v4  ;;  %v2385_v7 = vrot.slane %v4509_v56, %v4482_v28 }
 0x33b   : > { %v4531_v32 = vpop.eup %3524 }
 0x33c   : > { %v4537_v46 = vpop.eup %3526  ;;  %v2245_v6 = vrot.slane %v4531_v32, %v4474_v58  ;;  %v2252_v31 = vrot.slane %v4531_v32, %v4428_v51  ;;  %v2259_v40 = vrot.slane %v4531_v32, %v4479_v13  ;;  %v2266_v21 = vrot.slane %v4531_v32, %v4434_v23 }
 0x33d   : > { %v4543_v14 = vpop.eup %3528  ;;  %v2126_v35 = vpack.c.bf16 %v4537_v46, %v4537_v46  ;;  %v2273_v11 = vrot.slane %v4531_v32, %v4482_v28  ;;  %v2280_v24 = vrot.slane %v4531_v32, %v4440_v4 }
 0x33e   : > { %3477 = vmatmul.mubr.msk.bf16.vlgmr.msra.gmra.mxu1 %vm332_vm1, %v2127_v38  ;;  %v4548_v26 = vpop.eup %3530  ;;  %v2129_v55 = vpack.c.bf16 %v4543_v14, %v4543_v14 }
 0x33f   : > { %3459 = vmatmul.mubr.msk.bf16.vlgmr.msra.gmra.mxu0 %vm332_vm1, %v2124_v29  ;;  %3487 = vmatpush3.bf16.msra.mxu1 %v3105_v15  ;;  %v2413_v1 = vrot.slane %v4548_v26, %v4474_v58  ;;  %v4567_v49 = vpop.eup %3532  ;;  %v2427_v42 = vrot.slane %v4548_v26, %v4479_v13  ;;  %v2441_v20 = vrot.slane %v4548_v26, %v4482_v28 }
 0x340   : > { %3469 = vmatpush3.bf16.msra.mxu0 %v2967_v10  ;;  %3470 = vmatprep.mubr.msk.bf16.mxu0 %vm3574_vm2, %v5068_v27  ;;  %v4573_v59 = vpop.eup %3534  ;;  %v2553_v41 = vrot.slane %v4567_v49, %v4482_v28  ;;  %v2455_v36 = vrot.slane %v4548_v26, %v4502_v43  ;;  %v2462_v38 = vrot.slane %v4548_v26, %v4443_v3 }
 0x341   : > { %3480 = vmatprep.subr.bf16.mxu0 %v5068_v27  ;;  %3488 = vmatprep.mubr.msk.bf16.mxu1 %vm3574_vm2, %v5068_v27  ;;  %v4581_v63 = vpop.eup %3536  ;;  %v2504_v17 = vrot.slane %v4573_v59, %v4440_v4  ;;  %v2399_v15 = vrot.slane %v4509_v56, %v4502_v43  ;;  %v2574_v10 = vrot.slane %v4567_v49, %v4443_v3 }
 0x342   : > { %v2128_v29 = vpack.c.bf16 %v4581_v63, %v4581_v63 }
 0x346   : > { %3489 = vmatmul.mubr.msk.bf16.vlgmr.msra.gmra.mxu1 %vm332_vm1, %v2129_v55  ;;  %v2357_v55 = vrot.slane %v4509_v56, %v4474_v58 }
 0x347   : > { %2247 = vbcast.lane.b32.xlu1 %v2245_v6, 256  ;;  %3471 = vmatmul.mubr.msk.bf16.vlgmr.msra.gmra.mxu0 %vm332_vm1, %v2126_v35 }
 0x348   : > { %3481 = vmatpush3.bf16.msra.mxu0 %v3059_v39  ;;  %2254 = vbcast.lane.b32.xlu0 %v2252_v31, 256  ;;  %v3539_v31 = vpop.eup %3538  ;;  %v2287_v39 = vrot.slane %v4531_v32, %v4502_v43 }
 0x349   : > { %3482 = vmatprep.mubr.msk.bf16.mxu0 %vm3574_vm2, %v5068_v27  ;;  %v2567_v27 = vrot.slane %v4567_v49, %v4502_v43  ;;  %v2133_v6 = vrot.slane %v3539_v31, %v4474_v58  ;;  %v2161_v35 = vrot.slane %v3539_v31, %v4482_v28 }
 0x34b   : > { %2261 = vbcast.lane.b32.xlu1 %v2259_v40, 256  ;;  %v2168_v40 = vrot.slane %v3539_v31, %v4440_v4 }
 0x34c   : > { %2268 = vbcast.lane.b32.xlu0 %v2266_v21, 256  ;;  %v2140_v21 = vrot.slane %v3539_v31, %v4428_v51 }
 0x34f   : > { %2275 = vbcast.lane.b32.xlu1 %v2273_v11, 256  ;;  %3483 = vmatmul.mubr.msk.bf16.vlgmr.msra.gmra.mxu0 %vm332_vm1, %v2128_v29  ;;  %v2147_v29 = vrot.slane %v3539_v31, %v4479_v13  ;;  %v2154_v11 = vrot.slane %v3539_v31, %v4434_v23 }
 0x350   : > { %2282 = vbcast.lane.b32.xlu0 %v2280_v24, 256  ;;  %v2294_v24 = vrot.slane %v4531_v32, %v4443_v3 }
 0x353   : > { %2289 = vbcast.lane.b32.xlu1 %v2287_v39, 256  ;;  %v2175_v39 = vrot.slane %v3539_v31, %v4502_v43 }
 0x354   : > { %2296 = vbcast.lane.b32.xlu0 %v2294_v24, 256  ;;  %v2182_v24 = vrot.slane %v3539_v31, %v4443_v3 }
 0x357   : > { %2135 = vbcast.lane.b32.xlu1 %v2133_v6, 256  ;;  %v2189_v6 = vrot.slane %v4436_v8, %v4474_v58 }
 0x358   : > { %2142 = vbcast.lane.b32.xlu0 %v2140_v21, 256  ;;  %v2032_v21 = vsel %vm332_vm1, %v4531_v32, 0.0 }
 0x35b   : > { %2149 = vbcast.lane.b32.xlu1 %v2147_v29, 256  ;;  %v2033_v29 = vrot.slane %v2032_v21, 4 }
 0x35c   : > { %2156 = vbcast.lane.b32.xlu0 %v2154_v11, 256  ;;  %v2203_v11 = vrot.slane %v4436_v8, %v4479_v13 }
 0x35f   : > { %2163 = vbcast.lane.b32.xlu1 %v2161_v35, 256  ;;  %v2217_v35 = vrot.slane %v4436_v8, %v4482_v28 }
 0x360   : > { %2170 = vbcast.lane.b32.xlu0 %v2168_v40, 256  ;;  %v2034_v40 = vadd.f32 %v2033_v29, %v2032_v21  ;;  %v1997_v21 = vsel %vm332_vm1, %v4417_v53, 0.0  ;;  %v2006_v29 = vsel %vm332_vm1, %v4537_v46, 0.0  ;;  %v2003_v53 = vsel %vm332_vm1, %v4469_v50, 0.0 }
 0x363   : > { %2177 = vbcast.lane.b32.xlu1 %v2175_v39, 256  ;;  %v2231_v39 = vrot.slane %v4436_v8, %v4502_v43 }
 0x364   : > { %2184 = vbcast.lane.b32.xlu0 %v2182_v24, 256  ;;  %v2035_v24 = vrot.slane %v2034_v40, 2 }
 0x366   : > { %v2036_v32 = vadd.f32 %v2035_v24, %v2034_v40  ;;  %v2046_v40 = vsel %vm332_vm1, %v4509_v56, 0.0 }
 0x367   : > { %2191 = vbcast.lane.b32.xlu1 %v2189_v6, 256  ;;  %v2371_v6 = vrot.slane %v4509_v56, %v4479_v13  ;;  %v2047_v24 = vrot.slane %v2046_v40, 4 }
 0x368   : > { %v2037_v44 = vrot.slane %v2036_v32, 1 }
 0x36b   : > { %2205 = vbcast.lane.b32.xlu1 %v2203_v11, 256  ;;  %v2038_v11 = vadd.f32 %v2037_v44, %v2036_v32  ;;  %v2048_v32 = vadd.f32 %v2047_v24, %v2046_v40 }
 0x36f   : > { %2219 = vbcast.lane.b32.xlu1 %v2217_v35, 256  ;;  %v2018_v35 = vsel %vm332_vm1, %v3539_v31, 0.0  ;;  %v2025_v31 = vsel %vm332_vm1, %v4436_v8, 0.0 }
 0x373   : > { %2233 = vbcast.lane.b32.xlu1 %v2231_v39, 256  ;;  %v2019_v39 = vrot.slane %v2018_v35, 4 }
 0x377   : > { %2359 = vbcast.lane.b32.xlu1 %v2357_v55, 256  ;;  %v2020_v55 = vadd.f32 %v2019_v39, %v2018_v35 }
 0x379   : > { %v2021_v44 = vrot.slane %v2020_v55, 2 }
 0x37b   : > { %2373 = vbcast.lane.b32.xlu1 %v2371_v6, 256  ;;  %v2022_v46 = vadd.f32 %v2021_v44, %v2020_v55  ;;  %v2049_v6 = vrot.slane %v2048_v32, 2 }
 0x37f   : > { %2089 = vbcast.lane.b32.xlu1 %v2038_v11, 256 }
 0x383   : > { %1998 = vadd.xlane.f32.xlu0 %v1997_v21 }
 0x387   : > { %2007 = vadd.xlane.f32.xlu0 %v2006_v29  ;;  %v2050_v29 = vadd.f32 %v2049_v6, %v2048_v32 }
 0x39d   : > { %2198 = vbcast.lane.b32.xlu0 %v2196_v62, 256  ;;  %v2023_v62 = vrot.slane %v2022_v46, 1 }
 0x39f   : > { %v2024_v50 = vadd.f32 %v2023_v62, %v2022_v46  ;;  %v5074_v46 = vld [vmem:[#allocation9_spill] sm:$0xff] }
 0x3a1   : > { %2212 = vbcast.lane.b32.xlu0 %v2210_v19, 256  ;;  %v2026_v19 = vrot.slane %v2025_v31, 4 }
 0x3a3   : > { %2004 = vadd.xlane.f32.xlu1 %v2003_v53  ;;  %v2051_v53 = vrot.slane %v2050_v29, 1 }
 0x3a5   : > { %2226 = vbcast.lane.b32.xlu0 %v2224_v34, 256  ;;  %v2027_v34 = vadd.f32 %v2026_v19, %v2025_v31 }
 0x3a9   : > { %2240 = vbcast.lane.b32.xlu0 %v2238_v0, 256  ;;  %v2028_v0 = vrot.slane %v2027_v34, 2 }
 0x3ad   : > { %2366 = vbcast.lane.b32.xlu0 %v2364_v12, 256  ;;  %v2029_v12 = vadd.f32 %v2028_v0, %v2027_v34 }
 0x3af   : > { %v2030_v21 = vrot.slane %v2029_v12, 1 }
 0x3b1   : > { %2083 = vbcast.lane.b32.xlu0 %v2024_v50, 256  ;;  %v2031_v55 = vadd.f32 %v2030_v21, %v2029_v12  ;;  %v2052_v50 = vadd.f32 %v2051_v53, %v2050_v29 }
 0x3b4   : > { %2303 = vbcast.lane.b32.xlu1 %v2301_v45, 256  ;;  %v5073_v45 = vld [vmem:[#allocation10_spill] sm:$0xff] }
 0x3b8   : > { %2317 = vbcast.lane.b32.xlu1 %v2315_v2, 256 }
 0x3ba   : > { %v4690_v8 = vpop.xlane.xlu0 %2001 }
 0x3bc   : > { %2331 = vbcast.lane.b32.xlu1 %v2329_v37, 256 }
 0x3be   : > { %v2255_v11 = vpop.permute.xlu0 %2254 }
 0x3bf   : > { %v4695_v35 = vpop.xlane.xlu1 %1995  ;;  %v2595_v39 = vmul.f32 %v2255_v11, %v5073_v45 }
 0x3c0   : > { %2345 = vbcast.lane.b32.xlu1 %v2343_v33, 256 }
 0x3c1   : > { %v2673_v37 = vsel %vm332_vm1, %v2595_v39, 0.0 }
 0x3c2   : > { %v2269_v2 = vpop.permute.xlu0 %2268 }
 0x3c3   : > { %v2248_v44 = vpop.permute.xlu1 %2247  ;;  %v2597_v24 = vmul.f32 %v2269_v2, %v3965_v52 }
 0x3c4   : > { %v2594_v62 = vmul.f32 %v2248_v44, %v5074_v46  ;;  %2086 = vbcast.lane.b32.xlu1 %v2031_v55, 256 }
 0x3c5   : > { %v2677_v11 = vsel %vm332_vm1, %v2597_v24, 0.0 }
 0x3c6   : > { %v2672_v31 = vsel %vm332_vm1, %v2594_v62, 0.0  ;;  %v2283_v19 = vpop.permute.xlu0 %2282  ;;  %v2012_v62 = vsel %vm332_vm1, %v4581_v63, 0.0 }
 0x3c7   : > { %v2674_v40 = vadd.f32 %v2673_v37, %v2672_v31  ;;  %v2262_v34 = vpop.permute.xlu1 %2261  ;;  %v2599_v21 = vmul.f32 %v2283_v19, %v4424_v18 }
 0x3c8   : > { %v2596_v33 = vmul.f32 %v2262_v34, %v5069_v60  ;;  %2095 = vbcast.lane.b32.xlu1 %v2052_v50, 256 }
 0x3c9   : > { %v2681_v37 = vsel %vm332_vm1, %v2599_v21, 0.0 }
 0x3ca   : > { %v2675_v0 = vsel %vm332_vm1, %v2596_v33, 0.0  ;;  %v2297_v32 = vpop.permute.xlu0 %2296 }
 0x3cb   : > { %v2676_v12 = vadd.f32 %v2675_v0, %v2674_v40  ;;  %v2276_v6 = vpop.permute.xlu1 %2275  ;;  %v2601_v31 = vmul.f32 %v2297_v32, %v5070_v57 }
 0x3cc   : > { %v2598_v39 = vmul.f32 %v2276_v6, %v5071_v48 }
 0x3cd   : > { %v2678_v55 = vadd.f32 %v2677_v11, %v2676_v12  ;;  %v2685_v12 = vsel %vm332_vm1, %v2601_v31, 0.0 }
 0x3ce   : > { %v2679_v29 = vsel %vm332_vm1, %v2598_v39, 0.0  ;;  %v2143_v53 = vpop.permute.xlu0 %2142 }
 0x3cf   : > { %v2680_v44 = vadd.f32 %v2679_v29, %v2678_v55  ;;  %v2290_v2 = vpop.permute.xlu1 %2289  ;;  %v2579_v19 = vmul.f32 %v2143_v53, %v5073_v45 }
 0x3d0   : > { %v2600_v50 = vmul.f32 %v2290_v2, %v5072_v25  ;;  %2013 = vadd.xlane.f32.xlu0 %v2012_v62 }
 0x3d1   : > { %v2682_v40 = vadd.f32 %v2681_v37, %v2680_v44  ;;  %v2643_v11 = vsel %vm332_vm1, %v2579_v19, 0.0 }
 0x3d2   : > { %v2683_v34 = vsel %vm332_vm1, %v2600_v50, 0.0  ;;  %v2157_v24 = vpop.permute.xlu0 %2156 }
 0x3d3   : > { %v2684_v33 = vadd.f32 %v2683_v34, %v2682_v40  ;;  %v2136_v0 = vpop.permute.xlu1 %2135  ;;  %v2581_v29 = vmul.f32 %v2157_v24, %v3965_v52  ;;  %v2039_v34 = vsel %vm332_vm1, %v4484_v9, 0.0 }
 0x3d4   : > { %v2578_v6 = vmul.f32 %v2136_v0, %v5074_v46 }
 0x3d5   : > { %v4720_v63 = vadd.f32 %v2685_v12, %v2684_v33  ;;  %v2647_v37 = vsel %vm332_vm1, %v2581_v29, 0.0 }
 0x3d6   : > { %v2642_v32 = vsel %vm332_vm1, %v2578_v6, 0.0  ;;  %v2171_v39 = vpop.permute.xlu0 %2170 }
 0x3d7   : > { %v2644_v21 = vadd.f32 %v2643_v11, %v2642_v32  ;;  %v2150_v55 = vpop.permute.xlu1 %2149  ;;  %v2583_v31 = vmul.f32 %v2171_v39, %v4424_v18  ;;  %v2040_v32 = vrot.slane %v2039_v34, 4  ;;  %v2053_v39 = vsel %vm332_vm1, %v4548_v26, 0.0 }
 0x3d8   : > { %v2580_v53 = vmul.f32 %v2150_v55, %v5069_v60 }
 0x3d9   : > { %v2651_v12 = vsel %vm332_vm1, %v2583_v31, 0.0  ;;  %v2067_v31 = vsel %vm332_vm1, %v4567_v49, 0.0 }
 0x3da   : > { %v2645_v44 = vsel %vm332_vm1, %v2580_v53, 0.0  ;;  %v2185_v40 = vpop.permute.xlu0 %2184 }
 0x3db   : > { %v2646_v2 = vadd.f32 %v2645_v44, %v2644_v21  ;;  %v2164_v62 = vpop.permute.xlu1 %2163  ;;  %v2585_v6 = vmul.f32 %v2185_v40, %v5070_v57  ;;  %v2041_v44 = vadd.f32 %v2040_v32, %v2039_v34  ;;  %v2009_v34 = vsel %vm332_vm1, %v4504_v47, 0.0 }
 0x3dc   : > { %v2582_v50 = vmul.f32 %v2164_v62, %v5071_v48  ;;  %v2060_v62 = vsel %vm332_vm1, %v4573_v59, 0.0 }
 0x3dd   : > { %v2648_v19 = vadd.f32 %v2647_v37, %v2646_v2  ;;  %v2655_v53 = vsel %vm332_vm1, %v2585_v6, 0.0  ;;  %v2054_v2 = vrot.slane %v2053_v39, 4  ;;  %v2042_v40 = vrot.slane %v2041_v44, 2 }
 0x3de   : > { %v2649_v33 = vsel %vm332_vm1, %v2582_v50, 0.0  ;;  %v2061_v50 = vrot.slane %v2060_v62, 4 }
 0x3df   : > { %v2650_v24 = vadd.f32 %v2649_v33, %v2648_v19  ;;  %v2178_v0 = vpop.permute.xlu1 %2177  ;;  %v2055_v19 = vadd.f32 %v2054_v2, %v2053_v39  ;;  %v2068_v33 = vrot.slane %v2067_v31, 4 }
 0x3e0   : > { %v2584_v11 = vmul.f32 %v2178_v0, %v5072_v25  ;;  %v2043_v0 = vadd.f32 %v2042_v40, %v2041_v44 }
 0x3e1   : > { %v2652_v21 = vadd.f32 %v2651_v12, %v2650_v24  ;;  %v2062_v24 = vadd.f32 %v2061_v50, %v2060_v62  ;;  %v2056_v12 = vrot.slane %v2055_v19, 2  ;;  %v2069_v6 = vadd.f32 %v2068_v33, %v2067_v31 }
 0x3e2   : > { %v2653_v55 = vsel %vm332_vm1, %v2584_v11, 0.0 }
 0x3e3   : > { %v2654_v29 = vadd.f32 %v2653_v55, %v2652_v21  ;;  %v2063_v11 = vrot.slane %v2062_v24, 2  ;;  %v2044_v21 = vrot.slane %v2043_v0, 1  ;;  %v2057_v39 = vadd.f32 %v2056_v12, %v2055_v19 }
 0x3e4   : > { %v2070_v55 = vrot.slane %v2069_v6, 2 }
 0x3e5   : > { %v2656_v37 = vadd.f32 %v2655_v53, %v2654_v29  ;;  %v2045_v53 = vadd.f32 %v2044_v21, %v2043_v0  ;;  %v2058_v44 = vrot.slane %v2057_v39, 1 }
 0x3e6   : > { %2310 = vbcast.lane.b32.xlu0 %v2308_v30, 256  ;;  %v2071_v2 = vadd.f32 %v2070_v55, %v2069_v6 }
 0x3e7   : > { %v2059_v19 = vadd.f32 %v2058_v44, %v2057_v39 }
 0x3e8   : > { %v2072_v33 = vrot.slane %v2071_v2, 1 }
 0x3ea   : > { %2324 = vbcast.lane.b32.xlu0 %v2322_v5, 256  ;;  %v2064_v5 = vadd.f32 %v2063_v11, %v2062_v24  ;;  %v2073_v11 = vadd.f32 %v2072_v33, %v2071_v2 }
 0x3ec   : > { %2010 = vadd.xlane.f32.xlu1 %v2009_v34  ;;  %v2065_v31 = vrot.slane %v2064_v5, 1 }
 0x3ed   : > { %v4755_v30 = vpop.f32.mrf.mxu1 }
 0x3ee   : > { %2338 = vbcast.lane.b32.xlu0 %v2336_v16, 256  ;;  %v2066_v12 = vadd.f32 %v2065_v31, %v2064_v5  ;;  %v2192_v5 = vpop.permute.xlu1 %2191 }
 0x3ef   : > { %v3454_v32 = vpop.f32.mrf.mxu1 }
 0x3f1   : > { %v2868_v47 = vpop.f32.mrf.mxu1 }
 0x3f2   : > { %2352 = vbcast.lane.b32.xlu0 %v2350_v61, 256  ;;  %v2206_v31 = vpop.permute.xlu1 %2205 }
 0x3f3   : > { %v3455_v29 = vpop.f32.mrf.mxu1 }
 0x3f6   : > { %2092 = vbcast.lane.b32.xlu0 %v2045_v53, 256  ;;  %v4760_v62 = vpop.f32.mrf.mxu1 }
 0x3f7   : > { %v2819_v16 = vpop.f32.mrf.mxu0 }
 0x3f8   : > { %v4762_v50 = vadd.f32 %v2819_v16, %v2656_v37  ;;  %v3466_v40 = vpop.f32.mrf.mxu1 }
 0x3f9   : > { %v3448_v34 = vpop.f32.mrf.mxu0 }
 0x3fa   : > { %2098 = vbcast.lane.b32.xlu0 %v2059_v19, 256  ;;  %v2960_v9 = vpop.f32.mrf.mxu1  ;;  %v2469_v34 = vrot.slane %v4573_v59, %v4474_v58 }
 0x3fb   : > { %v2822_v61 = vpop.f32.mrf.mxu0 }
 0x3fc   : > { %v3467_v24 = vpop.f32.mrf.mxu1  ;;  %v2220_v61 = vpop.permute.xlu1 %2219 }
 0x3fd   : > { %v3449_v0 = vpop.f32.mrf.mxu0  ;;  %2101 = vbcast.lane.b32.xlu1 %v2066_v12, 256  ;;  %v2525_v24 = vrot.slane %v4567_v49, %v4474_v58 }
 0x3fe   : > { %2104 = vbcast.lane.b32.xlu0 %v2073_v11, 256  ;;  %v4764_v6 = vpop.f32.mrf.mxu1 }
 0x3ff   : > { %v2911_v32 = vpop.f32.mrf.mxu0 }
 0x400   : > { %v4767_v21 = vadd.f32 %v2911_v32, %v4720_v63  ;;  %v3478_v37 = vpop.f32.mrf.mxu1 }
 0x401   : > { %v3460_v55 = vpop.f32.mrf.mxu0  ;;  %v2588_v37 = vmul.f32 %v2206_v31, %v5069_v60  ;;  %v2590_v31 = vmul.f32 %v2220_v61, %v5071_v48 }
 0x402   : > { %2380 = vbcast.lane.b32.xlu0 %v2378_v22, 256  ;;  %v3052_v39 = vpop.f32.mrf.mxu1 }
 0x403   : > { %v2914_v47 = vpop.f32.mrf.mxu0 }
 0x404   : > { %v3479_v29 = vpop.f32.mrf.mxu1  ;;  %v2234_v47 = vpop.permute.xlu1 %2233 }
 0x405   : > { %v3461_v53 = vpop.f32.mrf.mxu0 }
 0x406   : > { %2394 = vbcast.lane.b32.xlu0 %v2392_v54, 256  ;;  %v4775_v44 = vpop.f32.mrf.mxu1 }
 0x407   : > { %v4777_v2 = vpop.f32.mrf.mxu0 }
 0x408   : > { %v3490_v63 = vpop.f32.mrf.mxu1 }
 0x409   : > { %v3472_v16 = vpop.f32.mrf.mxu0 }
 0x40a   : > { %2415 = vbcast.lane.b32.xlu0 %v2413_v1, 256  ;;  %v3144_v22 = vpop.f32.mrf.mxu1  ;;  %v2586_v1 = vmul.f32 %v2192_v5, %v5074_v46  ;;  %v2539_v5 = vrot.slane %v4567_v49, %v4479_v13  ;;  %v2660_v16 = vsel %vm332_vm1, %v2588_v37, 0.0 }
 0x40b   : > { %v3006_v40 = vpop.f32.mrf.mxu0 }
 0x40c   : > { %v4782_v19 = vpop.xlane.xlu0 %1998  ;;  %v3491_v33 = vpop.f32.mrf.mxu1  ;;  %v2657_v29 = vsel %vm332_vm1, %v2586_v1, 0.0  ;;  %v2592_v1 = vmul.f32 %v2234_v47, %v5072_v25 }
 0x40d   : > { %v3473_v54 = vpop.f32.mrf.mxu0 }
 0x40e   : > { %2471 = vbcast.lane.b32.xlu0 %v2469_v34, 256 }
 0x40f   : > { %v4786_v9 = vpop.f32.mrf.mxu0 }
 0x410   : > { %v4788_v12 = vpop.xlane.xlu0 %2007 }
 0x411   : > { %v3484_v11 = vpop.f32.mrf.mxu0 }
 0x412   : > { %2527 = vbcast.lane.b32.xlu0 %v2525_v24, 256  ;;  %v2490_v24 = vrot.slane %v4573_v59, %v4434_v23  ;;  %v2664_v11 = vsel %vm332_vm1, %v2590_v31, 0.0 }
 0x413   : > { %v3098_v0 = vpop.f32.mrf.mxu0 }
 0x414   : > { %v2199_v32 = vpop.permute.xlu0 %2198 }
 0x415   : > { %v2587_v55 = vmul.f32 %v2199_v32, %v5073_v45  ;;  %v3485_v39 = vpop.f32.mrf.mxu0 }
 0x416   : > { %2429 = vbcast.lane.b32.xlu0 %v2427_v42, 256  ;;  %v2360_v42 = vpop.permute.xlu1 %2359  ;;  %v2015_v39 = vsel %vm332_vm1, %v4543_v14, 0.0 }
 0x417   : > { %v2658_v58 = vsel %vm332_vm1, %v2587_v55, 0.0  ;;  %v2610_v47 = vmul.f32 %v2360_v42, %v5074_v46 }
 0x418   : > { %v2659_v53 = vadd.f32 %v2658_v58, %v2657_v29  ;;  %v2213_v63 = vpop.permute.xlu0 %2212  ;;  %v2668_v29 = vsel %vm332_vm1, %v2592_v1, 0.0 }
 0x419   : > { %v2589_v22 = vmul.f32 %v2213_v63, %v3965_v52 }
 0x41a   : > { %v2661_v40 = vadd.f32 %v2660_v16, %v2659_v53  ;;  %2541 = vbcast.lane.b32.xlu0 %v2539_v5, 256  ;;  %v2374_v53 = vpop.permute.xlu1 %2373 }
 0x41b   : > { %v2662_v33 = vsel %vm332_vm1, %v2589_v22, 0.0  ;;  %v2612_v22 = vmul.f32 %v2374_v53, %v5069_v60 }
 0x41c   : > { %v2663_v34 = vadd.f32 %v2662_v33, %v2661_v40  ;;  %v2227_v54 = vpop.permute.xlu0 %2226  ;;  %v2702_v33 = vsel %vm332_vm1, %v2610_v47, 0.0 }
 0x41d   : > { %v2591_v0 = vmul.f32 %v2227_v54, %v4424_v18  ;;  %v2705_v54 = vsel %vm332_vm1, %v2612_v22, 0.0  ;;  %v5085_v22 = vrot.slane %v4509_v56, %v4443_v3 }
 0x41e   : > { %v2665_v32 = vadd.f32 %v2664_v11, %v2663_v34  ;;  %2492 = vbcast.lane.b32.xlu0 %v2490_v24, 256  ;;  %v2090_v42 = vpop.permute.xlu1 %2089 }
 0x41f   : > { %v2666_v61 = vsel %vm332_vm1, %v2591_v0, 0.0  ;;  %v5079_v0 = vrot.slane %v4548_v26, %v4434_v23 }
 0x420   : > { %v2667_v37 = vadd.f32 %v2666_v61, %v2665_v32  ;;  %v2241_v55 = vpop.permute.xlu0 %2240  ;;  %v5080_v32 = vrot.slane %v4567_v49, %v4434_v23 }
 0x421   : > { %v2593_v58 = vmul.f32 %v2241_v55, %v5070_v57  ;;  %2016 = vadd.xlane.f32.xlu1 %v2015_v39  ;;  %v5083_v39 = vrot.slane %v4567_v49, %v4440_v4 }
 0x422   : > { %v2669_v63 = vadd.f32 %v2668_v29, %v2667_v37  ;;  %2443 = vbcast.lane.b32.xlu0 %v2441_v20, 256  ;;  %v5082_v37 = vrot.slane %v4548_v26, %v4440_v4 }
 0x423   : > { %v2670_v5 = vsel %vm332_vm1, %v2593_v58, 0.0 }
 0x424   : > { %v2671_v16 = vadd.f32 %v2670_v5, %v2669_v63  ;;  %v2367_v31 = vpop.permute.xlu0 %2366 }
 0x425   : > { %v2611_v14 = vmul.f32 %v2367_v31, %v5073_v45 }
 0x426   : > { %2555 = vbcast.lane.b32.xlu0 %v2553_v41, 256  ;;  %v4827_v40 = vadd.f32 %v4755_v30, %v2671_v16 }
 0x427   : > { %v2703_v20 = vsel %vm332_vm1, %v2611_v14, 0.0 }
 0x428   : > { %v2704_v34 = vadd.f32 %v2703_v20, %v2702_v33 }
 0x42a   : > { %2506 = vbcast.lane.b32.xlu0 %v2504_v17, 256  ;;  %v4835_v24 = vadd.f32 %v2705_v54, %v2704_v34  ;;  %v5086_v54 = vrot.slane %v4573_v59, %v4443_v3 }
 0x42c   : > { %v4837_v11 = vpop.xlane.xlu1 %2004 }
 0x42e   : > { %2457 = vbcast.lane.b32.xlu0 %v2455_v36, 256  ;;  %v5075_v36 = vrot.slane %v4548_v26, %v4428_v51  ;;  %v5084_v26 = vrot.slane %v4573_v59, %v4502_v43 }
 0x430   : > { %v2304_v41 = vpop.permute.xlu1 %2303 }
 0x431   : > { %v2602_v29 = vmul.f32 %v2304_v41, %v5074_v46 }
 0x432   : > { %2569 = vbcast.lane.b32.xlu0 %v2567_v27, 256  ;;  %2387 = vbcast.lane.b32.xlu1 %v2385_v7, 256  ;;  %v5076_v7 = vrot.slane %v4573_v59, %v4428_v51 }
 0x434   : > { %v2318_v30 = vpop.permute.xlu1 %2317 }
 0x435   : > { %v2604_v53 = vmul.f32 %v2318_v30, %v5069_v60 }
 0x436   : > { %2464 = vbcast.lane.b32.xlu0 %v2462_v38, 256  ;;  %2401 = vbcast.lane.b32.xlu1 %v2399_v15, 256  ;;  %v5077_v15 = vrot.slane %v4567_v49, %v4428_v51  ;;  %v2084_v51 = vpop.permute.xlu0 %2083 }
 0x437   : > { %v2114_v23 = vadd.f32 %v2084_v51, %v4695_v35  ;;  %v2690_v5 = vsel %vm332_vm1, %v2604_v53, 0.0 }
 0x438   : > { %v2332_v17 = vpop.permute.xlu1 %2331 }
 0x439   : > { %v2606_v16 = vmul.f32 %v2332_v17, %v5071_v48 }
 0x43a   : > { %2576 = vbcast.lane.b32.xlu0 %v2574_v10, 256  ;;  %2422 = vbcast.lane.b32.xlu1 %v5075_v36, 256  ;;  %v5078_v10 = vrot.slane %v4573_v59, %v4479_v13  ;;  %v2116_v13 = vadd.f32 %v2090_v42, %v4690_v8  ;;  %v2687_v8 = vsel %vm332_vm1, %v2602_v29, 0.0 }
 0x43b   : > { %v2694_v20 = vsel %vm332_vm1, %v2606_v16, 0.0 }
 0x43c   : > { %v2346_v27 = vpop.permute.xlu1 %2345 }
 0x43d   : > { %v2608_v42 = vmul.f32 %v2346_v27, %v5072_v25 }
 0x43e   : > { %2478 = vbcast.lane.b32.xlu1 %v5076_v7, 256 }
 0x43f   : > { %v2698_v7 = vsel %vm332_vm1, %v2608_v42, 0.0 }
 0x440   : > { %v2087_v1 = vpop.permute.xlu1 %2086 }
 0x441   : > { %v2115_v38 = vadd.f32 %v2087_v1, %v4782_v19  ;;  %v5081_v19 = vrot.slane %v4573_v59, %v4482_v28 }
 0x442   : > { %2534 = vbcast.lane.b32.xlu1 %v5077_v15, 256 }
 0x443   : > { %3540 = vrcp.f32 %v2115_v38 }
 0x444   : > { %3542 = vrcp.f32 %v2116_v13  ;;  %v2096_v58 = vpop.permute.xlu1 %2095 }
 0x445   : > { %3544 = vrcp.f32 %v2114_v23  ;;  %v2118_v4 = vadd.f32 %v2096_v58, %v4788_v12 }
 0x446   : > { %2485 = vbcast.lane.b32.xlu1 %v5078_v10, 256 }
 0x447   : > { %3546 = vrcp.f32 %v2118_v4 }
 0x44a   : > { %2436 = vbcast.lane.b32.xlu1 %v5079_v0, 256 }
 0x44e   : > { %2548 = vbcast.lane.b32.xlu1 %v5080_v32, 256 }
 0x450   : > { %v3541_v61 = vpop.eup %3540 }
 0x451   : > { %3154 = vperm.xlu0 %3507, %v3541_v61   ;;  %v3543_v30 = vpop.eup %3542 }
 0x452   : > { %2499 = vbcast.lane.b32.xlu1 %v5081_v19, 256  ;;  %v3545_v15 = vpop.eup %3544 }
 0x454   : > { %v3547_v59 = vpop.eup %3546 }
 0x456   : > { %2450 = vbcast.lane.b32.xlu1 %v5082_v37, 256 }
 0x459   : > { %v2014_v55 = vpop.xlane.xlu0 %2013 }
 0x45a   : > { %2562 = vbcast.lane.b32.xlu1 %v5083_v39, 256 }
 0x45d   : > { %v2311_v28 = vpop.permute.xlu0 %2310 }
 0x45e   : > { %v2603_v63 = vmul.f32 %v2311_v28, %v5073_v45  ;;  %2513 = vbcast.lane.b32.xlu1 %v5084_v26, 256 }
 0x460   : > { %v2688_v49 = vsel %vm332_vm1, %v2603_v63, 0.0 }
 0x461   : > { %v2689_v35 = vadd.f32 %v2688_v49, %v2687_v8  ;;  %v2325_v47 = vpop.permute.xlu0 %2324 }
 0x462   : > { %v2605_v31 = vmul.f32 %v2325_v47, %v3965_v52  ;;  %2408 = vbcast.lane.b32.xlu1 %v5085_v22, 256 }
 0x463   : > { %v2691_v43 = vadd.f32 %v2690_v5, %v2689_v35 }
 0x464   : > { %v2692_v14 = vsel %vm332_vm1, %v2605_v31, 0.0 }
 0x465   : > { %v2693_v33 = vadd.f32 %v2692_v14, %v2691_v43  ;;  %v2339_v12 = vpop.permute.xlu0 %2338 }
 0x466   : > { %v2607_v34 = vmul.f32 %v2339_v12, %v4424_v18  ;;  %2520 = vbcast.lane.b32.xlu1 %v5086_v54, 256 }
 0x467   : > { %v2695_v41 = vadd.f32 %v2694_v20, %v2693_v33 }
 0x468   : > { %v2696_v56 = vsel %vm332_vm1, %v2607_v34, 0.0 }
 0x469   : > { %v2697_v17 = vadd.f32 %v2696_v56, %v2695_v41  ;;  %v2353_v36 = vpop.permute.xlu0 %2352 }
 0x46a   : > { %v2609_v1 = vmul.f32 %v2353_v36, %v5070_v57  ;;  %3159 = vperm.xlu1 %3506, %v3543_v30  }
 0x46b   : > { %v2699_v38 = vadd.f32 %v2698_v7, %v2697_v17 }
 0x46c   : > { %v2700_v27 = vsel %vm332_vm1, %v2609_v1, 0.0 }
 0x46d   : > { %v4913_v10 = vadd.f32 %v2700_v27, %v2699_v38  ;;  %v2093_v0 = vpop.permute.xlu0 %2092 }
 0x46e   : > { %v2117_v3 = vadd.f32 %v2093_v0, %v4837_v11  ;;  %3149 = vperm.xlu1 %3506, %v3545_v15  }
 0x470   : > { %3548 = vrcp.f32 %v2117_v3 }
 0x471   : > { %v2099_v32 = vpop.permute.xlu0 %2098 }
 0x472   : > { %3169 = vperm.xlu1 %3506, %v3547_v59  }
 0x475   : > { %v2105_v61 = vpop.permute.xlu0 %2104  ;;  %v2011_v19 = vpop.xlane.xlu1 %2010 }
 0x476   : > { %v2119_v51 = vadd.f32 %v2099_v32, %v2011_v19 }
 0x478   : > { %3550 = vrcp.f32 %v2119_v51 }
 0x479   : > { %v2381_v37 = vpop.permute.xlu0 %2380  ;;  %v2102_v13 = vpop.permute.xlu1 %2101 }
 0x47a   : > { %v2613_v39 = vmul.f32 %v2381_v37, %v3965_v52  ;;  %v2120_v23 = vadd.f32 %v2102_v13, %v2014_v55 }
 0x47c   : > { %v2707_v29 = vsel %vm332_vm1, %v2613_v39, 0.0  ;;  %3552 = vrcp.f32 %v2120_v23 }
 0x47d   : > { %v3549_v58 = vpop.eup %3548  ;;  %v2708_v11 = vadd.f32 %v2707_v29, %v4835_v24  ;;  %v2395_v28 = vpop.permute.xlu0 %2394 }
 0x47e   : > { %3164 = vperm.xlu0 %3507, %v3549_v58   ;;  %v2615_v24 = vmul.f32 %v2395_v28, %v4424_v18 }
 0x480   : > { %v2711_v42 = vsel %vm332_vm1, %v2615_v24, 0.0 }
 0x481   : > { %v2416_v53 = vpop.permute.xlu0 %2415 }
 0x482   : > { %v2618_v54 = vmul.f32 %v2416_v53, %v5074_v46 }
 0x484   : > { %v2717_v36 = vsel %vm332_vm1, %v2618_v54, 0.0  ;;  %v4957_v54 = vstv %s2778_s22 }
 0x485   : > { %v3551_v63 = vpop.eup %3550  ;;  %v2472_v26 = vpop.permute.xlu0 %2471 }
 0x486   : > { %3174 = vperm.xlu0 %3507, %v3551_v63   ;;  %v2626_v19 = vmul.f32 %v2472_v26, %v5074_v46 }
 0x488   : > { %v2732_v28 = vsel %vm332_vm1, %v2626_v19, 0.0 }
 0x489   : > { %v3553_v8 = vpop.eup %3552  ;;  %v2528_v4 = vpop.permute.xlu0 %2527 }
 0x48a   : > { %3179 = vperm.xlu1 %3506, %v3553_v8   ;;  %v2634_v59 = vmul.f32 %v2528_v4, %v5074_v46 }
 0x48c   : > { %v2747_v13 = vsel %vm332_vm1, %v2634_v59, 0.0 }
 0x48d   : > { %v2430_v49 = vpop.permute.xlu0 %2429 }
 0x48e   : > { %v2620_v30 = vmul.f32 %v2430_v49, %v5069_v60 }
 0x490   : > { %v2720_v15 = vsel %vm332_vm1, %v2620_v30, 0.0 }
 0x491   : > { %v2542_v35 = vpop.permute.xlu0 %2541 }
 0x492   : > { %v2636_v51 = vmul.f32 %v2542_v35, %v5069_v60 }
 0x494   : > { %v2750_v53 = vsel %vm332_vm1, %v2636_v51, 0.0 }
 0x495   : > { %v2493_v47 = vpop.permute.xlu0 %2492 }
 0x496   : > { %v2629_v46 = vmul.f32 %v2493_v47, %v3965_v52 }
 0x498   : > { %v2737_v35 = vsel %vm332_vm1, %v2629_v46, 0.0 }
 0x499   : > { %v2444_v5 = vpop.permute.xlu0 %2443 }
 0x49d   : > { %v2556_v55 = vpop.permute.xlu0 %2555 }
 0x4a1   : > { %v2507_v14 = vpop.permute.xlu0 %2506 }
 0x4a5   : > { %v4928_v41 = vpop.permute.xlu0 %2457 }
 0x4a9   : > { %v2570_v0 = vpop.permute.xlu0 %2569 }
 0x4aa   : > { %v2017_v16 = vpop.xlane.xlu1 %2016  ;;  %v2640_v19 = vmul.f32 %v2570_v0, %v5072_v25 }
 0x4ab   : > { %v2121_v31 = vadd.f32 %v2105_v61, %v2017_v16  ;;  %v2622_v16 = vmul.f32 %v2444_v5, %v5071_v48 }
 0x4ad   : > { %3554 = vrcp.f32 %v2121_v31  ;;  %v4943_v29 = vpop.permute.xlu0 %2464 }
 0x4ae   : > { %v2388_v22 = vpop.permute.xlu1 %2387 }
 0x4af   : > { %v2614_v43 = vmul.f32 %v2388_v22, %v5071_v48 }
 0x4b1   : > { %v2709_v33 = vsel %vm332_vm1, %v2614_v43, 0.0  ;;  %v2577_v22 = vpop.permute.xlu0 %2576 }
 0x4b2   : > { %v2710_v12 = vadd.f32 %v2709_v33, %v2708_v11  ;;  %v4922_v20 = vpop.permute.xlu1 %2401  ;;  %v2724_v33 = vsel %vm332_vm1, %v2622_v16, 0.0 }
 0x4b3   : > { %v2616_v0 = vmul.f32 %v4922_v20, %v5072_v25  ;;  %v3557_v20 = vld [vmem:[%s3659_s19 + $0x10] sm:$0xff] }
 0x4b4   : > { %v4925_v34 = vadd.f32 %v2711_v42, %v2710_v12  ;;  %v2638_v12 = vmul.f32 %v2556_v55, %v5071_v48 }
 0x4b6   : > { %v2423_v56 = vpop.permute.xlu1 %2422 }
 0x4b7   : > { %v2619_v17 = vmul.f32 %v2423_v56, %v5073_v45 }
 0x4b9   : > { %v2718_v7 = vsel %vm332_vm1, %v2619_v17, 0.0 }
 0x4ba   : > { %v3555_v1 = vpop.eup %3554  ;;  %v2719_v38 = vadd.f32 %v2718_v7, %v2717_v36  ;;  %v2479_v27 = vpop.permute.xlu1 %2478 }
 0x4bb   : > { %3184 = vperm.xlu0 %3507, %v3555_v1   ;;  %v2627_v32 = vmul.f32 %v2479_v27, %v5073_v45  ;;  %v2754_v1 = vsel %vm332_vm1, %v2638_v12, 0.0 }
 0x4bc   : > { %v2721_v3 = vadd.f32 %v2720_v15, %v2719_v38  ;;  %v2631_v38 = vmul.f32 %v2507_v14, %v4424_v18  ;;  %v3556_v15 = vld [vmem:[%s3659_s19 + $0x8] sm:$0xff] }
 0x4bd   : > { %v2733_v39 = vsel %vm332_vm1, %v2627_v32, 0.0 }
 0x4be   : > { %v2535_v61 = vpop.permute.xlu1 %2534  ;;  %v2734_v26 = vadd.f32 %v2733_v39, %v2732_v28  ;;  %v2741_v14 = vsel %vm332_vm1, %v2631_v38, 0.0 }
 0x4bf   : > { %v2635_v37 = vmul.f32 %v2535_v61, %v5073_v45 }
 0x4c1   : > { %v2748_v23 = vsel %vm332_vm1, %v2635_v37, 0.0  ;;  %v2641_v37 = vmul.f32 %v2577_v22, %v5070_v57 }
 0x4c2   : > { %v2749_v58 = vadd.f32 %v2748_v23, %v2747_v13  ;;  %v2486_v11 = vpop.permute.xlu1 %2485 }
 0x4c3   : > { %v2628_v63 = vmul.f32 %v2486_v11, %v5069_v60  ;;  %v2760_v28 = vsel %vm332_vm1, %v2641_v37, 0.0  ;;  %v3561_v37 = vld [vmem:[%s3659_s19 + $0x28] sm:$0xff] }
 0x4c4   : > { %v2751_v45 = vadd.f32 %v2750_v53, %v2749_v58  ;;  %v2758_v58 = vsel %vm332_vm1, %v2640_v19, 0.0 }
 0x4c5   : > { %v2735_v8 = vsel %vm332_vm1, %v2628_v63, 0.0 }
 0x4c6   : > { %v2736_v4 = vadd.f32 %v2735_v8, %v2734_v26  ;;  %v2437_v49 = vpop.permute.xlu1 %2436 }
 0x4c7   : > { %v2621_v31 = vmul.f32 %v2437_v49, %v3965_v52 }
 0x4c8   : > { %v2738_v24 = vadd.f32 %v2737_v35, %v2736_v4 }
 0x4c9   : > { %v2722_v43 = vsel %vm332_vm1, %v2621_v31, 0.0 }
 0x4ca   : > { %v2723_v47 = vadd.f32 %v2722_v43, %v2721_v3  ;;  %v2549_v60 = vpop.permute.xlu1 %2548 }
 0x4cb   : > { %v2637_v42 = vmul.f32 %v2549_v60, %v3965_v52 }
 0x4cc   : > { %v3155_v56 = vpop.permute.xlu0 %3154  ;;  %v2725_v5 = vadd.f32 %v2724_v33, %v2723_v47  ;;  %v3558_v33 = vld [vmem:[%s3659_s19] sm:$0xff] }
 0x4cd   : > { %v2752_v30 = vsel %vm332_vm1, %v2637_v42, 0.0  ;;  %v3188_v17 = vmul.f32 %v3155_v56, %v4827_v40 }
 0x4ce   : > { %v2753_v36 = vadd.f32 %v2752_v30, %v2751_v45  ;;  %v2500_v7 = vpop.permute.xlu1 %2499  ;;  %v2713_v45 = vsel %vm332_vm1, %v2616_v0, 0.0 }
 0x4cf   : > { %v3197_v27 = vmul.f32 %v4957_v54, %v3188_v17  ;;  %v2630_v55 = vmul.f32 %v2500_v7, %v5071_v48  ;;  %v2714_v49 = vadd.f32 %v2713_v45, %v4925_v34  ;;  %v2625_v7 = vmul.f32 %v4943_v29, %v5070_v57 }
 0x4d0   : > { %v2755_v52 = vadd.f32 %v2754_v1, %v2753_v36 }
 0x4d1   : > { %v3205_v40 = vadd.f32 %v3556_v15, %v3197_v27  ;;  %v2739_v3 = vsel %vm332_vm1, %v2630_v55, 0.0  ;;  %v2958_v27 = vadd.f32 %v4760_v62, %v4913_v10 }
 0x4d2   : > { %v2740_v59 = vadd.f32 %v2739_v3, %v2738_v24  ;;  %v2451_v32 = vpop.permute.xlu1 %2450 }
 0x4d3   : > { %3213 = vst.msk [vmem:[%s4970_s25 + $0x8] sm:$0xff] %vm332_vm1, %v3205_v40  ;;  %v2623_v47 = vmul.f32 %v2451_v32, %v4424_v18 }
 0x4d4   : > { %v2742_v61 = vadd.f32 %v2741_v14, %v2740_v59  ;;  %v3560_v59 = vld [vmem:[%s3659_s19 + $0x18] sm:$0xff] }
 0x4d5   : > { %v2726_v56 = vsel %vm332_vm1, %v2623_v47, 0.0 }
 0x4d6   : > { %v2563_v48 = vpop.permute.xlu1 %2562  ;;  %v2727_v36 = vadd.f32 %v2726_v56, %v2725_v5  ;;  %v2730_v5 = vsel %vm332_vm1, %v2625_v7, 0.0 }
 0x4d7   : > { %v2639_v51 = vmul.f32 %v2563_v48, %v4424_v18  ;;  %v3559_v18 = vld [vmem:[%s3659_s19 + $0x20] sm:$0xff] }
 0x4d9   : > { %v2756_v13 = vsel %vm332_vm1, %v2639_v51, 0.0 }
 0x4da   : > { %v2757_v39 = vadd.f32 %v2756_v13, %v2755_v52  ;;  %v2514_v23 = vpop.permute.xlu1 %2513 }
 0x4db   : > { %v2632_v1 = vmul.f32 %v2514_v23, %v5072_v25  ;;  %v3562_v23 = vld [vmem:[%s3659_s19 + $0x30] sm:$0xff] }
 0x4dc   : > { %v2759_v11 = vadd.f32 %v2758_v58, %v2757_v39 }
 0x4dd   : > { %v2743_v15 = vsel %vm332_vm1, %v2632_v1, 0.0 }
 0x4de   : > { %v2409_v53 = vpop.permute.xlu1 %2408  ;;  %v4983_v46 = vadd.f32 %v2760_v28, %v2759_v11 }
 0x4df   : > { %v2617_v63 = vmul.f32 %v2409_v53, %v5070_v57  ;;  %v3563_v53 = vld [vmem:[%s3659_s19 + $0x38] sm:$0xff] }
 0x4e1   : > { %v2715_v8 = vsel %vm332_vm1, %v2617_v63, 0.0 }
 0x4e2   : > { %v2521_v26 = vpop.permute.xlu1 %2520  ;;  %v2716_v16 = vadd.f32 %v2715_v8, %v2714_v49 }
 0x4e4   : > { %v3004_v34 = vadd.f32 %v4777_v2, %v2716_v16 }
 0x4e6   : > { %v3160_v4 = vpop.permute.xlu1 %3159 }
 0x4e7   : > { %v3189_v35 = vmul.f32 %v3160_v4, %v4767_v21 }
 0x4e9   : > { %v3198_v31 = vmul.f32 %v4957_v54, %v3189_v35 }
 0x4ea   : > { %v3150_v22 = vpop.permute.xlu1 %3149 }
 0x4eb   : > { %v3206_v24 = vadd.f32 %v3557_v20, %v3198_v31  ;;  %v3187_v43 = vmul.f32 %v3150_v22, %v4762_v50  ;;  %v2624_v50 = vmul.f32 %v4928_v41, %v5072_v25  ;;  %v2633_v41 = vmul.f32 %v2521_v26, %v5070_v57 }
 0x4ec   : > { %v2744_v25 = vadd.f32 %v2743_v15, %v2742_v61 }
 0x4ed   : > { %3214 = vst.msk [vmem:[%s4970_s25 + $0x10] sm:$0xff] %vm332_vm1, %v3206_v24  ;;  %v3196_v60 = vmul.f32 %v4957_v54, %v3187_v43  ;;  %v2728_v2 = vsel %vm332_vm1, %v2624_v50, 0.0  ;;  %v2745_v29 = vsel %vm332_vm1, %v2633_v41, 0.0 }
 0x4ee   : > { %v3170_v21 = vpop.permute.xlu1 %3169  ;;  %v2729_v38 = vadd.f32 %v2728_v2, %v2727_v36  ;;  %v2746_v62 = vadd.f32 %v2745_v29, %v2744_v25 }
 0x4ef   : > { %v3204_v12 = vadd.f32 %v3558_v33, %v3196_v60  ;;  %v3191_v42 = vmul.f32 %v3170_v21, %v3004_v34 }
 0x4f0   : > { %v2731_v3 = vadd.f32 %v2730_v5, %v2729_v38  ;;  %v3096_v19 = vadd.f32 %v4786_v9, %v2746_v62 }
 0x4f1   : > { %3212 = vst.msk [vmem:[%s4970_s25] sm:$0xff] %vm332_vm1, %v3204_v12  ;;  %v3200_v30 = vmul.f32 %v4957_v54, %v3191_v42 }
 0x4f2   : > { %v3050_v57 = vadd.f32 %v4764_v6, %v2731_v3  ;;  %v3142_v6 = vadd.f32 %v4775_v44, %v4983_v46 }
 0x4f3   : > { %v3208_v17 = vadd.f32 %v3559_v18, %v3200_v30 }
 0x4f5   : > { %3216 = vst.msk [vmem:[%s4970_s25 + $0x20] sm:$0xff] %vm332_vm1, %v3208_v17 }
 0x4f9   : > { %v3165_v55 = vpop.permute.xlu0 %3164 }
 0x4fa   : > { %v3190_v52 = vmul.f32 %v3165_v55, %v2958_v27 }
 0x4fc   : > { %v3199_v40 = vmul.f32 %v4957_v54, %v3190_v52 }
 0x4fe   : > { %v3207_v32 = vadd.f32 %v3560_v59, %v3199_v40 }
 0x500   : > { %3215 = vst.msk [vmem:[%s4970_s25 + $0x18] sm:$0xff] %vm332_vm1, %v3207_v32 }
 0x501   : > { %v3175_v10 = vpop.permute.xlu0 %3174 }
 0x502   : > { %v3192_v14 = vmul.f32 %v3175_v10, %v3050_v57 }
 0x504   : > { %v3201_v48 = vmul.f32 %v4957_v54, %v3192_v14 }
 0x505   : > { %v3180_v51 = vpop.permute.xlu1 %3179 }
 0x506   : > { %v3209_v61 = vadd.f32 %v3561_v37, %v3201_v48  ;;  %v3193_v13 = vmul.f32 %v3180_v51, %v3096_v19 }
 0x508   : > { %3217 = vst.msk [vmem:[%s4970_s25 + $0x28] sm:$0xff] %vm332_vm1, %v3209_v61  ;;  %v3202_v39 = vmul.f32 %v4957_v54, %v3193_v13 }
 0x50a   : > { %v3210_v58 = vadd.f32 %v3562_v23, %v3202_v39 }
 0x50c   : > { %3218 = vst.msk [vmem:[%s4970_s25 + $0x30] sm:$0xff] %vm332_vm1, %v3210_v58 }
 0x536   : > { %v3185_v11 = vpop.permute.xlu0 %3184 }
 0x537   : > { %v3194_v28 = vmul.f32 %v3185_v11, %v3142_v6 }
 0x539   : > { %v3203_v9 = vmul.f32 %v4957_v54, %v3194_v28 }
 0x53b   : > { %v3211_v0 = vadd.f32 %v3563_v53, %v3203_v9 }
 0x53d   : > { %3219 = vst.msk [vmem:[%s4970_s25 + $0x38] sm:$0xff] %vm332_vm1, %v3211_v0 }
 0x53e PF: > { %s23_s11 = sadd.s32 1, %s3570_s11  }
 0x53f   : > { %p20_p4 = scmp.ge.s32.totalorder %s23_s11, 4  }
 0x541   :  { %22 = sbr.rel (!%p20_p4) target bundleno = 3 (0x3), region = 82 }

// kernel: rcca_forward.10
= control target key start
LH: loop header
LB: loop body
LE: loop exit
PB: predicated region body
PF: predicated region fallthrough
CT: control target
= control target key end

     0   :  { %s3034_s27 = smov 0   ;;  %s3936_s0 = inlined_call_operand.vmem [shape: f32[2,10,10,32], index: 0, kind: input, shape index: {}]   ;;  %s3937_s1 = inlined_call_operand.vmem [shape: f32[2,10,10,8], index: 1, kind: input, shape index: {}]   ;;  %s3938_s2 = inlined_call_operand.vmem [shape: bf16[9,32,8], index: 2, kind: input, shape index: {}]   ;;  %s3939_s3 = inlined_call_operand.vmem [shape: bf16[9,8,8], index: 3, kind: input, shape index: {}]   ;;  %s3940_s4 = inlined_call_operand.vmem [shape: f32[1,8], index: 4, kind: input, shape index: {}]   ;;  %s3941_s5 = inlined_call_operand.vmem [shape: f32[1,8], index: 5, kind: input, shape index: {}]   ;;  %s3942_s6 = inlined_call_operand.vmem [shape: bf16[8,5], index: 6, kind: input, shape index: {}]   ;;  %s3943_s7 = inlined_call_operand.vmem [shape: f32[1,5], index: 7, kind: input, shape index: {}]   ;;  %s3944_s8 = inlined_call_operand.vmem [shape: f32[2,8,8,5], index: 8, kind: output, shape index: {}]  }
   0x1 LB: > { %s2480_s28 = sadd.s32 4294967295, %s2987_s27   ;;  %p2484_p0 = scmp.ge.s32.totalorder %s2987_s27, 1  ;;  %s2987_s27 = sphi %s3034_s27, %s18_s27  }
   0x2   : > { %p272_p1 = scmp.lt.s32.totalorder %s2987_s27, 3 }
   0x4   : > { %p273_p2 = pnand %p2484_p0, %p272_p1 }
   0x6   : > { %276 = sbr.rel (%p273_p2) target bundleno = 576 (0x240), region = 52 }
   0xb   : > { %v379_v0 = vld [vmem:[%s3939_s3] sm:$0xf]  ;;  %vm393_vm0 = vcmask 1043456   ;;  %p311_p3 = scmp.lt.s32.totalorder %s2480_s28, 1  ;;  %v2963_v1 = vld [vmem:[%s3938_s2 + $0x8] sm:$0xff]   ;;  %v2964_v3 = vld [vmem:[%s3938_s2 + $0x18] sm:$0xff]  }
   0xc   : > { %2944 = vmatprep.subr.msk.bf16.mxu1 %vm393_vm0, %v379_v0  ;;  %v395_v2 = vsel %vm393_vm0, %v379_v0, 0  ;;  %2943 = vmatprep.subr.msk.bf16.mxu0 %vm393_vm0, %v379_v0  ;;  %v3070_v4 = vld [vmem:[%s3939_s3 + $0x4] sm:$0xf]  ;;  %vm380_vm1 = vcmask 64512   ;;  %vm474_vm2 = vcmask 261120   ;;  %vm568_vm3 = vcmask 1046528  }
   0xd   : > { %2942 = vmatpush3.bf16.msra.mxu1 %v395_v2  ;;  %2734 = vmatpush3.bf16.msra.mxu0 %v395_v2  ;;  %s4020_s28 = smov (!%p311_p3, %s2480_s28), 1  ;;  %v2965_v18 = vld [vmem:[%s3938_s2] sm:$0xff]   ;;  %v2966_v19 = vld [vmem:[%s3938_s2 + $0x10] sm:$0xff]   ;;  %v3123_v21 = vsel %vm393_vm0, %v3070_v4, 0  ;;  %v2967_v39 = vld [vmem:[%s3938_s2 + $0x28] sm:$0xff]   ;;  %vm849_vm4 = vcmask 1045504  }
   0xe   : > { %2743 = vmatprep.subr.bf16.mxu1 %v2963_v1  ;;  %2755 = vmatprep.subr.bf16.mxu0 %v2964_v3  ;;  %s2954_s13 = smul.u32 160, %s4020_s28  ;;  %s2628_s14 = sshll.u32 %s4020_s28, 6  ;;  %vm2404_vm5 = vcmask 39936  }
   0xf   : > { %s325_s21 = scalar_lea.vmem %s3944_s8, %s2628_s14 }
  0x10   : > { %s3060_s16 = scalar_lea.vmem %s3936_s0, %s2954_s13  ;;  %s3065_s19 = scalar_lea.vmem %s3937_s1, %s2954_s13 }
  0x11   : > { %v3073_v5 = vld [vmem:[%s3065_s19 + $0x30] sm:$0xff]  ;;  %v3076_v6 = vld [vmem:[%s3065_s19 + $0x40] sm:$0xff]  ;;  %v3136_v27 = vld [vmem:[%s3060_s16 + $0x8] sm:$0x3] }
  0x12   : > { %v3079_v7 = vld [vmem:[%s3065_s19 + $0x50] sm:$0xff]  ;;  %v3086_v9 = vld [vmem:[%s3065_s19 + $0x60] sm:$0xff]  ;;  %v630_v15 = vrot.slane %v3073_v5, 1  ;;  %v3149_v32 = vld [vmem:[%s3060_s16 + $0x18] sm:$0x3]  ;;  %v570_v36 = vrot.slane %v3136_v27, 1 }
  0x13   : > { %v3083_v8 = vpack.c.bf16 %v3079_v7, %v3076_v6  ;;  %v3089_v10 = vld [vmem:[%s3065_s19 + $0x70] sm:$0xff]  ;;  %v3092_v11 = vld [vmem:[%s3065_s19] sm:$0xff]  ;;  %v3160_v37 = vld [vmem:[%s3060_s16 + $0x28] sm:$0x3]  ;;  %v573_v41 = vrot.slane %v3149_v32, 1  ;;  %v854_v45 = vrot.slane %v3149_v32, 2 }
  0x14   : > { %v3095_v12 = vld [vmem:[%s3065_s19 + $0x10] sm:$0xff]  ;;  %v3098_v13 = vld [vmem:[%s3065_s19 + $0x20] sm:$0xff]  ;;  %v3108_v16 = vpack.c.bf16 %v3089_v10, %v3086_v9  ;;  %v621_v23 = vrot.slane %v3092_v11, 1  ;;  %v3171_v42 = vld [vmem:[%s3060_s16 + $0x38] sm:$0x3]  ;;  %v576_v44 = vrot.slane %v3160_v37, 1 }
  0x15   : > { %3961 = vst [vmem:[#allocation2_spill] sm:$0xff] %v3083_v8  ;;  %v3101_v14 = vld [vmem:[%s3060_s16] sm:$0xff]  ;;  %2739 = vmatprep.mubr.msk.bf16.mxu1 %vm380_vm1, %v3083_v8  ;;  %v371_v17 = vpack.c.bf16 %v3095_v12, %v3092_v11  ;;  %v3119_v20 = vld [vmem:[%s3060_s16 + $0x10] sm:$0xff]  ;;  %v624_v24 = vrot.slane %v3095_v12, 1  ;;  %v3130_v25 = vpack.c.bf16 %v3073_v5, %v3098_v13  ;;  %v627_v28 = vrot.slane %v3098_v13, 1 }
  0x16   : > { %3962 = vst [vmem:[#allocation3_spill] sm:$0xff] %v3108_v16  ;;  %v3133_v26 = vld [vmem:[%s3060_s16 + $0x20] sm:$0xff]  ;;  %2740 = vmatmul.mubr.msk.bf16.vlgmr.msra.gmra.mxu1 %vm380_vm1, %v3108_v16  ;;  %v367_v29 = vpack.c.bf16 %v3119_v20, %v3101_v14  ;;  %v569_v30 = vrot.slane %v3101_v14, 1  ;;  %v3146_v31 = vld [vmem:[%s3060_s16 + $0x30] sm:$0xff]  ;;  %v850_v34 = vrot.slane %v3101_v14, 2  ;;  %v572_v40 = vrot.slane %v3119_v20, 1 }
  0x17   : > { %3963 = vst [vmem:[#allocation4_spill] sm:$0xff] %v3130_v25  ;;  %2735 = vmatprep.mubr.msk.bf16.mxu0 %vm380_vm1, %v371_v17  ;;  %v3152_v33 = vld [vmem:[%s3060_s16 + $0x40] sm:$0xff]  ;;  %2744 = vmatpush3.bf16.msra.mxu1 %v2963_v1  ;;  %v3163_v38 = vld [vmem:[%s3060_s16 + $0x50] sm:$0xff]  ;;  %v575_v43 = vrot.slane %v3133_v26, 1  ;;  %v578_v47 = vrot.slane %v3146_v31, 1  ;;  %v579_v48 = vrot.slane %v3171_v42, 1  ;;  %v3188_v51 = vpack.c.bf16 %v3146_v31, %v3133_v26 }
  0x18   : > { %2736 = vmatmul.mubr.msk.bf16.vlgmr.msra.gmra.mxu0 %vm380_vm1, %v3130_v25  ;;  %2745 = vmatprep.subr.bf16.mxu1 %v2965_v18  ;;  %v571_v46 = vsel %vm568_vm3, %v569_v30, %v570_v36  ;;  %v3181_v49 = vld [vmem:[%s3060_s16 + $0x60] sm:$0xff]  ;;  %v3184_v50 = vld [vmem:[%s3060_s16 + $0x48] sm:$0x3]  ;;  %v3191_v52 = vsel %vm568_vm3, %v572_v40, %v573_v41  ;;  %v857_v54 = vrot.slane %v3160_v37, 2  ;;  %v3198_v55 = vld [vmem:[%s3060_s16 + $0x70] sm:$0xff]  ;;  %v3212_v60 = vpack.c.bf16 %v3163_v38, %v3152_v33 }
  0x19   : > { %2756 = vmatpush3.bf16.msra.mxu0 %v2964_v3  ;;  %2747 = vmatprep.mubr.msk.bf16.mxu1 %vm474_vm2, %v367_v29  ;;  %v3194_v53 = vsel %vm568_vm3, %v575_v43, %v576_v44  ;;  %v3201_v56 = vld [vmem:[%s3060_s16 + $0x58] sm:$0x3]  ;;  %v3204_v57 = vld [vmem:[%s3060_s16 + $0x68] sm:$0x3]  ;;  %v601_v58 = vpack.c.bf16 %v3191_v52, %v571_v46  ;;  %v3208_v59 = vsel %vm568_vm3, %v578_v47, %v579_v48  ;;  %v581_v1 = vrot.slane %v3152_v33, 1  ;;  %v2968_v17 = vld [vmem:[%s3938_s2 + $0x20] sm:$0xff]  }
  0x1a   : > { %2757 = vmatprep.subr.bf16.mxu0 %v2966_v19  ;;  %v3215_v61 = vld [vmem:[%s3060_s16 + $0x78] sm:$0x3]  ;;  %v3218_v62 = vld [vmem:[%s3065_s19 + $0x8] sm:$0x3]  ;;  %v3227_v0 = vpack.c.bf16 %v3208_v59, %v3194_v53  ;;  %v582_v2 = vrot.slane %v3184_v50, 1  ;;  %v584_v3 = vrot.slane %v3163_v38, 1 }
  0x1b   : > { %2746 = vmatpush3.bf16.msra.mxu1 %v2965_v18  ;;  %v3221_v63 = vld [vmem:[%s3065_s19 + $0x18] sm:$0x3]  ;;  %v2524_v18 = vld [vmem:[%s3939_s3 + $0x8] sm:$0xf]  ;;  %2759 = vmatprep.mubr.msk.bf16.mxu0 %vm474_vm2, %v601_v58  ;;  %v588_v29 = vrot.slane %v3204_v57, 1  ;;  %v590_v30 = vrot.slane %v3198_v55, 1 }
  0x1c   : > { %2945 = vmatprep.subr.msk.bf16.mxu1 %vm393_vm0, %v3070_v4  ;;  %3964 = vst [vmem:[#allocation5_spill] sm:$0xff] %v3227_v0  ;;  %v585_v4 = vrot.slane %v3201_v56, 1  ;;  %v3244_v36 = vld [vmem:[%s3065_s19 + $0x28] sm:$0x3]  ;;  %v3249_v40 = vsel %vm568_vm3, %v581_v1, %v582_v2  ;;  %v591_v41 = vrot.slane %v3215_v61, 1  ;;  %v622_v43 = vrot.slane %v3218_v62, 1 }
  0x1d   : > { %2758 = vmatpush3.bf16.msra.mxu0 %v2966_v19  ;;  %v587_v19 = vrot.slane %v3181_v49, 1  ;;  %v625_v44 = vrot.slane %v3221_v63, 1  ;;  %v3255_v46 = vld [vmem:[%s3065_s19 + $0x38] sm:$0x3]  ;;  %v860_v47 = vrot.slane %v3171_v42, 2  ;;  %v628_v1 = vrot.slane %v3244_v36, 1 }
  0x1e   : > { %2777 = vmatprep.subr.bf16.mxu0 %v2967_v39  ;;  %2748 = vmatmul.mubr.msk.bf16.vlgmr.msra.gmra.mxu1 %vm474_vm2, %v3188_v51  ;;  %v3262_v48 = vsel %vm568_vm3, %v584_v3, %v585_v4  ;;  %v3275_v2 = vsel %vm568_vm3, %v590_v30, %v591_v41  ;;  %v623_v42 = vsel %vm568_vm3, %v621_v23, %v622_v43  ;;  %v631_v3 = vrot.slane %v3255_v46, 1  ;;  %v3282_v4 = vld [vmem:[%s3065_s19 + $0x48] sm:$0x3] }
  0x1f   : > { %2768 = vmatpush3.bf16.msra.mxu1 %v3123_v21  ;;  %v3265_v58 = vsel %vm568_vm3, %v587_v19, %v588_v29  ;;  %2751 = vmatprep.mubr.msk.bf16.mxu1 %vm474_vm2, %v3212_v60  ;;  %v3272_v21 = vpack.c.bf16 %v3262_v48, %v3249_v40  ;;  %v3287_v19 = vld [vmem:[%s3938_s2 + $0x38] sm:$0xff]   ;;  %v3292_v29 = vsel %vm568_vm3, %v624_v24, %v625_v44  ;;  %v851_v41 = vrot.slane %v3136_v27, 2 }
  0x20   : > { %2760 = vmatmul.mubr.msk.bf16.vlgmr.msra.gmra.mxu0 %vm474_vm2, %v3227_v0  ;;  %2946 = vmatprep.subr.msk.bf16.mxu1 %vm393_vm0, %v2524_v18  ;;  %v3300_v23 = vpack.c.bf16 %v3198_v55, %v3181_v49  ;;  %v3306_v30 = vpack.c.bf16 %v3275_v2, %v3265_v58  ;;  %v853_v24 = vrot.slane %v3119_v20, 2  ;;  %v653_v43 = vpack.c.bf16 %v3292_v29, %v623_v42 }
  0x21   : > { %3965 = vst [vmem:[#allocation6_spill] sm:$0xff] %v3272_v21  ;;  %2778 = vmatpush3.bf16.msra.mxu0 %v2967_v39  ;;  %v3296_v39 = vld [vmem:[%s3065_s19 + $0x58] sm:$0x3]  ;;  %2763 = vmatprep.mubr.msk.bf16.mxu0 %vm474_vm2, %v3272_v21  ;;  %v3314_v44 = vsel %vm568_vm3, %v627_v28, %v628_v1  ;;  %v3319_v22 = vsel %vm568_vm3, %v630_v15, %v631_v3  ;;  %v636_v35 = vrot.slane %v3079_v7, 1  ;;  %v886_v27 = vrot.slane %v3092_v11, 2 }
  0x22   : > { %2779 = vmatprep.subr.bf16.mxu0 %v2968_v17  ;;  %3966 = vst [vmem:[#allocation7_spill] sm:$0xff] %v3300_v23  ;;  %3967 = vst [vmem:[#allocation8_spill] sm:$0xff] %v3306_v30  ;;  %v852_v42 = vsel %vm849_vm4, %v850_v34, %v851_v41  ;;  %v3328_v28 = vsel %vm849_vm4, %v853_v24, %v854_v45  ;;  %v634_v1 = vrot.slane %v3282_v4, 1  ;;  %v637_v15 = vrot.slane %v3296_v39, 1  ;;  %v3333_v3 = vld [vmem:[%s3065_s19 + $0x68] sm:$0x3] }
  0x23   : > { %v889_v32 = vrot.slane %v3095_v12, 2  ;;  %v3341_v11 = vpack.c.bf16 %v3319_v22, %v3314_v44  ;;  %v1039_v14 = vsel %vm393_vm0, %v2524_v18, 0  ;;  %v882_v34 = vpack.c.bf16 %v3328_v28, %v852_v42  ;;  %v3346_v45 = vld [vmem:[%s3065_s19 + $0x78] sm:$0x3] }
  0x24   : > { %v3970_v24 = vrot.slane %v3146_v31, 2  ;;  %v639_v42 = vrot.slane %v3086_v9, 1  ;;  %v862_v16 = vrot.slane %v3152_v33, 2  ;;  %v863_v37 = vrot.slane %v3184_v50, 2 }
  0x25   : > { %2780 = vmatpush3.bf16.msra.mxu0 %v2968_v17  ;;  %3968 = vst [vmem:[#allocation9_spill] sm:$0xff] %v3341_v11  ;;  %v3969_v17 = vrot.slane %v3133_v26, 2  ;;  %v869_v0 = vrot.slane %v3204_v57, 2  ;;  %v890_v57 = vrot.slane %v3221_v63, 2 }
  0x26   : > { %2799 = vmatprep.subr.bf16.mxu0 %v3287_v19  ;;  %2752 = vmatmul.mubr.msk.bf16.gmra.mxu1 %vm474_vm2, %v3300_v23  ;;  %v3361_v18 = vsel %vm849_vm4, %v3970_v24, %v860_v47  ;;  %v3376_v47 = vsel %vm568_vm3, %v636_v35, %v637_v15  ;;  %v642_v24 = vrot.slane %v3089_v10, 1  ;;  %v3381_v8 = vsel %vm849_vm4, %v862_v16, %v863_v37  ;;  %v2970_v37 = vld [vmem:[%s3938_s2 + $0x30] sm:$0xff]   ;;  %v2972_v23 = vld [vmem:[%s3938_s2 + $0x40] sm:$0xff]  }
  0x27   : > { %2769 = vmatprep.mubr.msk.bf16.mxu1 %vm380_vm1, %v653_v43  ;;  %v3356_v41 = vsel %vm849_vm4, %v3969_v17, %v857_v54  ;;  %v640_v43 = vrot.slane %v3333_v3, 1  ;;  %v866_v54 = vrot.slane %v3201_v56, 2  ;;  %v3971_v17 = vrot.slane %v3076_v6, 1 }
  0x28   : > { %2764 = vmatmul.mubr.msk.bf16.gmra.mxu0 %vm474_vm2, %v3306_v30  ;;  %v865_v30 = vrot.slane %v3163_v38, 2  ;;  %v868_v56 = vrot.slane %v3181_v49, 2  ;;  %v871_v35 = vrot.slane %v3198_v55, 2  ;;  %v872_v15 = vrot.slane %v3215_v61, 2  ;;  %v2539_v61 = vld [vmem:[%s3939_s3 + $0xc] sm:$0xf] }
  0x29   : > { %2781 = vmatprep.mubr.msk.bf16.mxu0 %vm474_vm2, %v882_v34  ;;  %v3373_v21 = vsel %vm568_vm3, %v3971_v17, %v634_v1  ;;  %v643_v34 = vrot.slane %v3346_v45, 1  ;;  %v3390_v1 = vpack.c.bf16 %v3361_v18, %v3356_v41 }
  0x2a   : > { %v3384_v50 = vsel %vm849_vm4, %v865_v30, %v866_v54  ;;  %v3396_v17 = vpack.c.bf16 %v3376_v47, %v3373_v21  ;;  %v887_v30 = vrot.slane %v3218_v62, 2  ;;  %v895_v54 = vrot.slane %v3073_v5, 2 }
  0x2b   : > { %3972 = vst [vmem:[#allocation10_spill] sm:$0xff] %v3390_v1  ;;  %v3400_v16 = vpack.c.bf16 %v3384_v50, %v3381_v8  ;;  %v3416_v62 = vsel %vm568_vm3, %v639_v42, %v640_v43  ;;  %v3419_v63 = vsel %vm568_vm3, %v642_v24, %v643_v34  ;;  %v3422_v25 = vsel %vm849_vm4, %v868_v56, %v869_v0  ;;  %v3437_v24 = vld [vmem:[%s3065_s19 + $0x80] sm:$0xff]  ;;  %v3445_v34 = vld [vmem:[%s3938_s2 + $0x48] sm:$0xff]  }
  0x2c   : > { %3973 = vst [vmem:[#allocation11_spill] sm:$0xff] %v3396_v17  ;;  %v888_v42 = vsel %vm849_vm4, %v886_v27, %v887_v30  ;;  %v3434_v43 = vsel %vm849_vm4, %v889_v32, %v890_v57  ;;  %v892_v0 = vrot.slane %v3098_v13, 2  ;;  %v3449_v56 = vpack.c.bf16 %v3419_v63, %v3416_v62  ;;  %v364_v57 = vld [vmem:[%s3065_s19 + $0x88] sm:$0x3] }
  0x2d   : > { %3974 = vst [vmem:[#allocation12_spill] sm:$0xff] %v3400_v16  ;;  %v893_v27 = vrot.slane %v3244_v36, 2  ;;  %v896_v32 = vrot.slane %v3255_v46, 2  ;;  %v902_v36 = vrot.slane %v3296_v39, 2  ;;  %v1326_v46 = vrot.slane %v3437_v24, 1 }
  0x2e   : > { %2770 = vmatmul.mubr.msk.bf16.vlgmr.msra.gmra.mxu1 %vm380_vm1, %v3341_v11  ;;  %v898_v11 = vrot.slane %v3076_v6, 2  ;;  %3975 = vst [vmem:[#allocation13_spill] sm:$0xff] %v3449_v56  ;;  %v1327_v30 = vrot.slane %v364_v57, 1 }
  0x2f   : > { %2790 = vmatpush3.bf16.msra.mxu1 %v1039_v14  ;;  %2773 = vmatprep.mubr.msk.bf16.mxu1 %vm380_vm1, %v3396_v17  ;;  %v3430_v14 = vsel %vm849_vm4, %v871_v35, %v872_v15  ;;  %v899_v15 = vrot.slane %v3282_v4, 2  ;;  %v1114_v17 = vpack.c.bf16 %v3133_v26, %v3119_v20  ;;  %v3470_v4 = vsel %vm849_vm4, %v892_v0, %v893_v27  ;;  %v3492_v27 = vld [vmem:[%s3060_s16 + $0x90] sm:$0xff] }
  0x30   : > { %2782 = vmatmul.mubr.msk.bf16.vlgmr.msra.gmra.mxu0 %vm474_vm2, %v3390_v1  ;;  %2947 = vmatprep.subr.msk.bf16.mxu1 %vm393_vm0, %v2539_v61  ;;  %v3455_v35 = vpack.c.bf16 %v3430_v14, %v3422_v25  ;;  %v1239_v20 = vsel %vm393_vm0, %v2539_v61, 0  ;;  %v1535_v0 = vrot.slane %v364_v57, 2  ;;  %3977 = vst [vmem:[#allocation15_spill] sm:$0xff] %v3492_v27  ;;  %v1115_v61 = vpack.c.bf16 %v3152_v33, %v3146_v31  ;;  %v3511_v31 = vld [vmem:[%s3065_s19 + $0x90] sm:$0xff] }
  0x31   : > { %2785 = vmatprep.mubr.msk.bf16.mxu0 %vm474_vm2, %v3400_v16  ;;  %2800 = vmatpush3.bf16.msra.mxu0 %v3287_v19  ;;  %v918_v19 = vpack.c.bf16 %v3434_v43, %v888_v42  ;;  %v901_v16 = vrot.slane %v3079_v7, 2  ;;  %v3473_v42 = vsel %vm849_vm4, %v895_v54, %v896_v32  ;;  %v3481_v26 = vsel %vm849_vm4, %v898_v11, %v899_v15  ;;  %v346_v32 = vld [vmem:[%s3060_s16 + $0x98] sm:$0x3] }
  0x32   : > { %2801 = vmatprep.subr.bf16.mxu0 %v2970_v37  ;;  %3976 = vst [vmem:[#allocation14_spill] sm:$0xff] %v3455_v35  ;;  %v1534_v54 = vrot.slane %v3437_v24, 2  ;;  %v3498_v11 = vpack.c.bf16 %v3473_v42, %v3470_v4  ;;  %v907_v15 = vrot.slane %v3089_v10, 2  ;;  %v1912_v57 = vrot.slane %v3492_v27, 1  ;;  %3979 = vst [vmem:[#allocation17_spill] sm:$0xff] %v3511_v31 }
  0x33   : > { %v3485_v39 = vsel %vm849_vm4, %v901_v16, %v902_v36  ;;  %v905_v16 = vrot.slane %v3333_v3, 2  ;;  %v2098_v36 = vrot.slane %v3492_v27, 2  ;;  %v1116_v3 = vpack.c.bf16 %v3181_v49, %v3163_v38  ;;  %v2554_v38 = vld [vmem:[%s3939_s3 + $0x10] sm:$0xf] }
  0x34   : > { %3978 = vst [vmem:[#allocation16_spill] sm:$0xff] %v3498_v11  ;;  %v3515_v33 = vpack.c.bf16 %v3485_v39, %v3481_v26  ;;  %v2099_v1 = vrot.slane %v346_v32, 2 }
  0x35   : > { %2802 = vmatpush3.bf16.msra.mxu0 %v2970_v37  ;;  %v3488_v37 = vsel %vm568_vm3, %v1326_v46, %v1327_v30  ;;  %v3506_v30 = vsel %vm849_vm4, %v1534_v54, %v1535_v0  ;;  %v908_v46 = vrot.slane %v3346_v45, 2  ;;  %v2103_v54 = vrot.slane %v3511_v31, 2 }
  0x36   : > { %2774 = vmatmul.mubr.msk.bf16.gmra.mxu1 %vm380_vm1, %v3449_v56  ;;  %2821 = vmatprep.subr.bf16.mxu0 %v3445_v34  ;;  %v1913_v0 = vrot.slane %v346_v32, 1  ;;  %v3537_v32 = vsel %vm849_vm4, %v2098_v36, %v2099_v1 }
  0x37   : > { %2791 = vmatprep.mubr.msk.bf16.mxu1 %vm380_vm1, %v918_v19  ;;  %v366_v19 = vld [vmem:[%s3065_s19 + $0x98] sm:$0x3] }
  0x38   : > { %2786 = vmatmul.mubr.msk.bf16.gmra.mxu0 %vm474_vm2, %v3455_v35  ;;  %v1919_v35 = vrot.slane %v3511_v31, 1  ;;  %v1920_v56 = vrot.slane %v366_v19, 1  ;;  %v2104_v27 = vrot.slane %v366_v19, 2  ;;  %v3531_v49 = vsel %vm568_vm3, %v1912_v57, %v1913_v0  ;;  %v2614_v0 = vld [vmem:[%s3939_s3 + $0x20] sm:$0xf] }
  0x39   : > { %2803 = vmatprep.mubr.msk.bf16.mxu0 %vm474_vm2, %v1114_v17  ;;  %v904_v17 = vrot.slane %v3086_v9, 2 }
  0x3a   : > { %v3534_v45 = vsel %vm568_vm3, %v1919_v35, %v1920_v56  ;;  %v3552_v56 = vld [vmem:[%s3060_s16 + $0x80] sm:$0xff]  ;;  %v3555_v1 = vsel %vm849_vm4, %v2103_v54, %v2104_v27 }
  0x3b   : > { %v3541_v19 = vsel %vm849_vm4, %v904_v17, %v905_v16  ;;  %v1923_v31 = vpack.c.bf16 %v3534_v45, %v3488_v37  ;;  %v2107_v35 = vpack.c.bf16 %v3555_v1, %v3506_v30  ;;  %v1117_v27 = vpack.c.bf16 %v3552_v56, %v3198_v55  ;;  %v344_v16 = vld [vmem:[%s3060_s16 + $0x88] sm:$0x3]  ;;  %v2980_v54 = vld [vmem:[%s3938_s2 + $0x80] sm:$0xff]  }
  0x3c   : > { %v1320_v17 = vpack.c.bf16 %v3194_v53, %v3191_v52  ;;  %v1119_v55 = vpack.c.bf16 %v3076_v6, %v3073_v5  ;;  %v1120_v52 = vpack.c.bf16 %v3086_v9, %v3079_v7  ;;  %v1322_v53 = vpack.c.bf16 %v3265_v58, %v3262_v48  ;;  %v2974_v5 = vld [vmem:[%s3938_s2 + $0x50] sm:$0xff]   ;;  %v2975_v9 = vld [vmem:[%s3938_s2 + $0x68] sm:$0xff]  }
  0x3d   : > { %v2569_v6 = vld [vmem:[%s3939_s3 + $0x14] sm:$0xf]  ;;  %v1530_v48 = vpack.c.bf16 %v3356_v41, %v3328_v28  ;;  %v3980_v58 = vpack.c.bf16 %v3437_v24, %v3089_v10  ;;  %v1332_v10 = vpack.c.bf16 %v3416_v62, %v3376_v47  ;;  %v1532_v28 = vpack.c.bf16 %v3422_v25, %v3384_v50 }
  0x3e   : > { %2792 = vmatmul.mubr.msk.bf16.vlgmr.msra.gmra.mxu1 %vm380_vm1, %v3498_v11  ;;  %v3544_v11 = vsel %vm849_vm4, %v907_v15, %v908_v46  ;;  %v1317_v15 = vrot.slane %v344_v16, 1  ;;  %v1526_v41 = vrot.slane %v3552_v56, 2  ;;  %v1527_v57 = vrot.slane %v344_v16, 2  ;;  %v3984_v46 = vld [vmem:[#allocation5_spill] sm:$0xff]  ;;  %v3991_v16 = vld [vmem:[#allocation10_spill] sm:$0xff] }
  0x3f   : > { %2812 = vmatpush3.bf16.msra.mxu1 %v1239_v20  ;;  %2795 = vmatprep.mubr.msk.bf16.mxu1 %vm380_vm1, %v3515_v33  ;;  %v3563_v20 = vpack.c.bf16 %v3544_v11, %v3541_v19  ;;  %v1538_v50 = vpack.c.bf16 %v3470_v4, %v3434_v43  ;;  %v1539_v62 = vpack.c.bf16 %v3481_v26, %v3473_v42  ;;  %v2978_v43 = vld [vmem:[%s3938_s2 + $0x70] sm:$0xff]   ;;  %v2599_v4 = vld [vmem:[%s3939_s3 + $0x1c] sm:$0xf]  ;;  %v2979_v26 = vld [vmem:[%s3938_s2 + $0x88] sm:$0xff]  }
  0x40   : > { %2804 = vmatmul.mubr.msk.bf16.vlgmr.msra.gmra.mxu0 %vm474_vm2, %v1115_v61  ;;  %2948 = vmatprep.subr.msk.bf16.mxu1 %vm393_vm0, %v2554_v38  ;;  %v2973_v61 = vld [vmem:[%s3938_s2 + $0x58] sm:$0xff]   ;;  %v3641_v25 = vsel %vm849_vm4, %v1526_v41, %v1527_v57  ;;  %v1541_v42 = vpack.c.bf16 %v3506_v30, %v3544_v11  ;;  %v2023_v11 = vsel %vm393_vm0, %v2599_v4, 0 }
  0x41   : > { %2807 = vmatprep.mubr.msk.bf16.mxu0 %vm474_vm2, %v1116_v3  ;;  %2822 = vmatpush3.bf16.msra.mxu0 %v3445_v34  ;;  %v1118_v34 = vpack.c.bf16 %v3098_v13, %v3095_v12  ;;  %v1321_v12 = vpack.c.bf16 %v3249_v40, %v3208_v59  ;;  %v1451_v13 = vsel %vm393_vm0, %v2554_v38, 0  ;;  %v1330_v40 = vpack.c.bf16 %v3314_v44, %v3292_v29  ;;  %v3985_v3 = vld [vmem:[#allocation2_spill] sm:$0xff] }
  0x42   : > { %2823 = vmatprep.subr.bf16.mxu0 %v2972_v23  ;;  %v1531_v29 = vpack.c.bf16 %v3381_v8, %v3361_v18  ;;  %v1659_v44 = vsel %vm393_vm0, %v2569_v6, 0  ;;  %v2584_v8 = vld [vmem:[%s3939_s3 + $0x18] sm:$0xf]  ;;  %v1533_v47 = vpack.c.bf16 %v3641_v25, %v3430_v14  ;;  %v1540_v14 = vpack.c.bf16 %v3541_v19, %v3485_v39  ;;  %v3982_v39 = vld [vmem:[#allocation15_spill] sm:$0xff]  ;;  %v3986_v38 = vld [vmem:[#allocation6_spill] sm:$0xff] }
  0x43   : > { %v2977_v18 = vld [vmem:[%s3938_s2 + $0x78] sm:$0xff]   ;;  %v1734_v36 = vpack.c.bf16 %v3982_v39, %v3552_v56  ;;  %v3987_v19 = vld [vmem:[#allocation3_spill] sm:$0xff] }
  0x45   : > { %2824 = vmatpush3.bf16.msra.mxu0 %v2972_v23  ;;  %v1316_v23 = vrot.slane %v3552_v56, 1  ;;  %v3988_v56 = vld [vmem:[#allocation8_spill] sm:$0xff] }
  0x46   : > { %2796 = vmatmul.mubr.msk.bf16.gmra.mxu1 %vm380_vm1, %v3563_v20  ;;  %2843 = vmatprep.subr.bf16.mxu0 %v2973_v61 }
  0x47   : > { %2813 = vmatprep.mubr.msk.bf16.mxu1 %vm380_vm1, %v1118_v34  ;;  %v3601_v7 = vsel %vm568_vm3, %v1316_v23, %v1317_v15 }
  0x48   : > { %2808 = vmatmul.mubr.msk.bf16.gmra.mxu0 %vm474_vm2, %v1117_v27  ;;  %v1323_v59 = vpack.c.bf16 %v3601_v7, %v3275_v2  ;;  %v1331_v2 = vpack.c.bf16 %v3373_v21, %v3319_v22  ;;  %v2976_v22 = vld [vmem:[%s3938_s2 + $0x60] sm:$0xff]   ;;  %v1333_v21 = vpack.c.bf16 %v3488_v37, %v3419_v63  ;;  %v1835_v63 = vsel %vm393_vm0, %v2584_v8, 0 }
  0x49   : > { %2825 = vmatprep.mubr.msk.bf16.mxu0 %vm474_vm2, %v1320_v17  ;;  %v1916_v34 = vpack.c.bf16 %v3531_v49, %v3601_v7  ;;  %v3990_v17 = vld [vmem:[#allocation9_spill] sm:$0xff] }
  0x4a   : > { %v3994_v49 = vld [vmem:[#allocation13_spill] sm:$0xff] }
  0x4e   : > { %2814 = vmatmul.mubr.msk.bf16.vlgmr.msra.gmra.mxu1 %vm380_vm1, %v1119_v55  ;;  %v2207_v55 = vsel %vm393_vm0, %v2614_v0, 0 }
  0x4f   : > { %2834 = vmatpush3.bf16.msra.mxu1 %v1451_v13  ;;  %2817 = vmatprep.mubr.msk.bf16.mxu1 %vm380_vm1, %v1120_v52  ;;  %v3995_v13 = vld [vmem:[#allocation14_spill] sm:$0xff]  ;;  %v2102_v52 = vpack.c.bf16 %v3537_v32, %v3641_v25 }
  0x50   : > { %2826 = vmatmul.mubr.msk.bf16.vlgmr.msra.gmra.mxu0 %vm474_vm2, %v1321_v12  ;;  %2949 = vmatprep.subr.msk.bf16.mxu1 %vm393_vm0, %v2569_v6  ;;  %v3992_v12 = vld [vmem:[#allocation11_spill] sm:$0xff] }
  0x51   : > { %2829 = vmatprep.mubr.msk.bf16.mxu0 %vm474_vm2, %v1322_v53  ;;  %2844 = vmatpush3.bf16.msra.mxu0 %v2973_v61  ;;  %v3989_v61 = vld [vmem:[#allocation17_spill] sm:$0xff]  ;;  %v3996_v53 = vld [vmem:[#allocation16_spill] sm:$0xff] }
  0x52   : > { %2845 = vmatprep.subr.bf16.mxu0 %v2974_v5  ;;  %v1735_v27 = vpack.c.bf16 %v3989_v61, %v3437_v24  ;;  %v3993_v24 = vld [vmem:[#allocation12_spill] sm:$0xff] }
  0x55   : > { %2846 = vmatpush3.bf16.msra.mxu0 %v2974_v5 }
  0x56   : > { %2818 = vmatmul.mubr.msk.bf16.gmra.mxu1 %vm380_vm1, %v3980_v58  ;;  %2865 = vmatprep.subr.bf16.mxu0 %v2975_v9 }
  0x57   : > { %2835 = vmatprep.mubr.msk.bf16.mxu1 %vm380_vm1, %v1330_v40 }
  0x58   : > { %2830 = vmatmul.mubr.msk.bf16.gmra.mxu0 %vm474_vm2, %v1323_v59 }
  0x59   : > { %2847 = vmatprep.mubr.msk.bf16.mxu0 %vm474_vm2, %v1530_v48 }
  0x5e   : > { %2836 = vmatmul.mubr.msk.bf16.vlgmr.msra.gmra.mxu1 %vm380_vm1, %v1331_v2 }
  0x5f   : > { %2856 = vmatpush3.bf16.msra.mxu1 %v1659_v44  ;;  %2839 = vmatprep.mubr.msk.bf16.mxu1 %vm380_vm1, %v1332_v10 }
  0x60   : > { %2848 = vmatmul.mubr.msk.bf16.vlgmr.msra.gmra.mxu0 %vm474_vm2, %v1531_v29  ;;  %2950 = vmatprep.subr.msk.bf16.mxu1 %vm393_vm0, %v2584_v8 }
  0x61   : > { %2851 = vmatprep.mubr.msk.bf16.mxu0 %vm474_vm2, %v1532_v28  ;;  %2866 = vmatpush3.bf16.msra.mxu0 %v2975_v9 }
  0x62   : > { %2867 = vmatprep.subr.bf16.mxu0 %v2976_v22 }
  0x65   : > { %2868 = vmatpush3.bf16.msra.mxu0 %v2976_v22 }
  0x66   : > { %2840 = vmatmul.mubr.msk.bf16.gmra.mxu1 %vm380_vm1, %v1333_v21  ;;  %2887 = vmatprep.subr.bf16.mxu0 %v2977_v18 }
  0x67   : > { %2857 = vmatprep.mubr.msk.bf16.mxu1 %vm380_vm1, %v1538_v50 }
  0x68   : > { %2852 = vmatmul.mubr.msk.bf16.gmra.mxu0 %vm474_vm2, %v1533_v47 }
  0x69   : > { %2869 = vmatprep.mubr.msk.bf16.mxu0 %vm474_vm2, %v3188_v51  ;;  %v3981_v51 = vld [vmem:[#allocation7_spill] sm:$0xff] }
  0x6e   : > { %2858 = vmatmul.mubr.msk.bf16.vlgmr.msra.gmra.mxu1 %vm380_vm1, %v1539_v62 }
  0x6f   : > { %2878 = vmatpush3.bf16.msra.mxu1 %v1835_v63  ;;  %2861 = vmatprep.mubr.msk.bf16.mxu1 %vm380_vm1, %v1540_v14 }
  0x70   : > { %2870 = vmatmul.mubr.msk.bf16.vlgmr.msra.gmra.mxu0 %vm474_vm2, %v3212_v60  ;;  %2951 = vmatprep.subr.msk.bf16.mxu1 %vm393_vm0, %v2599_v4  ;;  %v3983_v60 = vld [vmem:[#allocation4_spill] sm:$0xff] }
  0x71   : > { %2873 = vmatprep.mubr.msk.bf16.mxu0 %vm474_vm2, %v3981_v51  ;;  %2888 = vmatpush3.bf16.msra.mxu0 %v2977_v18 }
  0x72   : > { %2889 = vmatprep.subr.bf16.mxu0 %v2978_v43 }
  0x75   : > { %2890 = vmatpush3.bf16.msra.mxu0 %v2978_v43 }
  0x76   : > { %2862 = vmatmul.mubr.msk.bf16.gmra.mxu1 %vm380_vm1, %v1541_v42  ;;  %2909 = vmatprep.subr.bf16.mxu0 %v2979_v26 }
  0x77   : > { %2879 = vmatprep.mubr.msk.bf16.mxu1 %vm380_vm1, %v3983_v60 }
  0x78   : > { %2874 = vmatmul.mubr.msk.bf16.gmra.mxu0 %vm474_vm2, %v1734_v36 }
  0x79   : > { %2891 = vmatprep.mubr.msk.bf16.mxu0 %vm474_vm2, %v3984_v46 }
  0x7e   : > { %2880 = vmatmul.mubr.msk.bf16.vlgmr.msra.gmra.mxu1 %vm380_vm1, %v3985_v3 }
  0x7f   : > { %2900 = vmatpush3.bf16.msra.mxu1 %v2023_v11  ;;  %2883 = vmatprep.mubr.msk.bf16.mxu1 %vm380_vm1, %v3987_v19 }
  0x80   : > { %2892 = vmatmul.mubr.msk.bf16.vlgmr.msra.gmra.mxu0 %vm474_vm2, %v3986_v38  ;;  %2952 = vmatprep.subr.msk.bf16.mxu1 %vm393_vm0, %v2614_v0 }
  0x81   : > { %2895 = vmatprep.mubr.msk.bf16.mxu0 %vm474_vm2, %v3988_v56  ;;  %2910 = vmatpush3.bf16.msra.mxu0 %v2979_v26 }
  0x82   : > { %2911 = vmatprep.subr.bf16.mxu0 %v2980_v54 }
  0x85   : > { %2912 = vmatpush3.bf16.msra.mxu0 %v2980_v54 }
  0x86   : > { %2884 = vmatmul.mubr.msk.bf16.gmra.mxu1 %vm380_vm1, %v1735_v27 }
  0x87   : > { %2901 = vmatprep.mubr.msk.bf16.mxu1 %vm380_vm1, %v3990_v17 }
  0x88   : > { %2896 = vmatmul.mubr.msk.bf16.gmra.mxu0 %vm474_vm2, %v1916_v34 }
  0x89   : > { %2913 = vmatprep.mubr.msk.bf16.mxu0 %vm474_vm2, %v3991_v16 }
  0x8e   : > { %2902 = vmatmul.mubr.msk.bf16.vlgmr.msra.gmra.mxu1 %vm380_vm1, %v3992_v12 }
  0x8f   : > { %2922 = vmatpush3.bf16.msra.mxu1 %v2207_v55  ;;  %2905 = vmatprep.mubr.msk.bf16.mxu1 %vm380_vm1, %v3994_v49 }
  0x90   : > { %2914 = vmatmul.mubr.msk.bf16.vlgmr.msra.gmra.mxu0 %vm474_vm2, %v3993_v24 }
  0x91   : > { %2917 = vmatprep.mubr.msk.bf16.mxu0 %vm474_vm2, %v3995_v13 }
  0x96   : > { %2906 = vmatmul.mubr.msk.bf16.gmra.mxu1 %vm380_vm1, %v1923_v31 }
  0x97   : > { %2923 = vmatprep.mubr.msk.bf16.mxu1 %vm380_vm1, %v3996_v53 }
  0x98   : > { %2918 = vmatmul.mubr.msk.bf16.gmra.mxu0 %vm474_vm2, %v2102_v52 }
  0x9e   : > { %2924 = vmatmul.mubr.msk.bf16.vlgmr.msra.gmra.mxu1 %vm380_vm1, %v3515_v33  ;;  %v2316_v33 = vld [vmem:[%s3942_s6] sm:$0xf] }
  0x9f   : > { %2927 = vmatprep.mubr.msk.bf16.mxu1 %vm380_vm1, %v3563_v20  ;;  %2953 = vmatprep.subr.msk.bf16.mxu0 %vm393_vm0, %v2316_v33  ;;  %v2337_v29 = vsel %vm393_vm0, %v2316_v33, 0 }
  0xa0   : > { %2932 = vmatpush3.bf16.msra.mxu0 %v2337_v29 }
  0xa6   : > { %2928 = vmatmul.mubr.msk.bf16.gmra.mxu1 %vm380_vm1, %v2107_v35 }
  0xd6   : > { %v2741_v32 = vpop.f32.mrf.mxu1 }
  0xd8   : > { %v2737_v37 = vpop.f32.mrf.mxu0  ;;  %v447_v45 = vpop.f32.mrf.mxu1 }
  0xda   : > { %v431_v31 = vpop.f32.mrf.mxu0  ;;  %v2742_v23 = vpop.f32.mrf.mxu1 }
  0xdc   : > { %v2738_v15 = vpop.f32.mrf.mxu0  ;;  %v450_v5 = vpop.f32.mrf.mxu1 }
  0xde   : > { %v434_v6 = vpop.f32.mrf.mxu0  ;;  %v2749_v7 = vpop.f32.mrf.mxu1 }
  0xdf   : > { %v530_v20 = vadd.f32 %v2749_v7, %v2737_v37 }
  0xe0   : > { %v2761_v9 = vpop.f32.mrf.mxu0  ;;  %v521_v30 = vpop.f32.mrf.mxu1 }
  0xe1   : > { %v522_v1 = vadd.f32 %v521_v30, %v431_v31  ;;  %v753_v35 = vadd.f32 %v2761_v9, %v530_v20 }
  0xe2   : > { %v720_v59 = vpop.f32.mrf.mxu0  ;;  %v2750_v40 = vpop.f32.mrf.mxu1 }
  0xe3   : > { %v533_v48 = vadd.f32 %v2750_v40, %v2738_v15  ;;  %v751_v58 = vadd.f32 %v720_v59, %v522_v1 }
  0xe4   : > { %v2762_v2 = vpop.f32.mrf.mxu0  ;;  %v524_v44 = vpop.f32.mrf.mxu1 }
  0xe5   : > { %v525_v10 = vadd.f32 %v524_v44, %v434_v6  ;;  %v754_v28 = vadd.f32 %v2762_v2, %v533_v48 }
  0xe6   : > { %v723_v41 = vpop.f32.mrf.mxu0  ;;  %v2753_v57 = vpop.f32.mrf.mxu1 }
  0xe7   : > { %v546_v22 = vadd.f32 %v2753_v57, %v2741_v32  ;;  %v752_v8 = vadd.f32 %v723_v41, %v525_v10 }
  0xe8   : > { %v2765_v25 = vpop.f32.mrf.mxu0  ;;  %v537_v21 = vpop.f32.mrf.mxu1 }
  0xe9   : > { %v538_v18 = vadd.f32 %v537_v21, %v447_v45  ;;  %v757_v47 = vadd.f32 %v2765_v25, %v546_v22 }
  0xea   : > { %v736_v50 = vpop.f32.mrf.mxu0  ;;  %v2754_v62 = vpop.f32.mrf.mxu1 }
  0xeb   : > { %v549_v63 = vadd.f32 %v2754_v62, %v2742_v23  ;;  %v755_v14 = vadd.f32 %v736_v50, %v538_v18 }
  0xec   : > { %v2766_v43 = vpop.f32.mrf.mxu0  ;;  %v540_v4 = vpop.f32.mrf.mxu1 }
  0xed   : > { %v541_v51 = vadd.f32 %v540_v4, %v450_v5  ;;  %v758_v42 = vadd.f32 %v2766_v43, %v549_v63 }
  0xee   : > { %v739_v26 = vpop.f32.mrf.mxu0  ;;  %v2771_v39 = vpop.f32.mrf.mxu1 }
  0xef   : > { %v756_v36 = vadd.f32 %v739_v26, %v541_v51  ;;  %v843_v60 = vadd.f32 %v2771_v39, %v753_v35 }
  0xf0   : > { %v2783_v46 = vpop.f32.mrf.mxu0  ;;  %v810_v11 = vpop.f32.mrf.mxu1 }
  0xf1   : > { %v841_v3 = vadd.f32 %v810_v11, %v751_v58  ;;  %v1018_v54 = vadd.f32 %v2783_v46, %v843_v60 }
  0xf2   : > { %v985_v0 = vpop.f32.mrf.mxu0  ;;  %v2772_v38 = vpop.f32.mrf.mxu1 }
  0xf3   : > { %v844_v19 = vadd.f32 %v2772_v38, %v754_v28  ;;  %v1016_v56 = vadd.f32 %v985_v0, %v841_v3 }
  0xf4   : > { %v2784_v61 = vpop.f32.mrf.mxu0  ;;  %v813_v27 = vpop.f32.mrf.mxu1 }
  0xf5   : > { %v842_v34 = vadd.f32 %v813_v27, %v752_v8  ;;  %v1019_v17 = vadd.f32 %v2784_v61, %v844_v19 }
  0xf6   : > { %v988_v16 = vpop.f32.mrf.mxu0  ;;  %v2775_v55 = vpop.f32.mrf.mxu1 }
  0xf7   : > { %v847_v12 = vadd.f32 %v2775_v55, %v757_v47  ;;  %v1017_v24 = vadd.f32 %v988_v16, %v842_v34 }
  0xf8   : > { %v2787_v49 = vpop.f32.mrf.mxu0  ;;  %v826_v13 = vpop.f32.mrf.mxu1 }
  0xf9   : > { %v845_v52 = vadd.f32 %v826_v13, %v755_v14  ;;  %v1022_v53 = vadd.f32 %v2787_v49, %v847_v12 }
  0xfa   : > { %v1001_v32 = vpop.f32.mrf.mxu0  ;;  %v2776_v37 = vpop.f32.mrf.mxu1 }
  0xfb   : > { %v848_v45 = vadd.f32 %v2776_v37, %v758_v42  ;;  %v1020_v31 = vadd.f32 %v1001_v32, %v845_v52 }
  0xfc   : > { %v2788_v23 = vpop.f32.mrf.mxu0  ;;  %v829_v15 = vpop.f32.mrf.mxu1 }
  0xfd   : > { %v846_v5 = vadd.f32 %v829_v15, %v756_v36  ;;  %v1023_v6 = vadd.f32 %v2788_v23, %v848_v45 }
  0xfe   : > { %v1004_v33 = vpop.f32.mrf.mxu0  ;;  %v2793_v7 = vpop.f32.mrf.mxu1 }
  0xff   : > { %v1021_v20 = vadd.f32 %v1004_v33, %v846_v5  ;;  %v1108_v9 = vadd.f32 %v2793_v7, %v1018_v54 }
 0x100   : > { %v2805_v30 = vpop.f32.mrf.mxu0  ;;  %v1075_v1 = vpop.f32.mrf.mxu1 }
 0x101   : > { %v1106_v35 = vadd.f32 %v1075_v1, %v1016_v56  ;;  %v1218_v59 = vadd.f32 %v2805_v30, %v1108_v9 }
 0x102   : > { %v1185_v40 = vpop.f32.mrf.mxu0  ;;  %v2794_v48 = vpop.f32.mrf.mxu1 }
 0x103   : > { %v3746_v58 = vadd.f32 %v2794_v48, %v1019_v17  ;;  %v1216_v2 = vadd.f32 %v1185_v40, %v1106_v35 }
 0x104   : > { %v3748_v29 = vpop.f32.mrf.mxu0  ;;  %v1078_v44 = vpop.f32.mrf.mxu1 }
 0x105   : > { %v3750_v10 = vadd.f32 %v1078_v44, %v1017_v24 }
 0x106   : > { %v3752_v28 = vpop.f32.mrf.mxu0  ;;  %v2797_v41 = vpop.f32.mrf.mxu1 }
 0x107   : > { %v1112_v57 = vadd.f32 %v2797_v41, %v1022_v53 }
 0x108   : > { %v2809_v22 = vpop.f32.mrf.mxu0  ;;  %v1091_v8 = vpop.f32.mrf.mxu1 }
 0x109   : > { %v1110_v25 = vadd.f32 %v1091_v8, %v1020_v31  ;;  %v1222_v21 = vadd.f32 %v2809_v22, %v1112_v57 }
 0x10a   : > { %v1201_v18 = vpop.f32.mrf.mxu0  ;;  %v2798_v47 = vpop.f32.mrf.mxu1 }
 0x10b   : > { %v3754_v50 = vadd.f32 %v2798_v47, %v1023_v6  ;;  %v1220_v62 = vadd.f32 %v1201_v18, %v1110_v25 }
 0x10c   : > { %v3756_v63 = vpop.f32.mrf.mxu0  ;;  %v1094_v14 = vpop.f32.mrf.mxu1 }
 0x10d   : > { %v3758_v43 = vadd.f32 %v1094_v14, %v1021_v20 }
 0x10e   : > { %v3760_v4 = vpop.f32.mrf.mxu0  ;;  %v2815_v51 = vpop.f32.mrf.mxu1 }
 0x10f   : > { %v1308_v42 = vadd.f32 %v2815_v51, %v1218_v59 }
 0x110   : > { %v2827_v26 = vpop.f32.mrf.mxu0  ;;  %v1275_v39 = vpop.f32.mrf.mxu1 }
 0x111   : > { %v1306_v36 = vadd.f32 %v1275_v39, %v1216_v2  ;;  %v1219_v39 = vadd.f32 %v3748_v29, %v3746_v58 }
 0x112   : > { %v1397_v60 = vpop.f32.mrf.mxu0  ;;  %v2816_v46 = vpop.f32.mrf.mxu1 }
 0x114   : > { %v3762_v11 = vpop.f32.mrf.mxu0  ;;  %v1278_v3 = vpop.f32.mrf.mxu1 }
 0x116   : > { %v3764_v54 = vpop.f32.mrf.mxu0  ;;  %v2819_v0 = vpop.f32.mrf.mxu1 }
 0x117   : > { %v3766_v38 = vadd.f32 %v2819_v0, %v1222_v21 }
 0x118   : > { %v3768_v19 = vpop.f32.mrf.mxu0  ;;  %v1291_v56 = vpop.f32.mrf.mxu1 }
 0x119   : > { %v3770_v61 = vadd.f32 %v1291_v56, %v1220_v62 }
 0x11a   : > { %v3772_v27 = vpop.f32.mrf.mxu0  ;;  %v3774_v34 = vpop.f32.mrf.mxu1 }
 0x11c   : > { %v3776_v17 = vpop.f32.mrf.mxu0  ;;  %v3778_v16 = vpop.f32.mrf.mxu1 }
 0x11e   : > { %v3780_v55 = vpop.f32.mrf.mxu0  ;;  %v2837_v12 = vpop.f32.mrf.mxu1 }
 0x120   : > { %v2849_v24 = vpop.f32.mrf.mxu0  ;;  %v1487_v49 = vpop.f32.mrf.mxu1 }
 0x122   : > { %v1605_v13 = vpop.f32.mrf.mxu0  ;;  %v2838_v52 = vpop.f32.mrf.mxu1 }
 0x124   : > { %v3782_v53 = vpop.f32.mrf.mxu0  ;;  %v1490_v32 = vpop.f32.mrf.mxu1 }
 0x126   : > { %v3784_v37 = vpop.f32.mrf.mxu0  ;;  %v3786_v45 = vpop.f32.mrf.mxu1 }
 0x128   : > { %v3788_v31 = vpop.f32.mrf.mxu0  ;;  %v3790_v23 = vpop.f32.mrf.mxu1 }
 0x12a   : > { %v3792_v15 = vpop.f32.mrf.mxu0  ;;  %v3794_v5 = vpop.f32.mrf.mxu1 }
 0x12c   : > { %v3796_v6 = vpop.f32.mrf.mxu0  ;;  %v3798_v33 = vpop.f32.mrf.mxu1 }
 0x12e   : > { %v3800_v7 = vpop.f32.mrf.mxu0  ;;  %v2859_v20 = vpop.f32.mrf.mxu1 }
 0x12f   : > { %3997 = vst [vmem:[#allocation7_spill] sm:$0xff] %v3800_v7 }
 0x130   : > { %v2871_v9 = vpop.f32.mrf.mxu0  ;;  %v1695_v30 = vpop.f32.mrf.mxu1 }
 0x132   : > { %v3802_v1 = vpop.f32.mrf.mxu0  ;;  %v2860_v35 = vpop.f32.mrf.mxu1 }
 0x134   : > { %v3804_v59 = vpop.f32.mrf.mxu0  ;;  %v3806_v40 = vpop.f32.mrf.mxu1 }
 0x136   : > { %v3808_v48 = vpop.f32.mrf.mxu0  ;;  %v3810_v2 = vpop.f32.mrf.mxu1 }
 0x138   : > { %v3812_v44 = vpop.f32.mrf.mxu0  ;;  %v3814_v41 = vpop.f32.mrf.mxu1 }
 0x139   : > { %3998 = vst [vmem:[#allocation15_spill] sm:$0xff] %v3812_v44 }
 0x13a   : > { %v3816_v57 = vpop.f32.mrf.mxu0  ;;  %v3818_v22 = vpop.f32.mrf.mxu1 }
 0x13b   : > { %3999 = vst [vmem:[#allocation4_spill] sm:$0xff] %v3816_v57  ;;  %4000 = vst [vmem:[#allocation5_spill] sm:$0xff] %v3818_v22  ;;  %v1428_v22 = vadd.f32 %v1397_v60, %v1306_v36 }
 0x13c   : > { %v3820_v8 = vpop.f32.mrf.mxu0  ;;  %v3822_v25 = vpop.f32.mrf.mxu1 }
 0x13d   : > { %4001 = vst [vmem:[#allocation2_spill] sm:$0xff] %v3820_v8  ;;  %4002 = vst [vmem:[#allocation6_spill] sm:$0xff] %v3822_v25  ;;  %v1217_v8 = vadd.f32 %v3752_v28, %v3750_v10  ;;  %v1430_v25 = vadd.f32 %v2827_v26, %v1308_v42  ;;  %v1518_v29 = vadd.f32 %v1487_v49, %v1428_v22 }
 0x13e   : > { %v3824_v21 = vpop.f32.mrf.mxu0  ;;  %v2881_v18 = vpop.f32.mrf.mxu1  ;;  %v1223_v10 = vadd.f32 %v3756_v63, %v3754_v50 }
 0x13f   : > { %4003 = vst [vmem:[#allocation3_spill] sm:$0xff] %v3824_v21  ;;  %v1309_v21 = vadd.f32 %v2816_v46, %v1219_v39  ;;  %v1520_v7 = vadd.f32 %v2837_v12, %v1430_v25  ;;  %v1221_v46 = vadd.f32 %v3760_v4, %v3758_v43  ;;  %v1434_v12 = vadd.f32 %v3768_v19, %v3766_v38 }
 0x140   : > { %v3826_v47 = vpop.f32.mrf.mxu0  ;;  %v1871_v62 = vpop.f32.mrf.mxu1  ;;  %v1636_v49 = vadd.f32 %v1605_v13, %v1518_v29  ;;  %v4010_v29 = vld [vmem:[#allocation7_spill] sm:$0xff] }
 0x141   : > { %4004 = vst [vmem:[#allocation8_spill] sm:$0xff] %v3826_v47  ;;  %v1431_v58 = vadd.f32 %v3762_v11, %v1309_v21  ;;  %v1638_v26 = vadd.f32 %v2849_v24, %v1520_v7  ;;  %v1311_v24 = vadd.f32 %v3778_v16, %v1221_v46  ;;  %v1524_v4 = vadd.f32 %v3786_v45, %v1434_v12 }
 0x142   : > { %v3828_v14 = vpop.f32.mrf.mxu0  ;;  %v3830_v51 = vpop.f32.mrf.mxu1 }
 0x143   : > { %4005 = vst [vmem:[#allocation17_spill] sm:$0xff] %v3828_v14  ;;  %4006 = vst [vmem:[#allocation9_spill] sm:$0xff] %v3830_v51  ;;  %v1307_v14 = vadd.f32 %v1278_v3, %v1217_v8  ;;  %v1521_v36 = vadd.f32 %v2838_v52, %v1431_v58  ;;  %v1313_v3 = vadd.f32 %v3774_v34, %v1223_v10  ;;  %v4011_v10 = vld [vmem:[#allocation5_spill] sm:$0xff] }
 0x144   : > { %v3834_v0 = vpop.f32.mrf.mxu0  ;;  %v3836_v56 = vpop.f32.mrf.mxu1  ;;  %v1728_v63 = vadd.f32 %v2859_v20, %v1638_v26  ;;  %v1726_v34 = vadd.f32 %v1695_v30, %v1636_v49 }
 0x145   : > { %4007 = vst [vmem:[#allocation10_spill] sm:$0xff] %v3834_v0  ;;  %v1429_v42 = vadd.f32 %v3764_v54, %v1307_v14  ;;  %v1432_v54 = vadd.f32 %v3772_v27, %v3770_v61  ;;  %v1639_v43 = vadd.f32 %v3782_v53, %v1521_v36  ;;  %v1435_v8 = vadd.f32 %v3776_v17, %v1313_v3  ;;  %v4012_v36 = vld [vmem:[#allocation15_spill] sm:$0xff]  ;;  %v4014_v3 = vld [vmem:[#allocation4_spill] sm:$0xff] }
 0x146   : > { %v3840_v57 = vpop.f32.mrf.mxu0  ;;  %v3842_v44 = vpop.f32.mrf.mxu1  ;;  %v1433_v61 = vadd.f32 %v3780_v55, %v1311_v24  ;;  %v1642_v53 = vadd.f32 %v3788_v31, %v1524_v4  ;;  %v1821_v45 = vadd.f32 %v3802_v1, %v1726_v34  ;;  %v4017_v4 = vld [vmem:[#allocation2_spill] sm:$0xff] }
 0x147   : > { %v1519_v50 = vadd.f32 %v1490_v32, %v1429_v42  ;;  %v1522_v38 = vadd.f32 %v3790_v23, %v1432_v54  ;;  %v1823_v32 = vadd.f32 %v2871_v9, %v1728_v63  ;;  %v1729_v20 = vadd.f32 %v2860_v35, %v1639_v43 }
 0x148   : > { %v3844_v51 = vpop.f32.mrf.mxu0  ;;  %v3846_v47 = vpop.f32.mrf.mxu1  ;;  %v1525_v27 = vadd.f32 %v3794_v5, %v1435_v8  ;;  %v1523_v21 = vadd.f32 %v3798_v33, %v1433_v61  ;;  %v1732_v55 = vadd.f32 %v3810_v2, %v1642_v53  ;;  %v1902_v14 = vadd.f32 %v1871_v62, %v1821_v45 }
 0x149   : > { %v1637_v13 = vadd.f32 %v3784_v37, %v1519_v50  ;;  %v1904_v17 = vadd.f32 %v2881_v18, %v1823_v32  ;;  %v1640_v23 = vadd.f32 %v3792_v15, %v1522_v38  ;;  %v1824_v35 = vadd.f32 %v3804_v59, %v1729_v20  ;;  %v4018_v20 = vld [vmem:[#allocation3_spill] sm:$0xff] }
 0x14a   : > { %v3849_v0 = vpop.f32.mrf.mxu0  ;;  %v3853_v28 = vpop.f32.mrf.mxu1  ;;  %v1643_v5 = vadd.f32 %v3796_v6, %v1525_v27  ;;  %v4009_v58 = vld [vmem:[#allocation9_spill] sm:$0xff]  ;;  %v1641_v33 = vadd.f32 %v4010_v29, %v1523_v21  ;;  %v1827_v2 = vadd.f32 %v4012_v36, %v1732_v55 }
 0x14b   : > { %v1727_v30 = vadd.f32 %v3806_v40, %v1637_v13  ;;  %v1730_v31 = vadd.f32 %v3814_v41, %v1640_v23  ;;  %v4008_v40 = vld [vmem:[#allocation8_spill] sm:$0xff]  ;;  %v1905_v15 = vadd.f32 %v4009_v58, %v1824_v35  ;;  %v4013_v62 = vld [vmem:[#allocation17_spill] sm:$0xff] }
 0x14c   : > { %v3856_v60 = vpop.f32.mrf.mxu0  ;;  %v3861_v11 = vpop.f32.mrf.mxu1  ;;  %v2011_v18 = vadd.f32 %v4008_v40, %v1904_v17  ;;  %v1733_v42 = vadd.f32 %v4011_v10, %v1643_v5  ;;  %v2009_v46 = vadd.f32 %v4013_v62, %v1902_v14  ;;  %v4016_v63 = vld [vmem:[#allocation10_spill] sm:$0xff]  ;;  %v1908_v24 = vadd.f32 %v3842_v44, %v1827_v2 }
 0x14d   : > { %v1822_v1 = vadd.f32 %v3808_v48, %v1727_v30  ;;  %v1825_v12 = vadd.f32 %v4014_v3, %v1730_v31  ;;  %v4015_v48 = vld [vmem:[#allocation6_spill] sm:$0xff]  ;;  %v2012_v54 = vadd.f32 %v4016_v63, %v1905_v15 }
 0x14e   : > { %v3865_v22 = vpop.f32.mrf.mxu0  ;;  %v2903_v52 = vpop.f32.mrf.mxu1  ;;  %v1731_v49 = vadd.f32 %v4015_v48, %v1641_v33  ;;  %v1828_v34 = vadd.f32 %v4017_v4, %v1733_v42  ;;  %v2015_v45 = vadd.f32 %v3844_v51, %v1908_v24  ;;  %v2620_v31 = vld [vmem:[%s3941_s5] ss:$0 sm:$0xff] }
 0x14f   : > { %v1903_v6 = vadd.f32 %v3836_v56, %v1822_v1  ;;  %v2092_v41 = vadd.f32 %v2903_v52, %v2011_v18  ;;  %v1906_v8 = vadd.f32 %v3846_v47, %v1825_v12 }
 0x150   : > { %v2915_v7 = vpop.f32.mrf.mxu0  ;;  %v2059_v19 = vpop.f32.mrf.mxu1  ;;  %v1826_v61 = vadd.f32 %v4018_v20, %v1731_v49  ;;  %v1909_v27 = vadd.f32 %v3853_v28, %v1828_v34 }
 0x151   : > { %v2090_v43 = vadd.f32 %v2059_v19, %v2009_v46  ;;  %v2010_v32 = vadd.f32 %v3840_v57, %v1903_v6  ;;  %v2195_v56 = vadd.f32 %v2915_v7, %v2092_v41  ;;  %v2013_v17 = vadd.f32 %v3849_v0, %v1906_v8  ;;  %v2619_v57 = vld [vmem:[%s3940_s4] ss:$0 sm:$0xff] }
 0x152   : > { %v2162_v25 = vpop.f32.mrf.mxu0  ;;  %v2904_v16 = vpop.f32.mrf.mxu1  ;;  %v1907_v47 = vadd.f32 %v3861_v11, %v1826_v61  ;;  %v2016_v28 = vadd.f32 %v3856_v60, %v1909_v27 }
 0x153   : > { %v2093_v52 = vadd.f32 %v2904_v16, %v2012_v54  ;;  %v2193_v30 = vadd.f32 %v2162_v25, %v2090_v43 }
 0x154   : > { %v2062_v37 = vpop.f32.mrf.mxu1  ;;  %v2916_v9 = vpop.f32.mrf.mxu0  ;;  %v2014_v0 = vadd.f32 %v3865_v22, %v1907_v47 }
 0x155   : > { %v2091_v44 = vadd.f32 %v2062_v37, %v2010_v32  ;;  %v2196_v16 = vadd.f32 %v2916_v9, %v2093_v52  ;;  %v2621_v32 = vld [vmem:[%s3943_s7] ss:$0 sm:$0xff] }
 0x156   : > { %v2907_v39 = vpop.f32.mrf.mxu1  ;;  %v2165_v26 = vpop.f32.mrf.mxu0 }
 0x157   : > { %v2096_v21 = vadd.f32 %v2907_v39, %v2015_v45  ;;  %v2194_v25 = vadd.f32 %v2165_v26, %v2091_v44 }
 0x158   : > { %v2075_v59 = vpop.f32.mrf.mxu1  ;;  %v2919_v38 = vpop.f32.mrf.mxu0 }
 0x159   : > { %v2094_v55 = vadd.f32 %v2075_v59, %v2013_v17  ;;  %v2199_v40 = vadd.f32 %v2919_v38, %v2096_v21 }
 0x15a   : > { %v2908_v50 = vpop.f32.mrf.mxu1  ;;  %v2178_v23 = vpop.f32.mrf.mxu0 }
 0x15b   : > { %v2097_v5 = vadd.f32 %v2908_v50, %v2016_v28  ;;  %v2197_v58 = vadd.f32 %v2178_v23, %v2094_v55 }
 0x15c   : > { %v2078_v13 = vpop.f32.mrf.mxu1  ;;  %v2920_v11 = vpop.f32.mrf.mxu0 }
 0x15d   : > { %v2095_v60 = vadd.f32 %v2078_v13, %v2014_v0  ;;  %v2200_v26 = vadd.f32 %v2920_v11, %v2097_v5 }
 0x15e   : > { %v2925_v53 = vpop.f32.mrf.mxu1  ;;  %v2181_v22 = vpop.f32.mrf.mxu0 }
 0x15f   : > { %v2276_v19 = vadd.f32 %v2925_v53, %v2195_v56  ;;  %v2198_v41 = vadd.f32 %v2181_v22, %v2095_v60 }
 0x160   : > { %v2243_v7 = vpop.f32.mrf.mxu1 }
 0x161   : > { %v2274_v35 = vadd.f32 %v2243_v7, %v2193_v30  ;;  %v2291_v37 = vmul.f32 %v2619_v57, %v2276_v19 }
 0x162   : > { %v2926_v51 = vpop.f32.mrf.mxu1 }
 0x163   : > { %v2277_v14 = vadd.f32 %v2926_v51, %v2196_v16  ;;  %v2289_v9 = vmul.f32 %v2619_v57, %v2274_v35  ;;  %v2306_v29 = vadd.f32 %v2620_v31, %v2291_v37 }
 0x164   : > { %v2246_v1 = vpop.f32.mrf.mxu1 }
 0x165   : > { %v2292_v39 = vmul.f32 %v2619_v57, %v2277_v14  ;;  %v2275_v18 = vadd.f32 %v2246_v1, %v2194_v25  ;;  %v2304_v36 = vadd.f32 %v2620_v31, %v2289_v9 }
 0x166   : > { %v2929_v15 = vpop.f32.mrf.mxu1 }
 0x167   : > { %v2307_v33 = vadd.f32 %v2620_v31, %v2292_v39  ;;  %v2290_v10 = vmul.f32 %v2619_v57, %v2275_v18  ;;  %v2280_v42 = vadd.f32 %v2929_v15, %v2199_v40 }
 0x168   : > { %v2259_v59 = vpop.f32.mrf.mxu1 }
 0x169   : > { %v2313_v2 = vpack.c.bf16 %v2307_v33, %v2306_v29  ;;  %v2305_v62 = vadd.f32 %v2620_v31, %v2290_v10  ;;  %v2278_v46 = vadd.f32 %v2259_v59, %v2197_v58  ;;  %v2295_v12 = vmul.f32 %v2619_v57, %v2280_v42 }
 0x16a   : > { %v2930_v6 = vpop.f32.mrf.mxu1 }
 0x16b   : > { %v2312_v3 = vpack.c.bf16 %v2305_v62, %v2304_v36  ;;  %v2281_v48 = vadd.f32 %v2930_v6, %v2200_v26  ;;  %v2293_v50 = vmul.f32 %v2619_v57, %v2278_v46  ;;  %v2310_v24 = vadd.f32 %v2620_v31, %v2295_v12 }
 0x16c   : > { %v2262_v49 = vpop.f32.mrf.mxu1 }
 0x16d   : > { %v2296_v63 = vmul.f32 %v2619_v57, %v2281_v48  ;;  %v2279_v54 = vadd.f32 %v2262_v49, %v2198_v41  ;;  %2933 = vmatprep.mubr.msk.bf16.mxu0 %vm380_vm1, %v2312_v3  ;;  %v2308_v34 = vadd.f32 %v2620_v31, %v2293_v50 }
 0x16e   : > { %2934 = vmatmul.mubr.msk.bf16.vlgmr.msra.gmra.mxu0 %vm380_vm1, %v2313_v2 }
 0x16f   : > { %v2311_v43 = vadd.f32 %v2620_v31, %v2296_v63  ;;  %v2294_v4 = vmul.f32 %v2619_v57, %v2279_v54 }
 0x171   : > { %v2315_v8 = vpack.c.bf16 %v2311_v43, %v2310_v24  ;;  %v2309_v38 = vadd.f32 %v2620_v31, %v2294_v4 }
 0x173   : > { %v2314_v13 = vpack.c.bf16 %v2309_v38, %v2308_v34 }
 0x175   : > { %2937 = vmatprep.mubr.msk.bf16.mxu0 %vm380_vm1, %v2314_v13 }
 0x176   : > { %2938 = vmatmul.mubr.msk.bf16.gmra.mxu0 %vm380_vm1, %v2315_v8 }
 0x22e   : > { %v2935_v56 = vpop.f32.mrf.mxu0 }
 0x22f   : > { %v2382_v52 = vadd.f32 %v2935_v56, %v2621_v32 }
 0x230   : > { %v2373_v20 = vpop.f32.mrf.mxu0 }
 0x231   : > { %2407 = vst.msk [vmem:[%s325_s21 + $0x10] sm:$0xff] %vm2404_vm5, %v2382_v52  ;;  %v2374_v61 = vadd.f32 %v2621_v32, %v2373_v20 }
 0x232   : > { %v2936_v27 = vpop.f32.mrf.mxu0 }
 0x233   : > { %2405 = vst.msk [vmem:[%s325_s21] sm:$0xff] %vm2404_vm5, %v2374_v61  ;;  %v2385_v53 = vadd.f32 %v2936_v27, %v2621_v32 }
 0x234   : > { %v2376_v45 = vpop.f32.mrf.mxu0 }
 0x235   : > { %2408 = vst.msk [vmem:[%s325_s21 + $0x18] sm:$0xff] %vm2404_vm5, %v2385_v53  ;;  %v2377_v30 = vadd.f32 %v2621_v32, %v2376_v45 }
 0x236   : > { %v2939_v44 = vpop.f32.mrf.mxu0 }
 0x237   : > { %2406 = vst.msk [vmem:[%s325_s21 + $0x8] sm:$0xff] %vm2404_vm5, %v2377_v30  ;;  %v2398_v19 = vadd.f32 %v2939_v44, %v2621_v32 }
 0x238   : > { %v2389_v17 = vpop.f32.mrf.mxu0 }
 0x239   : > { %2411 = vst.msk [vmem:[%s325_s21 + $0x30] sm:$0xff] %vm2404_vm5, %v2398_v19  ;;  %v2390_v47 = vadd.f32 %v2621_v32, %v2389_v17 }
 0x23a   : > { %v2940_v23 = vpop.f32.mrf.mxu0 }
 0x23b   : > { %2409 = vst.msk [vmem:[%s325_s21 + $0x20] sm:$0xff] %vm2404_vm5, %v2390_v47  ;;  %v2401_v57 = vadd.f32 %v2940_v23, %v2621_v32 }
 0x23c   : > { %v2392_v7 = vpop.f32.mrf.mxu0 }
 0x23d   : > { %2412 = vst.msk [vmem:[%s325_s21 + $0x38] sm:$0xff] %vm2404_vm5, %v2401_v57  ;;  %v2393_v16 = vadd.f32 %v2621_v32, %v2392_v7 }
 0x23f   : > { %2410 = vst.msk [vmem:[%s325_s21 + $0x28] sm:$0xff] %vm2404_vm5, %v2393_v16 }
 0x240 PF: > { %s18_s27 = sadd.s32 1, %s2987_s27  }
 0x241   : > { %p15_p4 = scmp.ge.s32.totalorder %s18_s27, 4  }
 0x243   :  { %17 = sbr.rel (!%p15_p4) target bundleno = 1 (0x1), region = 101 }

// kernel: rcca_forward.11
= control target key start
LH: loop header
LB: loop body
LE: loop exit
PB: predicated region body
PF: predicated region fallthrough
CT: control target
= control target key end

     0   :  { %8 = vsyncpa [#allocation3], 0  ;;  %s1740_s0 = inlined_call_operand.vmem [shape: f32[2,5,8,8], index: 0, kind: input, shape index: {}]   ;;  %s1741_s1 = inlined_call_operand.vmem [shape: f32[64,8], index: 1, kind: input, shape index: {}]   ;;  %s1742_s2 = inlined_call_operand.vmem [shape: f32[8,64], index: 2, kind: input, shape index: {}]   ;;  %s1743_s3 = inlined_call_operand.hbm [shape: f32[2,5,64,64], index: 3, kind: output, shape index: {}]  }
   0x1   :  { %10 = vsyncpa [#allocation3 + $0x1], 0  ;;  %s1454_s12 = smov 0   ;;  %s1456_s13 = smov 0  }
   0x2   :  { %s1458_s14 = smov 0   ;;  %s1460_s15 = smov 0  }
   0x3 LB: > { %s1475_s16 = sadd.s32 4294967295, %s1429_s15   ;;  %s1081_s17 = sadd.s32 4294967294, %s1429_s15   ;;  %s1429_s15 = sphi %s1460_s15, %s1749_s15   ;;  %s1425_s14 = sphi %s1458_s14, %s1748_s14   ;;  %s1421_s13 = sphi %s1456_s13, %s1747_s13   ;;  %s1417_s12 = sphi %s1454_s12, %s1746_s12  }
   0x4   : > { %s1479_s18 = sadd.s32 1, %s1429_s15   ;;  %s91_s19 = sadd.s32 1, %s1425_s14 }
   0x5   : > { %s88_s20 = ssub.s32 %s1429_s15, %s1479_s18  ;;  %p101_p0 = scmp.ne.s32.totalorder %s1425_s14, %s1421_s13 }
   0x6   : > { %p89_p1 = scmp.eq.s32.totalorder %s88_s20, 0  ;;  %p102_p2 = scmp.eq.s32.totalorder %s1475_s16, 1 }
   0x7   : > { %p107_p3 = scmp.ne.s32.totalorder %s1421_s13, %s1417_s12  ;;  %p108_p4 = scmp.eq.s32.totalorder %s1081_s17, 1 }
   0x8   : > { %s1490_s21 = scalar_select %p89_p1, %s1425_s14, %s91_s19  }
   0x9   : > { %p1492_p5 = por %p102_p2, %p101_p0  ;;  %p1496_p6 = por %p108_p4, %p107_p3 }
   0xa   : > { %p1084_p7 = scmp.ge.s32.totalorder %s1429_s15, 1  ;;  %p140_p8 = scmp.lt.s32.totalorder %s1429_s15, 3 }
   0xc   : > { %p141_p9 = pnand %p1084_p7, %p140_p8 }
   0xd   : > { %p164_p10 = scmp.lt.s32.totalorder (!%p141_p9), %s1475_s16, 1  ;;  %s1431_s11 = smov (!%p141_p9), [#allocation2]  }
   0xe   : > { %144 = sbr.rel (%p141_p9) target bundleno = 518 (0x206), region = 32  ;;  %s1373_s17 = sshll.u32 (!%p141_p9), %s1431_s11, 4  ;;  %s1374_s17 = int_to_ptr.vmem [resolvable:$false] %s1373_s17 }
   0xf   : > { %s1375_s19 = scalar_lea.vmem (!%p141_p9), %s1374_s17, 10240 }
  0x13   : > { %v170_v0 = vld [vmem:[%s1741_s1] sm:$0xff]  ;;  %v171_v1 = vld [vmem:[%s1741_s1 + $0x8] sm:$0xff]  ;;  %vm186_vm0 = vcmask 64512   ;;  %s165_s28 = scalar_select %p164_p10, %s1475_s16, 1  ;;  %v172_v3 = vld [vmem:[%s1741_s1 + $0x10] sm:$0xff]  ;;  %vm199_vm1 = vcmask 1043456  }
  0x14   : > { %v178_v2 = vpack.c.bf16 %v171_v1, %v170_v0  ;;  %v173_v5 = vld [vmem:[%s1741_s1 + $0x18] sm:$0xff]  ;;  %v174_v9 = vld [vmem:[%s1741_s1 + $0x20] sm:$0xff]  ;;  %v175_v10 = vld [vmem:[%s1741_s1 + $0x28] sm:$0xff]  ;;  %vm352_vm2 = vcmask 523264  }
  0x15   : > { %s1326_s29 = smul.u32 40, %s165_s28  ;;  %v179_v13 = vpack.c.bf16 %v173_v5, %v172_v3  ;;  %v180_v14 = vpack.c.bf16 %v175_v10, %v174_v9  ;;  %v176_v17 = vld [vmem:[%s1741_s1 + $0x30] sm:$0xff]  ;;  %v177_v18 = vld [vmem:[%s1741_s1 + $0x38] sm:$0xff]  ;;  %v182_v27 = vld [vmem:[%s1742_s2] sm:$0xff] }
  0x16   : > { %1217 = vmatprep.mubr.msk.bf16.mxu0 %vm186_vm0, %v178_v2  ;;  %v181_v19 = vpack.c.bf16 %v177_v18, %v176_v17  ;;  %v183_v28 = vpack.c.bf16 %v182_v27, %v182_v27 }
  0x17   : > { %s1514_s5 = scalar_lea.vmem %s1740_s0, %s1326_s29  ;;  %s161_s29 = sand.u32 1, %s1421_s13  }
  0x18   : > { %v184_v4 = vld [vmem:[%s1514_s5] sm:$0xff]  ;;  %v1094_v6 = vld [vmem:[%s1514_s5 + $0x8] sm:$0xff]  ;;  %v1111_v11 = vld [vmem:[%s1514_s5 + $0x10] sm:$0xff]  ;;  %1316 = vmatprep.subr.msk.bf16.mxu1 %vm199_vm1, %v183_v28  ;;  %v1572_v29 = vsel %vm199_vm1, %v183_v28, 0  ;;  %s1325_s30 = smul.u32 320, %s161_s29 }
  0x19   : > { %v185_v7 = vpack.c.bf16 %v184_v4, %v184_v4  ;;  %v363_v8 = vpack.c.bf16 %v1094_v6, %v1094_v6  ;;  %v524_v16 = vpack.c.bf16 %v1111_v11, %v1111_v11  ;;  %v1128_v20 = vld [vmem:[%s1514_s5 + $0x18] sm:$0xff]  ;;  %v1145_v23 = vld [vmem:[%s1514_s5 + $0x20] sm:$0xff]  ;;  %1226 = vmatpush3.bf16.msra.mxu1 %v1572_v29  ;;  %s1327_s5 = smul.u32 5120, %s1475_s16  ;;  %s1700_s16 = scalar_lea.sflag [#allocation3], %s161_s29 }
  0x1a   : > { %v685_v22 = vpack.c.bf16 %v1128_v20, %v1128_v20  ;;  %v846_v25 = vpack.c.bf16 %v1145_v23, %v1145_v23  ;;  %1318 = vmatprep.subr.msk.bf16.mxu1 %vm199_vm1, %v183_v28  ;;  %s1607_s4 = scalar_lea.vmem [#allocation2], %s1325_s30 }
  0x1b   : > { %1315 = vmatprep.subr.msk.bf16.mxu0 %vm199_vm1, %v185_v7  ;;  %v201_v12 = vsel %vm199_vm1, %v185_v7, 0  ;;  %v365_v15 = vsel %vm199_vm1, %v363_v8, 0  ;;  %v526_v21 = vsel %vm199_vm1, %v524_v16, 0  ;;  %s1019_s6 = sshll.u32 %s1607_s4, 4  ;;  %s1690_s9 = scalar_lea.hbm %s1743_s3, %s1327_s5  ;;  %s1692_s6 = int_to_ptr.vmem [resolvable:$true] %s1019_s6 }
  0x1c   : > { %1216 = vmatpush3.bf16.msra.mxu0 %v201_v12  ;;  %v687_v24 = vsel %vm199_vm1, %v685_v22, 0  ;;  %v848_v26 = vsel %vm199_vm1, %v846_v25, 0  ;;  %s1369_s10 = scalar_lea.vmem %s1692_s6, 5120  ;;  %p1376_p0 = scmp.lt.s32.totalorder %s1692_s6, %s1374_s17 }
  0x1d   : > { %1317 = vmatprep.subr.msk.bf16.mxu0 %vm199_vm1, %v363_v8  ;;  %p1370_p11 = scmp.ne.s32.totalorder %s1692_s6, %s1369_s10  ;;  %p1377_p1 = scmp.lt.s32.totalorder %s1375_s19, %s1369_s10 }
  0x1f   : > { %1218 = vmatmul.mubr.msk.bf16.vlgmr.msra.gmra.mxu0 %vm186_vm0, %v179_v13  ;;  %p1371_p12 = pnand %p1370_p11, %p1492_p5  ;;  %p1378_p2 = por %p1377_p1, %p1376_p0 }
  0x20   : > { %1236 = vmatpush3.bf16.msra.mxu0 %v365_v15  ;;  %1221 = vmatprep.mubr.msk.bf16.mxu0 %vm186_vm0, %v180_v14 }
  0x21   : > { %1319 = vmatprep.subr.msk.bf16.mxu0 %vm199_vm1, %v524_v16  ;;  %p1372_p13 = pneg %p1371_p12 }
  0x23   : > { %p1379_p3 = pnand %p1378_p2, %p1372_p13 }
  0x27   : > { %1222 = vmatmul.mubr.msk.bf16.gmra.mxu0 %vm186_vm0, %v181_v19 }
  0x28   : > { %1237 = vmatprep.mubr.msk.bf16.mxu0 %vm186_vm0, %v178_v2 }
  0x2f   : > { %1238 = vmatmul.mubr.msk.bf16.vlgmr.msra.gmra.mxu0 %vm186_vm0, %v179_v13 }
  0x30   : > { %1256 = vmatpush3.bf16.msra.mxu0 %v526_v21  ;;  %1241 = vmatprep.mubr.msk.bf16.mxu0 %vm186_vm0, %v180_v14 }
  0x31   : > { %1321 = vmatprep.subr.msk.bf16.mxu0 %vm199_vm1, %v685_v22 }
  0x37   : > { %1242 = vmatmul.mubr.msk.bf16.gmra.mxu0 %vm186_vm0, %v181_v19 }
  0x38   : > { %1257 = vmatprep.mubr.msk.bf16.mxu0 %vm186_vm0, %v178_v2 }
  0x3f   : > { %1258 = vmatmul.mubr.msk.bf16.vlgmr.msra.gmra.mxu0 %vm186_vm0, %v179_v13 }
  0x40   : > { %1276 = vmatpush3.bf16.msra.mxu0 %v687_v24  ;;  %1261 = vmatprep.mubr.msk.bf16.mxu0 %vm186_vm0, %v180_v14 }
  0x41   : > { %1323 = vmatprep.subr.msk.bf16.mxu0 %vm199_vm1, %v846_v25 }
  0x47   : > { %1262 = vmatmul.mubr.msk.bf16.gmra.mxu0 %vm186_vm0, %v181_v19 }
  0x48   : > { %1277 = vmatprep.mubr.msk.bf16.mxu0 %vm186_vm0, %v178_v2 }
  0x4f   : > { %1278 = vmatmul.mubr.msk.bf16.vlgmr.msra.gmra.mxu0 %vm186_vm0, %v179_v13 }
  0x50   : > { %1296 = vmatpush3.bf16.msra.mxu0 %v848_v26  ;;  %1281 = vmatprep.mubr.msk.bf16.mxu0 %vm186_vm0, %v180_v14 }
  0x57   : > { %1282 = vmatmul.mubr.msk.bf16.gmra.mxu0 %vm186_vm0, %v181_v19 }
  0x58   : > { %1297 = vmatprep.mubr.msk.bf16.mxu0 %vm186_vm0, %v178_v2 }
  0x5f   : > { %1298 = vmatmul.mubr.msk.bf16.vlgmr.msra.gmra.mxu0 %vm186_vm0, %v179_v13 }
  0x60   : > { %1301 = vmatprep.mubr.msk.bf16.mxu0 %vm186_vm0, %v180_v14 }
  0x67   : > { %1302 = vmatmul.mubr.msk.bf16.gmra.mxu0 %vm186_vm0, %v181_v19 }
  0xdf   : > { %v1219_v30 = vpop.f32.mrf.mxu0 }
  0xe1   : > { %v237_v31 = vpop.f32.mrf.mxu0 }
  0xe3   : > { %v1220_v32 = vpop.f32.mrf.mxu0 }
  0xe4   : > { %v269_v35 = vpack.c.bf16 %v1220_v32, %v1219_v30 }
  0xe5   : > { %v240_v33 = vpop.f32.mrf.mxu0 }
  0xe6   : > { %v268_v34 = vpack.c.bf16 %v240_v33, %v237_v31 }
  0xe7   : > { %v1223_v36 = vpop.f32.mrf.mxu0 }
  0xe8   : > { %1227 = vmatprep.mubr.msk.bf16.mxu1 %vm186_vm0, %v268_v34 }
  0xe9   : > { %v253_v37 = vpop.f32.mrf.mxu0  ;;  %1228 = vmatmul.mubr.msk.bf16.vlgmr.msra.gmra.mxu1 %vm186_vm0, %v269_v35 }
  0xea   : > { %1246 = vmatpush3.bf16.msra.mxu1 %v1572_v29 }
  0xeb   : > { %v1224_v38 = vpop.f32.mrf.mxu0  ;;  %1320 = vmatprep.subr.msk.bf16.mxu1 %vm199_vm1, %v183_v28 }
  0xec   : > { %v271_v41 = vpack.c.bf16 %v1224_v38, %v1223_v36 }
  0xed   : > { %v256_v39 = vpop.f32.mrf.mxu0 }
  0xee   : > { %v270_v40 = vpack.c.bf16 %v256_v39, %v253_v37 }
  0xef   : > { %v1239_v42 = vpop.f32.mrf.mxu0 }
  0xf0   : > { %1231 = vmatprep.mubr.msk.bf16.mxu1 %vm186_vm0, %v270_v40 }
  0xf1   : > { %1232 = vmatmul.mubr.msk.bf16.gmra.mxu1 %vm186_vm0, %v271_v41  ;;  %v401_v43 = vpop.f32.mrf.mxu0 }
  0xf3   : > { %v1240_v44 = vpop.f32.mrf.mxu0 }
  0xf4   : > { %v433_v47 = vpack.c.bf16 %v1240_v44, %v1239_v42 }
  0xf5   : > { %v404_v45 = vpop.f32.mrf.mxu0 }
  0xf6   : > { %v432_v46 = vpack.c.bf16 %v404_v45, %v401_v43 }
  0xf7   : > { %v1243_v48 = vpop.f32.mrf.mxu0 }
  0xf8   : > { %1247 = vmatprep.mubr.msk.bf16.mxu1 %vm186_vm0, %v432_v46 }
  0xf9   : > { %v417_v49 = vpop.f32.mrf.mxu0  ;;  %1248 = vmatmul.mubr.msk.bf16.vlgmr.msra.gmra.mxu1 %vm186_vm0, %v433_v47 }
  0xfa   : > { %1266 = vmatpush3.bf16.msra.mxu1 %v1572_v29 }
  0xfb   : > { %v1244_v50 = vpop.f32.mrf.mxu0  ;;  %1322 = vmatprep.subr.msk.bf16.mxu1 %vm199_vm1, %v183_v28 }
  0xfc   : > { %v435_v53 = vpack.c.bf16 %v1244_v50, %v1243_v48 }
  0xfd   : > { %v420_v51 = vpop.f32.mrf.mxu0 }
  0xfe   : > { %v434_v52 = vpack.c.bf16 %v420_v51, %v417_v49 }
  0xff   : > { %v1259_v54 = vpop.f32.mrf.mxu0 }
 0x100   : > { %1251 = vmatprep.mubr.msk.bf16.mxu1 %vm186_vm0, %v434_v52 }
 0x101   : > { %1252 = vmatmul.mubr.msk.bf16.gmra.mxu1 %vm186_vm0, %v435_v53  ;;  %v562_v55 = vpop.f32.mrf.mxu0 }
 0x103   : > { %v1260_v56 = vpop.f32.mrf.mxu0 }
 0x104   : > { %v594_v59 = vpack.c.bf16 %v1260_v56, %v1259_v54 }
 0x105   : > { %v565_v57 = vpop.f32.mrf.mxu0 }
 0x106   : > { %v593_v58 = vpack.c.bf16 %v565_v57, %v562_v55 }
 0x107   : > { %v1263_v60 = vpop.f32.mrf.mxu0 }
 0x108   : > { %1267 = vmatprep.mubr.msk.bf16.mxu1 %vm186_vm0, %v593_v58 }
 0x109   : > { %v578_v61 = vpop.f32.mrf.mxu0  ;;  %1268 = vmatmul.mubr.msk.bf16.vlgmr.msra.gmra.mxu1 %vm186_vm0, %v594_v59 }
 0x10a   : > { %1286 = vmatpush3.bf16.msra.mxu1 %v1572_v29 }
 0x10b   : > { %v1264_v62 = vpop.f32.mrf.mxu0  ;;  %1324 = vmatprep.subr.msk.bf16.mxu1 %vm199_vm1, %v183_v28 }
 0x10c   : > { %v596_v1 = vpack.c.bf16 %v1264_v62, %v1263_v60 }
 0x10d   : > { %v581_v63 = vpop.f32.mrf.mxu0 }
 0x10e   : > { %v595_v0 = vpack.c.bf16 %v581_v63, %v578_v61 }
 0x10f   : > { %v1279_v2 = vpop.f32.mrf.mxu0 }
 0x110   : > { %1271 = vmatprep.mubr.msk.bf16.mxu1 %vm186_vm0, %v595_v0 }
 0x111   : > { %1272 = vmatmul.mubr.msk.bf16.gmra.mxu1 %vm186_vm0, %v596_v1  ;;  %v723_v3 = vpop.f32.mrf.mxu0 }
 0x113   : > { %v1280_v4 = vpop.f32.mrf.mxu0 }
 0x114   : > { %v755_v7 = vpack.c.bf16 %v1280_v4, %v1279_v2 }
 0x115   : > { %v726_v5 = vpop.f32.mrf.mxu0 }
 0x116   : > { %v754_v6 = vpack.c.bf16 %v726_v5, %v723_v3 }
 0x117   : > { %v1283_v8 = vpop.f32.mrf.mxu0 }
 0x118   : > { %1287 = vmatprep.mubr.msk.bf16.mxu1 %vm186_vm0, %v754_v6 }
 0x119   : > { %v739_v9 = vpop.f32.mrf.mxu0  ;;  %1288 = vmatmul.mubr.msk.bf16.vlgmr.msra.gmra.mxu1 %vm186_vm0, %v755_v7 }
 0x11a   : > { %1306 = vmatpush3.bf16.msra.mxu1 %v1572_v29 }
 0x11b   : > { %v1284_v10 = vpop.f32.mrf.mxu0 }
 0x11c   : > { %v757_v13 = vpack.c.bf16 %v1284_v10, %v1283_v8 }
 0x11d   : > { %v742_v11 = vpop.f32.mrf.mxu0 }
 0x11e   : > { %v756_v12 = vpack.c.bf16 %v742_v11, %v739_v9 }
 0x11f   : > { %v1299_v14 = vpop.f32.mrf.mxu0 }
 0x120   : > { %1291 = vmatprep.mubr.msk.bf16.mxu1 %vm186_vm0, %v756_v12 }
 0x121   : > { %1292 = vmatmul.mubr.msk.bf16.gmra.mxu1 %vm186_vm0, %v757_v13  ;;  %v884_v15 = vpop.f32.mrf.mxu0 }
 0x123   : > { %v1300_v16 = vpop.f32.mrf.mxu0 }
 0x124   : > { %v916_v19 = vpack.c.bf16 %v1300_v16, %v1299_v14 }
 0x125   : > { %v887_v17 = vpop.f32.mrf.mxu0 }
 0x126   : > { %v915_v18 = vpack.c.bf16 %v887_v17, %v884_v15 }
 0x127   : > { %v1303_v20 = vpop.f32.mrf.mxu0 }
 0x128   : > { %1307 = vmatprep.mubr.msk.bf16.mxu1 %vm186_vm0, %v915_v18 }
 0x129   : > { %v900_v21 = vpop.f32.mrf.mxu0  ;;  %1308 = vmatmul.mubr.msk.bf16.vlgmr.msra.gmra.mxu1 %vm186_vm0, %v916_v19 }
 0x12b   : > { %v1304_v22 = vpop.f32.mrf.mxu0 }
 0x12c   : > { %v918_v25 = vpack.c.bf16 %v1304_v22, %v1303_v20 }
 0x12d   : > { %v903_v23 = vpop.f32.mrf.mxu0 }
 0x12e   : > { %v917_v24 = vpack.c.bf16 %v903_v23, %v900_v21 }
 0x130   : > { %1311 = vmatprep.mubr.msk.bf16.mxu1 %vm186_vm0, %v917_v24 }
 0x131   : > { %1312 = vmatmul.mubr.msk.bf16.gmra.mxu1 %vm186_vm0, %v918_v25 }
 0x1a9   : > { %v1229_v26 = vpop.f32.mrf.mxu1 }
 0x1aa   : > { %355 = vst.msk [vmem:[%s1607_s4 + $0x10] sm:$0xff] %vm352_vm2, %v1229_v26 }
 0x1ab   : > { %v321_v27 = vpop.f32.mrf.mxu1 }
 0x1ac   : > { %353 = vst.msk [vmem:[%s1607_s4] sm:$0xff] %vm352_vm2, %v321_v27 }
 0x1ad   : > { %v1230_v28 = vpop.f32.mrf.mxu1 }
 0x1ae   : > { %356 = vst.msk [vmem:[%s1607_s4 + $0x18] sm:$0xff] %vm352_vm2, %v1230_v28 }
 0x1af   : > { %v324_v29 = vpop.f32.mrf.mxu1 }
 0x1b0   : > { %354 = vst.msk [vmem:[%s1607_s4 + $0x8] sm:$0xff] %vm352_vm2, %v324_v29 }
 0x1b1   : > { %v1233_v30 = vpop.f32.mrf.mxu1 }
 0x1b2   : > { %359 = vst.msk [vmem:[%s1607_s4 + $0x30] sm:$0xff] %vm352_vm2, %v1233_v30 }
 0x1b3   : > { %v337_v31 = vpop.f32.mrf.mxu1 }
 0x1b4   : > { %357 = vst.msk [vmem:[%s1607_s4 + $0x20] sm:$0xff] %vm352_vm2, %v337_v31 }
 0x1b5   : > { %v1234_v32 = vpop.f32.mrf.mxu1 }
 0x1b6   : > { %360 = vst.msk [vmem:[%s1607_s4 + $0x38] sm:$0xff] %vm352_vm2, %v1234_v32 }
 0x1b7   : > { %v340_v33 = vpop.f32.mrf.mxu1 }
 0x1b8   : > { %358 = vst.msk [vmem:[%s1607_s4 + $0x28] sm:$0xff] %vm352_vm2, %v340_v33 }
 0x1b9   : > { %v1249_v34 = vpop.f32.mrf.mxu1 }
 0x1ba   : > { %1105 = vst.msk [vmem:[%s1607_s4 + $0x50] sm:$0xff] %vm352_vm2, %v1249_v34 }
 0x1bb   : > { %v482_v35 = vpop.f32.mrf.mxu1 }
 0x1bc   : > { %1103 = vst.msk [vmem:[%s1607_s4 + $0x40] sm:$0xff] %vm352_vm2, %v482_v35 }
 0x1bd   : > { %v1250_v36 = vpop.f32.mrf.mxu1 }
 0x1be   : > { %1106 = vst.msk [vmem:[%s1607_s4 + $0x58] sm:$0xff] %vm352_vm2, %v1250_v36 }
 0x1bf   : > { %v485_v37 = vpop.f32.mrf.mxu1 }
 0x1c0   : > { %1104 = vst.msk [vmem:[%s1607_s4 + $0x48] sm:$0xff] %vm352_vm2, %v485_v37 }
 0x1c1   : > { %v1253_v38 = vpop.f32.mrf.mxu1 }
 0x1c2   : > { %1109 = vst.msk [vmem:[%s1607_s4 + $0x70] sm:$0xff] %vm352_vm2, %v1253_v38 }
 0x1c3   : > { %v498_v39 = vpop.f32.mrf.mxu1 }
 0x1c4   : > { %1107 = vst.msk [vmem:[%s1607_s4 + $0x60] sm:$0xff] %vm352_vm2, %v498_v39 }
 0x1c5   : > { %v1254_v40 = vpop.f32.mrf.mxu1 }
 0x1c6   : > { %1110 = vst.msk [vmem:[%s1607_s4 + $0x78] sm:$0xff] %vm352_vm2, %v1254_v40 }
 0x1c7   : > { %v501_v41 = vpop.f32.mrf.mxu1 }
 0x1c8   : > { %1108 = vst.msk [vmem:[%s1607_s4 + $0x68] sm:$0xff] %vm352_vm2, %v501_v41 }
 0x1c9   : > { %v1269_v42 = vpop.f32.mrf.mxu1 }
 0x1ca   : > { %1122 = vst.msk [vmem:[%s1607_s4 + $0x90] sm:$0xff] %vm352_vm2, %v1269_v42 }
 0x1cb   : > { %v643_v43 = vpop.f32.mrf.mxu1 }
 0x1cc   : > { %1120 = vst.msk [vmem:[%s1607_s4 + $0x80] sm:$0xff] %vm352_vm2, %v643_v43 }
 0x1cd   : > { %v1270_v44 = vpop.f32.mrf.mxu1 }
 0x1ce   : > { %1123 = vst.msk [vmem:[%s1607_s4 + $0x98] sm:$0xff] %vm352_vm2, %v1270_v44 }
 0x1cf   : > { %v646_v45 = vpop.f32.mrf.mxu1 }
 0x1d0   : > { %1121 = vst.msk [vmem:[%s1607_s4 + $0x88] sm:$0xff] %vm352_vm2, %v646_v45 }
 0x1d1   : > { %v1273_v46 = vpop.f32.mrf.mxu1 }
 0x1d2   : > { %1126 = vst.msk [vmem:[%s1607_s4 + $0xb0] sm:$0xff] %vm352_vm2, %v1273_v46 }
 0x1d3   : > { %v659_v47 = vpop.f32.mrf.mxu1 }
 0x1d4   : > { %1124 = vst.msk [vmem:[%s1607_s4 + $0xa0] sm:$0xff] %vm352_vm2, %v659_v47 }
 0x1d5   : > { %v1274_v48 = vpop.f32.mrf.mxu1 }
 0x1d6   : > { %1127 = vst.msk [vmem:[%s1607_s4 + $0xb8] sm:$0xff] %vm352_vm2, %v1274_v48 }
 0x1d7   : > { %v662_v49 = vpop.f32.mrf.mxu1 }
 0x1d8   : > { %1125 = vst.msk [vmem:[%s1607_s4 + $0xa8] sm:$0xff] %vm352_vm2, %v662_v49 }
 0x1d9   : > { %v1289_v50 = vpop.f32.mrf.mxu1 }
 0x1da   : > { %1139 = vst.msk [vmem:[%s1607_s4 + $0xd0] sm:$0xff] %vm352_vm2, %v1289_v50 }
 0x1db   : > { %v804_v51 = vpop.f32.mrf.mxu1 }
 0x1dc   : > { %1137 = vst.msk [vmem:[%s1607_s4 + $0xc0] sm:$0xff] %vm352_vm2, %v804_v51 }
 0x1dd   : > { %v1290_v52 = vpop.f32.mrf.mxu1 }
 0x1de   : > { %1140 = vst.msk [vmem:[%s1607_s4 + $0xd8] sm:$0xff] %vm352_vm2, %v1290_v52 }
 0x1df   : > { %v807_v53 = vpop.f32.mrf.mxu1 }
 0x1e0   : > { %1138 = vst.msk [vmem:[%s1607_s4 + $0xc8] sm:$0xff] %vm352_vm2, %v807_v53 }
 0x1e1   : > { %v1293_v54 = vpop.f32.mrf.mxu1 }
 0x1e2   : > { %1143 = vst.msk [vmem:[%s1607_s4 + $0xf0] sm:$0xff] %vm352_vm2, %v1293_v54 }
 0x1e3   : > { %v820_v55 = vpop.f32.mrf.mxu1 }
 0x1e4   : > { %1141 = vst.msk [vmem:[%s1607_s4 + $0xe0] sm:$0xff] %vm352_vm2, %v820_v55 }
 0x1e5   : > { %v1294_v56 = vpop.f32.mrf.mxu1 }
 0x1e6   : > { %1144 = vst.msk [vmem:[%s1607_s4 + $0xf8] sm:$0xff] %vm352_vm2, %v1294_v56 }
 0x1e7   : > { %v823_v57 = vpop.f32.mrf.mxu1 }
 0x1e8   : > { %1142 = vst.msk [vmem:[%s1607_s4 + $0xe8] sm:$0xff] %vm352_vm2, %v823_v57 }
 0x1e9   : > { %v1309_v58 = vpop.f32.mrf.mxu1 }
 0x1ea   : > { %1156 = vst.msk [vmem:[%s1607_s4 + $0x110] sm:$0xff] %vm352_vm2, %v1309_v58 }
 0x1eb   : > { %v965_v59 = vpop.f32.mrf.mxu1 }
 0x1ec   : > { %1154 = vst.msk [vmem:[%s1607_s4 + $0x100] sm:$0xff] %vm352_vm2, %v965_v59 }
 0x1ed   : > { %v1310_v60 = vpop.f32.mrf.mxu1 }
 0x1ee   : > { %1157 = vst.msk [vmem:[%s1607_s4 + $0x118] sm:$0xff] %vm352_vm2, %v1310_v60 }
 0x1ef   : > { %v968_v61 = vpop.f32.mrf.mxu1 }
 0x1f0   : > { %1155 = vst.msk [vmem:[%s1607_s4 + $0x108] sm:$0xff] %vm352_vm2, %v968_v61 }
 0x1f1   : > { %v1313_v62 = vpop.f32.mrf.mxu1 }
 0x1f2   : > { %1160 = vst.msk [vmem:[%s1607_s4 + $0x130] sm:$0xff] %vm352_vm2, %v1313_v62 }
 0x1f3   : > { %v981_v63 = vpop.f32.mrf.mxu1 }
 0x1f4   : > { %1158 = vst.msk [vmem:[%s1607_s4 + $0x120] sm:$0xff] %vm352_vm2, %v981_v63 }
 0x1f5   : > { %v1314_v0 = vpop.f32.mrf.mxu1 }
 0x1f6   : > { %1161 = vst.msk [vmem:[%s1607_s4 + $0x138] sm:$0xff] %vm352_vm2, %v1314_v0 }
 0x1f7   : > { %v984_v1 = vpop.f32.mrf.mxu1 }
 0x1f8   : > { %1159 = vst.msk [vmem:[%s1607_s4 + $0x128] sm:$0xff] %vm352_vm2, %v984_v1 }
 0x1f9   : > { %1382 = shalt.err (!%p1379_p3)
}
 0x1fa   : > { %s1383_s20 = scalar_lea.hbm %s1690_s9, 5120  ;;  %s1387_s26 = scalar_lea.hbm %s1743_s3, 10240 }
 0x1fb   : > { %p1384_p4 = scmp.ne.s32.totalorder %s1690_s9, %s1383_s20  ;;  %p1388_p9 = scmp.lt.s32.totalorder %s1690_s9, %s1743_s3 }
 0x1fc   : > { %p1389_p10 = scmp.lt.s32.totalorder %s1387_s26, %s1383_s20 }
 0x1fd   : > { %p1385_p7 = pnand %p1384_p4, %p1492_p5 }
 0x1fe   : > { %p1390_p11 = por %p1389_p10, %p1388_p9 }
 0x1ff   : > { %p1386_p8 = pneg %p1385_p7 }
 0x201   : > { %p1391_p12 = pnand %p1390_p11, %p1386_p8 }
 0x203   : > { %1394 = shalt.err (!%p1391_p12)
}
 0x204   : > { %s1432_s29 = smov 128   ;;  %s1433_s30 = smov 8  }
 0x205   : > { %1328 = dma.vmem_to_hbm [thread:$0]  (%p1492_p5), %s1692_s6, 5120, %s1690_s9, %s1700_s16, %s1432_s29, %s1432_s29, %s1433_s30  }
 0x206 PF: > { %p1334_p13 = scmp.ge.s32.totalorder %s1429_s15, 2  ;;  %s1034_s4 = sand.u32 1, %s1417_s12  }
 0x207   : > { %s1035_s5 = scalar_lea.sflag [#allocation3], %s1034_s4 }
 0x208   : > { %p1331_p0 = pnand %p1334_p13, %p1496_p6 }
 0x20a   : > { %p1332_p1 = pneg %p1331_p0 }
 0x20c   : > { %1412 = dma.done.wait (%p1332_p1), %s1035_s5, 5120  }
 0x20d   : > { %1414 = vsyncadd (%p1332_p1), %s1035_s5, 4294962176  ;;  %p13_p2 = scmp.ge.s32.totalorder %s1479_s18, 4   ;;  %s1746_s12 = smov %s1421_s13 }
 0x20e   : > { %s1747_s13 = smov %s1425_s14  ;;  %s1748_s14 = smov %s1490_s21 }
 0x20f   : > { %s1749_s15 = smov %s1479_s18  ;;  %15 = sbr.rel (!%p13_p2) target bundleno = 3 (0x3), region = 75 }
 0x214   :  { %1040 = vsyncpa [#allocation3], 1 }
 0x215   :  { %1042 = vsyncpa [#allocation3 + $0x1], 1 }

</bundles_post_ra>
